<compile_context>
chip_gen: v6e
topology: v6e:2x2x1
jax: 0.10.0
libtpu: 0.0.40
codegen_flags: <defaults>
</compile_context>

<pallas_src>
import jax
import jax.numpy as jnp
from jax.experimental import pallas as pl
from jax.experimental.pallas import tpu as pltpu

LATENT_DIM = 20
LAT_PAD = 128          # latent head padded to one full 128-lane vreg width
IN_DIM = 784
HID_DIM = 400
HID_PAD = 512          # hidden dim zero-padded to a multiple of 128 lanes


def vae_kernel(x_ref, eps_ref,
               w1_ref, b1_ref,
               wml_ref, bml_ref,
               w3_ref, b3_ref,
               w4_ref, b4_ref,
               recon_ref, ml_ref):
    # x arrives already in bf16 (converted once in the wrapper, halves HBM DMA).
    x = x_ref[...]

    # Encoder: fc1 -> relu   (hidden padded 400 -> 512; padded cols/bias are zero)
    h = jnp.dot(x, w1_ref[...], preferred_element_type=jnp.float32) + b1_ref[...]
    h = jnp.maximum(h, 0.0)

    # fc2_mean | fc2_logvar fused into one (HID_PAD, 2*LAT_PAD) matmul; each head
    # sits in its own 128-lane half so the split below is a clean vreg boundary.
    ml = jnp.dot(h.astype(jnp.bfloat16), wml_ref[...],
                 preferred_element_type=jnp.float32) + bml_ref[...]
    mean = ml[:, :LAT_PAD]       # cols 0..19 real, 20..127 zero
    logvar = ml[:, LAT_PAD:]     # cols 0..19 real, 20..127 zero

    # Reparameterize: z = mean + eps * exp(0.5 * logvar)
    # (eps padded cols are zero, so z padded cols are exactly zero.)
    z = mean + eps_ref[...] * jnp.exp(0.5 * logvar)

    # Decoder: fc3 -> relu -> fc4 -> sigmoid
    h2 = jnp.dot(z.astype(jnp.bfloat16), w3_ref[...],
                 preferred_element_type=jnp.float32) + b3_ref[...]
    h2 = jnp.maximum(h2, 0.0)
    logits = jnp.dot(h2.astype(jnp.bfloat16), w4_ref[...],
                     preferred_element_type=jnp.float32) + b4_ref[...]

    # sigmoid(x) = 0.5 * tanh(0.5 * x) + 0.5  -> a single EUP op over the widest
    # tensor in the kernel; the mul/add go to spare VALU slots.
    recon = 0.5 * jnp.tanh(0.5 * logits) + 0.5

    recon_ref[...] = recon.astype(recon_ref.dtype)   # bf16 store, lane-dense
    ml_ref[...] = ml                                  # (tb, 256) lane-dense f32


def _round_up(x, m):
    return (x + m - 1) // m * m


def _device_kind():
    try:
        return jax.devices()[0].device_kind.lower()
    except Exception:
        return ""


def _pick_tile(batch):
    kind = _device_kind()
    # v5e MXU is 4x128x128: M=128 already fills it. v6e/v7x MXU is 256-wide.
    base = 128 if "v5" in kind else 256
    tb = min(base, _round_up(batch, 8))
    if "v7" in kind:
        # v7x has 2 TensorCores per chip; keep >= 2 grid steps so
        # dimension_semantics=("parallel",) can shard batch tiles across them.
        while tb > 8 and pl.cdiv(batch, tb) < 2:
            tb = _round_up(tb // 2, 8)
    return tb


def init_linear(key, in_dim, out_dim):
    # PyTorch nn.Linear default init: U(-1/sqrt(in), 1/sqrt(in)).
    kw, kb = jax.random.split(key)
    bound = 1.0 / (in_dim ** 0.5)
    w = jax.random.uniform(kw, (in_dim, out_dim), jnp.float32, -bound, bound)
    b = jax.random.uniform(kb, (1, out_dim), jnp.float32, -bound, bound)
    return w, b


def make_params(key):
    k1, k2, k3, k4, k5 = jax.random.split(key, 5)
    pad_h = HID_PAD - HID_DIM
    pad_l = LAT_PAD - LATENT_DIM

    # fc1: 784 -> 400, padded to 784 -> 512 (zero cols / zero bias tail).
    w1, b1 = init_linear(k1, IN_DIM, HID_DIM)
    w1 = jnp.pad(w1, ((0, 0), (0, pad_h)))
    b1 = jnp.pad(b1, ((0, 0), (0, pad_h)))

    # fc2_mean / fc2_logvar fused: (512, 256); mean head in lanes 0..127,
    # logvar head in lanes 128..255, each zero-padded from 20 -> 128 cols.
    wm, bm = init_linear(k2, HID_DIM, LATENT_DIM)
    wlv, blv = init_linear(k3, HID_DIM, LATENT_DIM)
    wml = jnp.concatenate([jnp.pad(wm,  ((0, 0), (0, pad_l))),
                           jnp.pad(wlv, ((0, 0), (0, pad_l)))], axis=1)
    wml = jnp.pad(wml, ((0, pad_h), (0, 0)))
    bml = jnp.concatenate([jnp.pad(bm,  ((0, 0), (0, pad_l))),
                           jnp.pad(blv, ((0, 0), (0, pad_l)))], axis=1)

    # fc3: 20 -> 400, padded to 128 -> 512 (zero rows/cols contribute nothing).
    w3, b3 = init_linear(k4, LATENT_DIM, HID_DIM)
    w3 = jnp.pad(w3, ((0, pad_l), (0, pad_h)))
    b3 = jnp.pad(b3, ((0, 0), (0, pad_h)))

    # fc4: 400 -> 784, rows padded to 512 (padded rows are zero).
    w4, b4 = init_linear(k5, HID_DIM, IN_DIM)
    w4 = jnp.pad(w4, ((0, pad_h), (0, 0)))

    bf16 = lambda w: w.astype(jnp.bfloat16)   # weights bf16 (MXU-native); biases f32
    return (bf16(w1), b1, bf16(wml), bml, bf16(w3), b3, bf16(w4), b4)


def vae_forward(x, eps, params, tile_b=None):
    B = x.shape[0]
    # bf16 input halves x HBM traffic and removes the in-kernel convert.
    x = x.astype(jnp.bfloat16)
    # eps padded to the 128-lane latent width with zeros (keeps z padded cols 0).
    eps = jnp.pad(eps.astype(jnp.float32),
                  ((0, 0), (0, LAT_PAD - eps.shape[1])))

    tb = _pick_tile(B) if tile_b is None else min(tile_b, _round_up(B, 8))
    Bp = _round_up(B, tb)
    if Bp != B:
        x = jnp.pad(x, ((0, Bp - B), (0, 0)))
        eps = jnp.pad(eps, ((0, Bp - B), (0, 0)))

    def batch_spec(cols):
        return pl.BlockSpec((tb, cols), lambda i: (i, 0))

    def resident_spec(arr):
        # Same block index on every grid step -> weights DMA'd once, stay in VMEM.
        return pl.BlockSpec(arr.shape, lambda i: (0, 0))

    flops = 2 * Bp * (IN_DIM * HID_PAD + HID_PAD * 2 * LAT_PAD
                      + LAT_PAD * HID_PAD + HID_PAD * IN_DIM)
    transcendentals = Bp * (IN_DIM + LAT_PAD)          # tanh over 784 + exp over 128
    bytes_accessed = (
        Bp * IN_DIM * 2 + Bp * LAT_PAD * 4                     # x (bf16), eps (f32)
        + sum(int(p.size) * p.dtype.itemsize for p in params)  # resident weights
        + Bp * IN_DIM * 2 + Bp * 2 * LAT_PAD * 4               # recon (bf16), ml (f32)
    )

    recon, ml = pl.pallas_call(
        vae_kernel,
        out_shape=(
            jax.ShapeDtypeStruct((Bp, IN_DIM), jnp.bfloat16),      # reconstruction
            jax.ShapeDtypeStruct((Bp, 2 * LAT_PAD), jnp.float32),  # mean | logvar
        ),
        grid=(Bp // tb,),
        in_specs=[batch_spec(IN_DIM), batch_spec(LAT_PAD)]
                 + [resident_spec(p) for p in params],
        out_specs=(batch_spec(IN_DIM), batch_spec(2 * LAT_PAD)),
        compiler_params=pltpu.CompilerParams(
            dimension_semantics=("parallel",)),   # shard batch tiles across TCs (v7x)
        cost_estimate=pl.CostEstimate(
            flops=flops, transcendentals=transcendentals,
            bytes_accessed=bytes_accessed),
    )(x, eps, *params)

    recon = recon[:B].astype(jnp.float32)
    mean = ml[:B, :LATENT_DIM]
    logvar = ml[:B, LAT_PAD:LAT_PAD + LATENT_DIM]
    return recon, mean, logvar


if __name__ == "__main__":
    key = jax.random.PRNGKey(0)
    kx, keps, kparams = jax.random.split(key, 3)

    B = 256  # two or more batch tiles on v7x, one full 256-row tile on v6e
    x = jax.random.uniform(kx, (B, IN_DIM), jnp.float32)          # pixel-like inputs [0,1)
    eps = jax.random.normal(keps, (B, LATENT_DIM), jnp.float32)   # eps ~ N(0,1)
    params = make_params(kparams)

    recon, mean, logvar = jax.block_until_ready(
        jax.jit(vae_forward)(x, eps, params)
    )

    # Pure-JAX reference with identical bf16 weights / f32 accumulation.
    w1, b1, wml, bml, w3, b3, w4, b4 = params
    f32 = jnp.float32
    xb = x.astype(jnp.bfloat16)
    h = jnp.maximum(jnp.dot(xb, w1, preferred_element_type=f32) + b1, 0.0)
    ml_r = jnp.dot(h.astype(jnp.bfloat16), wml, preferred_element_type=f32) + bml
    mean_r = ml_r[:, :LATENT_DIM]
    logvar_r = ml_r[:, LAT_PAD:LAT_PAD + LATENT_DIM]
    eps_p = jnp.pad(eps, ((0, 0), (0, LAT_PAD - LATENT_DIM)))
    z = ml_r[:, :LAT_PAD] + eps_p * jnp.exp(0.5 * ml_r[:, LAT_PAD:])
    h2 = jnp.maximum(jnp.dot(z.astype(jnp.bfloat16), w3,
                             preferred_element_type=f32) + b3, 0.0)
    logits = jnp.dot(h2.astype(jnp.bfloat16), w4, preferred_element_type=f32) + b4
    recon_r = jax.nn.sigmoid(logits)

    assert jnp.allclose(mean, mean_r, atol=1e-2, rtol=1e-2)
    assert jnp.allclose(logvar, logvar_r, atol=1e-2, rtol=1e-2)
    assert jnp.allclose(recon, recon_r, atol=1e-2, rtol=1e-2)

    print("KERNEL_OK")
</pallas_src>

<mosaic_0001>
module attributes {stable_mosaic.version = 11 : i64} {
  func.func @vae_kernel(%arg0: i32, %arg1: memref<256x784xbf16, #tpu.memory_space<vmem>>, %arg2: memref<256x128xf32, #tpu.memory_space<vmem>>, %arg3: memref<784x512xbf16, #tpu.memory_space<vmem>>, %arg4: memref<1x512xf32, #tpu.memory_space<vmem>>, %arg5: memref<512x256xbf16, #tpu.memory_space<vmem>>, %arg6: memref<1x256xf32, #tpu.memory_space<vmem>>, %arg7: memref<128x512xbf16, #tpu.memory_space<vmem>>, %arg8: memref<1x512xf32, #tpu.memory_space<vmem>>, %arg9: memref<512x784xbf16, #tpu.memory_space<vmem>>, %arg10: memref<1x784xf32, #tpu.memory_space<vmem>>, %arg11: memref<256x784xbf16, #tpu.memory_space<vmem>>, %arg12: memref<256x256xf32, #tpu.memory_space<vmem>>) attributes {dimension_semantics = [#tpu.dimension_semantics<parallel>], iteration_bounds = array<i64: 1>, scalar_prefetch = 0 : i64, scratch_operands = 0 : i64, tpu.core_type = #tpu.core_type<tc>, window_params = [{transform_indices = @transform_0, window_bounds = array<i64: 256, 784>}, {transform_indices = @transform_1, window_bounds = array<i64: 256, 128>}, {pipeline_mode = #tpu.pipeline_mode<synchronous>, transform_indices = @transform_2, window_bounds = array<i64: 784, 512>}, {pipeline_mode = #tpu.pipeline_mode<synchronous>, transform_indices = @transform_3, window_bounds = array<i64: 1, 512>}, {pipeline_mode = #tpu.pipeline_mode<synchronous>, transform_indices = @transform_4, window_bounds = array<i64: 512, 256>}, {pipeline_mode = #tpu.pipeline_mode<synchronous>, transform_indices = @transform_5, window_bounds = array<i64: 1, 256>}, {pipeline_mode = #tpu.pipeline_mode<synchronous>, transform_indices = @transform_6, window_bounds = array<i64: 128, 512>}, {pipeline_mode = #tpu.pipeline_mode<synchronous>, transform_indices = @transform_7, window_bounds = array<i64: 1, 512>}, {pipeline_mode = #tpu.pipeline_mode<synchronous>, transform_indices = @transform_8, window_bounds = array<i64: 512, 784>}, {pipeline_mode = #tpu.pipeline_mode<synchronous>, transform_indices = @transform_9, window_bounds = array<i64: 1, 784>}, {transform_indices = @transform_10, window_bounds = array<i64: 256, 784>}, {transform_indices = @transform_11, window_bounds = array<i64: 256, 256>}]} {
    %c0 = arith.constant 0 : index
    %c0_0 = arith.constant 0 : index
    %0 = vector.load %arg1[%c0, %c0_0] : memref<256x784xbf16, #tpu.memory_space<vmem>>, vector<256x784xbf16>
    %c0_1 = arith.constant 0 : index
    %c0_2 = arith.constant 0 : index
    %1 = vector.load %arg3[%c0_1, %c0_2] : memref<784x512xbf16, #tpu.memory_space<vmem>>, vector<784x512xbf16>
    %cst = arith.constant dense<0.000000e+00> : vector<256x512xf32>
    %2 = tpu.matmul %0, %1, %cst {dimension_numbers = #tpu.dot_dimension_numbers<[1], [0], [0], [1], [0, 0, 1, 1], [], []>} : vector<256x784xbf16>, vector<784x512xbf16>, vector<256x512xf32> -> vector<256x512xf32>
    %c0_3 = arith.constant 0 : index
    %c0_4 = arith.constant 0 : index
    %3 = vector.load %arg4[%c0_3, %c0_4] : memref<1x512xf32, #tpu.memory_space<vmem>>, vector<1x512xf32>
    %4 = vector.broadcast %3 : vector<1x512xf32> to vector<256x512xf32>
    %5 = arith.addf %2, %4 : vector<256x512xf32>
    %cst_5 = arith.constant 0.000000e+00 : f32
    %6 = vector.broadcast %cst_5 : f32 to vector<256x512xf32>
    %7 = arith.maximumf %5, %6 : vector<256x512xf32>
    %8 = arith.truncf %7 : vector<256x512xf32> to vector<256x512xbf16>
    %c0_6 = arith.constant 0 : index
    %c0_7 = arith.constant 0 : index
    %9 = vector.load %arg5[%c0_6, %c0_7] : memref<512x256xbf16, #tpu.memory_space<vmem>>, vector<512x256xbf16>
    %cst_8 = arith.constant dense<0.000000e+00> : vector<256x256xf32>
    %10 = tpu.matmul %8, %9, %cst_8 {dimension_numbers = #tpu.dot_dimension_numbers<[1], [0], [0], [1], [0, 0, 1, 1], [], []>} : vector<256x512xbf16>, vector<512x256xbf16>, vector<256x256xf32> -> vector<256x256xf32>
    %c0_9 = arith.constant 0 : index
    %c0_10 = arith.constant 0 : index
    %11 = vector.load %arg6[%c0_9, %c0_10] : memref<1x256xf32, #tpu.memory_space<vmem>>, vector<1x256xf32>
    %12 = vector.broadcast %11 : vector<1x256xf32> to vector<256x256xf32>
    %13 = arith.addf %10, %12 : vector<256x256xf32>
    %14 = vector.extract_strided_slice %13 {offsets = [0, 0], sizes = [256, 128], strides = [1, 1]} : vector<256x256xf32> to vector<256x128xf32>
    %15 = vector.extract_strided_slice %13 {offsets = [0, 128], sizes = [256, 128], strides = [1, 1]} : vector<256x256xf32> to vector<256x128xf32>
    %c0_11 = arith.constant 0 : index
    %c0_12 = arith.constant 0 : index
    %16 = vector.load %arg2[%c0_11, %c0_12] : memref<256x128xf32, #tpu.memory_space<vmem>>, vector<256x128xf32>
    %cst_13 = arith.constant 5.000000e-01 : f32
    %17 = vector.broadcast %cst_13 : f32 to vector<256x128xf32>
    %18 = arith.mulf %17, %15 : vector<256x128xf32>
    %19 = math.exp %18 : vector<256x128xf32>
    %20 = arith.mulf %16, %19 : vector<256x128xf32>
    %21 = arith.addf %14, %20 : vector<256x128xf32>
    %22 = arith.truncf %21 : vector<256x128xf32> to vector<256x128xbf16>
    %c0_14 = arith.constant 0 : index
    %c0_15 = arith.constant 0 : index
    %23 = vector.load %arg7[%c0_14, %c0_15] : memref<128x512xbf16, #tpu.memory_space<vmem>>, vector<128x512xbf16>
    %cst_16 = arith.constant dense<0.000000e+00> : vector<256x512xf32>
    %24 = tpu.matmul %22, %23, %cst_16 {dimension_numbers = #tpu.dot_dimension_numbers<[1], [0], [0], [1], [0, 0, 1, 1], [], []>} : vector<256x128xbf16>, vector<128x512xbf16>, vector<256x512xf32> -> vector<256x512xf32>
    %c0_17 = arith.constant 0 : index
    %c0_18 = arith.constant 0 : index
    %25 = vector.load %arg8[%c0_17, %c0_18] : memref<1x512xf32, #tpu.memory_space<vmem>>, vector<1x512xf32>
    %26 = vector.broadcast %25 : vector<1x512xf32> to vector<256x512xf32>
    %27 = arith.addf %24, %26 : vector<256x512xf32>
    %cst_19 = arith.constant 0.000000e+00 : f32
    %28 = vector.broadcast %cst_19 : f32 to vector<256x512xf32>
    %29 = arith.maximumf %27, %28 : vector<256x512xf32>
    %30 = arith.truncf %29 : vector<256x512xf32> to vector<256x512xbf16>
    %c0_20 = arith.constant 0 : index
    %c0_21 = arith.constant 0 : index
    %31 = vector.load %arg9[%c0_20, %c0_21] : memref<512x784xbf16, #tpu.memory_space<vmem>>, vector<512x784xbf16>
    %cst_22 = arith.constant dense<0.000000e+00> : vector<256x784xf32>
    %32 = tpu.matmul %30, %31, %cst_22 {dimension_numbers = #tpu.dot_dimension_numbers<[1], [0], [0], [1], [0, 0, 1, 1], [], []>} : vector<256x512xbf16>, vector<512x784xbf16>, vector<256x784xf32> -> vector<256x784xf32>
    %c0_23 = arith.constant 0 : index
    %c0_24 = arith.constant 0 : index
    %33 = vector.load %arg10[%c0_23, %c0_24] : memref<1x784xf32, #tpu.memory_space<vmem>>, vector<1x784xf32>
    %34 = vector.broadcast %33 : vector<1x784xf32> to vector<256x784xf32>
    %35 = arith.addf %32, %34 : vector<256x784xf32>
    %cst_25 = arith.constant 5.000000e-01 : f32
    %36 = vector.broadcast %cst_25 : f32 to vector<256x784xf32>
    %37 = arith.mulf %36, %35 : vector<256x784xf32>
    %38 = math.tanh %37 : vector<256x784xf32>
    %cst_26 = arith.constant 5.000000e-01 : f32
    %39 = vector.broadcast %cst_26 : f32 to vector<256x784xf32>
    %40 = arith.mulf %39, %38 : vector<256x784xf32>
    %cst_27 = arith.constant 5.000000e-01 : f32
    %41 = vector.broadcast %cst_27 : f32 to vector<256x784xf32>
    %42 = arith.addf %40, %41 : vector<256x784xf32>
    %43 = arith.truncf %42 : vector<256x784xf32> to vector<256x784xbf16>
    %c0_28 = arith.constant 0 : index
    %c0_29 = arith.constant 0 : index
    %44 = vector.load %arg11[%c0_28, %c0_29] : memref<256x784xbf16, #tpu.memory_space<vmem>>, vector<256x784xbf16>
    tpu.vector_store %arg11[%c0_28, %c0_29], %43 {strides = array<i32>} : memref<256x784xbf16, #tpu.memory_space<vmem>>, vector<256x784xbf16>,
    %c0_30 = arith.constant 0 : index
    %c0_31 = arith.constant 0 : index
    %45 = vector.load %arg12[%c0_30, %c0_31] : memref<256x256xf32, #tpu.memory_space<vmem>>, vector<256x256xf32>
    tpu.vector_store %arg12[%c0_30, %c0_31], %13 {strides = array<i32>} : memref<256x256xf32, #tpu.memory_space<vmem>>, vector<256x256xf32>,
    return
  }
  func.func @transform_0(%arg0: i32) -> (i32, i32) {
    %c0_i32 = arith.constant 0 : i32
    %c0_i32_0 = arith.constant 0 : i32
    return %arg0, %c0_i32 : i32, i32
  }
  func.func @transform_1(%arg0: i32) -> (i32, i32) {
    %c0_i32 = arith.constant 0 : i32
    %c0_i32_0 = arith.constant 0 : i32
    return %arg0, %c0_i32 : i32, i32
  }
  func.func @transform_2(%arg0: i32) -> (i32, i32) {
    %c0_i32 = arith.constant 0 : i32
    %c0_i32_0 = arith.constant 0 : i32
    %c0_i32_1 = arith.constant 0 : i32
    return %c0_i32, %c0_i32_0 : i32, i32
  }
  func.func @transform_3(%arg0: i32) -> (i32, i32) {
    %c0_i32 = arith.constant 0 : i32
    %c0_i32_0 = arith.constant 0 : i32
    %c0_i32_1 = arith.constant 0 : i32
    return %c0_i32, %c0_i32_0 : i32, i32
  }
  func.func @transform_4(%arg0: i32) -> (i32, i32) {
    %c0_i32 = arith.constant 0 : i32
    %c0_i32_0 = arith.constant 0 : i32
    %c0_i32_1 = arith.constant 0 : i32
    return %c0_i32, %c0_i32_0 : i32, i32
  }
  func.func @transform_5(%arg0: i32) -> (i32, i32) {
    %c0_i32 = arith.constant 0 : i32
    %c0_i32_0 = arith.constant 0 : i32
    %c0_i32_1 = arith.constant 0 : i32
    return %c0_i32, %c0_i32_0 : i32, i32
  }
  func.func @transform_6(%arg0: i32) -> (i32, i32) {
    %c0_i32 = arith.constant 0 : i32
    %c0_i32_0 = arith.constant 0 : i32
    %c0_i32_1 = arith.constant 0 : i32
    return %c0_i32, %c0_i32_0 : i32, i32
  }
  func.func @transform_7(%arg0: i32) -> (i32, i32) {
    %c0_i32 = arith.constant 0 : i32
    %c0_i32_0 = arith.constant 0 : i32
    %c0_i32_1 = arith.constant 0 : i32
    return %c0_i32, %c0_i32_0 : i32, i32
  }
  func.func @transform_8(%arg0: i32) -> (i32, i32) {
    %c0_i32 = arith.constant 0 : i32
    %c0_i32_0 = arith.constant 0 : i32
    %c0_i32_1 = arith.constant 0 : i32
    return %c0_i32, %c0_i32_0 : i32, i32
  }
  func.func @transform_9(%arg0: i32) -> (i32, i32) {
    %c0_i32 = arith.constant 0 : i32
    %c0_i32_0 = arith.constant 0 : i32
    %c0_i32_1 = arith.constant 0 : i32
    return %c0_i32, %c0_i32_0 : i32, i32
  }
  func.func @transform_10(%arg0: i32) -> (i32, i32) {
    %c0_i32 = arith.constant 0 : i32
    %c0_i32_0 = arith.constant 0 : i32
    return %arg0, %c0_i32 : i32, i32
  }
  func.func @transform_11(%arg0: i32) -> (i32, i32) {
    %c0_i32 = arith.constant 0 : i32
    %c0_i32_0 = arith.constant 0 : i32
    return %arg0, %c0_i32 : i32, i32
  }
}

</mosaic_0001>

<bundles_post_ra>
// kernel: vae_forward.1
= control target key start
LH: loop header
LB: loop body
LE: loop exit
PB: predicated region body
PF: predicated region fallthrough
CT: control target
= control target key end

     0   :  { %vm1924_vm0 = vcmask 130048   ;;  %vm10019_vm1 = vcmask 125952   ;;  %s17801_s2 = inlined_call_operand.vmem [shape: bf16[784,512], index: 2, kind: input, shape index: {}]   ;;  %s17802_s0 = inlined_call_operand.vmem [shape: bf16[256,784], index: 0, kind: input, shape index: {}]   ;;  %s17803_s3 = inlined_call_operand.vmem [shape: f32[1,512], index: 3, kind: input, shape index: {}]   ;;  %s17804_s4 = inlined_call_operand.vmem [shape: bf16[512,256], index: 4, kind: input, shape index: {}]   ;;  %s17805_s6 = inlined_call_operand.vmem [shape: bf16[128,512], index: 6, kind: input, shape index: {}]   ;;  %s17806_s5 = inlined_call_operand.vmem [shape: f32[1,256], index: 5, kind: input, shape index: {}]   ;;  %s17807_s8 = inlined_call_operand.vmem [shape: bf16[512,784], index: 8, kind: input, shape index: {}]   ;;  %s17808_s11 = inlined_call_operand.vmem [shape: f32[256,256], index: 11, kind: output, shape index: {1}]   ;;  %s17809_s1 = inlined_call_operand.vmem [shape: f32[256,128], index: 1, kind: input, shape index: {}]   ;;  %s17810_s7 = inlined_call_operand.vmem [shape: f32[1,512], index: 7, kind: input, shape index: {}]   ;;  %s17811_s9 = inlined_call_operand.vmem [shape: f32[1,784], index: 9, kind: input, shape index: {}]   ;;  %s17812_s10 = inlined_call_operand.vmem [shape: bf16[256,784], index: 10, kind: output, shape index: {0}]  }
   0x1   :  { %v11358_v0 = vld [vmem:[%s17801_s2 + $0xe4] ss:$16 sps:$4 sm:$0xff]   ;;  %v11362_v2 = vld [vmem:[%s17801_s2 + $0xe0] ss:$16 sps:$4 sm:$0xff]   ;;  %v11459_v51 = vld [vmem:[%s17802_s0 + $0xc] ss:$28 sps:$4 sm:$0xff]  }
   0x2   :  { %v11360_v1 = vld [vmem:[%s17801_s2 + $0x2e4] ss:$16 sps:$4 sm:$0xff]   ;;  %1973 = vmatprep.subr.bf16.mxu0 %v11358_v0  ;;  %v11363_v3 = vld [vmem:[%s17801_s2 + $0x2e0] ss:$16 sps:$4 sm:$0xff]   ;;  %2198 = vmatprep.mubr.bf16.mxu1 %v11459_v51 }
   0x3   :  { %2166 = vmatprep.subr.bf16.mxu1 %v11360_v1  ;;  %v11364_v4 = vld [vmem:[%s17801_s2 + $0xc4] ss:$16 sps:$4 sm:$0xff]   ;;  %1974 = vmatpush1.bf16.msra.mxu0 %v11362_v2  ;;  %v11368_v6 = vld [vmem:[%s17801_s2 + $0xc0] ss:$16 sps:$4 sm:$0xff]  }
   0x4   :  { %2167 = vmatpush1.bf16.msra.mxu1 %v11363_v3  ;;  %v11366_v5 = vld [vmem:[%s17801_s2 + $0x2c4] ss:$16 sps:$4 sm:$0xff]   ;;  %1975 = vmatprep.subr.bf16.mxu0 %v11364_v4  ;;  %v11369_v7 = vld [vmem:[%s17801_s2 + $0x2c0] ss:$16 sps:$4 sm:$0xff]  }
   0x5   :  { %2168 = vmatprep.subr.bf16.mxu1 %v11366_v5  ;;  %v11370_v8 = vld [vmem:[%s17801_s2 + $0xa4] ss:$16 sps:$4 sm:$0xff]   ;;  %v11374_v10 = vld [vmem:[%s17801_s2 + $0xa0] ss:$16 sps:$4 sm:$0xff]  }
   0x6   :  { %v11372_v9 = vld [vmem:[%s17801_s2 + $0x2a4] ss:$16 sps:$4 sm:$0xff]   ;;  %v11375_v11 = vld [vmem:[%s17801_s2 + $0x2a0] ss:$16 sps:$4 sm:$0xff]  }
   0x7   :  { %1976 = vmatpush1.bf16.msra.mxu0 %v11368_v6  ;;  %v11376_v12 = vld [vmem:[%s17801_s2 + $0x84] ss:$16 sps:$4 sm:$0xff]   ;;  %v11380_v14 = vld [vmem:[%s17801_s2 + $0x80] ss:$16 sps:$4 sm:$0xff]  }
   0x8   :  { %2169 = vmatpush1.bf16.msra.mxu1 %v11369_v7  ;;  %1977 = vmatprep.subr.bf16.mxu0 %v11370_v8  ;;  %v11378_v13 = vld [vmem:[%s17801_s2 + $0x284] ss:$16 sps:$4 sm:$0xff]   ;;  %v11381_v15 = vld [vmem:[%s17801_s2 + $0x280] ss:$16 sps:$4 sm:$0xff]   ;;  %v11466_v8 = vld [vmem:[%s17802_s0 + $0x3c] ss:$28 sps:$4 sm:$0xff]  }
   0x9   :  { %2170 = vmatprep.subr.bf16.mxu1 %v11372_v9  ;;  %v11382_v16 = vld [vmem:[%s17801_s2 + $0x64] ss:$16 sps:$4 sm:$0xff]   ;;  %v11386_v18 = vld [vmem:[%s17801_s2 + $0x60] ss:$16 sps:$4 sm:$0xff]  }
   0xa   :  { %v11384_v17 = vld [vmem:[%s17801_s2 + $0x264] ss:$16 sps:$4 sm:$0xff]   ;;  %v11387_v19 = vld [vmem:[%s17801_s2 + $0x260] ss:$16 sps:$4 sm:$0xff]  }
   0xb   :  { %1978 = vmatpush1.bf16.msra.mxu0 %v11374_v10  ;;  %v11388_v20 = vld [vmem:[%s17801_s2 + $0x44] ss:$16 sps:$4 sm:$0xff]   ;;  %v11392_v22 = vld [vmem:[%s17801_s2 + $0x40] ss:$16 sps:$4 sm:$0xff]  }
   0xc   :  { %2171 = vmatpush1.bf16.msra.mxu1 %v11375_v11  ;;  %1979 = vmatprep.subr.bf16.mxu0 %v11376_v12  ;;  %v11390_v21 = vld [vmem:[%s17801_s2 + $0x244] ss:$16 sps:$4 sm:$0xff]   ;;  %v11393_v23 = vld [vmem:[%s17801_s2 + $0x240] ss:$16 sps:$4 sm:$0xff]  }
   0xd   :  { %2172 = vmatprep.subr.bf16.mxu1 %v11378_v13  ;;  %v11394_v24 = vld [vmem:[%s17801_s2 + $0x24] ss:$16 sps:$4 sm:$0xff]   ;;  %v11398_v26 = vld [vmem:[%s17801_s2 + $0x20] ss:$16 sps:$4 sm:$0xff]  }
   0xe   :  { %v11396_v25 = vld [vmem:[%s17801_s2 + $0x224] ss:$16 sps:$4 sm:$0xff]   ;;  %v11399_v27 = vld [vmem:[%s17801_s2 + $0x220] ss:$16 sps:$4 sm:$0xff]  }
   0xf   :  { %1980 = vmatpush1.bf16.msra.mxu0 %v11380_v14  ;;  %v11400_v28 = vld [vmem:[%s17801_s2 + $0x4] ss:$16 sps:$4 sm:$0xff]   ;;  %v11404_v30 = vld [vmem:[%s17801_s2] ss:$16 sps:$4 sm:$0xff]  }
  0x10   :  { %2173 = vmatpush1.bf16.msra.mxu1 %v11381_v15  ;;  %1981 = vmatprep.subr.bf16.mxu0 %v11382_v16  ;;  %v11402_v29 = vld [vmem:[%s17801_s2 + $0x204] ss:$16 sps:$4 sm:$0xff]   ;;  %v11405_v31 = vld [vmem:[%s17801_s2 + $0x200] ss:$16 sps:$4 sm:$0xff]   ;;  %v11477_v16 = vld [vmem:[%s17802_s0 + $0x7c] ss:$28 sps:$4 sm:$0xff]  }
  0x11   :  { %2174 = vmatprep.subr.bf16.mxu1 %v11384_v17  ;;  %v11406_v32 = vld [vmem:[%s17801_s2 + $0x1e4] ss:$16 sps:$4 sm:$0xff]   ;;  %v11410_v34 = vld [vmem:[%s17801_s2 + $0x1e0] ss:$16 sps:$4 sm:$0xff]  }
  0x12   :  { %v11408_v33 = vld [vmem:[%s17801_s2 + $0x3e4] ss:$16 sps:$4 sm:$0xff]   ;;  %v11411_v35 = vld [vmem:[%s17801_s2 + $0x3e0] ss:$16 sps:$4 sm:$0xff]  }
  0x13   :  { %1982 = vmatpush1.bf16.msra.mxu0 %v11386_v18  ;;  %v11412_v36 = vld [vmem:[%s17801_s2 + $0x1c4] ss:$16 sps:$4 sm:$0xff]   ;;  %v11416_v38 = vld [vmem:[%s17801_s2 + $0x1c0] ss:$16 sps:$4 sm:$0xff]  }
  0x14   :  { %2175 = vmatpush1.bf16.msra.mxu1 %v11387_v19  ;;  %1983 = vmatprep.subr.bf16.mxu0 %v11388_v20  ;;  %v11414_v37 = vld [vmem:[%s17801_s2 + $0x3c4] ss:$16 sps:$4 sm:$0xff]   ;;  %v11417_v39 = vld [vmem:[%s17801_s2 + $0x3c0] ss:$16 sps:$4 sm:$0xff]  }
  0x15   :  { %2176 = vmatprep.subr.bf16.mxu1 %v11390_v21  ;;  %v11418_v40 = vld [vmem:[%s17801_s2 + $0x1a4] ss:$16 sps:$4 sm:$0xff]   ;;  %v11422_v42 = vld [vmem:[%s17801_s2 + $0x1a0] ss:$16 sps:$4 sm:$0xff]  }
  0x16   :  { %v11420_v41 = vld [vmem:[%s17801_s2 + $0x3a4] ss:$16 sps:$4 sm:$0xff]   ;;  %v11423_v43 = vld [vmem:[%s17801_s2 + $0x3a0] ss:$16 sps:$4 sm:$0xff]  }
  0x17   :  { %1984 = vmatpush1.bf16.msra.mxu0 %v11392_v22  ;;  %v11424_v44 = vld [vmem:[%s17801_s2 + $0x184] ss:$16 sps:$4 sm:$0xff]   ;;  %v11428_v46 = vld [vmem:[%s17801_s2 + $0x180] ss:$16 sps:$4 sm:$0xff]  }
  0x18   :  { %2177 = vmatpush1.bf16.msra.mxu1 %v11393_v23  ;;  %1985 = vmatprep.subr.bf16.mxu0 %v11394_v24  ;;  %v11426_v45 = vld [vmem:[%s17801_s2 + $0x384] ss:$16 sps:$4 sm:$0xff]   ;;  %v11429_v47 = vld [vmem:[%s17801_s2 + $0x380] ss:$16 sps:$4 sm:$0xff]   ;;  %v11484_v23 = vld [vmem:[%s17802_s0 + $0xac] ss:$28 sps:$4 sm:$0xff]  }
  0x19   :  { %2178 = vmatprep.subr.bf16.mxu1 %v11396_v25  ;;  %v11430_v48 = vld [vmem:[%s17801_s2 + $0x164] ss:$16 sps:$4 sm:$0xff]   ;;  %v11434_v52 = vld [vmem:[%s17801_s2 + $0x160] ss:$16 sps:$4 sm:$0xff]  }
  0x1a   :  { %v11456_v49 = vld [vmem:[%s17802_s0 + $0x4] ss:$28 sps:$4 sm:$0xff]   ;;  %v11470_v13 = vld [vmem:[%s17802_s0 + $0x38] ss:$28 sps:$4 sm:$0xff]   ;;  %v11479_v20 = vld [vmem:[%s17802_s0 + $0x70] ss:$28 sps:$4 sm:$0xff]  }
  0x1b   :  { %1986 = vmatpush1.bf16.msra.mxu0 %v11398_v26  ;;  %v11432_v50 = vld [vmem:[%s17801_s2 + $0x364] ss:$16 sps:$4 sm:$0xff]   ;;  %2005 = vmatprep.mubr.bf16.mxu0 %v11456_v49  ;;  %v11435_v53 = vld [vmem:[%s17801_s2 + $0x360] ss:$16 sps:$4 sm:$0xff]  }
  0x1c   :  { %2179 = vmatpush1.bf16.msra.mxu1 %v11399_v27  ;;  %1987 = vmatprep.subr.bf16.mxu0 %v11400_v28  ;;  %v11436_v54 = vld [vmem:[%s17801_s2 + $0x144] ss:$16 sps:$4 sm:$0xff]   ;;  %v11440_v56 = vld [vmem:[%s17801_s2 + $0x140] ss:$16 sps:$4 sm:$0xff]  }
  0x1d   :  { %2180 = vmatprep.subr.bf16.mxu1 %v11402_v29  ;;  %v11438_v55 = vld [vmem:[%s17801_s2 + $0x344] ss:$16 sps:$4 sm:$0xff]   ;;  %v11441_v57 = vld [vmem:[%s17801_s2 + $0x340] ss:$16 sps:$4 sm:$0xff]  }
  0x1e   :  { %v11442_v58 = vld [vmem:[%s17801_s2 + $0x124] ss:$16 sps:$4 sm:$0xff]   ;;  %v11446_v60 = vld [vmem:[%s17801_s2 + $0x120] ss:$16 sps:$4 sm:$0xff]  }
  0x1f   :  { %1988 = vmatpush1.bf16.msra.mxu0 %v11404_v30  ;;  %v11444_v59 = vld [vmem:[%s17801_s2 + $0x324] ss:$16 sps:$4 sm:$0xff]   ;;  %v11447_v61 = vld [vmem:[%s17801_s2 + $0x320] ss:$16 sps:$4 sm:$0xff]  }
  0x20   :  { %2181 = vmatpush1.bf16.msra.mxu1 %v11405_v31  ;;  %1989 = vmatprep.subr.bf16.mxu0 %v11406_v32  ;;  %v11448_v62 = vld [vmem:[%s17801_s2 + $0x104] ss:$16 sps:$4 sm:$0xff]   ;;  %v11452_v0 = vld [vmem:[%s17801_s2 + $0x100] ss:$16 sps:$4 sm:$0xff]   ;;  %v11495_v32 = vld [vmem:[%s17802_s0 + $0xec] ss:$28 sps:$4 sm:$0xff]  }
  0x21   :  { %2182 = vmatprep.subr.bf16.mxu1 %v11408_v33  ;;  %v11450_v63 = vld [vmem:[%s17801_s2 + $0x304] ss:$16 sps:$4 sm:$0xff]   ;;  %v11453_v1 = vld [vmem:[%s17801_s2 + $0x300] ss:$16 sps:$4 sm:$0xff]  }
  0x22   :  { %v11462_v2 = vld [vmem:[%s17801_s2 + $0x4e4] ss:$16 sps:$4 sm:$0xff]   ;;  %v11454_v4 = vld [vmem:[%s17802_s0] ss:$28 sps:$4 sm:$0xff]   ;;  %v11489_v30 = vld [vmem:[%s17802_s0 + $0xb0] ss:$28 sps:$4 sm:$0xff]  }
  0x23   :  { %1990 = vmatpush2.bf16.msra.mxu0 %v11410_v34  ;;  %v11465_v3 = vld [vmem:[%s17801_s2 + $0x604] ss:$16 sps:$4 sm:$0xff]   ;;  %v11460_v6 = vld [vmem:[%s17801_s2 + $0x4e0] ss:$16 sps:$4 sm:$0xff]  }
  0x24   :  { %2183 = vmatpush2.bf16.msra.mxu1 %v11411_v35  ;;  %1991 = vmatprep.subr.bf16.mxu0 %v11412_v36  ;;  %v11457_v5 = vld [vmem:[%s17802_s0 + $0x8] ss:$28 sps:$4 sm:$0xff]   ;;  %v11463_v7 = vld [vmem:[%s17801_s2 + $0x600] ss:$16 sps:$4 sm:$0xff]   ;;  %v11480_v22 = vld [vmem:[%s17802_s0 + $0x78] ss:$28 sps:$4 sm:$0xff]  }
  0x25   :  { %2184 = vmatprep.subr.bf16.mxu1 %v11414_v37  ;;  %v11468_v9 = vld [vmem:[%s17802_s0 + $0x44] ss:$28 sps:$4 sm:$0xff]   ;;  %v11475_v15 = vld [vmem:[%s17802_s0 + $0x74] ss:$28 sps:$4 sm:$0xff]  }
  0x26   :  { %v11474_v10 = vld [vmem:[%s17801_s2 + $0x4c4] ss:$16 sps:$4 sm:$0xff]   ;;  %v11472_v11 = vld [vmem:[%s17801_s2 + $0x4c0] ss:$16 sps:$4 sm:$0xff]  }
  0x27   :  { %1992 = vmatpush2.bf16.msra.mxu0 %v11416_v38  ;;  %v11483_v12 = vld [vmem:[%s17801_s2 + $0x4a4] ss:$16 sps:$4 sm:$0xff]   ;;  %v11471_v14 = vld [vmem:[%s17802_s0 + $0x40] ss:$28 sps:$4 sm:$0xff]   ;;  %v11515_v51 = vld [vmem:[%s17802_s0 + $0x150] ss:$28 sps:$4 sm:$0xff]  }
  0x28   :  { %2185 = vmatpush2.bf16.msra.mxu1 %v11417_v39  ;;  %1993 = vmatprep.subr.bf16.mxu0 %v11418_v40  ;;  %v11481_v17 = vld [vmem:[%s17801_s2 + $0x4a0] ss:$16 sps:$4 sm:$0xff]   ;;  %v11492_v18 = vld [vmem:[%s17801_s2 + $0x484] ss:$16 sps:$4 sm:$0xff]   ;;  %v11502_v39 = vld [vmem:[%s17802_s0 + $0x11c] ss:$28 sps:$4 sm:$0xff]  }
  0x29   :  { %2186 = vmatprep.subr.bf16.mxu1 %v11420_v41  ;;  %v11490_v19 = vld [vmem:[%s17801_s2 + $0x480] ss:$16 sps:$4 sm:$0xff]   ;;  %v11501_v21 = vld [vmem:[%s17801_s2 + $0x464] ss:$16 sps:$4 sm:$0xff]  }
  0x2a   :  { %v11486_v24 = vld [vmem:[%s17802_s0 + $0xb4] ss:$28 sps:$4 sm:$0xff]   ;;  %v11488_v28 = vld [vmem:[%s17802_s0 + $0xa8] ss:$28 sps:$4 sm:$0xff]   ;;  %v11497_v36 = vld [vmem:[%s17802_s0 + $0xe0] ss:$28 sps:$4 sm:$0xff]  }
  0x2b   :  { %1994 = vmatpush2.bf16.msra.mxu0 %v11422_v42  ;;  %v11499_v25 = vld [vmem:[%s17801_s2 + $0x460] ss:$16 sps:$4 sm:$0xff]   ;;  %v11510_v26 = vld [vmem:[%s17801_s2 + $0x444] ss:$16 sps:$4 sm:$0xff]  }
  0x2c   :  { %2187 = vmatpush2.bf16.msra.mxu1 %v11423_v43  ;;  %1995 = vmatprep.subr.bf16.mxu0 %v11424_v44  ;;  %v11508_v27 = vld [vmem:[%s17801_s2 + $0x440] ss:$16 sps:$4 sm:$0xff]   ;;  %v11519_v29 = vld [vmem:[%s17801_s2 + $0x424] ss:$16 sps:$4 sm:$0xff]  }
  0x2d   :  { %2188 = vmatprep.subr.bf16.mxu1 %v11426_v45  ;;  %v11493_v31 = vld [vmem:[%s17802_s0 + $0xe4] ss:$28 sps:$4 sm:$0xff]   ;;  %v11506_v44 = vld [vmem:[%s17802_s0 + $0x118] ss:$28 sps:$4 sm:$0xff]  }
  0x2e   :  { %v11517_v33 = vld [vmem:[%s17801_s2 + $0x420] ss:$16 sps:$4 sm:$0xff]   ;;  %v11528_v34 = vld [vmem:[%s17801_s2 + $0x404] ss:$16 sps:$4 sm:$0xff]  }
  0x2f   :  { %1996 = vmatpush2.bf16.msra.mxu0 %v11428_v46  ;;  %v11526_v35 = vld [vmem:[%s17801_s2 + $0x400] ss:$16 sps:$4 sm:$0xff]   ;;  %v11537_v37 = vld [vmem:[%s17801_s2 + $0x5e4] ss:$16 sps:$4 sm:$0xff]  }
  0x30   :  { %2189 = vmatpush2.bf16.msra.mxu1 %v11429_v47  ;;  %1997 = vmatprep.subr.bf16.mxu0 %v11430_v48  ;;  %v11498_v38 = vld [vmem:[%s17802_s0 + $0xe8] ss:$28 sps:$4 sm:$0xff]   ;;  %v11535_v41 = vld [vmem:[%s17801_s2 + $0x5e0] ss:$16 sps:$4 sm:$0xff]   ;;  %v11513_v48 = vld [vmem:[%s17802_s0 + $0x15c] ss:$28 sps:$4 sm:$0xff]  }
  0x31   :  { %2190 = vmatprep.subr.bf16.mxu1 %v11432_v50  ;;  %v11504_v40 = vld [vmem:[%s17802_s0 + $0x124] ss:$28 sps:$4 sm:$0xff]   ;;  %v11511_v47 = vld [vmem:[%s17802_s0 + $0x154] ss:$28 sps:$4 sm:$0xff]  }
  0x32   :  { %v11546_v42 = vld [vmem:[%s17801_s2 + $0x5c4] ss:$16 sps:$4 sm:$0xff]   ;;  %v11544_v43 = vld [vmem:[%s17801_s2 + $0x5c0] ss:$16 sps:$4 sm:$0xff]  }
  0x33   :  { %1998 = vmatpush2.bf16.msra.mxu0 %v11434_v52  ;;  %v11555_v45 = vld [vmem:[%s17801_s2 + $0x5a4] ss:$16 sps:$4 sm:$0xff]   ;;  %v11507_v46 = vld [vmem:[%s17802_s0 + $0x120] ss:$28 sps:$4 sm:$0xff]  }
  0x34   :  { %2191 = vmatpush2.bf16.msra.mxu1 %v11435_v53  ;;  %1999 = vmatprep.subr.bf16.mxu0 %v11436_v54  ;;  %v11553_v49 = vld [vmem:[%s17801_s2 + $0x5a0] ss:$16 sps:$4 sm:$0xff]   ;;  %v11564_v50 = vld [vmem:[%s17801_s2 + $0x584] ss:$16 sps:$4 sm:$0xff]  }
  0x35   :  { %2192 = vmatprep.subr.bf16.mxu1 %v11438_v55  ;;  %v11562_v52 = vld [vmem:[%s17801_s2 + $0x580] ss:$16 sps:$4 sm:$0xff]   ;;  %v11573_v53 = vld [vmem:[%s17801_s2 + $0x564] ss:$16 sps:$4 sm:$0xff]   ;;  %v11520_v55 = vld [vmem:[%s17802_s0 + $0x18c] ss:$28 sps:$4 sm:$0xff]  }
  0x36   :  { %v11516_v54 = vld [vmem:[%s17802_s0 + $0x158] ss:$28 sps:$4 sm:$0xff]  }
  0x37   :  { %2000 = vmatpush2.bf16.msra.mxu0 %v11440_v56  ;;  %v11522_v56 = vld [vmem:[%s17802_s0 + $0x194] ss:$28 sps:$4 sm:$0xff]  }
  0x38   :  { %2193 = vmatpush2.bf16.msra.mxu1 %v11441_v57  ;;  %2001 = vmatprep.subr.bf16.mxu0 %v11442_v58  ;;  %v11610_v57 = vld [vmem:[%s17801_s2 + $0x2ec] ss:$16 sps:$4 sm:$0xff]   ;;  %v11571_v58 = vld [vmem:[%s17801_s2 + $0x560] ss:$16 sps:$4 sm:$0xff]  }
  0x39   :  { %2194 = vmatprep.subr.bf16.mxu1 %v11444_v59  ;;  %v11582_v59 = vld [vmem:[%s17801_s2 + $0x544] ss:$16 sps:$4 sm:$0xff]  }
  0x3b   :  { %2002 = vmatpush2.bf16.msra.mxu0 %v11446_v60  ;;  %v11524_v60 = vld [vmem:[%s17802_s0 + $0x188] ss:$28 sps:$4 sm:$0xff]  }
  0x3c   :  { %2195 = vmatpush2.bf16.msra.mxu1 %v11447_v61  ;;  %2003 = vmatprep.subr.bf16.mxu0 %v11448_v62  ;;  %v11525_v61 = vld [vmem:[%s17802_s0 + $0x190] ss:$28 sps:$4 sm:$0xff]  }
  0x3d   :  { %2196 = vmatprep.subr.bf16.mxu1 %v11450_v63  ;;  %v11580_v62 = vld [vmem:[%s17801_s2 + $0x540] ss:$16 sps:$4 sm:$0xff]   ;;  %v11591_v63 = vld [vmem:[%s17801_s2 + $0x524] ss:$16 sps:$4 sm:$0xff]  }
  0x3f   :  { %2004 = vmatpush2.bf16.msra.mxu0 %v11452_v0  ;;  %v11529_v0 = vld [vmem:[%s17802_s0 + $0x1c4] ss:$28 sps:$4 sm:$0xff]  }
  0x40   :  { %2197 = vmatpush2.bf16.msra.mxu1 %v11453_v1  ;;  %2359 = vmatprep.subr.bf16.mxu0 %v11462_v2  ;;  %v11531_v1 = vld [vmem:[%s17802_s0 + $0x1cc] ss:$28 sps:$4 sm:$0xff]   ;;  %v11589_v2 = vld [vmem:[%s17801_s2 + $0x520] ss:$16 sps:$4 sm:$0xff]  }
  0x41   :  { %2566 = vmatprep.subr.bf16.mxu1 %v11465_v3  ;;  %v11600_v3 = vld [vmem:[%s17801_s2 + $0x504] ss:$16 sps:$4 sm:$0xff]  }
  0x42   :  { %2006 = vmatmul.mubr.bf16.vlgmr.msra.gmra.mxu0 %v11454_v4  ;;  %v11598_v4 = vld [vmem:[%s17801_s2 + $0x500] ss:$16 sps:$4 sm:$0xff]  }
  0x43   :  { %2199 = vmatmul.mubr.bf16.vlgmr.msra.gmra.mxu1 %v11457_v5  ;;  %2360 = vmatpush1.bf16.msra.mxu0 %v11460_v6  ;;  %v11533_v5 = vld [vmem:[%s17802_s0 + $0x1c0] ss:$28 sps:$4 sm:$0xff]  }
  0x44   :  { %2567 = vmatpush1.bf16.msra.mxu1 %v11463_v7  ;;  %2015 = vmatprep.mubr.bf16.mxu0 %v11466_v8  ;;  %v11607_v6 = vld [vmem:[%s17801_s2 + $0xec] ss:$16 sps:$4 sm:$0xff]   ;;  %v11534_v7 = vld [vmem:[%s17802_s0 + $0x1c8] ss:$28 sps:$4 sm:$0xff]  }
  0x45   :  { %2208 = vmatprep.mubr.bf16.mxu1 %v11468_v9  ;;  %2361 = vmatprep.subr.bf16.mxu0 %v11474_v10  ;;  %v11538_v8 = vld [vmem:[%s17802_s0 + $0x1fc] ss:$28 sps:$4 sm:$0xff]   ;;  %v11540_v9 = vld [vmem:[%s17802_s0 + $0x204] ss:$28 sps:$4 sm:$0xff]  }
  0x46   :  { %2938 = vmatprep.subr.bf16.mxu1 %v11610_v57  ;;  %v11542_v10 = vld [vmem:[%s17802_s0 + $0x1f8] ss:$28 sps:$4 sm:$0xff]  }
  0x47   :  { %2362 = vmatpush1.bf16.msra.mxu0 %v11472_v11  ;;  %v11543_v11 = vld [vmem:[%s17802_s0 + $0x200] ss:$28 sps:$4 sm:$0xff]   ;;  %v11638_v57 = vld [vmem:[%s17801_s2 + $0x288] ss:$16 sps:$4 sm:$0xff]  }
  0x48   :  { %2363 = vmatprep.subr.bf16.mxu0 %v11483_v12  ;;  %v11547_v12 = vld [vmem:[%s17802_s0 + $0x234] ss:$28 sps:$4 sm:$0xff]  }
  0x4a   :  { %2016 = vmatmul.mubr.bf16.gmra.mxu0 %v11470_v13  ;;  %v11549_v13 = vld [vmem:[%s17802_s0 + $0x23c] ss:$28 sps:$4 sm:$0xff]  }
  0x4b   :  { %2209 = vmatmul.mubr.bf16.gmra.mxu1 %v11471_v14  ;;  %2025 = vmatprep.mubr.bf16.mxu0 %v11475_v15  ;;  %v11551_v14 = vld [vmem:[%s17802_s0 + $0x230] ss:$28 sps:$4 sm:$0xff]   ;;  %v11552_v15 = vld [vmem:[%s17802_s0 + $0x238] ss:$28 sps:$4 sm:$0xff]  }
  0x4c   :  { %2218 = vmatprep.mubr.bf16.mxu1 %v11477_v16  ;;  %2364 = vmatpush1.bf16.msra.mxu0 %v11481_v17  ;;  %v11556_v16 = vld [vmem:[%s17802_s0 + $0x26c] ss:$28 sps:$4 sm:$0xff]   ;;  %v11558_v17 = vld [vmem:[%s17802_s0 + $0x274] ss:$28 sps:$4 sm:$0xff]  }
  0x4d   :  { %2365 = vmatprep.subr.bf16.mxu0 %v11492_v18  ;;  %v11560_v18 = vld [vmem:[%s17802_s0 + $0x268] ss:$28 sps:$4 sm:$0xff]  }
  0x50   :  { %2366 = vmatpush1.bf16.msra.mxu0 %v11490_v19  ;;  %v11561_v19 = vld [vmem:[%s17802_s0 + $0x270] ss:$28 sps:$4 sm:$0xff]  }
  0x51   :  { %2367 = vmatprep.subr.bf16.mxu0 %v11501_v21  ;;  %v11567_v21 = vld [vmem:[%s17802_s0 + $0x2ac] ss:$28 sps:$4 sm:$0xff]  }
  0x52   :  { %2026 = vmatmul.mubr.bf16.gmra.mxu0 %v11479_v20  ;;  %v11565_v20 = vld [vmem:[%s17802_s0 + $0x2a4] ss:$28 sps:$4 sm:$0xff]  }
  0x53   :  { %2219 = vmatmul.mubr.bf16.gmra.mxu1 %v11480_v22  ;;  %2035 = vmatprep.mubr.bf16.mxu0 %v11484_v23  ;;  %v11569_v22 = vld [vmem:[%s17802_s0 + $0x2a0] ss:$28 sps:$4 sm:$0xff]   ;;  %v11570_v23 = vld [vmem:[%s17802_s0 + $0x2a8] ss:$28 sps:$4 sm:$0xff]  }
  0x54   :  { %2228 = vmatprep.mubr.bf16.mxu1 %v11486_v24  ;;  %2368 = vmatpush1.bf16.msra.mxu0 %v11499_v25  ;;  %v11574_v24 = vld [vmem:[%s17802_s0 + $0x2dc] ss:$28 sps:$4 sm:$0xff]   ;;  %v11576_v25 = vld [vmem:[%s17802_s0 + $0x2e4] ss:$28 sps:$4 sm:$0xff]  }
  0x55   :  { %2369 = vmatprep.subr.bf16.mxu0 %v11510_v26  ;;  %v11578_v26 = vld [vmem:[%s17802_s0 + $0x2d8] ss:$28 sps:$4 sm:$0xff]  }
  0x58   :  { %2370 = vmatpush1.bf16.msra.mxu0 %v11508_v27  ;;  %v11579_v27 = vld [vmem:[%s17802_s0 + $0x2e0] ss:$28 sps:$4 sm:$0xff]  }
  0x59   :  { %2371 = vmatprep.subr.bf16.mxu0 %v11519_v29  ;;  %v11585_v29 = vld [vmem:[%s17802_s0 + $0x31c] ss:$28 sps:$4 sm:$0xff]  }
  0x5a   :  { %2036 = vmatmul.mubr.bf16.gmra.mxu0 %v11488_v28  ;;  %v11583_v28 = vld [vmem:[%s17802_s0 + $0x314] ss:$28 sps:$4 sm:$0xff]  }
  0x5b   :  { %2229 = vmatmul.mubr.bf16.gmra.mxu1 %v11489_v30  ;;  %2045 = vmatprep.mubr.bf16.mxu0 %v11493_v31  ;;  %v11587_v30 = vld [vmem:[%s17802_s0 + $0x310] ss:$28 sps:$4 sm:$0xff]   ;;  %v11588_v31 = vld [vmem:[%s17802_s0 + $0x318] ss:$28 sps:$4 sm:$0xff]  }
  0x5c   :  { %2238 = vmatprep.mubr.bf16.mxu1 %v11495_v32  ;;  %2372 = vmatpush1.bf16.msra.mxu0 %v11517_v33  ;;  %v11592_v32 = vld [vmem:[%s17802_s0 + $0x34c] ss:$28 sps:$4 sm:$0xff]   ;;  %v11594_v33 = vld [vmem:[%s17802_s0 + $0x354] ss:$28 sps:$4 sm:$0xff]  }
  0x5d   :  { %2373 = vmatprep.subr.bf16.mxu0 %v11528_v34  ;;  %v11596_v34 = vld [vmem:[%s17802_s0 + $0x348] ss:$28 sps:$4 sm:$0xff]  }
  0x60   :  { %2374 = vmatpush1.bf16.msra.mxu0 %v11526_v35  ;;  %v11597_v35 = vld [vmem:[%s17802_s0 + $0x350] ss:$28 sps:$4 sm:$0xff]  }
  0x61   :  { %2375 = vmatprep.subr.bf16.mxu0 %v11537_v37  ;;  %v17813_v37 = vmov 0  }
  0x62   :  { %2046 = vmatmul.mubr.bf16.gmra.mxu0 %v11497_v36  ;;  %v11603_v36 = vld [vmem:[%s17802_s0 + $0x14] ss:$28 sps:$4 sm:$0xff]  }
  0x63   :  { %2239 = vmatmul.mubr.bf16.gmra.mxu1 %v11498_v38  ;;  %2055 = vmatprep.mubr.bf16.mxu0 %v11502_v39  ;;  %v11601_v38 = vld [vmem:[%s17802_s0 + $0x10] ss:$28 sps:$4 sm:$0xff]   ;;  %v11604_v39 = vld [vmem:[%s17802_s0 + $0x18] ss:$28 sps:$4 sm:$0xff]  }
  0x64   :  { %2248 = vmatprep.mubr.bf16.mxu1 %v11504_v40  ;;  %2376 = vmatpush2.bf16.msra.mxu0 %v11535_v41  ;;  %v11605_v40 = vld [vmem:[%s17801_s2 + $0xe8] ss:$16 sps:$4 sm:$0xff]  }
  0x65   :  { %2377 = vmatprep.subr.bf16.mxu0 %v11546_v42  ;;  %v11608_v41 = vld [vmem:[%s17801_s2 + $0x2e8] ss:$16 sps:$4 sm:$0xff]  }
  0x66   :  { %v11611_v42 = vld [vmem:[%s17802_s0 + $0x4c] ss:$28 sps:$4 sm:$0xff]  }
  0x68   :  { %2378 = vmatpush2.bf16.msra.mxu0 %v11544_v43  ;;  %v11617_v43 = vld [vmem:[%s17801_s2 + $0xcc] ss:$16 sps:$4 sm:$0xff]  }
  0x69   :  { %2379 = vmatprep.subr.bf16.mxu0 %v11555_v45  ;;  %v11615_v45 = vld [vmem:[%s17801_s2 + $0xc8] ss:$16 sps:$4 sm:$0xff]  }
  0x6a   :  { %2056 = vmatmul.mubr.bf16.gmra.mxu0 %v11506_v44  ;;  %v11620_v44 = vld [vmem:[%s17801_s2 + $0x2cc] ss:$16 sps:$4 sm:$0xff]  }
  0x6b   :  { %2249 = vmatmul.mubr.bf16.gmra.mxu1 %v11507_v46  ;;  %2065 = vmatprep.mubr.bf16.mxu0 %v11511_v47  ;;  %v11618_v46 = vld [vmem:[%s17801_s2 + $0x2c8] ss:$16 sps:$4 sm:$0xff]   ;;  %v11627_v47 = vld [vmem:[%s17801_s2 + $0xac] ss:$16 sps:$4 sm:$0xff]  }
  0x6c   :  { %2258 = vmatprep.mubr.bf16.mxu1 %v11513_v48  ;;  %2380 = vmatpush2.bf16.msra.mxu0 %v11553_v49  ;;  %v11630_v48 = vld [vmem:[%s17801_s2 + $0x2ac] ss:$16 sps:$4 sm:$0xff]   ;;  %v11613_v49 = vld [vmem:[%s17802_s0 + $0x48] ss:$28 sps:$4 sm:$0xff]  }
  0x6d   :  { %2381 = vmatprep.subr.bf16.mxu0 %v11564_v50  ;;  %v11614_v50 = vld [vmem:[%s17802_s0 + $0x50] ss:$28 sps:$4 sm:$0xff]  }
  0x70   :  { %2382 = vmatpush2.bf16.msra.mxu0 %v11562_v52  ;;  %v11625_v52 = vld [vmem:[%s17801_s2 + $0xa8] ss:$16 sps:$4 sm:$0xff]  }
  0x71   :  { %2383 = vmatprep.subr.bf16.mxu0 %v11573_v53  ;;  %v11628_v53 = vld [vmem:[%s17801_s2 + $0x2a8] ss:$16 sps:$4 sm:$0xff]  }
  0x72   :  { %2066 = vmatmul.mubr.bf16.gmra.mxu0 %v11515_v51  ;;  %v11621_v51 = vld [vmem:[%s17802_s0 + $0x84] ss:$28 sps:$4 sm:$0xff]  }
  0x73   :  { %2259 = vmatmul.mubr.bf16.gmra.mxu1 %v11516_v54  ;;  %2075 = vmatprep.mubr.bf16.mxu0 %v11520_v55  ;;  %v11637_v54 = vld [vmem:[%s17801_s2 + $0x8c] ss:$16 sps:$4 sm:$0xff]  }
  0x74   :  { %2268 = vmatprep.mubr.bf16.mxu1 %v11522_v56  ;;  %2384 = vmatpush2.bf16.msra.mxu0 %v11571_v58  ;;  %v11640_v55 = vld [vmem:[%s17801_s2 + $0x28c] ss:$16 sps:$4 sm:$0xff]   ;;  %v11635_v56 = vld [vmem:[%s17801_s2 + $0x88] ss:$16 sps:$4 sm:$0xff]  }
  0x75   :  { %2385 = vmatprep.subr.bf16.mxu0 %v11582_v59  ;;  %v11647_v58 = vld [vmem:[%s17801_s2 + $0x6c] ss:$16 sps:$4 sm:$0xff]  }
  0x76   :  { %v11650_v59 = vld [vmem:[%s17801_s2 + $0x26c] ss:$16 sps:$4 sm:$0xff]  }
  0x78   :  { %2386 = vmatpush2.bf16.msra.mxu0 %v11580_v62  ;;  %v11631_v62 = vld [vmem:[%s17802_s0 + $0xbc] ss:$28 sps:$4 sm:$0xff]  }
  0x79   :  { %2387 = vmatprep.subr.bf16.mxu0 %v11591_v63  ;;  %v11645_v63 = vld [vmem:[%s17801_s2 + $0x68] ss:$16 sps:$4 sm:$0xff]  }
  0x7a   :  { %2076 = vmatmul.mubr.bf16.gmra.mxu0 %v11524_v60  ;;  %v11623_v60 = vld [vmem:[%s17802_s0 + $0x80] ss:$28 sps:$4 sm:$0xff]  }
  0x7b   :  { %2269 = vmatmul.mubr.bf16.gmra.mxu1 %v11525_v61  ;;  %2085 = vmatprep.mubr.bf16.mxu0 %v11529_v0  ;;  %v11624_v61 = vld [vmem:[%s17802_s0 + $0x88] ss:$28 sps:$4 sm:$0xff]  }
  0x7c   :  { %2278 = vmatprep.mubr.bf16.mxu1 %v11531_v1  ;;  %2388 = vmatpush2.bf16.msra.mxu0 %v11589_v2  ;;  %v11648_v0 = vld [vmem:[%s17801_s2 + $0x268] ss:$16 sps:$4 sm:$0xff]   ;;  %v11657_v1 = vld [vmem:[%s17801_s2 + $0x4c] ss:$16 sps:$4 sm:$0xff]  }
  0x7d   :  { %2389 = vmatprep.subr.bf16.mxu0 %v11600_v3  ;;  %v11660_v2 = vld [vmem:[%s17801_s2 + $0x24c] ss:$16 sps:$4 sm:$0xff]   ;;  %v11655_v3 = vld [vmem:[%s17801_s2 + $0x48] ss:$16 sps:$4 sm:$0xff]  }
  0x80   :  { %2390 = vmatpush2.bf16.msra.mxu0 %v11598_v4  ;;  %v11658_v4 = vld [vmem:[%s17801_s2 + $0x248] ss:$16 sps:$4 sm:$0xff]  }
  0x81   :  { %2745 = vmatprep.subr.bf16.mxu0 %v11607_v6  ;;  %v11670_v6 = vld [vmem:[%s17801_s2 + $0x22c] ss:$16 sps:$4 sm:$0xff]  }
  0x82   :  { %2086 = vmatmul.mubr.bf16.gmra.mxu0 %v11533_v5  ;;  %v11667_v5 = vld [vmem:[%s17801_s2 + $0x2c] ss:$16 sps:$4 sm:$0xff]  }
  0x83   :  { %2279 = vmatmul.mubr.bf16.gmra.mxu1 %v11534_v7  ;;  %2095 = vmatprep.mubr.bf16.mxu0 %v11538_v8  ;;  %v11633_v7 = vld [vmem:[%s17802_s0 + $0xb8] ss:$28 sps:$4 sm:$0xff]   ;;  %v11634_v8 = vld [vmem:[%s17802_s0 + $0xc0] ss:$28 sps:$4 sm:$0xff]  }
  0x84   :  { %2288 = vmatprep.mubr.bf16.mxu1 %v11540_v9  ;;  %v11641_v9 = vld [vmem:[%s17802_s0 + $0xf4] ss:$28 sps:$4 sm:$0xff]  }
  0x8a   :  { %2096 = vmatmul.mubr.bf16.gmra.mxu0 %v11542_v10  ;;  %v11665_v10 = vld [vmem:[%s17801_s2 + $0x28] ss:$16 sps:$4 sm:$0xff]  }
  0x8b   :  { %2289 = vmatmul.mubr.bf16.gmra.mxu1 %v11543_v11  ;;  %2105 = vmatprep.mubr.bf16.mxu0 %v11547_v12  ;;  %v11668_v11 = vld [vmem:[%s17801_s2 + $0x228] ss:$16 sps:$4 sm:$0xff]   ;;  %v11677_v12 = vld [vmem:[%s17801_s2 + $0xc] ss:$16 sps:$4 sm:$0xff]  }
  0x8c   :  { %2298 = vmatprep.mubr.bf16.mxu1 %v11549_v13  ;;  %v11680_v13 = vld [vmem:[%s17801_s2 + $0x20c] ss:$16 sps:$4 sm:$0xff]  }
  0x92   :  { %2106 = vmatmul.mubr.bf16.gmra.mxu0 %v11551_v14  ;;  %v11675_v14 = vld [vmem:[%s17801_s2 + $0x8] ss:$16 sps:$4 sm:$0xff]  }
  0x93   :  { %2299 = vmatmul.mubr.bf16.gmra.mxu1 %v11552_v15  ;;  %2115 = vmatprep.mubr.bf16.mxu0 %v11556_v16  ;;  %v11678_v15 = vld [vmem:[%s17801_s2 + $0x208] ss:$16 sps:$4 sm:$0xff]   ;;  %v11687_v16 = vld [vmem:[%s17801_s2 + $0x1ec] ss:$16 sps:$4 sm:$0xff]  }
  0x94   :  { %2308 = vmatprep.mubr.bf16.mxu1 %v11558_v17  ;;  %v11690_v17 = vld [vmem:[%s17801_s2 + $0x3ec] ss:$16 sps:$4 sm:$0xff]  }
  0x9a   :  { %2116 = vmatmul.mubr.bf16.gmra.mxu0 %v11560_v18  ;;  %v11643_v18 = vld [vmem:[%s17802_s0 + $0xf0] ss:$28 sps:$4 sm:$0xff]  }
  0x9b   :  { %2309 = vmatmul.mubr.bf16.gmra.mxu1 %v11561_v19  ;;  %2125 = vmatprep.mubr.bf16.mxu0 %v11565_v20  ;;  %v11644_v19 = vld [vmem:[%s17802_s0 + $0xf8] ss:$28 sps:$4 sm:$0xff]   ;;  %v11651_v20 = vld [vmem:[%s17802_s0 + $0x12c] ss:$28 sps:$4 sm:$0xff]  }
  0x9c   :  { %2318 = vmatprep.mubr.bf16.mxu1 %v11567_v21  ;;  %v11685_v21 = vld [vmem:[%s17801_s2 + $0x1e8] ss:$16 sps:$4 sm:$0xff]  }
  0xa2   :  { %2126 = vmatmul.mubr.bf16.gmra.mxu0 %v11569_v22  ;;  %v11688_v22 = vld [vmem:[%s17801_s2 + $0x3e8] ss:$16 sps:$4 sm:$0xff]  }
  0xa3   :  { %2319 = vmatmul.mubr.bf16.gmra.mxu1 %v11570_v23  ;;  %2135 = vmatprep.mubr.bf16.mxu0 %v11574_v24  ;;  %v11697_v23 = vld [vmem:[%s17801_s2 + $0x1cc] ss:$16 sps:$4 sm:$0xff]  }
  0xa4   :  { %2328 = vmatprep.mubr.bf16.mxu1 %v11576_v25  ;;  %v11700_v24 = vld [vmem:[%s17801_s2 + $0x3cc] ss:$16 sps:$4 sm:$0xff]   ;;  %v11695_v25 = vld [vmem:[%s17801_s2 + $0x1c8] ss:$16 sps:$4 sm:$0xff]  }
  0xaa   :  { %2136 = vmatmul.mubr.bf16.gmra.mxu0 %v11578_v26  ;;  %v11698_v26 = vld [vmem:[%s17801_s2 + $0x3c8] ss:$16 sps:$4 sm:$0xff]  }
  0xab   :  { %2329 = vmatmul.mubr.bf16.gmra.mxu1 %v11579_v27  ;;  %2145 = vmatprep.mubr.bf16.mxu0 %v11583_v28  ;;  %v11707_v27 = vld [vmem:[%s17801_s2 + $0x1ac] ss:$16 sps:$4 sm:$0xff]  }
  0xac   :  { %2338 = vmatprep.mubr.bf16.mxu1 %v11585_v29  ;;  %v11710_v28 = vld [vmem:[%s17801_s2 + $0x3ac] ss:$16 sps:$4 sm:$0xff]   ;;  %v11653_v29 = vld [vmem:[%s17802_s0 + $0x128] ss:$28 sps:$4 sm:$0xff]  }
  0xb2   :  { %2146 = vmatmul.mubr.bf16.gmra.mxu0 %v11587_v30  ;;  %v11654_v30 = vld [vmem:[%s17802_s0 + $0x130] ss:$28 sps:$4 sm:$0xff]  }
  0xb3   :  { %2339 = vmatmul.mubr.bf16.gmra.mxu1 %v11588_v31  ;;  %2155 = vmatprep.mubr.bf16.mxu0 %v11592_v32  ;;  %v11661_v31 = vld [vmem:[%s17802_s0 + $0x164] ss:$28 sps:$4 sm:$0xff]   ;;  %v11705_v32 = vld [vmem:[%s17801_s2 + $0x1a8] ss:$16 sps:$4 sm:$0xff]  }
  0xb4   :  { %2348 = vmatprep.mubr.bf16.mxu1 %v11594_v33  ;;  %v11708_v33 = vld [vmem:[%s17801_s2 + $0x3a8] ss:$16 sps:$4 sm:$0xff]  }
  0xba   :  { %2156 = vmatmul.mubr.bf16.gmra.mxu0 %v11596_v34  ;;  %v11717_v34 = vld [vmem:[%s17801_s2 + $0x18c] ss:$16 sps:$4 sm:$0xff]  }
  0xbb   :  { %2349 = vmatmul.mubr.bf16.gmra.mxu1 %v11597_v35  ;;  %2391 = vmatprep.mubr.bf16.mxu0 %v11603_v36  ;;  %v11720_v35 = vld [vmem:[%s17801_s2 + $0x38c] ss:$16 sps:$4 sm:$0xff]   ;;  %v11715_v36 = vld [vmem:[%s17801_s2 + $0x188] ss:$16 sps:$4 sm:$0xff]  }
  0xbc   :  { %2584 = vmatprep.mubr.bf16.mxu1 %v17813_v37 }
  0xc2   :  { %2392 = vmatmul.mubr.bf16.vlgmr.msra.gmra.mxu0 %v11601_v38  ;;  %v11718_v38 = vld [vmem:[%s17801_s2 + $0x388] ss:$16 sps:$4 sm:$0xff]  }
  0xc3   :  { %10525 = vmatmul.mubr.msk.bf16.vlgmr.msra.gmra.mxu1 %vm1924_vm0, %v11604_v39  ;;  %2746 = vmatpush1.bf16.msra.mxu0 %v11605_v40  ;;  %v11727_v39 = vld [vmem:[%s17801_s2 + $0x16c] ss:$16 sps:$4 sm:$0xff]  }
  0xc4   :  { %2939 = vmatpush1.bf16.msra.mxu1 %v11608_v41  ;;  %2401 = vmatprep.mubr.bf16.mxu0 %v11611_v42  ;;  %v11730_v40 = vld [vmem:[%s17801_s2 + $0x36c] ss:$16 sps:$4 sm:$0xff]   ;;  %v11664_v42 = vld [vmem:[%s17802_s0 + $0x168] ss:$28 sps:$4 sm:$0xff]  }
  0xc5   :  { %2594 = vmatprep.mubr.bf16.mxu1 %v17813_v37  ;;  %2747 = vmatprep.subr.bf16.mxu0 %v11617_v43  ;;  %v11663_v41 = vld [vmem:[%s17802_s0 + $0x160] ss:$28 sps:$4 sm:$0xff]  }
  0xc6   :  { %2940 = vmatprep.subr.bf16.mxu1 %v11620_v44  ;;  %v11671_v43 = vld [vmem:[%s17802_s0 + $0x19c] ss:$28 sps:$4 sm:$0xff]  }
  0xc7   :  { %2748 = vmatpush1.bf16.msra.mxu0 %v11615_v45  ;;  %v11725_v44 = vld [vmem:[%s17801_s2 + $0x168] ss:$16 sps:$4 sm:$0xff]  }
  0xc8   :  { %2941 = vmatpush1.bf16.msra.mxu1 %v11618_v46  ;;  %2749 = vmatprep.subr.bf16.mxu0 %v11627_v47  ;;  %v11728_v45 = vld [vmem:[%s17801_s2 + $0x368] ss:$16 sps:$4 sm:$0xff]   ;;  %v11737_v46 = vld [vmem:[%s17801_s2 + $0x14c] ss:$16 sps:$4 sm:$0xff]  }
  0xc9   :  { %2942 = vmatprep.subr.bf16.mxu1 %v11630_v48  ;;  %v11740_v47 = vld [vmem:[%s17801_s2 + $0x34c] ss:$16 sps:$4 sm:$0xff]   ;;  %v364_v48 = vlaneseq }
  0xca   :  { %2402 = vmatmul.mubr.bf16.gmra.mxu0 %v11613_v49  ;;  %v11735_v49 = vld [vmem:[%s17801_s2 + $0x148] ss:$16 sps:$4 sm:$0xff]  }
  0xcb   :  { %10526 = vmatmul.mubr.msk.bf16.gmra.mxu1 %vm1924_vm0, %v11614_v50  ;;  %2411 = vmatprep.mubr.bf16.mxu0 %v11621_v51  ;;  %v11738_v50 = vld [vmem:[%s17801_s2 + $0x348] ss:$16 sps:$4 sm:$0xff]   ;;  %v11747_v51 = vld [vmem:[%s17801_s2 + $0x12c] ss:$16 sps:$4 sm:$0xff]  }
  0xcc   :  { %2604 = vmatprep.mubr.bf16.mxu1 %v17813_v37  ;;  %2750 = vmatpush1.bf16.msra.mxu0 %v11625_v52  ;;  %v11750_v52 = vld [vmem:[%s17801_s2 + $0x32c] ss:$16 sps:$4 sm:$0xff]  }
  0xcd   :  { %2943 = vmatpush1.bf16.msra.mxu1 %v11628_v53  ;;  %2751 = vmatprep.subr.bf16.mxu0 %v11637_v54  ;;  %v11673_v53 = vld [vmem:[%s17802_s0 + $0x198] ss:$28 sps:$4 sm:$0xff]   ;;  %v11674_v54 = vld [vmem:[%s17802_s0 + $0x1a0] ss:$28 sps:$4 sm:$0xff]  }
  0xce   :  { %2944 = vmatprep.subr.bf16.mxu1 %v11640_v55  ;;  %v11681_v55 = vld [vmem:[%s17802_s0 + $0x1d4] ss:$28 sps:$4 sm:$0xff]  }
  0xd0   :  { %2752 = vmatpush1.bf16.msra.mxu0 %v11635_v56  ;;  %v13715_v56 = vshrl.u32 %v364_v48, 7 }
  0xd1   :  { %2945 = vmatpush1.bf16.msra.mxu1 %v11638_v57  ;;  %2753 = vmatprep.subr.bf16.mxu0 %v11647_v58  ;;  %v11745_v57 = vld [vmem:[%s17801_s2 + $0x128] ss:$16 sps:$4 sm:$0xff]  }
  0xd2   :  { %2946 = vmatprep.subr.bf16.mxu1 %v11650_v59  ;;  %2412 = vmatmul.mubr.bf16.gmra.mxu0 %v11623_v60  ;;  %17889 = vst [vmem:[#allocation2_spill] sm:$0xff] %v13715_v56  ;;  %v11748_v58 = vld [vmem:[%s17801_s2 + $0x328] ss:$16 sps:$4 sm:$0xff]   ;;  %v11757_v59 = vld [vmem:[%s17801_s2 + $0x10c] ss:$16 sps:$4 sm:$0xff]  }
  0xd3   :  { %10527 = vmatmul.mubr.msk.bf16.gmra.mxu1 %vm1924_vm0, %v11624_v61  ;;  %2421 = vmatprep.mubr.bf16.mxu0 %v11631_v62  ;;  %v11760_v60 = vld [vmem:[%s17801_s2 + $0x30c] ss:$16 sps:$4 sm:$0xff]   ;;  %v13732_v61 = vsub.s32 0, %v13715_v56  ;;  %v362_v62 = vld [vmem:[%s17803_s3] sm:$0xf] }
  0xd4   :  { %2614 = vmatprep.mubr.bf16.mxu1 %v17813_v37  ;;  %2754 = vmatpush1.bf16.msra.mxu0 %v11645_v63  ;;  %v11755_v63 = vld [vmem:[%s17801_s2 + $0x108] ss:$16 sps:$4 sm:$0xff]  }
  0xd5   :  { %2947 = vmatpush1.bf16.msra.mxu1 %v11648_v0  ;;  %2755 = vmatprep.subr.bf16.mxu0 %v11657_v1  ;;  %17890 = vst [vmem:[#allocation3_spill] sm:$0xff] %v13732_v61  ;;  %v11758_v0 = vld [vmem:[%s17801_s2 + $0x308] ss:$16 sps:$4 sm:$0xff]   ;;  %v13744_v1 = vsub.s32 1, %v13715_v56 }
  0xd6   :  { %2948 = vmatprep.subr.bf16.mxu1 %v11660_v2  ;;  %v11763_v2 = vld [vmem:[%s17801_s2 + $0x4ec] ss:$16 sps:$4 sm:$0xff]  }
  0xd7   :  { %17891 = vst [vmem:[#allocation4_spill] sm:$0xff] %v13744_v1 }
  0xd8   :  { %2756 = vmatpush1.bf16.msra.mxu0 %v11655_v3  ;;  %v11766_v3 = vld [vmem:[%s17801_s2 + $0x60c] ss:$16 sps:$4 sm:$0xff]  }
  0xd9   :  { %2949 = vmatpush1.bf16.msra.mxu1 %v11658_v4  ;;  %2757 = vmatprep.subr.bf16.mxu0 %v11667_v5  ;;  %v11683_v4 = vld [vmem:[%s17802_s0 + $0x1d0] ss:$28 sps:$4 sm:$0xff]   ;;  %v11684_v5 = vld [vmem:[%s17802_s0 + $0x1d8] ss:$28 sps:$4 sm:$0xff]  }
  0xda   :  { %2950 = vmatprep.subr.bf16.mxu1 %v11670_v6  ;;  %2422 = vmatmul.mubr.bf16.gmra.mxu0 %v11633_v7  ;;  %v13759_v6 = vrot.slane %v362_v62, %v13732_v61  ;;  %v11691_v7 = vld [vmem:[%s17802_s0 + $0x20c] ss:$28 sps:$4 sm:$0xff]  }
  0xdb   :  { %10528 = vmatmul.mubr.msk.bf16.gmra.mxu1 %vm1924_vm0, %v11634_v8  ;;  %2431 = vmatprep.mubr.bf16.mxu0 %v11641_v9  ;;  %v13765_v8 = vrot.slane %v362_v62, %v13744_v1 }
  0xdc   :  { %2624 = vmatprep.mubr.bf16.mxu1 %v17813_v37  ;;  %2758 = vmatpush1.bf16.msra.mxu0 %v11665_v10 }
  0xdd   :  { %2951 = vmatpush1.bf16.msra.mxu1 %v11668_v11  ;;  %2759 = vmatprep.subr.bf16.mxu0 %v11677_v12 }
  0xde   :  { %2952 = vmatprep.subr.bf16.mxu1 %v11680_v13 }
  0xe0   :  { %2760 = vmatpush1.bf16.msra.mxu0 %v11675_v14 }
  0xe1   :  { %2953 = vmatpush1.bf16.msra.mxu1 %v11678_v15  ;;  %2761 = vmatprep.subr.bf16.mxu0 %v11687_v16 }
  0xe2   :  { %2954 = vmatprep.subr.bf16.mxu1 %v11690_v17  ;;  %2432 = vmatmul.mubr.bf16.gmra.mxu0 %v11643_v18  ;;  %v11693_v18 = vld [vmem:[%s17802_s0 + $0x208] ss:$28 sps:$4 sm:$0xff]  }
  0xe3   :  { %10529 = vmatmul.mubr.msk.bf16.gmra.mxu1 %vm1924_vm0, %v11644_v19  ;;  %2441 = vmatprep.mubr.bf16.mxu0 %v11651_v20  ;;  %v11694_v19 = vld [vmem:[%s17802_s0 + $0x210] ss:$28 sps:$4 sm:$0xff]  }
  0xe4   :  { %2634 = vmatprep.mubr.bf16.mxu1 %v17813_v37  ;;  %2762 = vmatpush2.bf16.msra.mxu0 %v11685_v21 }
  0xe5   :  { %2955 = vmatpush2.bf16.msra.mxu1 %v11688_v22  ;;  %2763 = vmatprep.subr.bf16.mxu0 %v11697_v23  ;;  %v11701_v22 = vld [vmem:[%s17802_s0 + $0x244] ss:$28 sps:$4 sm:$0xff]  }
  0xe6   :  { %2956 = vmatprep.subr.bf16.mxu1 %v11700_v24 }
  0xe8   :  { %2764 = vmatpush2.bf16.msra.mxu0 %v11695_v25 }
  0xe9   :  { %2957 = vmatpush2.bf16.msra.mxu1 %v11698_v26  ;;  %2765 = vmatprep.subr.bf16.mxu0 %v11707_v27 }
  0xea   :  { %2958 = vmatprep.subr.bf16.mxu1 %v11710_v28  ;;  %2442 = vmatmul.mubr.bf16.gmra.mxu0 %v11653_v29 }
  0xeb   :  { %10530 = vmatmul.mubr.msk.bf16.gmra.mxu1 %vm1924_vm0, %v11654_v30  ;;  %2451 = vmatprep.mubr.bf16.mxu0 %v11661_v31 }
  0xec   :  { %2644 = vmatprep.mubr.bf16.mxu1 %v17813_v37  ;;  %2766 = vmatpush2.bf16.msra.mxu0 %v11705_v32 }
  0xed   :  { %2959 = vmatpush2.bf16.msra.mxu1 %v11708_v33  ;;  %2767 = vmatprep.subr.bf16.mxu0 %v11717_v34 }
  0xee   :  { %2960 = vmatprep.subr.bf16.mxu1 %v11720_v35 }
  0xf0   :  { %2768 = vmatpush2.bf16.msra.mxu0 %v11715_v36 }
  0xf1   :  { %2961 = vmatpush2.bf16.msra.mxu1 %v11718_v38  ;;  %2769 = vmatprep.subr.bf16.mxu0 %v11727_v39  ;;  %v11703_v38 = vld [vmem:[%s17802_s0 + $0x240] ss:$28 sps:$4 sm:$0xff]   ;;  %v11704_v39 = vld [vmem:[%s17802_s0 + $0x248] ss:$28 sps:$4 sm:$0xff]  }
  0xf2   :  { %2962 = vmatprep.subr.bf16.mxu1 %v11730_v40  ;;  %2452 = vmatmul.mubr.bf16.gmra.mxu0 %v11663_v41 }
  0xf3   :  { %10531 = vmatmul.mubr.msk.bf16.gmra.mxu1 %vm1924_vm0, %v11664_v42  ;;  %2461 = vmatprep.mubr.bf16.mxu0 %v11671_v43  ;;  %v11711_v42 = vld [vmem:[%s17802_s0 + $0x27c] ss:$28 sps:$4 sm:$0xff]  }
  0xf4   :  { %2654 = vmatprep.mubr.bf16.mxu1 %v17813_v37  ;;  %2770 = vmatpush2.bf16.msra.mxu0 %v11725_v44 }
  0xf5   :  { %2963 = vmatpush2.bf16.msra.mxu1 %v11728_v45  ;;  %2771 = vmatprep.subr.bf16.mxu0 %v11737_v46 }
  0xf6   :  { %2964 = vmatprep.subr.bf16.mxu1 %v11740_v47 }
  0xf8   :  { %2772 = vmatpush2.bf16.msra.mxu0 %v11735_v49 }
  0xf9   :  { %2965 = vmatpush2.bf16.msra.mxu1 %v11738_v50  ;;  %2773 = vmatprep.subr.bf16.mxu0 %v11747_v51 }
  0xfa   :  { %2966 = vmatprep.subr.bf16.mxu1 %v11750_v52  ;;  %2462 = vmatmul.mubr.bf16.gmra.mxu0 %v11673_v53 }
  0xfb   :  { %10532 = vmatmul.mubr.msk.bf16.gmra.mxu1 %vm1924_vm0, %v11674_v54  ;;  %2471 = vmatprep.mubr.bf16.mxu0 %v11681_v55 }
  0xfc   :  { %2664 = vmatprep.mubr.bf16.mxu1 %v17813_v37  ;;  %2774 = vmatpush2.bf16.msra.mxu0 %v11745_v57 }
  0xfd   :  { %2967 = vmatpush2.bf16.msra.mxu1 %v11748_v58  ;;  %2775 = vmatprep.subr.bf16.mxu0 %v11757_v59  ;;  %v11713_v58 = vld [vmem:[%s17802_s0 + $0x278] ss:$28 sps:$4 sm:$0xff]   ;;  %v11714_v59 = vld [vmem:[%s17802_s0 + $0x280] ss:$28 sps:$4 sm:$0xff]  }
  0xfe   :  { %2968 = vmatprep.subr.bf16.mxu1 %v11760_v60 }
 0x100   :  { %2776 = vmatpush2.bf16.msra.mxu0 %v11755_v63  ;;  %v11723_v63 = vld [vmem:[%s17802_s0 + $0x2b4] ss:$28 sps:$4 sm:$0xff]  }
 0x101   :  { %2969 = vmatpush2.bf16.msra.mxu1 %v11758_v0  ;;  %3131 = vmatprep.subr.bf16.mxu0 %v11763_v2 }
 0x102   :  { %3338 = vmatprep.subr.bf16.mxu1 %v11766_v3  ;;  %v2007_v9 = vpop.f32.mrf.mxu0  ;;  %2472 = vmatmul.mubr.bf16.gmra.mxu0 %v11683_v4 }
 0x103   :  { %v2200_v10 = vpop.f32.mrf.mxu1  ;;  %10533 = vmatmul.mubr.msk.bf16.gmra.mxu1 %vm1924_vm0, %v11684_v5  ;;  %v2008_v11 = vadd.f32 %v2007_v9, %v13759_v6  ;;  %2481 = vmatprep.mubr.bf16.mxu0 %v11691_v7 }
 0x104   :  { %2674 = vmatprep.mubr.bf16.mxu1 %v17813_v37  ;;  %v2009_v12 = vpop.f32.mrf.mxu0 }
 0x105   :  { %v2202_v13 = vpop.f32.mrf.mxu1  ;;  %v13770_v14 = vadd.f32 %v2200_v10, %v2008_v11  ;;  %v2010_v15 = vadd.f32 %v2009_v12, %v13765_v8 }
 0x106   :  { %v2011_v16 = vpop.f32.mrf.mxu0 }
 0x107   :  { %v2204_v17 = vpop.f32.mrf.mxu1  ;;  %v13779_v20 = vadd.f32 %v2202_v13, %v2010_v15  ;;  %v2012_v21 = vadd.f32 %v2011_v16, %v13759_v6 }
 0x108   :  { %v2013_v23 = vpop.f32.mrf.mxu0 }
 0x109   :  { %v2206_v24 = vpop.f32.mrf.mxu1  ;;  %v13785_v25 = vadd.f32 %v2204_v17, %v2012_v21  ;;  %v2014_v26 = vadd.f32 %v2013_v23, %v13765_v8  ;;  %v11733_v23 = vld [vmem:[%s17802_s0 + $0x2ec] ss:$28 sps:$4 sm:$0xff]  }
 0x10a   :  { %v2017_v27 = vpop.f32.mrf.mxu0  ;;  %2482 = vmatmul.mubr.bf16.gmra.mxu0 %v11693_v18  ;;  %v11721_v18 = vld [vmem:[%s17802_s0 + $0x2b0] ss:$28 sps:$4 sm:$0xff]  }
 0x10b   :  { %v2210_v28 = vpop.f32.mrf.mxu1  ;;  %10534 = vmatmul.mubr.msk.bf16.gmra.mxu1 %vm1924_vm0, %v11694_v19  ;;  %v13789_v29 = vadd.f32 %v2206_v24, %v2014_v26  ;;  %v2018_v30 = vadd.f32 %v2017_v27, %v13759_v6  ;;  %2491 = vmatprep.mubr.bf16.mxu0 %v11701_v22  ;;  %v11724_v19 = vld [vmem:[%s17802_s0 + $0x2b8] ss:$28 sps:$4 sm:$0xff]  }
 0x10c   :  { %2684 = vmatprep.mubr.bf16.mxu1 %v17813_v37  ;;  %v2019_v31 = vpop.f32.mrf.mxu0 }
 0x10d   :  { %v2212_v32 = vpop.f32.mrf.mxu1  ;;  %v13793_v33 = vadd.f32 %v2210_v28, %v2018_v30  ;;  %v2020_v34 = vadd.f32 %v2019_v31, %v13765_v8 }
 0x10e   :  { %v2021_v35 = vpop.f32.mrf.mxu0 }
 0x10f   :  { %v2214_v36 = vpop.f32.mrf.mxu1  ;;  %v13802_v40 = vadd.f32 %v2212_v32, %v2020_v34  ;;  %v2022_v41 = vadd.f32 %v2021_v35, %v13759_v6 }
 0x110   :  { %v2023_v43 = vpop.f32.mrf.mxu0 }
 0x111   :  { %v2216_v44 = vpop.f32.mrf.mxu1  ;;  %v13808_v45 = vadd.f32 %v2214_v36, %v2022_v41  ;;  %v2024_v46 = vadd.f32 %v2023_v43, %v13765_v8  ;;  %v11731_v43 = vld [vmem:[%s17802_s0 + $0x2e8] ss:$28 sps:$4 sm:$0xff]  }
 0x112   :  { %v2027_v47 = vpop.f32.mrf.mxu0  ;;  %2492 = vmatmul.mubr.bf16.gmra.mxu0 %v11703_v38 }
 0x113   :  { %v2220_v48 = vpop.f32.mrf.mxu1  ;;  %10535 = vmatmul.mubr.msk.bf16.gmra.mxu1 %vm1924_vm0, %v11704_v39  ;;  %v13812_v49 = vadd.f32 %v2216_v44, %v2024_v46  ;;  %v2028_v50 = vadd.f32 %v2027_v47, %v13759_v6  ;;  %2501 = vmatprep.mubr.bf16.mxu0 %v11711_v42  ;;  %v11734_v44 = vld [vmem:[%s17802_s0 + $0x2f0] ss:$28 sps:$4 sm:$0xff]  }
 0x114   :  { %2694 = vmatprep.mubr.bf16.mxu1 %v17813_v37  ;;  %v2029_v51 = vpop.f32.mrf.mxu0 }
 0x115   :  { %v2222_v52 = vpop.f32.mrf.mxu1  ;;  %v13816_v53 = vadd.f32 %v2220_v48, %v2028_v50  ;;  %v2030_v54 = vadd.f32 %v2029_v51, %v13765_v8  ;;  %v11743_v48 = vld [vmem:[%s17802_s0 + $0x324] ss:$28 sps:$4 sm:$0xff]  }
 0x116   :  { %v2031_v55 = vpop.f32.mrf.mxu0 }
 0x117   :  { %v2224_v57 = vpop.f32.mrf.mxu1  ;;  %v13825_v60 = vadd.f32 %v2222_v52, %v2030_v54  ;;  %v2032_v62 = vadd.f32 %v2031_v55, %v13759_v6 }
 0x118   :  { %v2033_v0 = vpop.f32.mrf.mxu0 }
 0x119   :  { %v2226_v2 = vpop.f32.mrf.mxu1  ;;  %v13831_v3 = vadd.f32 %v2224_v57, %v2032_v62  ;;  %v2034_v4 = vadd.f32 %v2033_v0, %v13765_v8 }
 0x11a   :  { %v2037_v5 = vpop.f32.mrf.mxu0  ;;  %2502 = vmatmul.mubr.bf16.gmra.mxu0 %v11713_v58 }
 0x11b   :  { %v2230_v7 = vpop.f32.mrf.mxu1  ;;  %10536 = vmatmul.mubr.msk.bf16.gmra.mxu1 %vm1924_vm0, %v11714_v59  ;;  %v13835_v9 = vadd.f32 %v2226_v2, %v2034_v4  ;;  %v2038_v10 = vadd.f32 %v2037_v5, %v13759_v6  ;;  %2511 = vmatprep.mubr.bf16.mxu0 %v11723_v63 }
 0x11c   :  { %2704 = vmatprep.mubr.bf16.mxu1 %v17813_v37  ;;  %v2039_v11 = vpop.f32.mrf.mxu0 }
 0x11d   :  { %v2232_v12 = vpop.f32.mrf.mxu1  ;;  %v13839_v13 = vadd.f32 %v2230_v7, %v2038_v10  ;;  %v2040_v15 = vadd.f32 %v2039_v11, %v13765_v8  ;;  %v11741_v7 = vld [vmem:[%s17802_s0 + $0x320] ss:$28 sps:$4 sm:$0xff]   ;;  %v11744_v10 = vld [vmem:[%s17802_s0 + $0x328] ss:$28 sps:$4 sm:$0xff]  }
 0x11e   :  { %v2041_v16 = vpop.f32.mrf.mxu0 }
 0x11f   :  { %v2234_v17 = vpop.f32.mrf.mxu1  ;;  %v13848_v21 = vadd.f32 %v2232_v12, %v2040_v15  ;;  %v2042_v22 = vadd.f32 %v2041_v16, %v13759_v6  ;;  %v11753_v15 = vld [vmem:[%s17802_s0 + $0x35c] ss:$28 sps:$4 sm:$0xff]  }
 0x120   :  { %v2043_v24 = vpop.f32.mrf.mxu0 }
 0x121   :  { %v2236_v26 = vpop.f32.mrf.mxu1  ;;  %v13854_v27 = vadd.f32 %v2234_v17, %v2042_v22  ;;  %v2044_v28 = vadd.f32 %v2043_v24, %v13765_v8 }
 0x122   :  { %v2047_v30 = vpop.f32.mrf.mxu0  ;;  %2512 = vmatmul.mubr.bf16.gmra.mxu0 %v11721_v18 }
 0x123   :  { %v2240_v31 = vpop.f32.mrf.mxu1  ;;  %10537 = vmatmul.mubr.msk.bf16.gmra.mxu1 %vm1924_vm0, %v11724_v19  ;;  %v13858_v32 = vadd.f32 %v2236_v26, %v2044_v28  ;;  %v2048_v34 = vadd.f32 %v2047_v30, %v13759_v6  ;;  %2521 = vmatprep.mubr.bf16.mxu0 %v11733_v23 }
 0x124   :  { %2714 = vmatprep.mubr.bf16.mxu1 %v17813_v37  ;;  %v2049_v35 = vpop.f32.mrf.mxu0 }
 0x125   :  { %v2242_v36 = vpop.f32.mrf.mxu1  ;;  %v13862_v38 = vadd.f32 %v2240_v31, %v2048_v34  ;;  %v2050_v39 = vadd.f32 %v2049_v35, %v13765_v8 }
 0x126   :  { %v2051_v41 = vpop.f32.mrf.mxu0 }
 0x127   :  { %v2244_v42 = vpop.f32.mrf.mxu1  ;;  %v13871_v46 = vadd.f32 %v2242_v36, %v2050_v39  ;;  %v2052_v47 = vadd.f32 %v2051_v41, %v13759_v6  ;;  %v11751_v39 = vld [vmem:[%s17802_s0 + $0x358] ss:$28 sps:$4 sm:$0xff]   ;;  %v11754_v41 = vld [vmem:[%s17802_s0 + $0x360] ss:$28 sps:$4 sm:$0xff]  }
 0x128   :  { %v2053_v50 = vpop.f32.mrf.mxu0 }
 0x129   :  { %v2246_v51 = vpop.f32.mrf.mxu1  ;;  %v13877_v52 = vadd.f32 %v2244_v42, %v2052_v47  ;;  %v2054_v54 = vadd.f32 %v2053_v50, %v13765_v8 }
 0x12a   :  { %v2057_v55 = vpop.f32.mrf.mxu0  ;;  %2522 = vmatmul.mubr.bf16.gmra.mxu0 %v11731_v43 }
 0x12b   :  { %v2250_v57 = vpop.f32.mrf.mxu1  ;;  %10538 = vmatmul.mubr.msk.bf16.gmra.mxu1 %vm1924_vm0, %v11734_v44  ;;  %v13881_v58 = vadd.f32 %v2246_v51, %v2054_v54  ;;  %v2058_v59 = vadd.f32 %v2057_v55, %v13759_v6  ;;  %2531 = vmatprep.mubr.bf16.mxu0 %v11743_v48 }
 0x12c   :  { %2724 = vmatprep.mubr.bf16.mxu1 %v17813_v37  ;;  %v2059_v62 = vpop.f32.mrf.mxu0 }
 0x12d   :  { %v2252_v63 = vpop.f32.mrf.mxu1  ;;  %v13885_v0 = vadd.f32 %v2250_v57, %v2058_v59  ;;  %v2060_v2 = vadd.f32 %v2059_v62, %v13765_v8  ;;  %v12788_v59 = vld [vmem:[%s17802_s0 + $0x4] ss:$28 sps:$4 sm:$0xff]   ;;  %v12789_v62 = vld [vmem:[%s17802_s0 + $0xc] ss:$28 sps:$4 sm:$0xff]  }
 0x12e   :  { %v2061_v4 = vpop.f32.mrf.mxu0 }
 0x12f   :  { %v2254_v5 = vpop.f32.mrf.mxu1  ;;  %v13894_v11 = vadd.f32 %v2252_v63, %v2060_v2  ;;  %v2062_v12 = vadd.f32 %v2061_v4, %v13759_v6 }
 0x130   :  { %v2063_v16 = vpop.f32.mrf.mxu0 }
 0x131   :  { %v2256_v17 = vpop.f32.mrf.mxu1  ;;  %v13900_v18 = vadd.f32 %v2254_v5, %v2062_v12  ;;  %v2064_v19 = vadd.f32 %v2063_v16, %v13765_v8  ;;  %v11761_v16 = vld [vmem:[%s17801_s2 + $0x4e8] ss:$16 sps:$4 sm:$0xff]  }
 0x132   :  { %v2067_v22 = vpop.f32.mrf.mxu0  ;;  %2532 = vmatmul.mubr.bf16.gmra.mxu0 %v11741_v7 }
 0x133   :  { %v2260_v23 = vpop.f32.mrf.mxu1  ;;  %10539 = vmatmul.mubr.msk.bf16.gmra.mxu1 %vm1924_vm0, %v11744_v10  ;;  %v13904_v24 = vadd.f32 %v2256_v17, %v2064_v19  ;;  %v2068_v26 = vadd.f32 %v2067_v22, %v13759_v6  ;;  %2541 = vmatprep.mubr.bf16.mxu0 %v11753_v15  ;;  %v11764_v17 = vld [vmem:[%s17801_s2 + $0x608] ss:$16 sps:$4 sm:$0xff]  }
 0x134   :  { %2734 = vmatprep.mubr.bf16.mxu1 %v17813_v37  ;;  %v2069_v28 = vpop.f32.mrf.mxu0 }
 0x135   :  { %v2262_v30 = vpop.f32.mrf.mxu1  ;;  %v13908_v31 = vadd.f32 %v2260_v23, %v2068_v26  ;;  %v2070_v34 = vadd.f32 %v2069_v28, %v13765_v8  ;;  %v11769_v28 = vld [vmem:[%s17801_s2 + $0x4cc] ss:$16 sps:$4 sm:$0xff]  }
 0x136   :  { %v2071_v35 = vpop.f32.mrf.mxu0 }
 0x137   :  { %v2264_v36 = vpop.f32.mrf.mxu1  ;;  %v13917_v42 = vadd.f32 %v2262_v30, %v2070_v34  ;;  %v2072_v43 = vadd.f32 %v2071_v35, %v13759_v6  ;;  %v12790_v35 = vld [vmem:[%s17802_s0] ss:$28 sps:$4 sm:$0xff]  }
 0x138   :  { %v2073_v44 = vpop.f32.mrf.mxu0 }
 0x139   :  { %v2266_v47 = vpop.f32.mrf.mxu1  ;;  %v13920_v48 = vadd.f32 %v2264_v36, %v2072_v43  ;;  %v2074_v50 = vadd.f32 %v2073_v44, %v13765_v8  ;;  %v12791_v36 = vld [vmem:[%s17802_s0 + $0x8] ss:$28 sps:$4 sm:$0xff]  }
 0x13a   :  { %v2077_v51 = vpop.f32.mrf.mxu0  ;;  %2542 = vmatmul.mubr.bf16.gmra.mxu0 %v11751_v39  ;;  %v11767_v43 = vld [vmem:[%s17801_s2 + $0x4c8] ss:$16 sps:$4 sm:$0xff]  }
 0x13b   :  { %v2270_v54 = vpop.f32.mrf.mxu1  ;;  %10540 = vmatmul.mubr.msk.bf16.gmra.mxu1 %vm1924_vm0, %v11754_v41  ;;  %v13924_v55 = vadd.f32 %v2266_v47, %v2074_v50  ;;  %v2078_v57 = vadd.f32 %v2077_v51, %v13759_v6  ;;  %2777 = vmatprep.mubr.bf16.mxu0 %v12788_v59  ;;  %v12792_v50 = vld [vmem:[%s17802_s0 + $0x3c] ss:$28 sps:$4 sm:$0xff]   ;;  %v12793_v51 = vld [vmem:[%s17802_s0 + $0x44] ss:$28 sps:$4 sm:$0xff]  }
 0x13c   :  { %2970 = vmatprep.mubr.bf16.mxu1 %v12789_v62  ;;  %v2079_v63 = vpop.f32.mrf.mxu0 }
 0x13d   :  { %v2272_v2 = vpop.f32.mrf.mxu1  ;;  %v13933_v4 = vadd.f32 %v2270_v54, %v2078_v57  ;;  %v2080_v5 = vadd.f32 %v2079_v63, %v13765_v8  ;;  %v11772_v54 = vld [vmem:[%s17801_s2 + $0x4ac] ss:$16 sps:$4 sm:$0xff]  }
 0x13e   :  { %v2081_v7 = vpop.f32.mrf.mxu0 }
 0x13f   :  { %v2274_v10 = vpop.f32.mrf.mxu1  ;;  %v13936_v12 = vadd.f32 %v2272_v2, %v2080_v5  ;;  %v2082_v15 = vadd.f32 %v2081_v7, %v13759_v6 }
 0x140   :  { %v2083_v19 = vpop.f32.mrf.mxu0 }
 0x141   :  { %v2276_v22 = vpop.f32.mrf.mxu1  ;;  %v13945_v23 = vadd.f32 %v2274_v10, %v2082_v15  ;;  %v2084_v26 = vadd.f32 %v2083_v19, %v13765_v8  ;;  %v11770_v15 = vld [vmem:[%s17801_s2 + $0x4a8] ss:$16 sps:$4 sm:$0xff]   ;;  %v11775_v19 = vld [vmem:[%s17801_s2 + $0x48c] ss:$16 sps:$4 sm:$0xff]  }
 0x142   :  { %v2087_v30 = vpop.f32.mrf.mxu0  ;;  %2778 = vmatmul.mubr.bf16.vlgmr.msra.gmra.mxu0 %v12790_v35 }
 0x143   :  { %v2280_v34 = vpop.f32.mrf.mxu1  ;;  %2971 = vmatmul.mubr.bf16.vlgmr.msra.gmra.mxu1 %v12791_v36  ;;  %v13957_v39 = vadd.f32 %v2276_v22, %v2084_v26  ;;  %v2088_v41 = vadd.f32 %v2087_v30, %v13759_v6  ;;  %3132 = vmatpush1.bf16.msra.mxu0 %v11761_v16  ;;  %v12795_v30 = vld [vmem:[%s17802_s0 + $0x40] ss:$28 sps:$4 sm:$0xff]   ;;  %v12796_v36 = vld [vmem:[%s17802_s0 + $0x74] ss:$28 sps:$4 sm:$0xff]  }
 0x144   :  { %3339 = vmatpush1.bf16.msra.mxu1 %v11764_v17  ;;  %v2089_v44 = vpop.f32.mrf.mxu0  ;;  %2787 = vmatprep.mubr.bf16.mxu0 %v12792_v50 }
 0x145   :  { %v2282_v47 = vpop.f32.mrf.mxu1  ;;  %2980 = vmatprep.mubr.bf16.mxu1 %v12793_v51  ;;  %v13972_v57 = vadd.f32 %v2280_v34, %v2088_v41  ;;  %v2090_v59 = vadd.f32 %v2089_v44, %v13765_v8  ;;  %3133 = vmatprep.subr.bf16.mxu0 %v11769_v28  ;;  %v12794_v28 = vld [vmem:[%s17802_s0 + $0x38] ss:$28 sps:$4 sm:$0xff]  }
 0x146   :  { %v2091_v62 = vpop.f32.mrf.mxu0  ;;  %v12797_v41 = vld [vmem:[%s17802_s0 + $0x7c] ss:$28 sps:$4 sm:$0xff]  }
 0x147   :  { %v2284_v63 = vpop.f32.mrf.mxu1  ;;  %v13975_v2 = vadd.f32 %v2282_v47, %v2090_v59  ;;  %v2092_v5 = vadd.f32 %v2091_v62, %v13759_v6  ;;  %3134 = vmatpush1.bf16.msra.mxu0 %v11767_v43  ;;  %v11773_v47 = vld [vmem:[%s17801_s2 + $0x488] ss:$16 sps:$4 sm:$0xff]  }
 0x148   :  { %v2093_v7 = vpop.f32.mrf.mxu0  ;;  %3135 = vmatprep.subr.bf16.mxu0 %v11772_v54  ;;  %v11778_v54 = vld [vmem:[%s17801_s2 + $0x46c] ss:$16 sps:$4 sm:$0xff]  }
 0x149   :  { %v2286_v10 = vpop.f32.mrf.mxu1  ;;  %v13981_v16 = vadd.f32 %v2284_v63, %v2092_v5  ;;  %v2094_v17 = vadd.f32 %v2093_v7, %v13765_v8 }
 0x14a   :  { %v2097_v22 = vpop.f32.mrf.mxu0  ;;  %2788 = vmatmul.mubr.bf16.gmra.mxu0 %v12794_v28 }
 0x14b   :  { %v2290_v26 = vpop.f32.mrf.mxu1  ;;  %2981 = vmatmul.mubr.bf16.gmra.mxu1 %v12795_v30  ;;  %v13993_v34 = vadd.f32 %v2286_v10, %v2094_v17  ;;  %v2098_v35 = vadd.f32 %v2097_v22, %v13759_v6  ;;  %2797 = vmatprep.mubr.bf16.mxu0 %v12796_v36  ;;  %v11781_v22 = vld [vmem:[%s17801_s2 + $0x44c] ss:$16 sps:$4 sm:$0xff]  }
 0x14c   :  { %2990 = vmatprep.mubr.bf16.mxu1 %v12797_v41  ;;  %v2099_v43 = vpop.f32.mrf.mxu0  ;;  %3136 = vmatpush1.bf16.msra.mxu0 %v11770_v15  ;;  %v11776_v15 = vld [vmem:[%s17801_s2 + $0x468] ss:$16 sps:$4 sm:$0xff]   ;;  %v12798_v30 = vld [vmem:[%s17802_s0 + $0x70] ss:$28 sps:$4 sm:$0xff]  }
 0x14d   :  { %v2292_v44 = vpop.f32.mrf.mxu1  ;;  %v14005_v50 = vadd.f32 %v2290_v26, %v2098_v35  ;;  %v2100_v51 = vadd.f32 %v2099_v43, %v13765_v8  ;;  %3137 = vmatprep.subr.bf16.mxu0 %v11775_v19  ;;  %v12799_v35 = vld [vmem:[%s17802_s0 + $0x78] ss:$28 sps:$4 sm:$0xff]   ;;  %v12800_v43 = vld [vmem:[%s17802_s0 + $0xac] ss:$28 sps:$4 sm:$0xff]  }
 0x14e   :  { %v2101_v59 = vpop.f32.mrf.mxu0 }
 0x14f   :  { %v2294_v62 = vpop.f32.mrf.mxu1  ;;  %v14011_v63 = vadd.f32 %v2292_v44, %v2100_v51  ;;  %v2102_v5 = vadd.f32 %v2101_v59, %v13759_v6  ;;  %v12801_v44 = vld [vmem:[%s17802_s0 + $0xb4] ss:$28 sps:$4 sm:$0xff]  }
 0x150   :  { %v2103_v7 = vpop.f32.mrf.mxu0  ;;  %3138 = vmatpush1.bf16.msra.mxu0 %v11773_v47 }
 0x151   :  { %v2296_v10 = vpop.f32.mrf.mxu1  ;;  %v14017_v17 = vadd.f32 %v2294_v62, %v2102_v5  ;;  %v2104_v19 = vadd.f32 %v2103_v7, %v13765_v8  ;;  %3139 = vmatprep.subr.bf16.mxu0 %v11778_v54  ;;  %v11779_v54 = vld [vmem:[%s17801_s2 + $0x448] ss:$16 sps:$4 sm:$0xff]   ;;  %v11784_v5 = vld [vmem:[%s17801_s2 + $0x42c] ss:$16 sps:$4 sm:$0xff]  }
 0x152   :  { %v2107_v26 = vpop.f32.mrf.mxu0  ;;  %2798 = vmatmul.mubr.bf16.gmra.mxu0 %v12798_v30 }
 0x153   :  { %v2300_v28 = vpop.f32.mrf.mxu1  ;;  %2991 = vmatmul.mubr.bf16.gmra.mxu1 %v12799_v35  ;;  %v14029_v36 = vadd.f32 %v2296_v10, %v2104_v19  ;;  %v2108_v41 = vadd.f32 %v2107_v26, %v13759_v6  ;;  %2807 = vmatprep.mubr.bf16.mxu0 %v12800_v43 }
 0x154   :  { %3000 = vmatprep.mubr.bf16.mxu1 %v12801_v44  ;;  %v2109_v47 = vpop.f32.mrf.mxu0  ;;  %3140 = vmatpush1.bf16.msra.mxu0 %v11776_v15 }
 0x155   :  { %v2302_v51 = vpop.f32.mrf.mxu1  ;;  %v14041_v59 = vadd.f32 %v2300_v28, %v2108_v41  ;;  %v2110_v62 = vadd.f32 %v2109_v47, %v13765_v8  ;;  %3141 = vmatprep.subr.bf16.mxu0 %v11781_v22  ;;  %v11782_v28 = vld [vmem:[%s17801_s2 + $0x428] ss:$16 sps:$4 sm:$0xff]   ;;  %v11787_v41 = vld [vmem:[%s17801_s2 + $0x40c] ss:$16 sps:$4 sm:$0xff]  }
 0x156   :  { %v2111_v7 = vpop.f32.mrf.mxu0  ;;  %v12802_v47 = vld [vmem:[%s17802_s0 + $0xa8] ss:$28 sps:$4 sm:$0xff]  }
 0x157   :  { %v2304_v10 = vpop.f32.mrf.mxu1  ;;  %v14047_v19 = vadd.f32 %v2302_v51, %v2110_v62  ;;  %v2112_v26 = vadd.f32 %v2111_v7, %v13759_v6  ;;  %v12803_v51 = vld [vmem:[%s17802_s0 + $0xb0] ss:$28 sps:$4 sm:$0xff]  }
 0x158   :  { %v2113_v15 = vpop.f32.mrf.mxu0  ;;  %3142 = vmatpush1.bf16.msra.mxu0 %v11779_v54  ;;  %v12805_v7 = vld [vmem:[%s17802_s0 + $0xec] ss:$28 sps:$4 sm:$0xff]  }
 0x159   :  { %v2306_v30 = vpop.f32.mrf.mxu1  ;;  %v14053_v35 = vadd.f32 %v2304_v10, %v2112_v26  ;;  %v2114_v22 = vadd.f32 %v2113_v15, %v13765_v8  ;;  %3143 = vmatprep.subr.bf16.mxu0 %v11784_v5  ;;  %v12804_v5 = vld [vmem:[%s17802_s0 + $0xe4] ss:$28 sps:$4 sm:$0xff]   ;;  %v11785_v15 = vld [vmem:[%s17801_s2 + $0x408] ss:$16 sps:$4 sm:$0xff]  }
 0x15a   :  { %v2117_v43 = vpop.f32.mrf.mxu0  ;;  %2808 = vmatmul.mubr.bf16.gmra.mxu0 %v12802_v47 }
 0x15b   :  { %v2310_v44 = vpop.f32.mrf.mxu1  ;;  %3001 = vmatmul.mubr.bf16.gmra.mxu1 %v12803_v51  ;;  %v14065_v54 = vadd.f32 %v2306_v30, %v2114_v22  ;;  %v2118_v62 = vadd.f32 %v2117_v43, %v13759_v6  ;;  %2817 = vmatprep.mubr.bf16.mxu0 %v12804_v5  ;;  %v11790_v43 = vld [vmem:[%s17801_s2 + $0x5ec] ss:$16 sps:$4 sm:$0xff]  }
 0x15c   :  { %3010 = vmatprep.mubr.bf16.mxu1 %v12805_v7  ;;  %v2119_v10 = vpop.f32.mrf.mxu0  ;;  %3144 = vmatpush1.bf16.msra.mxu0 %v11782_v28 }
 0x15d   :  { %v2312_v26 = vpop.f32.mrf.mxu1  ;;  %v14077_v30 = vadd.f32 %v2310_v44, %v2118_v62  ;;  %v2120_v22 = vadd.f32 %v2119_v10, %v13765_v8  ;;  %3145 = vmatprep.subr.bf16.mxu0 %v11787_v41  ;;  %v11788_v44 = vld [vmem:[%s17801_s2 + $0x5e8] ss:$16 sps:$4 sm:$0xff]   ;;  %v11793_v10 = vld [vmem:[%s17801_s2 + $0x5cc] ss:$16 sps:$4 sm:$0xff]  }
 0x15e   :  { %v2121_v47 = vpop.f32.mrf.mxu0 }
 0x15f   :  { %v2314_v51 = vpop.f32.mrf.mxu1  ;;  %v14083_v5 = vadd.f32 %v2312_v26, %v2120_v22  ;;  %v2122_v7 = vadd.f32 %v2121_v47, %v13759_v6  ;;  %v12806_v47 = vld [vmem:[%s17802_s0 + $0xe0] ss:$28 sps:$4 sm:$0xff]  }
 0x160   :  { %v2123_v28 = vpop.f32.mrf.mxu0  ;;  %3146 = vmatpush1.bf16.msra.mxu0 %v11785_v15  ;;  %v12807_v15 = vld [vmem:[%s17802_s0 + $0xe8] ss:$28 sps:$4 sm:$0xff]  }
 0x161   :  { %v2316_v37 = vpop.f32.mrf.mxu1  ;;  %v14089_v62 = vadd.f32 %v2314_v51, %v2122_v7  ;;  %v2124_v41 = vadd.f32 %v2123_v28, %v13765_v8  ;;  %3147 = vmatprep.subr.bf16.mxu0 %v11790_v43  ;;  %v12808_v7 = vld [vmem:[%s17802_s0 + $0x11c] ss:$28 sps:$4 sm:$0xff]   ;;  %v12809_v28 = vld [vmem:[%s17802_s0 + $0x124] ss:$28 sps:$4 sm:$0xff]  }
 0x162   :  { %v2127_v26 = vpop.f32.mrf.mxu0  ;;  %2818 = vmatmul.mubr.bf16.gmra.mxu0 %v12806_v47 }
 0x163   :  { %17892 = vst [vmem:[#allocation5_spill] sm:$0xff] %v14089_v62  ;;  %v2320_v22 = vpop.f32.mrf.mxu1  ;;  %3011 = vmatmul.mubr.bf16.gmra.mxu1 %v12807_v15  ;;  %v14101_v51 = vadd.f32 %v2316_v37, %v2124_v41  ;;  %v2128_v43 = vadd.f32 %v2127_v26, %v13759_v6  ;;  %2827 = vmatprep.mubr.bf16.mxu0 %v12808_v7  ;;  %v11791_v37 = vld [vmem:[%s17801_s2 + $0x5c8] ss:$16 sps:$4 sm:$0xff]   ;;  %v11796_v15 = vld [vmem:[%s17801_s2 + $0x5ac] ss:$16 sps:$4 sm:$0xff]  }
 0x164   :  { %3020 = vmatprep.mubr.bf16.mxu1 %v12809_v28  ;;  %v2129_v47 = vpop.f32.mrf.mxu0  ;;  %3148 = vmatpush2.bf16.msra.mxu0 %v11788_v44 }
 0x165   :  { %17893 = vst [vmem:[#allocation6_spill] sm:$0xff] %v14101_v51  ;;  %v2322_v1 = vpop.f32.mrf.mxu1  ;;  %v14113_v41 = vadd.f32 %v2320_v22, %v2128_v43  ;;  %v2130_v26 = vadd.f32 %v2129_v47, %v13765_v8  ;;  %3149 = vmatprep.subr.bf16.mxu0 %v11793_v10  ;;  %v11794_v22 = vld [vmem:[%s17801_s2 + $0x5a8] ss:$16 sps:$4 sm:$0xff]   ;;  %v11799_v47 = vld [vmem:[%s17801_s2 + $0x58c] ss:$16 sps:$4 sm:$0xff]  }
 0x166   :  { %v2131_v7 = vpop.f32.mrf.mxu0 }
 0x167   :  { %17894 = vst [vmem:[#allocation7_spill] sm:$0xff] %v14113_v41  ;;  %v2324_v61 = vpop.f32.mrf.mxu1  ;;  %v14119_v56 = vadd.f32 %v2322_v1, %v2130_v26  ;;  %v2132_v28 = vadd.f32 %v2131_v7, %v13759_v6  ;;  %v12810_v7 = vld [vmem:[%s17802_s0 + $0x118] ss:$28 sps:$4 sm:$0xff]  }
 0x168   :  { %v2133_v44 = vpop.f32.mrf.mxu0  ;;  %3150 = vmatpush2.bf16.msra.mxu0 %v11791_v37  ;;  %v12811_v37 = vld [vmem:[%s17802_s0 + $0x120] ss:$28 sps:$4 sm:$0xff]  }
 0x169   :  { %17895 = vst [vmem:[#allocation8_spill] sm:$0xff] %v14119_v56  ;;  %v2326_v51 = vpop.f32.mrf.mxu1  ;;  %v14125_v43 = vadd.f32 %v2324_v61, %v2132_v28  ;;  %v2134_v10 = vadd.f32 %v2133_v44, %v13765_v8  ;;  %3151 = vmatprep.subr.bf16.mxu0 %v11796_v15  ;;  %v12812_v28 = vld [vmem:[%s17802_s0 + $0x154] ss:$28 sps:$4 sm:$0xff]   ;;  %v12813_v44 = vld [vmem:[%s17802_s0 + $0x15c] ss:$28 sps:$4 sm:$0xff]  }
 0x16a   :  { %v2137_v1 = vpop.f32.mrf.mxu0  ;;  %2828 = vmatmul.mubr.bf16.gmra.mxu0 %v12810_v7 }
 0x16b   :  { %17896 = vst [vmem:[#allocation9_spill] sm:$0xff] %v14125_v43  ;;  %v2330_v26 = vpop.f32.mrf.mxu1  ;;  %3021 = vmatmul.mubr.bf16.gmra.mxu1 %v12811_v37  ;;  %v14137_v61 = vadd.f32 %v2326_v51, %v2134_v10  ;;  %v2138_v15 = vadd.f32 %v2137_v1, %v13759_v6  ;;  %2837 = vmatprep.mubr.bf16.mxu0 %v12812_v28  ;;  %v11797_v51 = vld [vmem:[%s17801_s2 + $0x588] ss:$16 sps:$4 sm:$0xff]   ;;  %v11802_v37 = vld [vmem:[%s17801_s2 + $0x56c] ss:$16 sps:$4 sm:$0xff]  }
 0x16c   :  { %3030 = vmatprep.mubr.bf16.mxu1 %v12813_v44  ;;  %v2139_v7 = vpop.f32.mrf.mxu0  ;;  %3152 = vmatpush2.bf16.msra.mxu0 %v11794_v22 }
 0x16d   :  { %17897 = vst [vmem:[#allocation10_spill] sm:$0xff] %v14137_v61  ;;  %v2332_v43 = vpop.f32.mrf.mxu1  ;;  %v14149_v10 = vadd.f32 %v2330_v26, %v2138_v15  ;;  %v2140_v1 = vadd.f32 %v2139_v7, %v13765_v8  ;;  %3153 = vmatprep.subr.bf16.mxu0 %v11799_v47  ;;  %v11800_v26 = vld [vmem:[%s17801_s2 + $0x568] ss:$16 sps:$4 sm:$0xff]   ;;  %v11805_v7 = vld [vmem:[%s17801_s2 + $0x54c] ss:$16 sps:$4 sm:$0xff]  }
 0x16e   :  { %v2141_v28 = vpop.f32.mrf.mxu0 }
 0x16f   :  { %17898 = vst [vmem:[#allocation11_spill] sm:$0xff] %v14149_v10  ;;  %v2334_v61 = vpop.f32.mrf.mxu1  ;;  %v14155_v56 = vadd.f32 %v2332_v43, %v2140_v1  ;;  %v2142_v44 = vadd.f32 %v2141_v28, %v13759_v6  ;;  %v12814_v28 = vld [vmem:[%s17802_s0 + $0x150] ss:$28 sps:$4 sm:$0xff]  }
 0x170   :  { %v2143_v22 = vpop.f32.mrf.mxu0  ;;  %3154 = vmatpush2.bf16.msra.mxu0 %v11797_v51  ;;  %v12815_v51 = vld [vmem:[%s17802_s0 + $0x158] ss:$28 sps:$4 sm:$0xff]  }
 0x171   :  { %17899 = vst [vmem:[#allocation12_spill] sm:$0xff] %v14155_v56  ;;  %v2336_v41 = vpop.f32.mrf.mxu1  ;;  %v14161_v15 = vadd.f32 %v2334_v61, %v2142_v44  ;;  %v2144_v47 = vadd.f32 %v2143_v22, %v13765_v8  ;;  %3155 = vmatprep.subr.bf16.mxu0 %v11802_v37  ;;  %v12816_v44 = vld [vmem:[%s17802_s0 + $0x18c] ss:$28 sps:$4 sm:$0xff]   ;;  %v12817_v22 = vld [vmem:[%s17802_s0 + $0x194] ss:$28 sps:$4 sm:$0xff]  }
 0x172   :  { %v2147_v43 = vpop.f32.mrf.mxu0  ;;  %2838 = vmatmul.mubr.bf16.gmra.mxu0 %v12814_v28 }
 0x173   :  { %17900 = vst [vmem:[#allocation13_spill] sm:$0xff] %v14161_v15  ;;  %v2340_v1 = vpop.f32.mrf.mxu1  ;;  %3031 = vmatmul.mubr.bf16.gmra.mxu1 %v12815_v51  ;;  %v14173_v61 = vadd.f32 %v2336_v41, %v2144_v47  ;;  %v2148_v37 = vadd.f32 %v2147_v43, %v13759_v6  ;;  %2847 = vmatprep.mubr.bf16.mxu0 %v12816_v44  ;;  %v11803_v41 = vld [vmem:[%s17801_s2 + $0x548] ss:$16 sps:$4 sm:$0xff]   ;;  %v11808_v51 = vld [vmem:[%s17801_s2 + $0x52c] ss:$16 sps:$4 sm:$0xff]  }
 0x174   :  { %3040 = vmatprep.mubr.bf16.mxu1 %v12817_v22  ;;  %v2149_v28 = vpop.f32.mrf.mxu0  ;;  %3156 = vmatpush2.bf16.msra.mxu0 %v11800_v26 }
 0x175   :  { %17901 = vst [vmem:[#allocation14_spill] sm:$0xff] %v14173_v61  ;;  %v2342_v15 = vpop.f32.mrf.mxu1  ;;  %v14185_v47 = vadd.f32 %v2340_v1, %v2148_v37  ;;  %v2150_v43 = vadd.f32 %v2149_v28, %v13765_v8  ;;  %3157 = vmatprep.subr.bf16.mxu0 %v11805_v7  ;;  %v11806_v1 = vld [vmem:[%s17801_s2 + $0x528] ss:$16 sps:$4 sm:$0xff]   ;;  %v11811_v28 = vld [vmem:[%s17801_s2 + $0x50c] ss:$16 sps:$4 sm:$0xff]  }
 0x176   :  { %v2151_v44 = vpop.f32.mrf.mxu0 }
 0x177   :  { %17902 = vst [vmem:[#allocation15_spill] sm:$0xff] %v14185_v47  ;;  %v2344_v61 = vpop.f32.mrf.mxu1  ;;  %v14191_v56 = vadd.f32 %v2342_v15, %v2150_v43  ;;  %v2152_v22 = vadd.f32 %v2151_v44, %v13759_v6  ;;  %v12818_v44 = vld [vmem:[%s17802_s0 + $0x188] ss:$28 sps:$4 sm:$0xff]  }
 0x178   :  { %v2153_v26 = vpop.f32.mrf.mxu0  ;;  %3158 = vmatpush2.bf16.msra.mxu0 %v11803_v41  ;;  %v12819_v41 = vld [vmem:[%s17802_s0 + $0x190] ss:$28 sps:$4 sm:$0xff]  }
 0x179   :  { %17903 = vst [vmem:[#allocation16_spill] sm:$0xff] %v14191_v56  ;;  %v2346_v10 = vpop.f32.mrf.mxu1  ;;  %v14197_v37 = vadd.f32 %v2344_v61, %v2152_v22  ;;  %v2154_v7 = vadd.f32 %v2153_v26, %v13765_v8  ;;  %3159 = vmatprep.subr.bf16.mxu0 %v11808_v51  ;;  %v12820_v22 = vld [vmem:[%s17802_s0 + $0x1c4] ss:$28 sps:$4 sm:$0xff]   ;;  %v12821_v26 = vld [vmem:[%s17802_s0 + $0x1cc] ss:$28 sps:$4 sm:$0xff]  }
 0x17a   :  { %v2157_v15 = vpop.f32.mrf.mxu0  ;;  %2848 = vmatmul.mubr.bf16.gmra.mxu0 %v12818_v44 }
 0x17b   :  { %17904 = vst [vmem:[#allocation17_spill] sm:$0xff] %v14197_v37  ;;  %v2350_v43 = vpop.f32.mrf.mxu1  ;;  %3041 = vmatmul.mubr.bf16.gmra.mxu1 %v12819_v41  ;;  %v14209_v61 = vadd.f32 %v2346_v10, %v2154_v7  ;;  %v2158_v51 = vadd.f32 %v2157_v15, %v13759_v6  ;;  %2857 = vmatprep.mubr.bf16.mxu0 %v12820_v22  ;;  %v11809_v10 = vld [vmem:[%s17801_s2 + $0x508] ss:$16 sps:$4 sm:$0xff]  }
 0x17c   :  { %3050 = vmatprep.mubr.bf16.mxu1 %v12821_v26  ;;  %v2159_v44 = vpop.f32.mrf.mxu0  ;;  %3160 = vmatpush2.bf16.msra.mxu0 %v11806_v1  ;;  %v11814_v1 = vld [vmem:[%s17804_s4 + $0x74] ss:$8 sps:$4 sm:$0xff]  }
 0x17d   :  { %17905 = vst [vmem:[#allocation18_spill] sm:$0xff] %v14209_v61  ;;  %v2352_v37 = vpop.f32.mrf.mxu1  ;;  %v14221_v7 = vadd.f32 %v2350_v43, %v2158_v51  ;;  %v2160_v15 = vadd.f32 %v2159_v44, %v13765_v8  ;;  %3161 = vmatprep.subr.bf16.mxu0 %v11811_v28 }
 0x17e   :  { %v2161_v41 = vpop.f32.mrf.mxu0 }
 0x17f   :  { %17906 = vst [vmem:[#allocation19_spill] sm:$0xff] %v14221_v7  ;;  %v2354_v61 = vpop.f32.mrf.mxu1  ;;  %v14224_v22 = vadd.f32 %v2352_v37, %v2160_v15  ;;  %v2162_v56 = vadd.f32 %v2161_v41, %v13759_v6  ;;  %v12822_v37 = vld [vmem:[%s17802_s0 + $0x1c0] ss:$28 sps:$4 sm:$0xff]   ;;  %v12823_v6 = vld [vmem:[%s17802_s0 + $0x1c8] ss:$28 sps:$4 sm:$0xff]  }
 0x180   :  { %v2163_v47 = vpop.f32.mrf.mxu0  ;;  %3162 = vmatpush2.bf16.msra.mxu0 %v11809_v10 }
 0x181   :  { %17907 = vst [vmem:[#allocation20_spill] sm:$0xff] %v14224_v22  ;;  %v2356_v26 = vpop.f32.mrf.mxu1  ;;  %v14230_v62 = vadd.f32 %v2354_v61, %v2162_v56  ;;  %v2164_v43 = vadd.f32 %v2163_v47, %v13765_v8  ;;  %v12824_v56 = vld [vmem:[%s17802_s0 + $0x1fc] ss:$28 sps:$4 sm:$0xff]   ;;  %v12825_v8 = vld [vmem:[%s17802_s0 + $0x204] ss:$28 sps:$4 sm:$0xff]   ;;  %4105 = vmatprep.subr.bf16.mxu0 %v11814_v1 }
 0x182   :  { %v2393_v51 = vpop.f32.mrf.mxu0  ;;  %2858 = vmatmul.mubr.bf16.gmra.mxu0 %v12822_v37 }
 0x183   :  { %17908 = vst [vmem:[#allocation21_spill] sm:$0xff] %v14230_v62  ;;  %v2586_v44 = vpop.f32.mrf.mxu1  ;;  %3051 = vmatmul.mubr.bf16.gmra.mxu1 %v12823_v6  ;;  %v14239_v28 = vadd.f32 %v2356_v26, %v2164_v43  ;;  %v2394_v10 = vadd.f32 %v2393_v51, %v13770_v14  ;;  %2867 = vmatprep.mubr.bf16.mxu0 %v12824_v56 }
 0x184   :  { %3060 = vmatprep.mubr.bf16.mxu1 %v12825_v8  ;;  %v2395_v47 = vpop.f32.mrf.mxu0  ;;  %v12826_v8 = vld [vmem:[%s17802_s0 + $0x1f8] ss:$28 sps:$4 sm:$0xff]  }
 0x185   :  { %17909 = vst [vmem:[#allocation22_spill] sm:$0xff] %v14239_v28  ;;  %v2588_v61 = vpop.f32.mrf.mxu1  ;;  %v2587_v15 = vadd.f32 %v2586_v44, %v2394_v10  ;;  %v2396_v41 = vadd.f32 %v2395_v47, %v13779_v20  ;;  %v12827_v20 = vld [vmem:[%s17802_s0 + $0x200] ss:$28 sps:$4 sm:$0xff]  }
 0x186   :  { %v2397_v26 = vpop.f32.mrf.mxu0  ;;  %v12829_v47 = vld [vmem:[%s17802_s0 + $0x23c] ss:$28 sps:$4 sm:$0xff]  }
 0x187   :  { %v2590_v43 = vpop.f32.mrf.mxu1  ;;  %v2589_v37 = vadd.f32 %v2588_v61, %v2396_v41  ;;  %v2398_v14 = vadd.f32 %v2397_v26, %v13785_v25  ;;  %v3517_v1 = vmax.f32 %v2587_v15, 0.0 }
 0x188   :  { %v2399_v51 = vpop.f32.mrf.mxu0 }
 0x189   :  { %v2592_v6 = vpop.f32.mrf.mxu1  ;;  %v2591_v28 = vadd.f32 %v2590_v43, %v2398_v14  ;;  %v2400_v56 = vadd.f32 %v2399_v51, %v13789_v29  ;;  %v12828_v29 = vld [vmem:[%s17802_s0 + $0x234] ss:$28 sps:$4 sm:$0xff]   ;;  %v3518_v61 = vmax.f32 %v2589_v37, 0.0 }
 0x18a   :  { %v2403_v62 = vpop.f32.mrf.mxu0  ;;  %2868 = vmatmul.mubr.bf16.gmra.mxu0 %v12826_v8 }
 0x18b   :  { %v2596_v22 = vpop.f32.mrf.mxu1  ;;  %3061 = vmatmul.mubr.bf16.gmra.mxu1 %v12827_v20  ;;  %v3521_v44 = vmax.f32 %v2591_v28, 0.0  ;;  %v2593_v25 = vadd.f32 %v2592_v6, %v2400_v56  ;;  %v2404_v10 = vadd.f32 %v2403_v62, %v13793_v33  ;;  %2877 = vmatprep.mubr.bf16.mxu0 %v12828_v29 }
 0x18c   :  { %3070 = vmatprep.mubr.bf16.mxu1 %v12829_v47  ;;  %v2405_v41 = vpop.f32.mrf.mxu0 }
 0x18d   :  { %v2598_v26 = vpop.f32.mrf.mxu1  ;;  %v14264_v43 = vpack.c.bf16 %v3521_v44, %v3517_v1  ;;  %v3522_v15 = vmax.f32 %v2593_v25, 0.0  ;;  %v2597_v28 = vadd.f32 %v2596_v22, %v2404_v10  ;;  %v2406_v14 = vadd.f32 %v2405_v41, %v13802_v40  ;;  %v12830_v22 = vld [vmem:[%s17802_s0 + $0x230] ss:$28 sps:$4 sm:$0xff]   ;;  %v12831_v40 = vld [vmem:[%s17802_s0 + $0x238] ss:$28 sps:$4 sm:$0xff]  }
 0x18e   :  { %v2407_v33 = vpop.f32.mrf.mxu0  ;;  %v12833_v10 = vld [vmem:[%s17802_s0 + $0x274] ss:$28 sps:$4 sm:$0xff]  }
 0x18f   :  { %v2600_v62 = vpop.f32.mrf.mxu1  ;;  %v2599_v51 = vadd.f32 %v2598_v26, %v2406_v14  ;;  %v2408_v6 = vadd.f32 %v2407_v33, %v13808_v45  ;;  %v14268_v56 = vpack.c.bf16 %v3522_v15, %v3518_v61  ;;  %v3525_v45 = vmax.f32 %v2597_v28, 0.0 }
 0x190   :  { %v2409_v8 = vpop.f32.mrf.mxu0 }
 0x191   :  { %v2602_v20 = vpop.f32.mrf.mxu1  ;;  %v2601_v29 = vadd.f32 %v2600_v62, %v2408_v6  ;;  %v2410_v37 = vadd.f32 %v2409_v8, %v13812_v49  ;;  %v12832_v49 = vld [vmem:[%s17802_s0 + $0x26c] ss:$28 sps:$4 sm:$0xff]   ;;  %v3526_v61 = vmax.f32 %v2599_v51, 0.0 }
 0x192   :  { %v2413_v47 = vpop.f32.mrf.mxu0  ;;  %2878 = vmatmul.mubr.bf16.gmra.mxu0 %v12830_v22 }
 0x193   :  { %v2606_v7 = vpop.f32.mrf.mxu1  ;;  %3071 = vmatmul.mubr.bf16.gmra.mxu1 %v12831_v40  ;;  %v3529_v1 = vmax.f32 %v2601_v29, 0.0  ;;  %v2603_v44 = vadd.f32 %v2602_v20, %v2410_v37  ;;  %v2414_v25 = vadd.f32 %v2413_v47, %v13816_v53  ;;  %2887 = vmatprep.mubr.bf16.mxu0 %v12832_v49  ;;  %v11829_v53 = vld [vmem:[%s17804_s4 + $0x174] ss:$8 sps:$4 sm:$0xff]   ;;  %v12837_v49 = vld [vmem:[%s17802_s0 + $0x2ac] ss:$28 sps:$4 sm:$0xff]  }
 0x194   :  { %3080 = vmatprep.mubr.bf16.mxu1 %v12833_v10  ;;  %v2415_v41 = vpop.f32.mrf.mxu0  ;;  %4298 = vmatprep.subr.bf16.mxu1 %v11829_v53 }
 0x195   :  { %v2608_v26 = vpop.f32.mrf.mxu1  ;;  %v14284_v15 = vpack.c.bf16 %v3529_v1, %v3525_v45  ;;  %v3530_v28 = vmax.f32 %v2603_v44, 0.0  ;;  %v2607_v14 = vadd.f32 %v2606_v7, %v2414_v25  ;;  %v2416_v33 = vadd.f32 %v2415_v41, %v13825_v60  ;;  %v12834_v60 = vld [vmem:[%s17802_s0 + $0x268] ss:$28 sps:$4 sm:$0xff]   ;;  %v12835_v45 = vld [vmem:[%s17802_s0 + $0x270] ss:$28 sps:$4 sm:$0xff]  }
 0x196   :  { %v2417_v62 = vpop.f32.mrf.mxu0 }
 0x197   :  { %v2610_v6 = vpop.f32.mrf.mxu1  ;;  %v2609_v8 = vadd.f32 %v2608_v26, %v2416_v33  ;;  %v2418_v20 = vadd.f32 %v2417_v62, %v13831_v3  ;;  %v14291_v29 = vpack.c.bf16 %v3530_v28, %v3526_v61  ;;  %v3533_v3 = vmax.f32 %v2607_v14, 0.0 }
 0x198   :  { %v2419_v51 = vpop.f32.mrf.mxu0 }
 0x199   :  { %v2612_v37 = vpop.f32.mrf.mxu1  ;;  %v2611_v47 = vadd.f32 %v2610_v6, %v2418_v20  ;;  %v2420_v22 = vadd.f32 %v2419_v51, %v13835_v9  ;;  %v12836_v9 = vld [vmem:[%s17802_s0 + $0x2a4] ss:$28 sps:$4 sm:$0xff]   ;;  %v3534_v10 = vmax.f32 %v2609_v8, 0.0 }
 0x19a   :  { %v2423_v7 = vpop.f32.mrf.mxu0  ;;  %2888 = vmatmul.mubr.bf16.gmra.mxu0 %v12834_v60 }
 0x19b   :  { %v2616_v40 = vpop.f32.mrf.mxu1  ;;  %3081 = vmatmul.mubr.bf16.gmra.mxu1 %v12835_v45  ;;  %v3537_v1 = vmax.f32 %v2611_v47, 0.0  ;;  %v2613_v44 = vadd.f32 %v2612_v37, %v2420_v22  ;;  %v2424_v25 = vadd.f32 %v2423_v7, %v13839_v13  ;;  %2897 = vmatprep.mubr.bf16.mxu0 %v12836_v9 }
 0x19c   :  { %3090 = vmatprep.mubr.bf16.mxu1 %v12837_v49  ;;  %v2425_v61 = vpop.f32.mrf.mxu0 }
 0x19d   :  { %v2618_v41 = vpop.f32.mrf.mxu1  ;;  %v14307_v26 = vpack.c.bf16 %v3537_v1, %v3533_v3  ;;  %v3538_v28 = vmax.f32 %v2613_v44, 0.0  ;;  %v2617_v14 = vadd.f32 %v2616_v40, %v2424_v25  ;;  %v2426_v33 = vadd.f32 %v2425_v61, %v13848_v21  ;;  %v12838_v40 = vld [vmem:[%s17802_s0 + $0x2a0] ss:$28 sps:$4 sm:$0xff]   ;;  %v12839_v21 = vld [vmem:[%s17802_s0 + $0x2a8] ss:$28 sps:$4 sm:$0xff]  }
 0x19e   :  { %v2427_v13 = vpop.f32.mrf.mxu0  ;;  %v12841_v1 = vld [vmem:[%s17802_s0 + $0x2e4] ss:$28 sps:$4 sm:$0xff]  }
 0x19f   :  { %v2620_v53 = vpop.f32.mrf.mxu1  ;;  %v2619_v62 = vadd.f32 %v2618_v41, %v2426_v33  ;;  %v2428_v6 = vadd.f32 %v2427_v13, %v13854_v27  ;;  %v14311_v20 = vpack.c.bf16 %v3538_v28, %v3534_v10  ;;  %v3541_v27 = vmax.f32 %v2617_v14, 0.0 }
 0x1a0   :  { %v2429_v51 = vpop.f32.mrf.mxu0 }
 0x1a1   :  { %v2622_v37 = vpop.f32.mrf.mxu1  ;;  %v2621_v47 = vadd.f32 %v2620_v53, %v2428_v6  ;;  %v2430_v8 = vadd.f32 %v2429_v51, %v13858_v32  ;;  %v12840_v32 = vld [vmem:[%s17802_s0 + $0x2dc] ss:$28 sps:$4 sm:$0xff]   ;;  %v3542_v44 = vmax.f32 %v2619_v62, 0.0 }
 0x1a2   :  { %v2433_v22 = vpop.f32.mrf.mxu0  ;;  %2898 = vmatmul.mubr.bf16.gmra.mxu0 %v12838_v40 }
 0x1a3   :  { %v2626_v7 = vpop.f32.mrf.mxu1  ;;  %3091 = vmatmul.mubr.bf16.gmra.mxu1 %v12839_v21  ;;  %v3545_v60 = vmax.f32 %v2621_v47, 0.0  ;;  %v2623_v45 = vadd.f32 %v2622_v37, %v2430_v8  ;;  %v2434_v3 = vadd.f32 %v2433_v22, %v13862_v38  ;;  %2907 = vmatprep.mubr.bf16.mxu0 %v12840_v32  ;;  %v12842_v8 = vld [vmem:[%s17802_s0 + $0x2d8] ss:$28 sps:$4 sm:$0xff]  }
 0x1a4   :  { %3100 = vmatprep.mubr.bf16.mxu1 %v12841_v1  ;;  %v2435_v25 = vpop.f32.mrf.mxu0  ;;  %v12845_v21 = vld [vmem:[%s17802_s0 + $0x31c] ss:$28 sps:$4 sm:$0xff]  }
 0x1a5   :  { %v2628_v9 = vpop.f32.mrf.mxu1  ;;  %v14327_v49 = vpack.c.bf16 %v3545_v60, %v3541_v27  ;;  %v3546_v10 = vmax.f32 %v2623_v45, 0.0  ;;  %v2627_v61 = vadd.f32 %v2626_v7, %v2434_v3  ;;  %v2436_v41 = vadd.f32 %v2435_v25, %v13871_v46  ;;  %v12843_v46 = vld [vmem:[%s17802_s0 + $0x2e0] ss:$28 sps:$4 sm:$0xff]  }
 0x1a6   :  { %v2437_v38 = vpop.f32.mrf.mxu0 }
 0x1a7   :  { %v2630_v28 = vpop.f32.mrf.mxu1  ;;  %v2629_v14 = vadd.f32 %v2628_v9, %v2436_v41  ;;  %v2438_v33 = vadd.f32 %v2437_v38, %v13877_v52  ;;  %v14331_v13 = vpack.c.bf16 %v3546_v10, %v3542_v44  ;;  %v3549_v52 = vmax.f32 %v2627_v61, 0.0 }
 0x1a8   :  { %v2439_v53 = vpop.f32.mrf.mxu0 }
 0x1a9   :  { %v2632_v6 = vpop.f32.mrf.mxu1  ;;  %v2631_v51 = vadd.f32 %v2630_v28, %v2438_v33  ;;  %v2440_v62 = vadd.f32 %v2439_v53, %v13881_v58  ;;  %v12844_v58 = vld [vmem:[%s17802_s0 + $0x314] ss:$28 sps:$4 sm:$0xff]   ;;  %v3550_v27 = vmax.f32 %v2629_v14, 0.0 }
 0x1aa   :  { %v2443_v37 = vpop.f32.mrf.mxu0  ;;  %2908 = vmatmul.mubr.bf16.gmra.mxu0 %v12842_v8 }
 0x1ab   :  { %v2636_v47 = vpop.f32.mrf.mxu1  ;;  %3101 = vmatmul.mubr.bf16.gmra.mxu1 %v12843_v46  ;;  %v3553_v22 = vmax.f32 %v2631_v51, 0.0  ;;  %v2633_v7 = vadd.f32 %v2632_v6, %v2440_v62  ;;  %v2444_v40 = vadd.f32 %v2443_v37, %v13885_v0  ;;  %2917 = vmatprep.mubr.bf16.mxu0 %v12844_v58  ;;  %v12846_v6 = vld [vmem:[%s17802_s0 + $0x310] ss:$28 sps:$4 sm:$0xff]  }
 0x1ac   :  { %3110 = vmatprep.mubr.bf16.mxu1 %v12845_v21  ;;  %v2445_v60 = vpop.f32.mrf.mxu0 }
 0x1ad   :  { %v2638_v45 = vpop.f32.mrf.mxu1  ;;  %v14347_v3 = vpack.c.bf16 %v3553_v22, %v3549_v52  ;;  %v3554_v32 = vmax.f32 %v2633_v7, 0.0  ;;  %v2637_v1 = vadd.f32 %v2636_v47, %v2444_v40  ;;  %v2446_v44 = vadd.f32 %v2445_v60, %v13894_v11  ;;  %v12847_v11 = vld [vmem:[%s17802_s0 + $0x318] ss:$28 sps:$4 sm:$0xff]  }
 0x1ae   :  { %v2447_v0 = vpop.f32.mrf.mxu0  ;;  %v12849_v47 = vld [vmem:[%s17802_s0 + $0x354] ss:$28 sps:$4 sm:$0xff]  }
 0x1af   :  { %v2640_v25 = vpop.f32.mrf.mxu1  ;;  %v2639_v9 = vadd.f32 %v2638_v45, %v2446_v44  ;;  %v2448_v10 = vadd.f32 %v2447_v0, %v13900_v18  ;;  %v14351_v61 = vpack.c.bf16 %v3554_v32, %v3550_v27  ;;  %v3557_v18 = vmax.f32 %v2637_v1, 0.0 }
 0x1b0   :  { %v2449_v41 = vpop.f32.mrf.mxu0 }
 0x1b1   :  { %v2642_v38 = vpop.f32.mrf.mxu1  ;;  %v2641_v28 = vadd.f32 %v2640_v25, %v2448_v10  ;;  %v2450_v14 = vadd.f32 %v2449_v41, %v13904_v24  ;;  %v12848_v24 = vld [vmem:[%s17802_s0 + $0x34c] ss:$28 sps:$4 sm:$0xff]   ;;  %v3558_v8 = vmax.f32 %v2639_v9, 0.0 }
 0x1b2   :  { %v2453_v33 = vpop.f32.mrf.mxu0  ;;  %2918 = vmatmul.mubr.bf16.gmra.mxu0 %v12846_v6  ;;  %v12850_v10 = vld [vmem:[%s17802_s0 + $0x348] ss:$28 sps:$4 sm:$0xff]  }
 0x1b3   :  { %v2646_v53 = vpop.f32.mrf.mxu1  ;;  %3111 = vmatmul.mubr.bf16.gmra.mxu1 %v12847_v11  ;;  %v3561_v51 = vmax.f32 %v2641_v28, 0.0  ;;  %v2643_v62 = vadd.f32 %v2642_v38, %v2450_v14  ;;  %v2454_v37 = vadd.f32 %v2453_v33, %v13908_v31  ;;  %2927 = vmatprep.mubr.bf16.mxu0 %v12848_v24  ;;  %v17910_v14 = vmov 0  }
 0x1b4   :  { %3120 = vmatprep.mubr.bf16.mxu1 %v12849_v47  ;;  %v2455_v46 = vpop.f32.mrf.mxu0 }
 0x1b5   :  { %v2648_v52 = vpop.f32.mrf.mxu1  ;;  %v14367_v22 = vpack.c.bf16 %v3561_v51, %v3557_v18  ;;  %v3562_v7 = vmax.f32 %v2643_v62, 0.0  ;;  %v2647_v40 = vadd.f32 %v2646_v53, %v2454_v37  ;;  %v2456_v58 = vadd.f32 %v2455_v46, %v13917_v42  ;;  %v12851_v42 = vld [vmem:[%s17802_s0 + $0x350] ss:$28 sps:$4 sm:$0xff]  }
 0x1b6   :  { %v2457_v31 = vpop.f32.mrf.mxu0 }
 0x1b7   :  { %v2650_v21 = vpop.f32.mrf.mxu1  ;;  %v2649_v27 = vadd.f32 %v2648_v52, %v2456_v58  ;;  %v2458_v60 = vadd.f32 %v2457_v31, %v13920_v48  ;;  %v14371_v45 = vpack.c.bf16 %v3562_v7, %v3558_v8  ;;  %v3565_v48 = vmax.f32 %v2647_v40, 0.0  ;;  %v11812_v7 = vld [vmem:[%s17804_s4 + $0x70] ss:$8 sps:$4 sm:$0xff]   ;;  %v11817_v31 = vld [vmem:[%s17804_s4 + $0x64] ss:$8 sps:$4 sm:$0xff]  }
 0x1b8   :  { %v2459_v32 = vpop.f32.mrf.mxu0  ;;  %v11827_v40 = vld [vmem:[%s17804_s4 + $0x170] ss:$8 sps:$4 sm:$0xff]  }
 0x1b9   :  { %v2652_v1 = vpop.f32.mrf.mxu1  ;;  %v2651_v44 = vadd.f32 %v2650_v21, %v2458_v60  ;;  %v2460_v0 = vadd.f32 %v2459_v32, %v13924_v55  ;;  %v12852_v55 = vld [vmem:[%s17802_s0 + $0x14] ss:$28 sps:$4 sm:$0xff]   ;;  %v3566_v33 = vmax.f32 %v2649_v27, 0.0 }
 0x1ba   :  { %v2463_v25 = vpop.f32.mrf.mxu0  ;;  %2928 = vmatmul.mubr.bf16.gmra.mxu0 %v12850_v10  ;;  %v12853_v60 = vld [vmem:[%s17802_s0 + $0x10] ss:$28 sps:$4 sm:$0xff]   ;;  %v12854_v32 = vld [vmem:[%s17802_s0 + $0x18] ss:$28 sps:$4 sm:$0xff]  }
 0x1bb   :  { %v2656_v9 = vpop.f32.mrf.mxu1  ;;  %3121 = vmatmul.mubr.bf16.gmra.mxu1 %v12851_v42  ;;  %v3569_v41 = vmax.f32 %v2651_v44, 0.0  ;;  %v2653_v38 = vadd.f32 %v2652_v1, %v2460_v0  ;;  %v2464_v28 = vadd.f32 %v2463_v25, %v13933_v4  ;;  %3163 = vmatprep.mubr.bf16.mxu0 %v12852_v55  ;;  %v12855_v25 = vld [vmem:[%s17802_s0 + $0x4c] ss:$28 sps:$4 sm:$0xff]  }
 0x1bc   :  { %3356 = vmatprep.mubr.bf16.mxu1 %v17910_v14  ;;  %v2465_v53 = vpop.f32.mrf.mxu0 }
 0x1bd   :  { %v2658_v6 = vpop.f32.mrf.mxu1  ;;  %v14385_v11 = vpack.c.bf16 %v3569_v41, %v3565_v48  ;;  %v3570_v18 = vmax.f32 %v2653_v38, 0.0  ;;  %v2657_v51 = vadd.f32 %v2656_v9, %v2464_v28  ;;  %v2466_v62 = vadd.f32 %v2465_v53, %v13936_v12  ;;  %v11815_v48 = vld [vmem:[%s17804_s4 + $0x60] ss:$8 sps:$4 sm:$0xff]   ;;  %v11847_v53 = vld [vmem:[%s17804_s4 + $0x154] ss:$8 sps:$4 sm:$0xff]  }
 0x1be   :  { %v2467_v37 = vpop.f32.mrf.mxu0 }
 0x1bf   :  { %v2660_v24 = vpop.f32.mrf.mxu1  ;;  %v2659_v47 = vadd.f32 %v2658_v6, %v2466_v62  ;;  %v2468_v4 = vadd.f32 %v2467_v37, %v13945_v23  ;;  %v14389_v8 = vpack.c.bf16 %v3570_v18, %v3566_v33  ;;  %v11838_v23 = vld [vmem:[%s17804_s4 + $0x164] ss:$8 sps:$4 sm:$0xff]   ;;  %v11820_v33 = vld [vmem:[%s17804_s4 + $0x54] ss:$8 sps:$4 sm:$0xff]  }
 0x1c0   :  { %v2469_v46 = vpop.f32.mrf.mxu0 }
 0x1c1   :  { %v2662_v52 = vpop.f32.mrf.mxu1  ;;  %v2661_v58 = vadd.f32 %v2660_v24, %v2468_v4  ;;  %v2470_v12 = vadd.f32 %v2469_v46, %v13957_v39  ;;  %v3573_v39 = vmax.f32 %v2657_v51, 0.0  ;;  %v3574_v9 = vmax.f32 %v2659_v47, 0.0  ;;  %v11845_v4 = vld [vmem:[%s17804_s4 + $0x150] ss:$8 sps:$4 sm:$0xff]  }
 0x1c2   :  { %v2473_v21 = vpop.f32.mrf.mxu0  ;;  %3164 = vmatmul.mubr.bf16.vlgmr.msra.gmra.mxu0 %v12853_v60  ;;  %v12858_v60 = vld [vmem:[%s17802_s0 + $0x84] ss:$28 sps:$4 sm:$0xff]  }
 0x1c3   :  { %v2666_v27 = vpop.f32.mrf.mxu1  ;;  %10541 = vmatmul.mubr.msk.bf16.vlgmr.msra.gmra.mxu1 %vm1924_vm0, %v12854_v32  ;;  %v3577_v1 = vmax.f32 %v2661_v58, 0.0  ;;  %v2663_v44 = vadd.f32 %v2662_v52, %v2470_v12  ;;  %v2474_v0 = vadd.f32 %v2473_v21, %v13972_v57  ;;  %3173 = vmatprep.mubr.bf16.mxu0 %v12855_v25  ;;  %v11836_v57 = vld [vmem:[%s17804_s4 + $0x160] ss:$8 sps:$4 sm:$0xff]  }
 0x1c4   :  { %3366 = vmatprep.mubr.bf16.mxu1 %v17910_v14  ;;  %v2475_v10 = vpop.f32.mrf.mxu0  ;;  %4106 = vmatpush1.bf16.msra.mxu0 %v11812_v7  ;;  %v11856_v7 = vld [vmem:[%s17804_s4 + $0x144] ss:$8 sps:$4 sm:$0xff]  }
 0x1c5   :  { %v2668_v42 = vpop.f32.mrf.mxu1  ;;  %4299 = vmatpush1.bf16.msra.mxu1 %v11827_v40  ;;  %v14422_v41 = vpack.c.bf16 %v3577_v1, %v3573_v39  ;;  %v3578_v38 = vmax.f32 %v2663_v44, 0.0  ;;  %v2667_v28 = vadd.f32 %v2666_v27, %v2474_v0  ;;  %v2476_v55 = vadd.f32 %v2475_v10, %v13975_v2  ;;  %4107 = vmatprep.subr.bf16.mxu0 %v11817_v31  ;;  %v11818_v2 = vld [vmem:[%s17804_s4 + $0x50] ss:$8 sps:$4 sm:$0xff]   ;;  %v12856_v12 = vld [vmem:[%s17802_s0 + $0x48] ss:$28 sps:$4 sm:$0xff]  }
 0x1c6   :  { %4300 = vmatprep.subr.bf16.mxu1 %v11838_v23  ;;  %v2477_v6 = vpop.f32.mrf.mxu0  ;;  %v11821_v44 = vld [vmem:[%s17804_s4 + $0x40] ss:$8 sps:$4 sm:$0xff]  }
 0x1c7   :  { %v2670_v18 = vpop.f32.mrf.mxu1  ;;  %v2669_v51 = vadd.f32 %v2668_v42, %v2476_v55  ;;  %v2478_v62 = vadd.f32 %v2477_v6, %v13981_v16  ;;  %v14432_v37 = vpack.c.bf16 %v3578_v38, %v3574_v9  ;;  %v11823_v16 = vld [vmem:[%s17804_s4 + $0x44] ss:$8 sps:$4 sm:$0xff]   ;;  %v3581_v31 = vmax.f32 %v2667_v28, 0.0  ;;  %v11826_v42 = vld [vmem:[%s17804_s4 + $0x34] ss:$8 sps:$4 sm:$0xff]  }
 0x1c8   :  { %v2479_v24 = vpop.f32.mrf.mxu0  ;;  %4108 = vmatpush1.bf16.msra.mxu0 %v11815_v48  ;;  %v11865_v48 = vld [vmem:[%s17804_s4 + $0x134] ss:$8 sps:$4 sm:$0xff]  }
 0x1c9   :  { %v2672_v47 = vpop.f32.mrf.mxu1  ;;  %4301 = vmatpush1.bf16.msra.mxu1 %v11836_v57  ;;  %v2671_v46 = vadd.f32 %v2670_v18, %v2478_v62  ;;  %v2480_v52 = vadd.f32 %v2479_v24, %v13993_v34  ;;  %4109 = vmatprep.subr.bf16.mxu0 %v11820_v33  ;;  %v12857_v34 = vld [vmem:[%s17802_s0 + $0x50] ss:$28 sps:$4 sm:$0xff]   ;;  %v3582_v32 = vmax.f32 %v2669_v51, 0.0 }
 0x1ca   :  { %4302 = vmatprep.subr.bf16.mxu1 %v11847_v53  ;;  %v2483_v40 = vpop.f32.mrf.mxu0  ;;  %3174 = vmatmul.mubr.bf16.gmra.mxu0 %v12856_v12  ;;  %v11863_v18 = vld [vmem:[%s17804_s4 + $0x130] ss:$8 sps:$4 sm:$0xff]   ;;  %v11874_v24 = vld [vmem:[%s17804_s4 + $0x124] ss:$8 sps:$4 sm:$0xff]  }
 0x1cb   :  { %v2676_v58 = vpop.f32.mrf.mxu1  ;;  %10542 = vmatmul.mubr.msk.bf16.gmra.mxu1 %vm1924_vm0, %v12857_v34  ;;  %v3585_v23 = vmax.f32 %v2671_v46, 0.0  ;;  %v2673_v21 = vadd.f32 %v2672_v47, %v2480_v52  ;;  %v2484_v27 = vadd.f32 %v2483_v40, %v14005_v50  ;;  %3183 = vmatprep.mubr.bf16.mxu0 %v12858_v60  ;;  %v11854_v50 = vld [vmem:[%s17804_s4 + $0x140] ss:$8 sps:$4 sm:$0xff]   ;;  %v12861_v40 = vld [vmem:[%s17802_s0 + $0xbc] ss:$28 sps:$4 sm:$0xff]  }
 0x1cc   :  { %3376 = vmatprep.mubr.bf16.mxu1 %v17910_v14  ;;  %v2485_v39 = vpop.f32.mrf.mxu0  ;;  %4110 = vmatpush1.bf16.msra.mxu0 %v11818_v2 }
 0x1cd   :  { %v2678_v1 = vpop.f32.mrf.mxu1  ;;  %4303 = vmatpush1.bf16.msra.mxu1 %v11845_v4  ;;  %v14465_v0 = vpack.c.bf16 %v3585_v23, %v3581_v31  ;;  %v3586_v25 = vmax.f32 %v2673_v21, 0.0  ;;  %v2677_v9 = vadd.f32 %v2676_v58, %v2484_v27  ;;  %v2486_v10 = vadd.f32 %v2485_v39, %v14011_v63  ;;  %4111 = vmatprep.subr.bf16.mxu0 %v11823_v16  ;;  %v11824_v63 = vld [vmem:[%s17804_s4 + $0x30] ss:$8 sps:$4 sm:$0xff]   ;;  %v12859_v4 = vld [vmem:[%s17802_s0 + $0x80] ss:$28 sps:$4 sm:$0xff]  }
 0x1ce   :  { %4304 = vmatprep.subr.bf16.mxu1 %v11856_v7  ;;  %v2487_v57 = vpop.f32.mrf.mxu0  ;;  %v11830_v31 = vld [vmem:[%s17804_s4 + $0x20] ss:$8 sps:$4 sm:$0xff]   ;;  %v11880_v39 = vld [vmem:[%s17804_s4 + $0x114] ss:$8 sps:$4 sm:$0xff]  }
 0x1cf   :  { %v2680_v38 = vpop.f32.mrf.mxu1  ;;  %v2679_v28 = vadd.f32 %v2678_v1, %v2486_v10  ;;  %v2488_v55 = vadd.f32 %v2487_v57, %v14017_v17  ;;  %v14475_v33 = vpack.c.bf16 %v3586_v25, %v3582_v32  ;;  %v11832_v17 = vld [vmem:[%s17804_s4 + $0x24] ss:$8 sps:$4 sm:$0xff]   ;;  %v3589_v46 = vmax.f32 %v2677_v9, 0.0  ;;  %v11835_v32 = vld [vmem:[%s17804_s4 + $0x14] ss:$8 sps:$4 sm:$0xff]  }
 0x1d0   :  { %v2489_v53 = vpop.f32.mrf.mxu0  ;;  %4112 = vmatpush1.bf16.msra.mxu0 %v11821_v44 }
 0x1d1   :  { %v2682_v6 = vpop.f32.mrf.mxu1  ;;  %4305 = vmatpush1.bf16.msra.mxu1 %v11854_v50  ;;  %v2681_v51 = vadd.f32 %v2680_v38, %v2488_v55  ;;  %v2490_v62 = vadd.f32 %v2489_v53, %v14029_v36  ;;  %4113 = vmatprep.subr.bf16.mxu0 %v11826_v42  ;;  %v12860_v36 = vld [vmem:[%s17802_s0 + $0x88] ss:$28 sps:$4 sm:$0xff]   ;;  %v3590_v58 = vmax.f32 %v2679_v28, 0.0 }
 0x1d2   :  { %4306 = vmatprep.subr.bf16.mxu1 %v11865_v48  ;;  %v2493_v47 = vpop.f32.mrf.mxu0  ;;  %3184 = vmatmul.mubr.bf16.gmra.mxu0 %v12859_v4  ;;  %v11878_v48 = vld [vmem:[%s17804_s4 + $0x110] ss:$8 sps:$4 sm:$0xff]   ;;  %v11883_v28 = vld [vmem:[%s17804_s4 + $0x104] ss:$8 sps:$4 sm:$0xff]   ;;  %v11839_v4 = vld [vmem:[%s17804_s4] ss:$8 sps:$4 sm:$0xff]  }
 0x1d3   :  { %v2686_v2 = vpop.f32.mrf.mxu1  ;;  %10543 = vmatmul.mubr.msk.bf16.gmra.mxu1 %vm1924_vm0, %v12860_v36  ;;  %v3593_v52 = vmax.f32 %v2681_v51, 0.0  ;;  %v2683_v16 = vadd.f32 %v2682_v6, %v2490_v62  ;;  %v2494_v7 = vadd.f32 %v2493_v47, %v14041_v59  ;;  %3193 = vmatprep.mubr.bf16.mxu0 %v12861_v40  ;;  %v11872_v59 = vld [vmem:[%s17804_s4 + $0x120] ss:$8 sps:$4 sm:$0xff]   ;;  %v12862_v6 = vld [vmem:[%s17802_s0 + $0xb8] ss:$28 sps:$4 sm:$0xff]  }
 0x1d4   :  { %3386 = vmatprep.mubr.bf16.mxu1 %v17910_v14  ;;  %v2495_v12 = vpop.f32.mrf.mxu0  ;;  %4114 = vmatpush1.bf16.msra.mxu0 %v11824_v63  ;;  %v11886_v40 = vld [vmem:[%s17804_s4 + $0x1f4] ss:$8 sps:$4 sm:$0xff]  }
 0x1d5   :  { %v2688_v34 = vpop.f32.mrf.mxu1  ;;  %4307 = vmatpush1.bf16.msra.mxu1 %v11863_v18  ;;  %v14508_v23 = vpack.c.bf16 %v3593_v52, %v3589_v46  ;;  %v3594_v21 = vmax.f32 %v2683_v16, 0.0  ;;  %v2687_v27 = vadd.f32 %v2686_v2, %v2494_v7  ;;  %v2496_v60 = vadd.f32 %v2495_v12, %v14047_v19  ;;  %4115 = vmatprep.subr.bf16.mxu0 %v11832_v17  ;;  %v11833_v19 = vld [vmem:[%s17804_s4 + $0x10] ss:$8 sps:$4 sm:$0xff]   ;;  %v11844_v7 = vld [vmem:[%s17804_s4 + $0xf4] ss:$8 sps:$4 sm:$0xff]  }
 0x1d6   :  { %4308 = vmatprep.subr.bf16.mxu1 %v11874_v24  ;;  %v2497_v1 = vpop.f32.mrf.mxu0  ;;  %v12864_v17 = vld [vmem:[%s17802_s0 + $0xf4] ss:$28 sps:$4 sm:$0xff]  }
 0x1d7   :  { %v2690_v44 = vpop.f32.mrf.mxu1  ;;  %v2689_v50 = vadd.f32 %v2688_v34, %v2496_v60  ;;  %v2498_v25 = vadd.f32 %v2497_v1, %v14053_v35  ;;  %v14518_v9 = vpack.c.bf16 %v3594_v21, %v3590_v58  ;;  %v11841_v35 = vld [vmem:[%s17804_s4 + $0x4] ss:$8 sps:$4 sm:$0xff]   ;;  %v3597_v63 = vmax.f32 %v2687_v27, 0.0 }
 0x1d8   :  { %v2499_v10 = vpop.f32.mrf.mxu0  ;;  %4116 = vmatpush1.bf16.msra.mxu0 %v11830_v31  ;;  %v17911_v31 = vld [vmem:[#allocation5_spill] sm:$0xff]  ;;  %v17912_v1 = vld [vmem:[#allocation6_spill] sm:$0xff] }
 0x1d9   :  { %v2692_v42 = vpop.f32.mrf.mxu1  ;;  %4309 = vmatpush1.bf16.msra.mxu1 %v11872_v59  ;;  %v2691_v57 = vadd.f32 %v2690_v44, %v2498_v25  ;;  %v2500_v38 = vadd.f32 %v2499_v10, %v14065_v54  ;;  %4117 = vmatprep.subr.bf16.mxu0 %v11835_v32  ;;  %v12863_v54 = vld [vmem:[%s17802_s0 + $0xc0] ss:$28 sps:$4 sm:$0xff]   ;;  %v3598_v24 = vmax.f32 %v2689_v50, 0.0  ;;  %v11884_v32 = vld [vmem:[%s17804_s4 + $0x1f0] ss:$8 sps:$4 sm:$0xff]  }
 0x1da   :  { %4310 = vmatprep.subr.bf16.mxu1 %v11880_v39  ;;  %v2503_v55 = vpop.f32.mrf.mxu0  ;;  %3194 = vmatmul.mubr.bf16.gmra.mxu0 %v12862_v6  ;;  %v11850_v50 = vld [vmem:[%s17804_s4 + $0xe4] ss:$8 sps:$4 sm:$0xff]  }
 0x1db   :  { %v2696_v53 = vpop.f32.mrf.mxu1  ;;  %10544 = vmatmul.mubr.msk.bf16.gmra.mxu1 %vm1924_vm0, %v12863_v54  ;;  %v3601_v18 = vmax.f32 %v2691_v57, 0.0  ;;  %v2693_v51 = vadd.f32 %v2692_v42, %v2500_v38  ;;  %v2504_v62 = vadd.f32 %v2503_v55, %v14077_v30  ;;  %3203 = vmatprep.mubr.bf16.mxu0 %v12864_v17  ;;  %v11881_v30 = vld [vmem:[%s17804_s4 + $0x100] ss:$8 sps:$4 sm:$0xff]   ;;  %v11889_v25 = vld [vmem:[%s17804_s4 + $0x1e4] ss:$8 sps:$4 sm:$0xff]  }
 0x1dc   :  { %3396 = vmatprep.mubr.bf16.mxu1 %v17910_v14  ;;  %v2505_v47 = vpop.f32.mrf.mxu0  ;;  %4118 = vmatpush1.bf16.msra.mxu0 %v11833_v19  ;;  %v12865_v19 = vld [vmem:[%s17802_s0 + $0xf0] ss:$28 sps:$4 sm:$0xff]  }
 0x1dd   :  { %v2698_v2 = vpop.f32.mrf.mxu1  ;;  %4311 = vmatpush1.bf16.msra.mxu1 %v11878_v48  ;;  %v14551_v36 = vpack.c.bf16 %v3601_v18, %v3597_v63  ;;  %v3602_v46 = vmax.f32 %v2693_v51, 0.0  ;;  %v2697_v52 = vadd.f32 %v2696_v53, %v2504_v62  ;;  %v2506_v16 = vadd.f32 %v2505_v47, %v14083_v5  ;;  %4119 = vmatprep.subr.bf16.mxu0 %v11841_v35  ;;  %v11842_v5 = vld [vmem:[%s17804_s4 + $0xf0] ss:$8 sps:$4 sm:$0xff]   ;;  %v12867_v53 = vld [vmem:[%s17802_s0 + $0x12c] ss:$28 sps:$4 sm:$0xff]  }
 0x1de   :  { %4312 = vmatprep.subr.bf16.mxu1 %v11883_v28  ;;  %v2507_v58 = vpop.f32.mrf.mxu0  ;;  %v12866_v48 = vld [vmem:[%s17802_s0 + $0xf8] ss:$28 sps:$4 sm:$0xff]   ;;  %v17913_v28 = vld [vmem:[#allocation7_spill] sm:$0xff] }
 0x1df   :  { %v2700_v12 = vpop.f32.mrf.mxu1  ;;  %v2699_v34 = vadd.f32 %v2698_v2, %v2506_v16  ;;  %v2508_v59 = vadd.f32 %v2507_v58, %v17911_v31  ;;  %v14561_v21 = vpack.c.bf16 %v3602_v46, %v3598_v24  ;;  %v3605_v57 = vmax.f32 %v2697_v52, 0.0  ;;  %v11848_v18 = vld [vmem:[%s17804_s4 + $0xe0] ss:$8 sps:$4 sm:$0xff]   ;;  %v17914_v47 = vld [vmem:[#allocation8_spill] sm:$0xff] }
 0x1e0   :  { %v2509_v27 = vpop.f32.mrf.mxu0  ;;  %4120 = vmatpush1.bf16.msra.mxu0 %v11839_v4  ;;  %v11887_v51 = vld [vmem:[%s17804_s4 + $0x1e0] ss:$8 sps:$4 sm:$0xff]   ;;  %v11853_v4 = vld [vmem:[%s17804_s4 + $0xd4] ss:$8 sps:$4 sm:$0xff]   ;;  %v11851_v31 = vld [vmem:[%s17804_s4 + $0xd0] ss:$8 sps:$4 sm:$0xff]  }
 0x1e1   :  { %v2702_v60 = vpop.f32.mrf.mxu1  ;;  %4313 = vmatpush1.bf16.msra.mxu1 %v11881_v30  ;;  %v2701_v39 = vadd.f32 %v2700_v12, %v2508_v59  ;;  %v2510_v44 = vadd.f32 %v2509_v27, %v17912_v1  ;;  %4121 = vmatprep.subr.bf16.mxu0 %v11844_v7  ;;  %v3606_v6 = vmax.f32 %v2699_v34, 0.0  ;;  %v11892_v30 = vld [vmem:[%s17804_s4 + $0x1d4] ss:$8 sps:$4 sm:$0xff]   ;;  %v11890_v59 = vld [vmem:[%s17804_s4 + $0x1d0] ss:$8 sps:$4 sm:$0xff]  }
 0x1e2   :  { %4314 = vmatprep.subr.bf16.mxu1 %v11886_v40  ;;  %v2513_v10 = vpop.f32.mrf.mxu0  ;;  %3204 = vmatmul.mubr.bf16.gmra.mxu0 %v12865_v19  ;;  %v17915_v7 = vld [vmem:[#allocation9_spill] sm:$0xff]  ;;  %v17917_v19 = vld [vmem:[#allocation11_spill] sm:$0xff] }
 0x1e3   :  { %v2706_v42 = vpop.f32.mrf.mxu1  ;;  %10545 = vmatmul.mubr.msk.bf16.gmra.mxu1 %vm1924_vm0, %v12866_v48  ;;  %v3609_v38 = vmax.f32 %v2701_v39, 0.0  ;;  %v2703_v35 = vadd.f32 %v2702_v60, %v2510_v44  ;;  %v2514_v55 = vadd.f32 %v2513_v10, %v17913_v28  ;;  %3213 = vmatprep.mubr.bf16.mxu0 %v12867_v53  ;;  %v17916_v60 = vld [vmem:[#allocation10_spill] sm:$0xff]  ;;  %v11862_v53 = vld [vmem:[%s17804_s4 + $0xb4] ss:$8 sps:$4 sm:$0xff]  }
 0x1e4   :  { %3406 = vmatprep.mubr.bf16.mxu1 %v17910_v14  ;;  %v2515_v54 = vpop.f32.mrf.mxu0  ;;  %4122 = vmatpush2.bf16.msra.mxu0 %v11842_v5  ;;  %v12868_v44 = vld [vmem:[%s17802_s0 + $0x128] ss:$28 sps:$4 sm:$0xff]  }
 0x1e5   :  { %v2708_v63 = vpop.f32.mrf.mxu1  ;;  %4315 = vmatpush2.bf16.msra.mxu1 %v11884_v32  ;;  %v14594_v62 = vpack.c.bf16 %v3609_v38, %v3605_v57  ;;  %v3610_v17 = vmax.f32 %v2703_v35, 0.0  ;;  %v2707_v24 = vadd.f32 %v2706_v42, %v2514_v55  ;;  %v2516_v2 = vadd.f32 %v2515_v54, %v17914_v47  ;;  %4123 = vmatprep.subr.bf16.mxu0 %v11850_v50  ;;  %v11859_v32 = vld [vmem:[%s17804_s4 + $0xc4] ss:$8 sps:$4 sm:$0xff]   ;;  %v11857_v55 = vld [vmem:[%s17804_s4 + $0xc0] ss:$8 sps:$4 sm:$0xff]  }
 0x1e6   :  { %4316 = vmatprep.subr.bf16.mxu1 %v11889_v25  ;;  %v2517_v46 = vpop.f32.mrf.mxu0  ;;  %v12869_v50 = vld [vmem:[%s17802_s0 + $0x130] ss:$28 sps:$4 sm:$0xff]   ;;  %v12870_v57 = vld [vmem:[%s17802_s0 + $0x164] ss:$28 sps:$4 sm:$0xff]  }
 0x1e7   :  { %v2710_v52 = vpop.f32.mrf.mxu1  ;;  %v2709_v16 = vadd.f32 %v2708_v63, %v2516_v2  ;;  %v2518_v40 = vadd.f32 %v2517_v46, %v17915_v7  ;;  %v14604_v58 = vpack.c.bf16 %v3610_v17, %v3606_v6  ;;  %v3613_v25 = vmax.f32 %v2707_v24, 0.0  ;;  %v11893_v17 = vld [vmem:[%s17804_s4 + $0x1c0] ss:$8 sps:$4 sm:$0xff]   ;;  %v11895_v24 = vld [vmem:[%s17804_s4 + $0x1c4] ss:$8 sps:$4 sm:$0xff]  }
 0x1e8   :  { %v2519_v12 = vpop.f32.mrf.mxu0  ;;  %4124 = vmatpush2.bf16.msra.mxu0 %v11848_v18  ;;  %v17918_v18 = vld [vmem:[#allocation12_spill] sm:$0xff] }
 0x1e9   :  { %v2712_v34 = vpop.f32.mrf.mxu1  ;;  %4317 = vmatpush2.bf16.msra.mxu1 %v11887_v51  ;;  %v2711_v27 = vadd.f32 %v2710_v52, %v2518_v40  ;;  %v2520_v5 = vadd.f32 %v2519_v12, %v17916_v60  ;;  %4125 = vmatprep.subr.bf16.mxu0 %v11853_v4  ;;  %v3614_v38 = vmax.f32 %v2709_v16, 0.0  ;;  %v11860_v40 = vld [vmem:[%s17804_s4 + $0xb0] ss:$8 sps:$4 sm:$0xff]  }
 0x1ea   :  { %4318 = vmatprep.subr.bf16.mxu1 %v11892_v30  ;;  %v2523_v39 = vpop.f32.mrf.mxu0  ;;  %3214 = vmatmul.mubr.bf16.gmra.mxu0 %v12868_v44  ;;  %v17919_v30 = vld [vmem:[#allocation13_spill] sm:$0xff] }
 0x1eb   :  { %v2716_v1 = vpop.f32.mrf.mxu1  ;;  %10546 = vmatmul.mubr.msk.bf16.gmra.mxu1 %vm1924_vm0, %v12869_v50  ;;  %v3617_v10 = vmax.f32 %v2711_v27, 0.0  ;;  %v2713_v42 = vadd.f32 %v2712_v34, %v2520_v5  ;;  %v2524_v48 = vadd.f32 %v2523_v39, %v17917_v19  ;;  %3223 = vmatprep.mubr.bf16.mxu0 %v12870_v57  ;;  %v17920_v34 = vld [vmem:[#allocation14_spill] sm:$0xff]  ;;  %v17921_v50 = vld [vmem:[#allocation15_spill] sm:$0xff] }
 0x1ec   :  { %3416 = vmatprep.mubr.bf16.mxu1 %v17910_v14  ;;  %v2525_v35 = vpop.f32.mrf.mxu0  ;;  %4126 = vmatpush2.bf16.msra.mxu0 %v11851_v31  ;;  %v12871_v5 = vld [vmem:[%s17802_s0 + $0x160] ss:$28 sps:$4 sm:$0xff]  }
 0x1ed   :  { %v2718_v28 = vpop.f32.mrf.mxu1  ;;  %4319 = vmatpush2.bf16.msra.mxu1 %v11890_v59  ;;  %v14634_v6 = vpack.c.bf16 %v3617_v10, %v3613_v25  ;;  %v3618_v54 = vmax.f32 %v2713_v42, 0.0  ;;  %v2717_v63 = vadd.f32 %v2716_v1, %v2524_v48  ;;  %v2526_v51 = vadd.f32 %v2525_v35, %v17918_v18  ;;  %4127 = vmatprep.subr.bf16.mxu0 %v11859_v32  ;;  %v11868_v59 = vld [vmem:[%s17804_s4 + $0xa4] ss:$8 sps:$4 sm:$0xff]   ;;  %v12873_v10 = vld [vmem:[%s17802_s0 + $0x19c] ss:$28 sps:$4 sm:$0xff]  }
 0x1ee   :  { %v2527_v47 = vpop.f32.mrf.mxu0  ;;  %4320 = vmatprep.subr.bf16.mxu1 %v11895_v24  ;;  %v12872_v32 = vld [vmem:[%s17802_s0 + $0x168] ss:$28 sps:$4 sm:$0xff]   ;;  %v11898_v18 = vld [vmem:[%s17804_s4 + $0x1b4] ss:$8 sps:$4 sm:$0xff]  }
 0x1ef   :  { %v2720_v2 = vpop.f32.mrf.mxu1  ;;  %v2719_v4 = vadd.f32 %v2718_v28, %v2526_v51  ;;  %v2528_v46 = vadd.f32 %v2527_v47, %v17919_v30  ;;  %v14644_v52 = vpack.c.bf16 %v3618_v54, %v3614_v38  ;;  %v3621_v39 = vmax.f32 %v2717_v63, 0.0  ;;  %v11866_v57 = vld [vmem:[%s17804_s4 + $0xa0] ss:$8 sps:$4 sm:$0xff]   ;;  %v11871_v38 = vld [vmem:[%s17804_s4 + $0x94] ss:$8 sps:$4 sm:$0xff]  }
 0x1f0   :  { %v2529_v16 = vpop.f32.mrf.mxu0  ;;  %4128 = vmatpush2.bf16.msra.mxu0 %v11857_v55  ;;  %v11896_v63 = vld [vmem:[%s17804_s4 + $0x1b0] ss:$8 sps:$4 sm:$0xff]  }
 0x1f1   :  { %v2722_v7 = vpop.f32.mrf.mxu1  ;;  %4321 = vmatpush2.bf16.msra.mxu1 %v11893_v17  ;;  %v2721_v12 = vadd.f32 %v2720_v2, %v2528_v46  ;;  %v2530_v31 = vadd.f32 %v2529_v16, %v17920_v34  ;;  %4129 = vmatprep.subr.bf16.mxu0 %v11862_v53  ;;  %v3622_v42 = vmax.f32 %v2719_v4, 0.0  ;;  %v17923_v53 = vld [vmem:[#allocation16_spill] sm:$0xff]  ;;  %v17924_v47 = vld [vmem:[#allocation17_spill] sm:$0xff]  ;;  %v11877_v34 = vld [vmem:[%s17804_s4 + $0x84] ss:$8 sps:$4 sm:$0xff]  }
 0x1f2   :  { %v2533_v27 = vpop.f32.mrf.mxu0  ;;  %3224 = vmatmul.mubr.bf16.gmra.mxu0 %v12871_v5  ;;  %4322 = vmatprep.subr.bf16.mxu1 %v11898_v18  ;;  %v11869_v16 = vld [vmem:[%s17804_s4 + $0x90] ss:$8 sps:$4 sm:$0xff]   ;;  %v17926_v5 = vld [vmem:[#allocation2_spill] sm:$0xff] }
 0x1f3   :  { %v2726_v60 = vpop.f32.mrf.mxu1  ;;  %10547 = vmatmul.mubr.msk.bf16.gmra.mxu1 %vm1924_vm0, %v12872_v32  ;;  %v3625_v1 = vmax.f32 %v2721_v12, 0.0  ;;  %v2723_v44 = vadd.f32 %v2722_v7, %v2530_v31  ;;  %v2534_v25 = vadd.f32 %v2533_v27, %v17921_v50  ;;  %3233 = vmatprep.mubr.bf16.mxu0 %v12873_v10  ;;  %v12874_v27 = vld [vmem:[%s17802_s0 + $0x198] ss:$28 sps:$4 sm:$0xff]   ;;  %v14698_v32 = vsub.s32 2, %v17926_v5  ;;  %v17928_v50 = vld [vmem:[#allocation19_spill] sm:$0xff] }
 0x1f4   :  { %3426 = vmatprep.mubr.bf16.mxu1 %v17910_v14  ;;  %v2535_v19 = vpop.f32.mrf.mxu0  ;;  %4130 = vmatpush2.bf16.msra.mxu0 %v11860_v40  ;;  %v17925_v40 = vld [vmem:[#allocation18_spill] sm:$0xff]  ;;  %v12876_v10 = vld [vmem:[%s17802_s0 + $0x1d4] ss:$28 sps:$4 sm:$0xff]  }
 0x1f5   :  { %v2728_v48 = vpop.f32.mrf.mxu1  ;;  %v14671_v35 = vpack.c.bf16 %v3625_v1, %v3621_v39  ;;  %v3626_v28 = vmax.f32 %v2723_v44, 0.0  ;;  %v2727_v55 = vadd.f32 %v2726_v60, %v2534_v25  ;;  %v2536_v54 = vadd.f32 %v2535_v19, %v17923_v53  ;;  %4131 = vmatprep.subr.bf16.mxu0 %v11868_v59  ;;  %4323 = vmatpush2.bf16.msra.mxu1 %v11896_v63  ;;  %v12875_v60 = vld [vmem:[%s17802_s0 + $0x1a0] ss:$28 sps:$4 sm:$0xff]  }
 0x1f6   :  { %v2537_v51 = vpop.f32.mrf.mxu0  ;;  %17927 = vst [vmem:[#allocation6_spill] sm:$0xff] %v14698_v32  ;;  %v11899_v18 = vld [vmem:[%s17804_s4 + $0x1a0] ss:$8 sps:$4 sm:$0xff]  }
 0x1f7   :  { %17922 = vst [vmem:[#allocation5_spill] sm:$0xff] %v14671_v35  ;;  %v2730_v17 = vpop.f32.mrf.mxu1  ;;  %v2729_v24 = vadd.f32 %v2728_v48, %v2536_v54  ;;  %v2538_v2 = vadd.f32 %v2537_v51, %v17924_v47  ;;  %v14681_v4 = vpack.c.bf16 %v3626_v28, %v3622_v42  ;;  %v3629_v39 = vmax.f32 %v2727_v55, 0.0  ;;  %v17931_v54 = vld [vmem:[#allocation20_spill] sm:$0xff]  ;;  %v11901_v51 = vld [vmem:[%s17804_s4 + $0x1a4] ss:$8 sps:$4 sm:$0xff]  }
 0x1f8   :  { %v2539_v30 = vpop.f32.mrf.mxu0  ;;  %4132 = vmatpush2.bf16.msra.mxu0 %v11866_v57  ;;  %v14706_v57 = vsub.s32 3, %v17926_v5  ;;  %4324 = vmatprep.subr.bf16.mxu1 %v11901_v51 }
 0x1f9   :  { %v2732_v46 = vpop.f32.mrf.mxu1  ;;  %v2731_v7 = vadd.f32 %v2730_v17, %v2538_v2  ;;  %v2540_v12 = vadd.f32 %v2539_v30, %v17925_v40  ;;  %4133 = vmatprep.subr.bf16.mxu0 %v11871_v38  ;;  %v3630_v42 = vmax.f32 %v2729_v24, 0.0  ;;  %v11875_v38 = vld [vmem:[%s17804_s4 + $0x80] ss:$8 sps:$4 sm:$0xff]   ;;  %v17932_v2 = vld [vmem:[#allocation21_spill] sm:$0xff]  ;;  %4325 = vmatpush2.bf16.msra.mxu1 %v11899_v18 }
 0x1fa   :  { %v2543_v31 = vpop.f32.mrf.mxu0  ;;  %3234 = vmatmul.mubr.bf16.gmra.mxu0 %v12874_v27  ;;  %17929 = vst [vmem:[#allocation7_spill] sm:$0xff] %v14706_v57 }
 0x1fb   :  { %v2736_v59 = vpop.f32.mrf.mxu1  ;;  %10548 = vmatmul.mubr.msk.bf16.gmra.mxu1 %vm1924_vm0, %v12875_v60  ;;  %v3633_v1 = vmax.f32 %v2731_v7, 0.0  ;;  %v2733_v44 = vadd.f32 %v2732_v46, %v2540_v12  ;;  %v2544_v25 = vadd.f32 %v2543_v31, %v17928_v50  ;;  %3243 = vmatprep.mubr.bf16.mxu0 %v12876_v10  ;;  %v12877_v46 = vld [vmem:[%s17803_s3] sm:$0xf] }
 0x1fc   :  { %3436 = vmatprep.mubr.bf16.mxu1 %v17910_v14  ;;  %v2545_v19 = vpop.f32.mrf.mxu0  ;;  %4134 = vmatpush2.bf16.msra.mxu0 %v11869_v16  ;;  %v14725_v16 = vrot.slane %v12877_v46, %v14698_v32  ;;  %v17934_v31 = vld [vmem:[#allocation22_spill] sm:$0xff]  ;;  %v14731_v27 = vrot.slane %v12877_v46, %v14706_v57 }
 0x1fd   :  { %v2738_v48 = vpop.f32.mrf.mxu1  ;;  %v14711_v28 = vpack.c.bf16 %v3633_v1, %v3629_v39  ;;  %v3634_v55 = vmax.f32 %v2733_v44, 0.0  ;;  %v2737_v53 = vadd.f32 %v2736_v59, %v2544_v25  ;;  %v2546_v63 = vadd.f32 %v2545_v19, %v17931_v54  ;;  %4135 = vmatprep.subr.bf16.mxu0 %v11877_v34  ;;  %v12878_v1 = vld [vmem:[%s17802_s0 + $0x1d0] ss:$28 sps:$4 sm:$0xff]   ;;  %v12879_v44 = vld [vmem:[%s17802_s0 + $0x1d8] ss:$28 sps:$4 sm:$0xff]  }
 0x1fe   :  { %v2547_v17 = vpop.f32.mrf.mxu0  ;;  %v12880_v19 = vld [vmem:[%s17802_s0 + $0x20c] ss:$28 sps:$4 sm:$0xff]  }
 0x1ff   :  { %17930 = vst [vmem:[#allocation8_spill] sm:$0xff] %v14711_v28  ;;  %v2740_v24 = vpop.f32.mrf.mxu1  ;;  %v2739_v47 = vadd.f32 %v2738_v48, %v2546_v63  ;;  %v2548_v30 = vadd.f32 %v2547_v17, %v17932_v2  ;;  %v14727_v7 = vpack.c.bf16 %v3634_v55, %v3630_v42  ;;  %v3637_v50 = vmax.f32 %v2737_v53, 0.0 }
 0x200   :  { %v2549_v40 = vpop.f32.mrf.mxu0  ;;  %4136 = vmatpush2.bf16.msra.mxu0 %v11875_v38 }
 0x201   :  { %17933 = vst [vmem:[#allocation9_spill] sm:$0xff] %v14727_v7  ;;  %v2742_v12 = vpop.f32.mrf.mxu1  ;;  %v2741_v34 = vadd.f32 %v2740_v24, %v2548_v30  ;;  %v2550_v59 = vadd.f32 %v2549_v40, %v17934_v31  ;;  %v3638_v48 = vmax.f32 %v2739_v47, 0.0  ;;  %v11904_v30 = vld [vmem:[%s17804_s4 + $0x194] ss:$8 sps:$4 sm:$0xff]  }
 0x202   :  { %v2779_v60 = vpop.f32.mrf.mxu0  ;;  %3244 = vmatmul.mubr.bf16.gmra.mxu0 %v12878_v1  ;;  %4326 = vmatprep.subr.bf16.mxu1 %v11904_v30  ;;  %v12882_v1 = vld [vmem:[%s17802_s0 + $0x210] ss:$28 sps:$4 sm:$0xff]  }
 0x203   :  { %v2972_v39 = vpop.f32.mrf.mxu1  ;;  %10549 = vmatmul.mubr.msk.bf16.gmra.mxu1 %vm1924_vm0, %v12879_v44  ;;  %v3641_v25 = vmax.f32 %v2741_v34, 0.0  ;;  %v2743_v10 = vadd.f32 %v2742_v12, %v2550_v59  ;;  %v2780_v42 = vadd.f32 %v2779_v60, %v14725_v16  ;;  %3253 = vmatprep.mubr.bf16.mxu0 %v12880_v19  ;;  %v11902_v12 = vld [vmem:[%s17804_s4 + $0x190] ss:$8 sps:$4 sm:$0xff]   ;;  %v11907_v19 = vld [vmem:[%s17804_s4 + $0x184] ss:$8 sps:$4 sm:$0xff]  }
 0x204   :  { %3446 = vmatprep.mubr.bf16.mxu1 %v17910_v14  ;;  %v2781_v38 = vpop.f32.mrf.mxu0  ;;  %4327 = vmatpush2.bf16.msra.mxu1 %v11902_v12 }
 0x205   :  { %v2974_v55 = vpop.f32.mrf.mxu1  ;;  %v14745_v54 = vpack.c.bf16 %v3641_v25, %v3637_v50  ;;  %v3642_v63 = vmax.f32 %v2743_v10, 0.0  ;;  %v14747_v18 = vadd.f32 %v2972_v39, %v2780_v42  ;;  %v2782_v53 = vadd.f32 %v2781_v38, %v14731_v27  ;;  %v12881_v39 = vld [vmem:[%s17802_s0 + $0x208] ss:$28 sps:$4 sm:$0xff]   ;;  %4328 = vmatprep.subr.bf16.mxu1 %v11907_v19 }
 0x206   :  { %v2783_v51 = vpop.f32.mrf.mxu0  ;;  %v12883_v25 = vld [vmem:[%s17802_s0 + $0x244] ss:$28 sps:$4 sm:$0xff]  }
 0x207   :  { %17935 = vst [vmem:[#allocation10_spill] sm:$0xff] %v14745_v54  ;;  %v2976_v17 = vpop.f32.mrf.mxu1  ;;  %v14750_v24 = vadd.f32 %v2974_v55, %v2782_v53  ;;  %v2784_v2 = vadd.f32 %v2783_v51, %v14725_v16  ;;  %v14756_v47 = vpack.c.bf16 %v3642_v63, %v3638_v48  ;;  %v11905_v55 = vld [vmem:[%s17804_s4 + $0x180] ss:$8 sps:$4 sm:$0xff]  }
 0x208   :  { %v2785_v46 = vpop.f32.mrf.mxu0  ;;  %4329 = vmatpush2.bf16.msra.mxu1 %v11905_v55 }
 0x209   :  { %17936 = vst [vmem:[#allocation11_spill] sm:$0xff] %v14756_v47  ;;  %v2978_v40 = vpop.f32.mrf.mxu1  ;;  %v14761_v34 = vadd.f32 %v2976_v17, %v2784_v2  ;;  %v2786_v31 = vadd.f32 %v2785_v46, %v14731_v27 }
 0x20a   :  { %v2789_v59 = vpop.f32.mrf.mxu0  ;;  %3254 = vmatmul.mubr.bf16.gmra.mxu0 %v12881_v39 }
 0x20b   :  { %v2982_v60 = vpop.f32.mrf.mxu1  ;;  %10550 = vmatmul.mubr.msk.bf16.gmra.mxu1 %vm1924_vm0, %v12882_v1  ;;  %v14771_v44 = vadd.f32 %v2978_v40, %v2786_v31  ;;  %v2790_v50 = vadd.f32 %v2789_v59, %v14725_v16  ;;  %3263 = vmatprep.mubr.bf16.mxu0 %v12883_v25  ;;  %v12884_v59 = vld [vmem:[%s17802_s0 + $0x240] ss:$28 sps:$4 sm:$0xff]  }
 0x20c   :  { %3456 = vmatprep.mubr.bf16.mxu1 %v17910_v14  ;;  %v2791_v10 = vpop.f32.mrf.mxu0 }
 0x20d   :  { %v2984_v42 = vpop.f32.mrf.mxu1  ;;  %v14781_v48 = vadd.f32 %v2982_v60, %v2790_v50  ;;  %v2792_v38 = vadd.f32 %v2791_v10, %v14731_v27  ;;  %v12885_v60 = vld [vmem:[%s17802_s0 + $0x248] ss:$28 sps:$4 sm:$0xff]   ;;  %v12886_v50 = vld [vmem:[%s17802_s0 + $0x27c] ss:$28 sps:$4 sm:$0xff]  }
 0x20e   :  { %v2793_v63 = vpop.f32.mrf.mxu0 }
 0x20f   :  { %v2986_v53 = vpop.f32.mrf.mxu1  ;;  %v14787_v51 = vadd.f32 %v2984_v42, %v2792_v38  ;;  %v2794_v17 = vadd.f32 %v2793_v63, %v14725_v16 }
 0x210   :  { %v2795_v2 = vpop.f32.mrf.mxu0 }
 0x211   :  { %v2988_v30 = vpop.f32.mrf.mxu1  ;;  %v14790_v46 = vadd.f32 %v2986_v53, %v2794_v17  ;;  %v2796_v40 = vadd.f32 %v2795_v2, %v14731_v27 }
 0x212   :  { %v2799_v12 = vpop.f32.mrf.mxu0  ;;  %3264 = vmatmul.mubr.bf16.gmra.mxu0 %v12884_v59 }
 0x213   :  { %v2992_v31 = vpop.f32.mrf.mxu1  ;;  %10551 = vmatmul.mubr.msk.bf16.gmra.mxu1 %vm1924_vm0, %v12885_v60  ;;  %v14800_v39 = vadd.f32 %v2988_v30, %v2796_v40  ;;  %v2800_v1 = vadd.f32 %v2799_v12, %v14725_v16  ;;  %3273 = vmatprep.mubr.bf16.mxu0 %v12886_v50  ;;  %v12888_v60 = vld [vmem:[%s17802_s0 + $0x280] ss:$28 sps:$4 sm:$0xff]  }
 0x214   :  { %3466 = vmatprep.mubr.bf16.mxu1 %v17910_v14  ;;  %v2801_v25 = vpop.f32.mrf.mxu0 }
 0x215   :  { %v2994_v10 = vpop.f32.mrf.mxu1  ;;  %v14807_v42 = vadd.f32 %v2992_v31, %v2800_v1  ;;  %v2802_v19 = vadd.f32 %v2801_v25, %v14731_v27  ;;  %v12887_v31 = vld [vmem:[%s17802_s0 + $0x278] ss:$28 sps:$4 sm:$0xff]  }
 0x216   :  { %v2803_v38 = vpop.f32.mrf.mxu0  ;;  %v12889_v25 = vld [vmem:[%s17802_s0 + $0x2b4] ss:$28 sps:$4 sm:$0xff]  }
 0x217   :  { %v2996_v55 = vpop.f32.mrf.mxu1  ;;  %v14810_v63 = vadd.f32 %v2994_v10, %v2802_v19  ;;  %v2804_v53 = vadd.f32 %v2803_v38, %v14725_v16 }
 0x218   :  { %v2805_v17 = vpop.f32.mrf.mxu0 }
 0x219   :  { %v2998_v2 = vpop.f32.mrf.mxu1  ;;  %v14813_v30 = vadd.f32 %v2996_v55, %v2804_v53  ;;  %v2806_v40 = vadd.f32 %v2805_v17, %v14731_v27 }
 0x21a   :  { %v2809_v12 = vpop.f32.mrf.mxu0  ;;  %3274 = vmatmul.mubr.bf16.gmra.mxu0 %v12887_v31 }
 0x21b   :  { %v3002_v59 = vpop.f32.mrf.mxu1  ;;  %10552 = vmatmul.mubr.msk.bf16.gmra.mxu1 %vm1924_vm0, %v12888_v60  ;;  %v14823_v1 = vadd.f32 %v2998_v2, %v2806_v40  ;;  %v2810_v50 = vadd.f32 %v2809_v12, %v14725_v16  ;;  %3283 = vmatprep.mubr.bf16.mxu0 %v12889_v25 }
 0x21c   :  { %3476 = vmatprep.mubr.bf16.mxu1 %v17910_v14  ;;  %v2811_v10 = vpop.f32.mrf.mxu0 }
 0x21d   :  { %v3004_v19 = vpop.f32.mrf.mxu1  ;;  %v14830_v38 = vadd.f32 %v3002_v59, %v2810_v50  ;;  %v2812_v55 = vadd.f32 %v2811_v10, %v14731_v27  ;;  %v12890_v59 = vld [vmem:[%s17802_s0 + $0x2b0] ss:$28 sps:$4 sm:$0xff]   ;;  %v12891_v50 = vld [vmem:[%s17802_s0 + $0x2b8] ss:$28 sps:$4 sm:$0xff]  }
 0x21e   :  { %v2813_v53 = vpop.f32.mrf.mxu0 }
 0x21f   :  { %v3006_v17 = vpop.f32.mrf.mxu1  ;;  %v14833_v31 = vadd.f32 %v3004_v19, %v2812_v55  ;;  %v2814_v2 = vadd.f32 %v2813_v53, %v14725_v16  ;;  %v12892_v55 = vld [vmem:[%s17802_s0 + $0x2ec] ss:$28 sps:$4 sm:$0xff]  }
 0x220   :  { %v2815_v40 = vpop.f32.mrf.mxu0 }
 0x221   :  { %v3008_v12 = vpop.f32.mrf.mxu1  ;;  %v14836_v60 = vadd.f32 %v3006_v17, %v2814_v2  ;;  %v2816_v25 = vadd.f32 %v2815_v40, %v14731_v27 }
 0x222   :  { %v2819_v5 = vpop.f32.mrf.mxu0  ;;  %3284 = vmatmul.mubr.bf16.gmra.mxu0 %v12890_v59 }
 0x223   :  { %v3012_v32 = vpop.f32.mrf.mxu1  ;;  %10553 = vmatmul.mubr.msk.bf16.gmra.mxu1 %vm1924_vm0, %v12891_v50  ;;  %v14846_v10 = vadd.f32 %v3008_v12, %v2816_v25  ;;  %v2820_v19 = vadd.f32 %v2819_v5, %v14725_v16  ;;  %3293 = vmatprep.mubr.bf16.mxu0 %v12892_v55 }
 0x224   :  { %3486 = vmatprep.mubr.bf16.mxu1 %v17910_v14  ;;  %v2821_v53 = vpop.f32.mrf.mxu0 }
 0x225   :  { %v3014_v17 = vpop.f32.mrf.mxu1  ;;  %v14853_v2 = vadd.f32 %v3012_v32, %v2820_v19  ;;  %v2822_v40 = vadd.f32 %v2821_v53, %v14731_v27  ;;  %v12893_v32 = vld [vmem:[%s17802_s0 + $0x2e8] ss:$28 sps:$4 sm:$0xff]   ;;  %v12894_v19 = vld [vmem:[%s17802_s0 + $0x2f0] ss:$28 sps:$4 sm:$0xff]  }
 0x226   :  { %v2823_v59 = vpop.f32.mrf.mxu0 }
 0x227   :  { %v3016_v57 = vpop.f32.mrf.mxu1  ;;  %v14856_v50 = vadd.f32 %v3014_v17, %v2822_v40  ;;  %v2824_v12 = vadd.f32 %v2823_v59, %v14725_v16 }
 0x228   :  { %v14859_v5 = vpop.f32.mrf.mxu0 }
 0x229   :  { %v14861_v25 = vpop.f32.mrf.mxu1  ;;  %v14863_v54 = vadd.f32 %v3016_v57, %v2824_v12  ;;  %v12895_v57 = vld [vmem:[%s17802_s0 + $0x324] ss:$28 sps:$4 sm:$0xff]  }
 0x22a   :  { %17937 = vst [vmem:[#allocation12_spill] sm:$0xff] %v14861_v25  ;;  %v2829_v55 = vpop.f32.mrf.mxu0  ;;  %3294 = vmatmul.mubr.bf16.gmra.mxu0 %v12893_v32 }
 0x22b   :  { %17938 = vst [vmem:[#allocation13_spill] sm:$0xff] %v14863_v54  ;;  %v3022_v47 = vpop.f32.mrf.mxu1  ;;  %10554 = vmatmul.mubr.msk.bf16.gmra.mxu1 %vm1924_vm0, %v12894_v19  ;;  %v2830_v53 = vadd.f32 %v2829_v55, %v14725_v16  ;;  %3303 = vmatprep.mubr.bf16.mxu0 %v12895_v57 }
 0x22c   :  { %3496 = vmatprep.mubr.bf16.mxu1 %v17910_v14  ;;  %v2831_v17 = vpop.f32.mrf.mxu0 }
 0x22d   :  { %v3024_v40 = vpop.f32.mrf.mxu1  ;;  %v14877_v59 = vadd.f32 %v3022_v47, %v2830_v53  ;;  %v2832_v12 = vadd.f32 %v2831_v17, %v14731_v27  ;;  %v12896_v47 = vld [vmem:[%s17802_s0 + $0x320] ss:$28 sps:$4 sm:$0xff]   ;;  %v12897_v53 = vld [vmem:[%s17802_s0 + $0x328] ss:$28 sps:$4 sm:$0xff]  }
 0x22e   :  { %v2833_v32 = vpop.f32.mrf.mxu0 }
 0x22f   :  { %17939 = vst [vmem:[#allocation14_spill] sm:$0xff] %v14877_v59  ;;  %v3026_v28 = vpop.f32.mrf.mxu1  ;;  %v14880_v7 = vadd.f32 %v3024_v40, %v2832_v12  ;;  %v2834_v19 = vadd.f32 %v2833_v32, %v14725_v16 }
 0x230   :  { %v14883_v55 = vpop.f32.mrf.mxu0 }
 0x231   :  { %17940 = vst [vmem:[#allocation15_spill] sm:$0xff] %v14880_v7  ;;  %v14885_v35 = vpop.f32.mrf.mxu1  ;;  %v14887_v54 = vadd.f32 %v3026_v28, %v2834_v19  ;;  %v12898_v28 = vld [vmem:[%s17802_s0 + $0x35c] ss:$28 sps:$4 sm:$0xff]  }
 0x232   :  { %17941 = vst [vmem:[#allocation16_spill] sm:$0xff] %v14885_v35  ;;  %v2839_v57 = vpop.f32.mrf.mxu0  ;;  %3304 = vmatmul.mubr.bf16.gmra.mxu0 %v12896_v47 }
 0x233   :  { %17942 = vst [vmem:[#allocation17_spill] sm:$0xff] %v14887_v54  ;;  %v3032_v25 = vpop.f32.mrf.mxu1  ;;  %10555 = vmatmul.mubr.msk.bf16.gmra.mxu1 %vm1924_vm0, %v12897_v53  ;;  %v2840_v17 = vadd.f32 %v2839_v57, %v14725_v16  ;;  %3313 = vmatprep.mubr.bf16.mxu0 %v12898_v28 }
 0x234   :  { %3506 = vmatprep.mubr.bf16.mxu1 %v17910_v14  ;;  %v2841_v40 = vpop.f32.mrf.mxu0 }
 0x235   :  { %v3034_v12 = vpop.f32.mrf.mxu1  ;;  %v14901_v32 = vadd.f32 %v3032_v25, %v2840_v17  ;;  %v2842_v19 = vadd.f32 %v2841_v40, %v14731_v27  ;;  %v12899_v25 = vld [vmem:[%s17802_s0 + $0x358] ss:$28 sps:$4 sm:$0xff]   ;;  %v12900_v17 = vld [vmem:[%s17802_s0 + $0x360] ss:$28 sps:$4 sm:$0xff]  }
 0x236   :  { %v2843_v47 = vpop.f32.mrf.mxu0 }
 0x237   :  { %17943 = vst [vmem:[#allocation18_spill] sm:$0xff] %v14901_v32  ;;  %v3036_v54 = vpop.f32.mrf.mxu1  ;;  %v14904_v35 = vadd.f32 %v3034_v12, %v2842_v19  ;;  %v2844_v53 = vadd.f32 %v2843_v47, %v14725_v16 }
 0x238   :  { %v14907_v57 = vpop.f32.mrf.mxu0 }
 0x239   :  { %17944 = vst [vmem:[#allocation19_spill] sm:$0xff] %v14904_v35  ;;  %v14909_v7 = vpop.f32.mrf.mxu1  ;;  %v14911_v59 = vadd.f32 %v3036_v54, %v2844_v53 }
 0x23a   :  { %17945 = vst [vmem:[#allocation20_spill] sm:$0xff] %v14909_v7  ;;  %v2849_v28 = vpop.f32.mrf.mxu0  ;;  %3314 = vmatmul.mubr.bf16.gmra.mxu0 %v12899_v25 }
 0x23b   :  { %17946 = vst [vmem:[#allocation21_spill] sm:$0xff] %v14911_v59  ;;  %v3042_v14 = vpop.f32.mrf.mxu1  ;;  %10556 = vmatmul.mubr.msk.bf16.gmra.mxu1 %vm1924_vm0, %v12900_v17  ;;  %v2850_v40 = vadd.f32 %v2849_v28, %v14725_v16  ;;  %4137 = vmatprep.mubr.bf16.mxu0 %v14268_v56 }
 0x23c   :  { %v2851_v12 = vpop.f32.mrf.mxu0 }
 0x23d   :  { %v3044_v54 = vpop.f32.mrf.mxu1  ;;  %v14922_v19 = vadd.f32 %v3042_v14, %v2850_v40  ;;  %v2852_v47 = vadd.f32 %v2851_v12, %v14731_v27 }
 0x23e   :  { %v2853_v53 = vpop.f32.mrf.mxu0 }
 0x23f   :  { %17947 = vst [vmem:[#allocation22_spill] sm:$0xff] %v14922_v19  ;;  %v3046_v59 = vpop.f32.mrf.mxu1  ;;  %v14925_v7 = vadd.f32 %v3044_v54, %v2852_v47  ;;  %v2854_v25 = vadd.f32 %v2853_v53, %v14725_v16 }
 0x240   :  { %v14928_v35 = vpop.f32.mrf.mxu0 }
 0x241   :  { %17948 = vst [vmem:[#allocation23_spill] sm:$0xff] %v14925_v7  ;;  %v14930_v32 = vpop.f32.mrf.mxu1  ;;  %v14932_v17 = vadd.f32 %v3046_v59, %v2854_v25 }
 0x242   :  { %v2859_v28 = vpop.f32.mrf.mxu0  ;;  %4138 = vmatmul.mubr.bf16.vlgmr.msra.gmra.mxu0 %v14264_v43 }
 0x243   :  { %17949 = vst [vmem:[#allocation24_spill] sm:$0xff] %v14932_v17  ;;  %v3052_v56 = vpop.f32.mrf.mxu1  ;;  %v2860_v14 = vadd.f32 %v2859_v28, %v14725_v16  ;;  %4147 = vmatprep.mubr.bf16.mxu0 %v14291_v29 }
 0x244   :  { %v2861_v40 = vpop.f32.mrf.mxu0 }
 0x245   :  { %v3054_v12 = vpop.f32.mrf.mxu1  ;;  %v14937_v54 = vadd.f32 %v3052_v56, %v2860_v14  ;;  %v2862_v47 = vadd.f32 %v2861_v40, %v14731_v27 }
 0x246   :  { %v2863_v53 = vpop.f32.mrf.mxu0 }
 0x247   :  { %17950 = vst [vmem:[#allocation25_spill] sm:$0xff] %v14937_v54  ;;  %v3056_v7 = vpop.f32.mrf.mxu1  ;;  %v14940_v19 = vadd.f32 %v3054_v12, %v2862_v47  ;;  %v2864_v59 = vadd.f32 %v2863_v53, %v14725_v16 }
 0x248   :  { %v14943_v25 = vpop.f32.mrf.mxu0 }
 0x249   :  { %17951 = vst [vmem:[#allocation26_spill] sm:$0xff] %v14940_v19  ;;  %v14945_v17 = vpop.f32.mrf.mxu1  ;;  %v14947_v43 = vadd.f32 %v3056_v7, %v2864_v59 }
 0x24a   :  { %v2869_v28 = vpop.f32.mrf.mxu0  ;;  %4148 = vmatmul.mubr.bf16.gmra.mxu0 %v14284_v15 }
 0x24b   :  { %17952 = vst [vmem:[#allocation27_spill] sm:$0xff] %v14947_v43  ;;  %v3062_v29 = vpop.f32.mrf.mxu1  ;;  %v2870_v56 = vadd.f32 %v2869_v28, %v14725_v16  ;;  %4157 = vmatprep.mubr.bf16.mxu0 %v14311_v20 }
 0x24c   :  { %v2871_v14 = vpop.f32.mrf.mxu0 }
 0x24d   :  { %v3064_v40 = vpop.f32.mrf.mxu1  ;;  %v14952_v12 = vadd.f32 %v3062_v29, %v2870_v56  ;;  %v2872_v47 = vadd.f32 %v2871_v14, %v14731_v27 }
 0x24e   :  { %v2873_v53 = vpop.f32.mrf.mxu0 }
 0x24f   :  { %17953 = vst [vmem:[#allocation28_spill] sm:$0xff] %v14952_v12  ;;  %v3066_v19 = vpop.f32.mrf.mxu1  ;;  %v14955_v54 = vadd.f32 %v3064_v40, %v2872_v47  ;;  %v2874_v7 = vadd.f32 %v2873_v53, %v14725_v16 }
 0x250   :  { %v14958_v59 = vpop.f32.mrf.mxu0 }
 0x251   :  { %17954 = vst [vmem:[#allocation29_spill] sm:$0xff] %v14955_v54  ;;  %v14960_v43 = vpop.f32.mrf.mxu1  ;;  %v14962_v15 = vadd.f32 %v3066_v19, %v2874_v7 }
 0x252   :  { %v2879_v28 = vpop.f32.mrf.mxu0  ;;  %4158 = vmatmul.mubr.bf16.gmra.mxu0 %v14307_v26 }
 0x253   :  { %17955 = vst [vmem:[#allocation30_spill] sm:$0xff] %v14962_v15  ;;  %v3072_v20 = vpop.f32.mrf.mxu1  ;;  %v2880_v29 = vadd.f32 %v2879_v28, %v14725_v16  ;;  %4167 = vmatprep.mubr.bf16.mxu0 %v14331_v13 }
 0x254   :  { %v2881_v56 = vpop.f32.mrf.mxu0 }
 0x255   :  { %v3074_v14 = vpop.f32.mrf.mxu1  ;;  %v14967_v40 = vadd.f32 %v3072_v20, %v2880_v29  ;;  %v2882_v47 = vadd.f32 %v2881_v56, %v14731_v27 }
 0x256   :  { %v2883_v53 = vpop.f32.mrf.mxu0 }
 0x257   :  { %17956 = vst [vmem:[#allocation31_spill] sm:$0xff] %v14967_v40  ;;  %v3076_v54 = vpop.f32.mrf.mxu1  ;;  %v14970_v12 = vadd.f32 %v3074_v14, %v2882_v47  ;;  %v2884_v19 = vadd.f32 %v2883_v53, %v14725_v16 }
 0x258   :  { %v14973_v7 = vpop.f32.mrf.mxu0 }
 0x259   :  { %17957 = vst [vmem:[#allocation32_spill] sm:$0xff] %v14970_v12  ;;  %v14975_v15 = vpop.f32.mrf.mxu1  ;;  %v14977_v26 = vadd.f32 %v3076_v54, %v2884_v19 }
 0x25a   :  { %v2889_v28 = vpop.f32.mrf.mxu0  ;;  %4168 = vmatmul.mubr.bf16.gmra.mxu0 %v14327_v49 }
 0x25b   :  { %17958 = vst [vmem:[#allocation33_spill] sm:$0xff] %v14977_v26  ;;  %v3082_v13 = vpop.f32.mrf.mxu1  ;;  %v2890_v20 = vadd.f32 %v2889_v28, %v14725_v16  ;;  %4177 = vmatprep.mubr.bf16.mxu0 %v14351_v61 }
 0x25c   :  { %v2891_v29 = vpop.f32.mrf.mxu0 }
 0x25d   :  { %v3084_v56 = vpop.f32.mrf.mxu1  ;;  %v14982_v14 = vadd.f32 %v3082_v13, %v2890_v20  ;;  %v2892_v47 = vadd.f32 %v2891_v29, %v14731_v27 }
 0x25e   :  { %v2893_v53 = vpop.f32.mrf.mxu0 }
 0x25f   :  { %17959 = vst [vmem:[#allocation34_spill] sm:$0xff] %v14982_v14  ;;  %v3086_v12 = vpop.f32.mrf.mxu1  ;;  %v14985_v40 = vadd.f32 %v3084_v56, %v2892_v47  ;;  %v2894_v54 = vadd.f32 %v2893_v53, %v14725_v16 }
 0x260   :  { %v14988_v19 = vpop.f32.mrf.mxu0 }
 0x261   :  { %17960 = vst [vmem:[#allocation35_spill] sm:$0xff] %v14985_v40  ;;  %v14990_v26 = vpop.f32.mrf.mxu1  ;;  %v14992_v49 = vadd.f32 %v3086_v12, %v2894_v54 }
 0x262   :  { %v2899_v28 = vpop.f32.mrf.mxu0  ;;  %4178 = vmatmul.mubr.bf16.gmra.mxu0 %v14347_v3 }
 0x263   :  { %17961 = vst [vmem:[#allocation36_spill] sm:$0xff] %v14992_v49  ;;  %v3092_v61 = vpop.f32.mrf.mxu1  ;;  %v2900_v13 = vadd.f32 %v2899_v28, %v14725_v16  ;;  %4187 = vmatprep.mubr.bf16.mxu0 %v14371_v45 }
 0x264   :  { %v2901_v20 = vpop.f32.mrf.mxu0 }
 0x265   :  { %v3094_v29 = vpop.f32.mrf.mxu1  ;;  %v14997_v56 = vadd.f32 %v3092_v61, %v2900_v13  ;;  %v2902_v47 = vadd.f32 %v2901_v20, %v14731_v27 }
 0x266   :  { %v2903_v53 = vpop.f32.mrf.mxu0 }
 0x267   :  { %17962 = vst [vmem:[#allocation37_spill] sm:$0xff] %v14997_v56  ;;  %v3096_v40 = vpop.f32.mrf.mxu1  ;;  %v15000_v14 = vadd.f32 %v3094_v29, %v2902_v47  ;;  %v2904_v12 = vadd.f32 %v2903_v53, %v14725_v16 }
 0x268   :  { %v15003_v54 = vpop.f32.mrf.mxu0 }
 0x269   :  { %17963 = vst [vmem:[#allocation38_spill] sm:$0xff] %v15000_v14  ;;  %v15005_v49 = vpop.f32.mrf.mxu1  ;;  %v15007_v3 = vadd.f32 %v3096_v40, %v2904_v12 }
 0x26a   :  { %v2909_v28 = vpop.f32.mrf.mxu0  ;;  %4188 = vmatmul.mubr.bf16.gmra.mxu0 %v14367_v22 }
 0x26b   :  { %17964 = vst [vmem:[#allocation39_spill] sm:$0xff] %v15007_v3  ;;  %v3102_v45 = vpop.f32.mrf.mxu1  ;;  %v2910_v61 = vadd.f32 %v2909_v28, %v14725_v16  ;;  %4197 = vmatprep.mubr.bf16.mxu0 %v14389_v8 }
 0x26c   :  { %v2911_v13 = vpop.f32.mrf.mxu0 }
 0x26d   :  { %v3104_v20 = vpop.f32.mrf.mxu1  ;;  %v15012_v29 = vadd.f32 %v3102_v45, %v2910_v61  ;;  %v2912_v47 = vadd.f32 %v2911_v13, %v14731_v27 }
 0x26e   :  { %v2913_v53 = vpop.f32.mrf.mxu0 }
 0x26f   :  { %17965 = vst [vmem:[#allocation40_spill] sm:$0xff] %v15012_v29  ;;  %v3106_v14 = vpop.f32.mrf.mxu1  ;;  %v15015_v56 = vadd.f32 %v3104_v20, %v2912_v47  ;;  %v2914_v40 = vadd.f32 %v2913_v53, %v14725_v16 }
 0x270   :  { %v15018_v12 = vpop.f32.mrf.mxu0 }
 0x271   :  { %17966 = vst [vmem:[#allocation41_spill] sm:$0xff] %v15015_v56  ;;  %v15020_v3 = vpop.f32.mrf.mxu1  ;;  %v15022_v22 = vadd.f32 %v3106_v14, %v2914_v40 }
 0x272   :  { %v2919_v28 = vpop.f32.mrf.mxu0  ;;  %4198 = vmatmul.mubr.bf16.gmra.mxu0 %v14385_v11  ;;  %v11908_v11 = vld [vmem:[%s17805_s6 + $0xe0] ss:$16 sps:$4 sm:$0xff]  }
 0x273   :  { %17967 = vst [vmem:[#allocation42_spill] sm:$0xff] %v15022_v22  ;;  %v3112_v8 = vpop.f32.mrf.mxu1  ;;  %v2920_v45 = vadd.f32 %v2919_v28, %v14725_v16  ;;  %4207 = vmatprep.mubr.bf16.mxu0 %v14432_v37  ;;  %v11910_v28 = vld [vmem:[%s17805_s6 + $0xe4] ss:$16 sps:$4 sm:$0xff]  }
 0x274   :  { %v2921_v61 = vpop.f32.mrf.mxu0  ;;  %4913 = vmatprep.subr.bf16.mxu0 %v11910_v28 }
 0x275   :  { %v3114_v13 = vpop.f32.mrf.mxu1  ;;  %v15027_v20 = vadd.f32 %v3112_v8, %v2920_v45  ;;  %v2922_v47 = vadd.f32 %v2921_v61, %v14731_v27  ;;  %v11913_v61 = vld [vmem:[%s17805_s6 + $0xec] ss:$16 sps:$4 sm:$0xff]   ;;  %4914 = vmatpush1.bf16.msra.mxu0 %v11908_v11 }
 0x276   :  { %v2923_v53 = vpop.f32.mrf.mxu0  ;;  %5106 = vmatprep.subr.bf16.mxu1 %v11913_v61 }
 0x277   :  { %17968 = vst [vmem:[#allocation43_spill] sm:$0xff] %v15027_v20  ;;  %v3116_v56 = vpop.f32.mrf.mxu1  ;;  %v15030_v29 = vadd.f32 %v3114_v13, %v2922_v47  ;;  %v2924_v14 = vadd.f32 %v2923_v53, %v14725_v16 }
 0x278   :  { %v15033_v40 = vpop.f32.mrf.mxu0 }
 0x279   :  { %17969 = vst [vmem:[#allocation44_spill] sm:$0xff] %v15030_v29  ;;  %17970 = vst [vmem:[#allocation45_spill] sm:$0xff] %v15033_v40  ;;  %v15035_v22 = vpop.f32.mrf.mxu1  ;;  %v15040_v37 = vadd.f32 %v3116_v56, %v2924_v14 }
 0x27a   :  { %17971 = vst [vmem:[#allocation46_spill] sm:$0xff] %v15035_v22  ;;  %v2929_v8 = vpop.f32.mrf.mxu0  ;;  %4208 = vmatmul.mubr.bf16.gmra.mxu0 %v14422_v41 }
 0x27b   :  { %17972 = vst [vmem:[#allocation47_spill] sm:$0xff] %v15040_v37  ;;  %v3122_v45 = vpop.f32.mrf.mxu1  ;;  %v2930_v13 = vadd.f32 %v2929_v8, %v14725_v16  ;;  %4217 = vmatprep.mubr.bf16.mxu0 %v14475_v33 }
 0x27c   :  { %v2931_v47 = vpop.f32.mrf.mxu0 }
 0x27d   :  { %v3124_v56 = vpop.f32.mrf.mxu1  ;;  %v15051_v53 = vadd.f32 %v3122_v45, %v2930_v13  ;;  %v2932_v14 = vadd.f32 %v2931_v47, %v14731_v27 }
 0x27e   :  { %v2933_v37 = vpop.f32.mrf.mxu0 }
 0x27f   :  { %17973 = vst [vmem:[#allocation48_spill] sm:$0xff] %v15051_v53  ;;  %v3126_v22 = vpop.f32.mrf.mxu1  ;;  %v15054_v41 = vadd.f32 %v3124_v56, %v2932_v14  ;;  %v2934_v29 = vadd.f32 %v2933_v37, %v14725_v16  ;;  %v11914_v16 = vld [vmem:[%s17805_s6 + $0xc0] ss:$16 sps:$4 sm:$0xff]  }
 0x280   :  { %v15057_v20 = vpop.f32.mrf.mxu0 }
 0x281   :  { %17974 = vst [vmem:[#allocation49_spill] sm:$0xff] %v15054_v41  ;;  %v15059_v8 = vpop.f32.mrf.mxu1  ;;  %v15061_v33 = vadd.f32 %v3126_v22, %v2934_v29  ;;  %v11916_v29 = vld [vmem:[%s17805_s6 + $0xc4] ss:$16 sps:$4 sm:$0xff]  }
 0x282   :  { %17975 = vst [vmem:[#allocation50_spill] sm:$0xff] %v15059_v8  ;;  %v3165_v28 = vpop.f32.mrf.mxu0  ;;  %4218 = vmatmul.mubr.bf16.gmra.mxu0 %v14465_v0  ;;  %4915 = vmatprep.subr.bf16.mxu0 %v11916_v29 }
 0x283   :  { %17976 = vst [vmem:[#allocation51_spill] sm:$0xff] %v15061_v33  ;;  %v3358_v40 = vpop.f32.mrf.mxu1  ;;  %v3166_v11 = vadd.f32 %v3165_v28, %v14747_v18  ;;  %4227 = vmatprep.mubr.bf16.mxu0 %v14518_v9  ;;  %4916 = vmatpush1.bf16.msra.mxu0 %v11914_v16 }
 0x284   :  { %v3167_v45 = vpop.f32.mrf.mxu0 }
 0x285   :  { %v3360_v61 = vpop.f32.mrf.mxu1  ;;  %v3168_v13 = vadd.f32 %v3167_v45, %v14750_v24  ;;  %v3359_v47 = vadd.f32 %v3358_v40, %v3166_v11 }
 0x286   :  { %v3169_v22 = vpop.f32.mrf.mxu0 }
 0x287   :  { %v3362_v37 = vpop.f32.mrf.mxu1  ;;  %v3170_v0 = vadd.f32 %v3169_v22, %v14761_v34  ;;  %v3361_v56 = vadd.f32 %v3360_v61, %v3168_v13  ;;  %v3519_v33 = vmax.f32 %v3359_v47, 0.0  ;;  %v11911_v47 = vld [vmem:[%s17805_s6 + $0xe8] ss:$16 sps:$4 sm:$0xff]  }
 0x288   :  { %v3171_v18 = vpop.f32.mrf.mxu0 }
 0x289   :  { %v3364_v9 = vpop.f32.mrf.mxu1  ;;  %v3363_v14 = vadd.f32 %v3362_v37, %v3170_v0  ;;  %v3172_v24 = vadd.f32 %v3171_v18, %v14771_v44  ;;  %v3520_v11 = vmax.f32 %v3361_v56, 0.0 }
 0x28a   :  { %v3175_v28 = vpop.f32.mrf.mxu0  ;;  %4228 = vmatmul.mubr.bf16.gmra.mxu0 %v14508_v23 }
 0x28b   :  { %v3368_v45 = vpop.f32.mrf.mxu1  ;;  %v3523_v8 = vmax.f32 %v3363_v14, 0.0  ;;  %v3365_v41 = vadd.f32 %v3364_v9, %v3172_v24  ;;  %v3176_v53 = vadd.f32 %v3175_v28, %v14781_v48  ;;  %4237 = vmatprep.mubr.bf16.mxu0 %v14561_v21  ;;  %v11919_v21 = vld [vmem:[%s17805_s6 + $0xcc] ss:$16 sps:$4 sm:$0xff]  }
 0x28c   :  { %v3177_v34 = vpop.f32.mrf.mxu0 }
 0x28d   :  { %v3370_v40 = vpop.f32.mrf.mxu1  ;;  %v3647_v29 = vpack.c.bf16 %v3523_v8, %v3519_v33  ;;  %v3524_v16 = vmax.f32 %v3365_v41, 0.0  ;;  %v3178_v61 = vadd.f32 %v3177_v34, %v14787_v51  ;;  %v3369_v22 = vadd.f32 %v3368_v45, %v3176_v53 }
 0x28e   :  { %v3179_v13 = vpop.f32.mrf.mxu0 }
 0x28f   :  { %v3372_v44 = vpop.f32.mrf.mxu1  ;;  %v3180_v37 = vadd.f32 %v3179_v13, %v14790_v46  ;;  %v3648_v23 = vpack.c.bf16 %v3524_v16, %v3520_v11  ;;  %v3371_v8 = vadd.f32 %v3370_v40, %v3178_v61  ;;  %v11917_v46 = vld [vmem:[%s17805_s6 + $0xc8] ss:$16 sps:$4 sm:$0xff]   ;;  %v3527_v18 = vmax.f32 %v3369_v22, 0.0 }
 0x290   :  { %v3181_v48 = vpop.f32.mrf.mxu0 }
 0x291   :  { %v3374_v0 = vpop.f32.mrf.mxu1  ;;  %v3373_v41 = vadd.f32 %v3372_v44, %v3180_v37  ;;  %v3182_v51 = vadd.f32 %v3181_v48, %v14800_v39  ;;  %4330 = vmatprep.mubr.bf16.mxu1 %v3648_v23  ;;  %v11920_v39 = vld [vmem:[%s17805_s6 + $0xa0] ss:$16 sps:$4 sm:$0xff]   ;;  %v3528_v45 = vmax.f32 %v3371_v8, 0.0  ;;  %v11923_v44 = vld [vmem:[%s17805_s6 + $0xa8] ss:$16 sps:$4 sm:$0xff]  }
 0x292   :  { %v3185_v33 = vpop.f32.mrf.mxu0  ;;  %4238 = vmatmul.mubr.bf16.gmra.mxu0 %v14551_v36  ;;  %4331 = vmatmul.mubr.bf16.vlgmr.msra.gmra.mxu1 %v3647_v29  ;;  %v11922_v36 = vld [vmem:[%s17805_s6 + $0xa4] ss:$16 sps:$4 sm:$0xff]  }
 0x293   :  { %v3378_v53 = vpop.f32.mrf.mxu1  ;;  %v3531_v9 = vmax.f32 %v3373_v41, 0.0  ;;  %v3375_v56 = vadd.f32 %v3374_v0, %v3182_v51  ;;  %v3186_v14 = vadd.f32 %v3185_v33, %v14807_v42  ;;  %4247 = vmatprep.mubr.bf16.mxu0 %v14604_v58  ;;  %5107 = vmatpush1.bf16.msra.mxu1 %v11911_v47  ;;  %v11925_v58 = vld [vmem:[%s17805_s6 + $0xac] ss:$16 sps:$4 sm:$0xff]  }
 0x294   :  { %v3187_v24 = vpop.f32.mrf.mxu0  ;;  %5108 = vmatprep.subr.bf16.mxu1 %v11919_v21  ;;  %4917 = vmatprep.subr.bf16.mxu0 %v11922_v36 }
 0x295   :  { %v3380_v28 = vpop.f32.mrf.mxu1  ;;  %v3651_v34 = vpack.c.bf16 %v3531_v9, %v3527_v18  ;;  %v3532_v40 = vmax.f32 %v3375_v56, 0.0  ;;  %v3188_v11 = vadd.f32 %v3187_v24, %v14810_v63  ;;  %4918 = vmatpush1.bf16.msra.mxu0 %v11920_v39  ;;  %v3379_v16 = vadd.f32 %v3378_v53, %v3186_v14 }
 0x296   :  { %v3189_v42 = vpop.f32.mrf.mxu0 }
 0x297   :  { %v3382_v29 = vpop.f32.mrf.mxu1  ;;  %v3190_v61 = vadd.f32 %v3189_v42, %v14813_v30  ;;  %v3652_v13 = vpack.c.bf16 %v3532_v40, %v3528_v45  ;;  %5109 = vmatpush1.bf16.msra.mxu1 %v11917_v46  ;;  %v3381_v63 = vadd.f32 %v3380_v28, %v3188_v11  ;;  %v3535_v30 = vmax.f32 %v3379_v16, 0.0 }
 0x298   :  { %v3191_v22 = vpop.f32.mrf.mxu0  ;;  %5110 = vmatprep.subr.bf16.mxu1 %v11925_v58  ;;  %v2826_v45 = vadd.f32 %v14859_v5, %v14731_v27  ;;  %v11928_v5 = vld [vmem:[%s17805_s6 + $0x84] ss:$16 sps:$4 sm:$0xff]  }
 0x299   :  { %v3384_v37 = vpop.f32.mrf.mxu1  ;;  %v3383_v23 = vadd.f32 %v3382_v29, %v3190_v61  ;;  %v3192_v47 = vadd.f32 %v3191_v22, %v14823_v1  ;;  %4340 = vmatprep.mubr.bf16.mxu1 %v3652_v13  ;;  %v3536_v53 = vmax.f32 %v3381_v63, 0.0  ;;  %4919 = vmatprep.subr.bf16.mxu0 %v11928_v5 }
 0x29a   :  { %v3195_v48 = vpop.f32.mrf.mxu0  ;;  %4248 = vmatmul.mubr.bf16.gmra.mxu0 %v14594_v62  ;;  %4341 = vmatmul.mubr.bf16.gmra.mxu1 %v3651_v34 }
 0x29b   :  { %v3388_v0 = vpop.f32.mrf.mxu1  ;;  %v3539_v21 = vmax.f32 %v3383_v23, 0.0  ;;  %v3385_v8 = vadd.f32 %v3384_v37, %v3192_v47  ;;  %v3196_v41 = vadd.f32 %v3195_v48, %v14830_v38  ;;  %4257 = vmatprep.mubr.bf16.mxu0 %v14644_v52  ;;  %5111 = vmatpush1.bf16.msra.mxu1 %v11923_v44  ;;  %v17977_v37 = vld [vmem:[#allocation12_spill] sm:$0xff]  ;;  %v17978_v47 = vld [vmem:[#allocation13_spill] sm:$0xff] }
 0x29c   :  { %v3197_v51 = vpop.f32.mrf.mxu0  ;;  %v3019_v63 = vadd.f32 %v17977_v37, %v2826_v45 }
 0x29d   :  { %v3390_v33 = vpop.f32.mrf.mxu1  ;;  %v3655_v46 = vpack.c.bf16 %v3539_v21, %v3535_v30  ;;  %v3540_v18 = vmax.f32 %v3385_v8, 0.0  ;;  %v3198_v1 = vadd.f32 %v3197_v51, %v14833_v31  ;;  %v3389_v14 = vadd.f32 %v3388_v0, %v3196_v41 }
 0x29e   :  { %v3199_v9 = vpop.f32.mrf.mxu0  ;;  %v2836_v51 = vadd.f32 %v14883_v55, %v14731_v27 }
 0x29f   :  { %v3392_v56 = vpop.f32.mrf.mxu1  ;;  %v3200_v62 = vadd.f32 %v3199_v9, %v14836_v60  ;;  %v3656_v39 = vpack.c.bf16 %v3540_v18, %v3536_v53  ;;  %v3391_v28 = vadd.f32 %v3390_v33, %v3198_v1  ;;  %v3543_v31 = vmax.f32 %v3389_v14, 0.0 }
 0x2a0   :  { %v3201_v36 = vpop.f32.mrf.mxu0 }
 0x2a1   :  { %v3394_v24 = vpop.f32.mrf.mxu1  ;;  %v3393_v38 = vadd.f32 %v3392_v56, %v3200_v62  ;;  %v3202_v52 = vadd.f32 %v3201_v36, %v14846_v10  ;;  %4350 = vmatprep.mubr.bf16.mxu1 %v3656_v39  ;;  %v11926_v10 = vld [vmem:[%s17805_s6 + $0x80] ss:$16 sps:$4 sm:$0xff]   ;;  %v3544_v16 = vmax.f32 %v3391_v28, 0.0  ;;  %v17981_v62 = vld [vmem:[#allocation9_spill] sm:$0xff] }
 0x2a2   :  { %v3205_v34 = vpop.f32.mrf.mxu0  ;;  %4258 = vmatmul.mubr.bf16.gmra.mxu0 %v14634_v6  ;;  %4351 = vmatmul.mubr.bf16.gmra.mxu1 %v3655_v46  ;;  %v17979_v46 = vld [vmem:[#allocation5_spill] sm:$0xff]  ;;  %v17980_v56 = vld [vmem:[#allocation14_spill] sm:$0xff] }
 0x2a3   :  { %v3398_v40 = vpop.f32.mrf.mxu1  ;;  %v3547_v11 = vmax.f32 %v3393_v38, 0.0  ;;  %v3395_v58 = vadd.f32 %v3394_v24, %v3202_v52  ;;  %v3206_v60 = vadd.f32 %v3205_v34, %v14853_v2  ;;  %4267 = vmatprep.mubr.bf16.mxu0 %v14681_v4  ;;  %v11929_v4 = vld [vmem:[%s17805_s6 + $0x88] ss:$16 sps:$4 sm:$0xff]   ;;  %v11931_v2 = vld [vmem:[%s17805_s6 + $0x8c] ss:$16 sps:$4 sm:$0xff]   ;;  %4920 = vmatpush1.bf16.msra.mxu0 %v11926_v10 }
 0x2a4   :  { %v3207_v42 = vpop.f32.mrf.mxu0  ;;  %5112 = vmatprep.subr.bf16.mxu1 %v11931_v2  ;;  %v17982_v52 = vld [vmem:[#allocation15_spill] sm:$0xff]  ;;  %v17985_v2 = vld [vmem:[#allocation8_spill] sm:$0xff] }
 0x2a5   :  { %v3400_v29 = vpop.f32.mrf.mxu1  ;;  %v3659_v6 = vpack.c.bf16 %v3547_v11, %v3543_v31  ;;  %v3548_v61 = vmax.f32 %v3395_v58, 0.0  ;;  %v3208_v13 = vadd.f32 %v3207_v42, %v14856_v50  ;;  %v3399_v23 = vadd.f32 %v3398_v40, %v3206_v60  ;;  %5113 = vmatpush1.bf16.msra.mxu1 %v11929_v4  ;;  %v17983_v40 = vld [vmem:[#allocation16_spill] sm:$0xff]  ;;  %v17984_v58 = vld [vmem:[#allocation17_spill] sm:$0xff] }
 0x2a6   :  { %v3209_v44 = vpop.f32.mrf.mxu0  ;;  %v3029_v31 = vadd.f32 %v17983_v40, %v2836_v51  ;;  %v17991_v40 = vld [vmem:[#allocation10_spill] sm:$0xff] }
 0x2a7   :  { %v3402_v22 = vpop.f32.mrf.mxu1  ;;  %v3210_v48 = vadd.f32 %v3209_v44, %v17978_v47  ;;  %v3660_v0 = vpack.c.bf16 %v3548_v61, %v3544_v16  ;;  %v3401_v21 = vadd.f32 %v3400_v29, %v3208_v13  ;;  %v3551_v18 = vmax.f32 %v3399_v23, 0.0  ;;  %v17987_v47 = vld [vmem:[#allocation11_spill] sm:$0xff] }
 0x2a8   :  { %v3211_v50 = vpop.f32.mrf.mxu0  ;;  %v2846_v61 = vadd.f32 %v14907_v57, %v14731_v27  ;;  %v11934_v57 = vld [vmem:[%s17805_s6 + $0x64] ss:$16 sps:$4 sm:$0xff]  }
 0x2a9   :  { %v3404_v30 = vpop.f32.mrf.mxu1  ;;  %v3403_v8 = vadd.f32 %v3402_v22, %v3210_v48  ;;  %v3212_v41 = vadd.f32 %v3211_v50, %v3019_v63  ;;  %4360 = vmatprep.mubr.bf16.mxu1 %v3660_v0  ;;  %v3552_v24 = vmax.f32 %v3401_v21, 0.0  ;;  %v17986_v63 = vld [vmem:[#allocation18_spill] sm:$0xff]  ;;  %4921 = vmatprep.subr.bf16.mxu0 %v11934_v57 }
 0x2aa   :  { %v3215_v33 = vpop.f32.mrf.mxu0  ;;  %4268 = vmatmul.mubr.bf16.gmra.mxu0 %v17979_v46  ;;  %4361 = vmatmul.mubr.bf16.gmra.mxu1 %v3659_v6  ;;  %v11932_v48 = vld [vmem:[%s17805_s6 + $0x60] ss:$16 sps:$4 sm:$0xff]  }
 0x2ab   :  { %v3408_v53 = vpop.f32.mrf.mxu1  ;;  %v3555_v1 = vmax.f32 %v3403_v8, 0.0  ;;  %v3405_v9 = vadd.f32 %v3404_v30, %v3212_v41  ;;  %v3216_v14 = vadd.f32 %v3215_v33, %v17980_v56  ;;  %4277 = vmatprep.mubr.bf16.mxu0 %v17981_v62  ;;  %v17988_v41 = vld [vmem:[#allocation19_spill] sm:$0xff]  ;;  %4922 = vmatpush1.bf16.msra.mxu0 %v11932_v48 }
 0x2ac   :  { %v3217_v39 = vpop.f32.mrf.mxu0  ;;  %v11935_v33 = vld [vmem:[%s17805_s6 + $0x68] ss:$16 sps:$4 sm:$0xff]  }
 0x2ad   :  { %v3410_v36 = vpop.f32.mrf.mxu1  ;;  %v3663_v28 = vpack.c.bf16 %v3555_v1, %v3551_v18  ;;  %v3556_v38 = vmax.f32 %v3405_v9, 0.0  ;;  %v3218_v45 = vadd.f32 %v3217_v39, %v17982_v52  ;;  %v3409_v11 = vadd.f32 %v3408_v53, %v3216_v14  ;;  %v11937_v53 = vld [vmem:[%s17805_s6 + $0x6c] ss:$16 sps:$4 sm:$0xff]   ;;  %v17989_v1 = vld [vmem:[#allocation20_spill] sm:$0xff] }
 0x2ae   :  { %v3219_v55 = vpop.f32.mrf.mxu0  ;;  %v3039_v9 = vadd.f32 %v17989_v1, %v2846_v61  ;;  %v17990_v14 = vld [vmem:[#allocation21_spill] sm:$0xff]  ;;  %5114 = vmatprep.subr.bf16.mxu1 %v11937_v53 }
 0x2af   :  { %v3412_v34 = vpop.f32.mrf.mxu1  ;;  %v3220_v60 = vadd.f32 %v3219_v55, %v17984_v58  ;;  %v3664_v10 = vpack.c.bf16 %v3556_v38, %v3552_v24  ;;  %v3411_v29 = vadd.f32 %v3410_v36, %v3218_v45  ;;  %v3559_v44 = vmax.f32 %v3409_v11, 0.0  ;;  %5115 = vmatpush1.bf16.msra.mxu1 %v11935_v33 }
 0x2b0   :  { %v3221_v5 = vpop.f32.mrf.mxu0  ;;  %v2856_v45 = vadd.f32 %v14928_v35, %v14731_v27 }
 0x2b1   :  { %v3414_v42 = vpop.f32.mrf.mxu1  ;;  %v3413_v16 = vadd.f32 %v3412_v34, %v3220_v60  ;;  %v3222_v6 = vadd.f32 %v3221_v5, %v3029_v31  ;;  %4370 = vmatprep.mubr.bf16.mxu1 %v3664_v10  ;;  %v3560_v30 = vmax.f32 %v3411_v29, 0.0  ;;  %v17992_v60 = vld [vmem:[#allocation22_spill] sm:$0xff]  ;;  %v17993_v5 = vmov 0  }
 0x2b2   :  { %v3225_v13 = vpop.f32.mrf.mxu0  ;;  %4278 = vmatmul.mubr.bf16.gmra.mxu0 %v17985_v2  ;;  %4371 = vmatmul.mubr.bf16.gmra.mxu1 %v3663_v28 }
 0x2b3   :  { %v3418_v4 = vpop.f32.mrf.mxu1  ;;  %v3563_v22 = vmax.f32 %v3413_v16, 0.0  ;;  %v3415_v37 = vadd.f32 %v3414_v42, %v3222_v6  ;;  %v3226_v23 = vadd.f32 %v3225_v13, %v17986_v63  ;;  %4287 = vmatprep.mubr.bf16.mxu0 %v17987_v47  ;;  %v17994_v13 = vld [vmem:[#allocation23_spill] sm:$0xff] }
 0x2b4   :  { %v3227_v0 = vpop.f32.mrf.mxu0 }
 0x2b5   :  { %v3420_v50 = vpop.f32.mrf.mxu1  ;;  %v3667_v21 = vpack.c.bf16 %v3563_v22, %v3559_v44  ;;  %v3564_v8 = vmax.f32 %v3415_v37, 0.0  ;;  %v3228_v51 = vadd.f32 %v3227_v0, %v17988_v41  ;;  %v3419_v56 = vadd.f32 %v3418_v4, %v3226_v23  ;;  %v17995_v37 = vld [vmem:[#allocation24_spill] sm:$0xff] }
 0x2b6   :  { %v3229_v46 = vpop.f32.mrf.mxu0  ;;  %v3049_v44 = vadd.f32 %v14930_v32, %v2856_v45  ;;  %v17996_v32 = vld [vmem:[#allocation25_spill] sm:$0xff] }
 0x2b7   :  { %v3422_v18 = vpop.f32.mrf.mxu1  ;;  %v3230_v62 = vadd.f32 %v3229_v46, %v17990_v14  ;;  %v3668_v39 = vpack.c.bf16 %v3564_v8, %v3560_v30  ;;  %v3421_v28 = vadd.f32 %v3420_v50, %v3228_v51  ;;  %v3567_v31 = vmax.f32 %v3419_v56, 0.0  ;;  %v11938_v46 = vld [vmem:[%s17805_s6 + $0x40] ss:$16 sps:$4 sm:$0xff]  }
 0x2b8   :  { %v3231_v36 = vpop.f32.mrf.mxu0  ;;  %v2866_v30 = vadd.f32 %v14943_v25, %v14731_v27 }
 0x2b9   :  { %v3424_v24 = vpop.f32.mrf.mxu1  ;;  %v3423_v38 = vadd.f32 %v3422_v18, %v3230_v62  ;;  %v3232_v52 = vadd.f32 %v3231_v36, %v3039_v9  ;;  %4380 = vmatprep.mubr.bf16.mxu1 %v3668_v39  ;;  %v3568_v16 = vmax.f32 %v3421_v28, 0.0  ;;  %v11940_v18 = vld [vmem:[%s17805_s6 + $0x44] ss:$16 sps:$4 sm:$0xff]   ;;  %v11941_v36 = vld [vmem:[%s17805_s6 + $0x48] ss:$16 sps:$4 sm:$0xff]  }
 0x2ba   :  { %v3235_v55 = vpop.f32.mrf.mxu0  ;;  %4288 = vmatmul.mubr.bf16.gmra.mxu0 %v17991_v40  ;;  %4381 = vmatmul.mubr.bf16.gmra.mxu1 %v3667_v21  ;;  %v17997_v62 = vld [vmem:[#allocation26_spill] sm:$0xff] }
 0x2bb   :  { %v3428_v34 = vpop.f32.mrf.mxu1  ;;  %v3571_v11 = vmax.f32 %v3423_v38, 0.0  ;;  %v3425_v58 = vadd.f32 %v3424_v24, %v3232_v52  ;;  %v3236_v10 = vadd.f32 %v3235_v55, %v17992_v60  ;;  %4945 = vmatprep.mubr.bf16.mxu0 %v17993_v5  ;;  %4923 = vmatprep.subr.bf16.mxu0 %v11940_v18  ;;  %v11943_v24 = vld [vmem:[%s17805_s6 + $0x4c] ss:$16 sps:$4 sm:$0xff]   ;;  %v3059_v52 = vadd.f32 %v14945_v17, %v2866_v30 }
 0x2bc   :  { %v3237_v42 = vpop.f32.mrf.mxu0  ;;  %4924 = vmatpush1.bf16.msra.mxu0 %v11938_v46  ;;  %v17998_v55 = vld [vmem:[#allocation27_spill] sm:$0xff]  ;;  %5116 = vmatprep.subr.bf16.mxu1 %v11943_v24  ;;  %v18003_v24 = vld [vmem:[#allocation32_spill] sm:$0xff] }
 0x2bd   :  { %v3430_v29 = vpop.f32.mrf.mxu1  ;;  %v3671_v6 = vpack.c.bf16 %v3571_v11, %v3567_v31  ;;  %v3572_v61 = vmax.f32 %v3425_v58, 0.0  ;;  %v3238_v4 = vadd.f32 %v3237_v42, %v17994_v13  ;;  %v3429_v22 = vadd.f32 %v3428_v34, %v3236_v10  ;;  %5117 = vmatpush1.bf16.msra.mxu1 %v11941_v36  ;;  %v17999_v13 = vld [vmem:[#allocation28_spill] sm:$0xff] }
 0x2be   :  { %v3239_v35 = vpop.f32.mrf.mxu0  ;;  %v2876_v42 = vadd.f32 %v14958_v59, %v14731_v27 }
 0x2bf   :  { %v3432_v2 = vpop.f32.mrf.mxu1  ;;  %v3240_v63 = vadd.f32 %v3239_v35, %v17995_v37  ;;  %v3672_v23 = vpack.c.bf16 %v3572_v61, %v3568_v16  ;;  %v3431_v57 = vadd.f32 %v3430_v29, %v3238_v4  ;;  %v3575_v41 = vmax.f32 %v3429_v22, 0.0 }
 0x2c0   :  { %v3241_v47 = vpop.f32.mrf.mxu0 }
 0x2c1   :  { %v3434_v48 = vpop.f32.mrf.mxu1  ;;  %v3433_v0 = vadd.f32 %v3432_v2, %v3240_v63  ;;  %v3242_v50 = vadd.f32 %v3241_v47, %v3049_v44  ;;  %4390 = vmatprep.mubr.bf16.mxu1 %v3672_v23  ;;  %v3576_v56 = vmax.f32 %v3431_v57, 0.0  ;;  %v18000_v63 = vld [vmem:[#allocation29_spill] sm:$0xff]  ;;  %v3069_v57 = vadd.f32 %v14960_v43, %v2876_v42  ;;  %v18002_v43 = vld [vmem:[#allocation31_spill] sm:$0xff] }
 0x2c2   :  { %v3245_v21 = vpop.f32.mrf.mxu0  ;;  %4391 = vmatmul.mubr.bf16.gmra.mxu1 %v3671_v6 }
 0x2c3   :  { %v3438_v8 = vpop.f32.mrf.mxu1  ;;  %v3579_v51 = vmax.f32 %v3433_v0, 0.0  ;;  %v3435_v33 = vadd.f32 %v3434_v48, %v3242_v50  ;;  %v3246_v53 = vadd.f32 %v3245_v21, %v17996_v32  ;;  %v18001_v0 = vld [vmem:[#allocation30_spill] sm:$0xff]  ;;  %v2886_v32 = vadd.f32 %v14973_v7, %v14731_v27 }
 0x2c4   :  { %v3247_v1 = vpop.f32.mrf.mxu0  ;;  %v11946_v7 = vld [vmem:[%s17805_s6 + $0x24] ss:$16 sps:$4 sm:$0xff]  }
 0x2c5   :  { %v3440_v9 = vpop.f32.mrf.mxu1  ;;  %v3675_v25 = vpack.c.bf16 %v3579_v51, %v3575_v41  ;;  %v3580_v14 = vmax.f32 %v3435_v33, 0.0  ;;  %v3248_v39 = vadd.f32 %v3247_v1, %v17997_v62  ;;  %v3439_v45 = vadd.f32 %v3438_v8, %v3246_v53  ;;  %4925 = vmatprep.subr.bf16.mxu0 %v11946_v7 }
 0x2c6   :  { %v3249_v28 = vpop.f32.mrf.mxu0 }
 0x2c7   :  { %v3442_v38 = vpop.f32.mrf.mxu1  ;;  %v3250_v34 = vadd.f32 %v3249_v28, %v17998_v55  ;;  %v3676_v40 = vpack.c.bf16 %v3580_v14, %v3576_v56  ;;  %v3441_v58 = vadd.f32 %v3440_v9, %v3248_v39  ;;  %v3583_v6 = vmax.f32 %v3439_v45, 0.0 }
 0x2c8   :  { %v3251_v31 = vpop.f32.mrf.mxu0  ;;  %v3079_v55 = vadd.f32 %v14975_v15, %v2886_v32  ;;  %v2906_v32 = vadd.f32 %v15003_v54, %v14731_v27 }
 0x2c9   :  { %v3444_v11 = vpop.f32.mrf.mxu1  ;;  %v3443_v60 = vadd.f32 %v3442_v38, %v3250_v34  ;;  %v3252_v10 = vadd.f32 %v3251_v31, %v3059_v52  ;;  %4400 = vmatprep.mubr.bf16.mxu1 %v3676_v40  ;;  %v3584_v44 = vmax.f32 %v3441_v58, 0.0  ;;  %v11944_v38 = vld [vmem:[%s17805_s6 + $0x20] ss:$16 sps:$4 sm:$0xff]   ;;  %v18004_v40 = vld [vmem:[#allocation33_spill] sm:$0xff] }
 0x2ca   :  { %v3255_v29 = vpop.f32.mrf.mxu0  ;;  %4401 = vmatmul.mubr.bf16.gmra.mxu1 %v3675_v25  ;;  %4926 = vmatpush1.bf16.msra.mxu0 %v11944_v38  ;;  %v3099_v7 = vadd.f32 %v15005_v49, %v2906_v32  ;;  %v2916_v49 = vadd.f32 %v15018_v12, %v14731_v27  ;;  %v11950_v12 = vld [vmem:[%s17805_s6] ss:$16 sps:$4 sm:$0xff]   ;;  %v18014_v32 = vld [vmem:[#allocation45_spill] sm:$0xff] }
 0x2cb   :  { %v3448_v16 = vpop.f32.mrf.mxu1  ;;  %v3587_v17 = vmax.f32 %v3443_v60, 0.0  ;;  %v3445_v61 = vadd.f32 %v3444_v11, %v3252_v10  ;;  %v3256_v4 = vadd.f32 %v3255_v29, %v17999_v13 }
 0x2cc   :  { %v3257_v35 = vpop.f32.mrf.mxu0 }
 0x2cd   :  { %v3450_v2 = vpop.f32.mrf.mxu1  ;;  %v3679_v22 = vpack.c.bf16 %v3587_v17, %v3583_v6  ;;  %v3588_v37 = vmax.f32 %v3445_v61, 0.0  ;;  %v3258_v23 = vadd.f32 %v3257_v35, %v18000_v63  ;;  %v3449_v59 = vadd.f32 %v3448_v16, %v3256_v4  ;;  %v18005_v4 = vld [vmem:[#allocation34_spill] sm:$0xff] }
 0x2ce   :  { %v3259_v47 = vpop.f32.mrf.mxu0  ;;  %v2896_v16 = vadd.f32 %v14988_v19, %v14731_v27 }
 0x2cf   :  { %v3452_v48 = vpop.f32.mrf.mxu1  ;;  %v3260_v50 = vadd.f32 %v3259_v47, %v18001_v0  ;;  %v3680_v30 = vpack.c.bf16 %v3588_v37, %v3584_v44  ;;  %v3451_v41 = vadd.f32 %v3450_v2, %v3258_v23  ;;  %v3591_v18 = vmax.f32 %v3449_v59, 0.0  ;;  %v18006_v23 = vld [vmem:[#allocation35_spill] sm:$0xff]  ;;  %v18007_v0 = vld [vmem:[#allocation36_spill] sm:$0xff] }
 0x2d0   :  { %v3261_v21 = vpop.f32.mrf.mxu0  ;;  %v3089_v59 = vadd.f32 %v14990_v26, %v2896_v16  ;;  %v18008_v26 = vld [vmem:[#allocation37_spill] sm:$0xff] }
 0x2d1   :  { %v3454_v8 = vpop.f32.mrf.mxu1  ;;  %v3453_v51 = vadd.f32 %v3452_v48, %v3260_v50  ;;  %v3262_v33 = vadd.f32 %v3261_v21, %v3069_v57  ;;  %4410 = vmatprep.mubr.bf16.mxu1 %v3680_v30  ;;  %v3592_v62 = vmax.f32 %v3451_v41, 0.0 }
 0x2d2   :  { %v3265_v53 = vpop.f32.mrf.mxu0  ;;  %4411 = vmatmul.mubr.bf16.gmra.mxu1 %v3679_v22 }
 0x2d3   :  { %v3458_v46 = vpop.f32.mrf.mxu1  ;;  %v3595_v1 = vmax.f32 %v3453_v51, 0.0  ;;  %v3455_v9 = vadd.f32 %v3454_v8, %v3262_v33  ;;  %v3266_v56 = vadd.f32 %v3265_v53, %v18002_v43 }
 0x2d4   :  { %v3267_v25 = vpop.f32.mrf.mxu0 }
 0x2d5   :  { %v3460_v14 = vpop.f32.mrf.mxu1  ;;  %v3683_v39 = vpack.c.bf16 %v3595_v1, %v3591_v18  ;;  %v3596_v36 = vmax.f32 %v3455_v9, 0.0  ;;  %v3268_v28 = vadd.f32 %v3267_v25, %v18003_v24  ;;  %v3459_v34 = vadd.f32 %v3458_v46, %v3266_v56 }
 0x2d6   :  { %v3269_v52 = vpop.f32.mrf.mxu0 }
 0x2d7   :  { %v3462_v45 = vpop.f32.mrf.mxu1  ;;  %v3270_v31 = vadd.f32 %v3269_v52, %v18004_v40  ;;  %v3684_v11 = vpack.c.bf16 %v3596_v36, %v3592_v62  ;;  %v3461_v10 = vadd.f32 %v3460_v14, %v3268_v28  ;;  %v3599_v61 = vmax.f32 %v3459_v34, 0.0  ;;  %v18009_v36 = vld [vmem:[#allocation38_spill] sm:$0xff]  ;;  %v18010_v52 = vld [vmem:[#allocation39_spill] sm:$0xff] }
 0x2d8   :  { %v3271_v58 = vpop.f32.mrf.mxu0 }
 0x2d9   :  { %v3464_v60 = vpop.f32.mrf.mxu1  ;;  %v3463_v42 = vadd.f32 %v3462_v45, %v3270_v31  ;;  %v3272_v29 = vadd.f32 %v3271_v58, %v3079_v55  ;;  %4420 = vmatprep.mubr.bf16.mxu1 %v3684_v11  ;;  %v3600_v22 = vmax.f32 %v3461_v10, 0.0  ;;  %v11949_v10 = vld [vmem:[%s17805_s6 + $0x2c] ss:$16 sps:$4 sm:$0xff]  }
 0x2da   :  { %v3275_v6 = vpop.f32.mrf.mxu0  ;;  %4421 = vmatmul.mubr.bf16.gmra.mxu1 %v3683_v39  ;;  %5118 = vmatprep.subr.bf16.mxu1 %v11949_v10  ;;  %v2936_v10 = vadd.f32 %v15057_v20, %v14731_v27  ;;  %v18022_v20 = vld [vmem:[#allocation51_spill] sm:$0xff] }
 0x2db   :  { %v3468_v17 = vpop.f32.mrf.mxu1  ;;  %v3603_v15 = vmax.f32 %v3463_v42, 0.0  ;;  %v3465_v13 = vadd.f32 %v3464_v60, %v3272_v29  ;;  %v3276_v35 = vadd.f32 %v3275_v6, %v18005_v4  ;;  %v11947_v60 = vld [vmem:[%s17805_s6 + $0x28] ss:$16 sps:$4 sm:$0xff]  }
 0x2dc   :  { %v3277_v2 = vpop.f32.mrf.mxu0  ;;  %5119 = vmatpush1.bf16.msra.mxu1 %v11947_v60 }
 0x2dd   :  { %v3470_v44 = vpop.f32.mrf.mxu1  ;;  %v3687_v37 = vpack.c.bf16 %v3603_v15, %v3599_v61  ;;  %v3604_v63 = vmax.f32 %v3465_v13, 0.0  ;;  %v3278_v47 = vadd.f32 %v3277_v2, %v18006_v23  ;;  %v3469_v19 = vadd.f32 %v3468_v17, %v3276_v35  ;;  %v18011_v61 = vld [vmem:[#allocation40_spill] sm:$0xff] }
 0x2de   :  { %v3279_v48 = vpop.f32.mrf.mxu0 }
 0x2df   :  { %v3472_v57 = vpop.f32.mrf.mxu1  ;;  %v3280_v50 = vadd.f32 %v3279_v48, %v18007_v0  ;;  %v3688_v30 = vpack.c.bf16 %v3604_v63, %v3600_v22  ;;  %v3471_v41 = vadd.f32 %v3470_v44, %v3278_v47  ;;  %v3607_v18 = vmax.f32 %v3469_v19, 0.0  ;;  %v18012_v22 = vld [vmem:[#allocation41_spill] sm:$0xff]  ;;  %v11952_v63 = vld [vmem:[%s17805_s6 + $0x4] ss:$16 sps:$4 sm:$0xff]  }
 0x2e0   :  { %v3281_v21 = vpop.f32.mrf.mxu0  ;;  %v11953_v48 = vld [vmem:[%s17805_s6 + $0x8] ss:$16 sps:$4 sm:$0xff]   ;;  %v18013_v0 = vld [vmem:[#allocation42_spill] sm:$0xff]  ;;  %4927 = vmatprep.subr.bf16.mxu0 %v11952_v63 }
 0x2e1   :  { %v3474_v8 = vpop.f32.mrf.mxu1  ;;  %v3473_v51 = vadd.f32 %v3472_v57, %v3280_v50  ;;  %v3282_v33 = vadd.f32 %v3281_v21, %v3089_v59  ;;  %4430 = vmatprep.mubr.bf16.mxu1 %v3688_v30  ;;  %v3608_v14 = vmax.f32 %v3471_v41, 0.0  ;;  %v11955_v57 = vld [vmem:[%s17805_s6 + $0xc] ss:$16 sps:$4 sm:$0xff]   ;;  %v3109_v59 = vadd.f32 %v15020_v3, %v2916_v49  ;;  %4928 = vmatpush1.bf16.msra.mxu0 %v11950_v12  ;;  %v18021_v63 = vld [vmem:[#allocation50_spill] sm:$0xff] }
 0x2e2   :  { %v3285_v53 = vpop.f32.mrf.mxu0  ;;  %4431 = vmatmul.mubr.bf16.gmra.mxu1 %v3687_v37  ;;  %5120 = vmatprep.subr.bf16.mxu1 %v11955_v57 }
 0x2e3   :  { %v3478_v46 = vpop.f32.mrf.mxu1  ;;  %v3611_v1 = vmax.f32 %v3473_v51, 0.0  ;;  %v3475_v9 = vadd.f32 %v3474_v8, %v3282_v33  ;;  %v3286_v43 = vadd.f32 %v3285_v53, %v18008_v26  ;;  %5121 = vmatpush1.bf16.msra.mxu1 %v11953_v48  ;;  %v2926_v53 = vadd.f32 %v18014_v32, %v14731_v27  ;;  %v18015_v26 = vld [vmem:[#allocation43_spill] sm:$0xff] }
 0x2e4   :  { %v3287_v56 = vpop.f32.mrf.mxu0 }
 0x2e5   :  { %v3480_v25 = vpop.f32.mrf.mxu1  ;;  %v3691_v62 = vpack.c.bf16 %v3611_v1, %v3607_v18  ;;  %v3612_v39 = vmax.f32 %v3475_v9, 0.0  ;;  %v3288_v24 = vadd.f32 %v3287_v56, %v18009_v36  ;;  %v3479_v54 = vadd.f32 %v3478_v46, %v3286_v43  ;;  %v18016_v36 = vld [vmem:[#allocation44_spill] sm:$0xff] }
 0x2e6   :  { %v3289_v28 = vpop.f32.mrf.mxu0 }
 0x2e7   :  { %v3482_v38 = vpop.f32.mrf.mxu1  ;;  %v3290_v45 = vadd.f32 %v3289_v28, %v18010_v52  ;;  %v3692_v55 = vpack.c.bf16 %v3612_v39, %v3608_v14  ;;  %v3481_v31 = vadd.f32 %v3480_v25, %v3288_v24  ;;  %v3615_v16 = vmax.f32 %v3479_v54, 0.0 }
 0x2e8   :  { %v3291_v34 = vpop.f32.mrf.mxu0 }
 0x2e9   :  { %v3484_v40 = vpop.f32.mrf.mxu1  ;;  %v3483_v11 = vadd.f32 %v3482_v38, %v3290_v45  ;;  %v3292_v58 = vadd.f32 %v3291_v34, %v3099_v7  ;;  %4440 = vmatprep.mubr.bf16.mxu1 %v3692_v55  ;;  %v3616_v35 = vmax.f32 %v3481_v31, 0.0  ;;  %v18017_v7 = vld [vmem:[#allocation46_spill] sm:$0xff]  ;;  %v18018_v45 = vld [vmem:[#allocation47_spill] sm:$0xff] }
 0x2ea   :  { %v3295_v42 = vpop.f32.mrf.mxu0  ;;  %4441 = vmatmul.mubr.bf16.gmra.mxu1 %v3691_v62  ;;  %v3119_v54 = vadd.f32 %v18017_v7, %v2926_v53 }
 0x2eb   :  { %v3488_v29 = vpop.f32.mrf.mxu1  ;;  %v3619_v6 = vmax.f32 %v3483_v11, 0.0  ;;  %v3485_v17 = vadd.f32 %v3484_v40, %v3292_v58  ;;  %v3296_v15 = vadd.f32 %v3295_v42, %v18011_v61 }
 0x2ec   :  { %v3297_v13 = vpop.f32.mrf.mxu0 }
 0x2ed   :  { %v3490_v4 = vpop.f32.mrf.mxu1  ;;  %v3695_v2 = vpack.c.bf16 %v3619_v6, %v3615_v16  ;;  %v3620_v44 = vmax.f32 %v3485_v17, 0.0  ;;  %v3298_v37 = vadd.f32 %v3297_v13, %v18012_v22  ;;  %v3489_v19 = vadd.f32 %v3488_v29, %v3296_v15  ;;  %v18019_v17 = vld [vmem:[#allocation48_spill] sm:$0xff] }
 0x2ee   :  { %v3299_v23 = vpop.f32.mrf.mxu0 }
 0x2ef   :  { %v3492_v47 = vpop.f32.mrf.mxu1  ;;  %v3300_v50 = vadd.f32 %v3299_v23, %v18013_v0  ;;  %v3696_v30 = vpack.c.bf16 %v3620_v44, %v3616_v35  ;;  %v3491_v41 = vadd.f32 %v3490_v4, %v3298_v37  ;;  %v3623_v3 = vmax.f32 %v3489_v19, 0.0  ;;  %v18020_v44 = vld [vmem:[#allocation49_spill] sm:$0xff] }
 0x2f0   :  { %v3301_v21 = vpop.f32.mrf.mxu0  ;;  %v3129_v23 = vadd.f32 %v18021_v63, %v2936_v10 }
 0x2f1   :  { %v3494_v8 = vpop.f32.mrf.mxu1  ;;  %v3493_v51 = vadd.f32 %v3492_v47, %v3300_v50  ;;  %v3302_v33 = vadd.f32 %v3301_v21, %v3109_v59  ;;  %4450 = vmatprep.mubr.bf16.mxu1 %v3696_v30  ;;  %v3624_v14 = vmax.f32 %v3491_v41, 0.0 }
 0x2f2   :  { %v3305_v46 = vpop.f32.mrf.mxu0  ;;  %4451 = vmatmul.mubr.bf16.gmra.mxu1 %v3695_v2 }
 0x2f3   :  { %v3498_v18 = vpop.f32.mrf.mxu1  ;;  %v3627_v1 = vmax.f32 %v3493_v51, 0.0  ;;  %v3495_v9 = vadd.f32 %v3494_v8, %v3302_v33  ;;  %v3306_v43 = vadd.f32 %v3305_v46, %v18015_v26 }
 0x2f4   :  { %v3307_v56 = vpop.f32.mrf.mxu0 }
 0x2f5   :  { %v3500_v25 = vpop.f32.mrf.mxu1  ;;  %v3699_v62 = vpack.c.bf16 %v3627_v1, %v3623_v3  ;;  %v3628_v39 = vmax.f32 %v3495_v9, 0.0  ;;  %v3308_v24 = vadd.f32 %v3307_v56, %v18016_v36  ;;  %v3499_v52 = vadd.f32 %v3498_v18, %v3306_v43 }
 0x2f6   :  { %v3309_v28 = vpop.f32.mrf.mxu0 }
 0x2f7   :  { %v3502_v38 = vpop.f32.mrf.mxu1  ;;  %v3310_v55 = vadd.f32 %v3309_v28, %v18018_v45  ;;  %v3700_v34 = vpack.c.bf16 %v3628_v39, %v3624_v14  ;;  %v3501_v11 = vadd.f32 %v3500_v25, %v3308_v24  ;;  %v3631_v29 = vmax.f32 %v3499_v52, 0.0 }
 0x2f8   :  { %v3311_v40 = vpop.f32.mrf.mxu0 }
 0x2f9   :  { %v3504_v31 = vpop.f32.mrf.mxu1  ;;  %v3503_v58 = vadd.f32 %v3502_v38, %v3310_v55  ;;  %v3312_v60 = vadd.f32 %v3311_v40, %v3119_v54  ;;  %4460 = vmatprep.mubr.bf16.mxu1 %v3700_v34  ;;  %v3632_v4 = vmax.f32 %v3501_v11, 0.0 }
 0x2fa   :  { %v3315_v49 = vpop.f32.mrf.mxu0  ;;  %4461 = vmatmul.mubr.bf16.gmra.mxu1 %v3699_v62 }
 0x2fb   :  { %v3508_v42 = vpop.f32.mrf.mxu1  ;;  %v3635_v16 = vmax.f32 %v3503_v58, 0.0  ;;  %v3505_v6 = vadd.f32 %v3504_v31, %v3312_v60  ;;  %v3316_v61 = vadd.f32 %v3315_v49, %v18019_v17 }
 0x2fc   :  { %v3317_v15 = vpop.f32.mrf.mxu0 }
 0x2fd   :  { %v3510_v13 = vpop.f32.mrf.mxu1  ;;  %v3703_v35 = vpack.c.bf16 %v3635_v16, %v3631_v29  ;;  %v3636_v2 = vmax.f32 %v3505_v6, 0.0  ;;  %v3318_v22 = vadd.f32 %v3317_v15, %v18020_v44  ;;  %v3509_v27 = vadd.f32 %v3508_v42, %v3316_v61  ;;  %v11958_v29 = vld [vmem:[%s17807_s8 + $0x18c] ss:$28 sps:$4 sm:$0xff]   ;;  %v3773_v16 = vld [vmem:[%s17806_s5] sm:$0x3] }
 0x2fe   :  { %v3319_v37 = vpop.f32.mrf.mxu0  ;;  %v11961_v6 = vld [vmem:[%s17807_s8 + $0x50c] ss:$28 sps:$4 sm:$0xff]   ;;  %6936 = vmatprep.subr.bf16.mxu0 %v11958_v29 }
 0x2ff   :  { %v3512_v12 = vpop.f32.mrf.mxu1  ;;  %v3320_v47 = vadd.f32 %v3319_v37, %v18022_v20  ;;  %v3704_v48 = vpack.c.bf16 %v3636_v2, %v3632_v4  ;;  %v3511_v59 = vadd.f32 %v3510_v13, %v3318_v22  ;;  %v3639_v21 = vmax.f32 %v3509_v27, 0.0  ;;  %7129 = vmatprep.subr.bf16.mxu1 %v11961_v6  ;;  %v18023_v61 = vld [vmem:[#allocation3_spill] sm:$0xff]  ;;  %v18024_v13 = vld [vmem:[#allocation4_spill] sm:$0xff] }
 0x300   :  { %v3321_v57 = vpop.f32.mrf.mxu0  ;;  %v15317_v15 = vrot.slane %v3773_v16, %v18023_v61  ;;  %v15320_v4 = vrot.slane %v3773_v16, %v18024_v13 }
 0x301   :  { %v3513_v19 = vadd.f32 %v3512_v12, %v3320_v47  ;;  %v3322_v0 = vadd.f32 %v3321_v57, %v3129_v23  ;;  %4470 = vmatprep.mubr.bf16.mxu1 %v3704_v48  ;;  %v3514_v50 = vpop.f32.mrf.mxu1  ;;  %v3640_v33 = vmax.f32 %v3511_v59, 0.0 }
 0x302   :  { %v4139_v30 = vpop.f32.mrf.mxu0  ;;  %4471 = vmatmul.mubr.bf16.gmra.mxu1 %v3703_v35 }
 0x303   :  { %v3643_v8 = vmax.f32 %v3513_v19, 0.0  ;;  %v3515_v41 = vadd.f32 %v3514_v50, %v3322_v0  ;;  %v4140_v2 = vadd.f32 %v4139_v30, %v15317_v15 }
 0x304   :  { %v4141_v51 = vpop.f32.mrf.mxu0 }
 0x305   :  { %v3707_v32 = vpack.c.bf16 %v3643_v8, %v3639_v21  ;;  %v3644_v53 = vmax.f32 %v3515_v41, 0.0  ;;  %v4142_v22 = vadd.f32 %v4141_v51, %v15320_v4 }
 0x306   :  { %v4143_v46 = vpop.f32.mrf.mxu0 }
 0x307   :  { %v3708_v18 = vpack.c.bf16 %v3644_v53, %v3640_v33  ;;  %v4144_v23 = vadd.f32 %v4143_v46, %v15317_v15 }
 0x308   :  { %v4145_v3 = vpop.f32.mrf.mxu0 }
 0x309   :  { %4480 = vmatprep.mubr.bf16.mxu1 %v3708_v18  ;;  %v4146_v47 = vadd.f32 %v4145_v3, %v15320_v4 }
 0x30a   :  { %v4149_v1 = vpop.f32.mrf.mxu0  ;;  %4481 = vmatmul.mubr.bf16.gmra.mxu1 %v3707_v32 }
 0x30b   :  { %5138 = vmatprep.mubr.bf16.mxu1 %v17993_v5  ;;  %v4150_v0 = vadd.f32 %v4149_v1, %v15317_v15 }
 0x30c   :  { %v4151_v9 = vpop.f32.mrf.mxu0 }
 0x30d   :  { %v4152_v8 = vadd.f32 %v4151_v9, %v15320_v4 }
 0x30e   :  { %v15255_v26 = vpop.f32.mrf.mxu0 }
 0x30f   :  { %v4154_v53 = vadd.f32 %v15255_v26, %v15317_v15 }
 0x310   :  { %v15257_v43 = vpop.f32.mrf.mxu0 }
 0x311   :  { %v4156_v1 = vadd.f32 %v15257_v43, %v15320_v4 }
 0x312   :  { %v15259_v56 = vpop.f32.mrf.mxu0 }
 0x313   :  { %v4160_v6 = vadd.f32 %v15259_v56, %v15317_v15 }
 0x314   :  { %v15261_v25 = vpop.f32.mrf.mxu0 }
 0x316   :  { %v15263_v14 = vpop.f32.mrf.mxu0 }
 0x318   :  { %v15265_v62 = vpop.f32.mrf.mxu0 }
 0x31a   :  { %v15267_v39 = vpop.f32.mrf.mxu0 }
 0x31c   :  { %v15269_v36 = vpop.f32.mrf.mxu0 }
 0x31e   :  { %v15271_v24 = vpop.f32.mrf.mxu0 }
 0x320   :  { %v15273_v28 = vpop.f32.mrf.mxu0 }
 0x322   :  { %v15275_v38 = vpop.f32.mrf.mxu0 }
 0x324   :  { %v15277_v7 = vpop.f32.mrf.mxu0 }
 0x326   :  { %v15279_v54 = vpop.f32.mrf.mxu0 }
 0x328   :  { %v15281_v52 = vpop.f32.mrf.mxu0 }
 0x32a   :  { %v15283_v45 = vpop.f32.mrf.mxu0 }
 0x32c   :  { %v15285_v55 = vpop.f32.mrf.mxu0 }
 0x32e   :  { %v15287_v34 = vpop.f32.mrf.mxu0 }
 0x330   :  { %v15289_v40 = vpop.f32.mrf.mxu0 }
 0x332   :  { %v15291_v31 = vpop.f32.mrf.mxu0 }
 0x334   :  { %v15293_v11 = vpop.f32.mrf.mxu0 }
 0x336   :  { %v15295_v58 = vpop.f32.mrf.mxu0 }
 0x338   :  { %v15297_v60 = vpop.f32.mrf.mxu0 }
 0x33a   :  { %v15299_v10 = vpop.f32.mrf.mxu0 }
 0x33c   :  { %v15301_v49 = vpop.f32.mrf.mxu0 }
 0x33e   :  { %v15303_v42 = vpop.f32.mrf.mxu0 }
 0x340   :  { %v15314_v17 = vpop.f32.mrf.mxu0 }
 0x342   :  { %v15322_v35 = vpop.f32.mrf.mxu0 }
 0x344   :  { %v15326_v37 = vpop.f32.mrf.mxu0 }
 0x346   :  { %v15336_v48 = vpop.f32.mrf.mxu0 }
 0x348   :  { %v15349_v41 = vpop.f32.mrf.mxu0 }
 0x34a   :  { %v15364_v9 = vpop.f32.mrf.mxu0 }
 0x352   :  { %v4332_v44 = vpop.f32.mrf.mxu1 }
 0x353   :  { %v15328_v12 = vadd.f32 %v4332_v44, %v4140_v2 }
 0x354   :  { %v4334_v63 = vpop.f32.mrf.mxu1 }
 0x355   :  { %10145 = vst [vmem:[%s17808_s11] sm:$0xff] %v15328_v12  ;;  %v4335_v27 = vadd.f32 %v4334_v63, %v4142_v22  ;;  %v4162_v22 = vadd.f32 %v15261_v25, %v15320_v4  ;;  %v15379_v63 = vpop.f32.mrf.mxu0 }
 0x356   :  { %v4336_v20 = vpop.f32.mrf.mxu1 }
 0x357   :  { %v4523_v57 = vmul.f32 0.5, %v4335_v27  ;;  %10146 = vst [vmem:[%s17808_s11 + $0x8] sm:$0xff] %v4335_v27  ;;  %v15341_v59 = vadd.f32 %v4336_v20, %v4144_v23  ;;  %v4164_v20 = vadd.f32 %v15263_v14, %v15317_v15 }
 0x358   :  { %v4338_v19 = vpop.f32.mrf.mxu1 }
 0x359   :  { %v4555_v50 = vmul.f32 1.442695, %v4523_v57  ;;  %10147 = vst [vmem:[%s17808_s11 + $0x10] sm:$0xff] %v15341_v59  ;;  %v4339_v30 = vadd.f32 %v4338_v19, %v4146_v47  ;;  %v4166_v19 = vadd.f32 %v15265_v62, %v15320_v4 }
 0x35a   :  { %v4342_v21 = vpop.f32.mrf.mxu1 }
 0x35b   :  { %v4524_v51 = vmul.f32 0.5, %v4339_v30  ;;  %10148 = vst [vmem:[%s17808_s11 + $0x18] sm:$0xff] %v4339_v30  ;;  %v15354_v33 = vadd.f32 %v4342_v21, %v4150_v0  ;;  %12276 = vpow2.f32 %v4555_v50  ;;  %v15394_v0 = vpop.f32.mrf.mxu0  ;;  %v4491_v50 = vld [vmem:[%s17809_s1] sm:$0xff]  ;;  %v4492_v21 = vld [vmem:[%s17809_s1 + $0x8] sm:$0xff] }
 0x35c   :  { %v4344_v32 = vpop.f32.mrf.mxu1 }
 0x35d   :  { %v4557_v46 = vmul.f32 1.442695, %v4524_v51  ;;  %10149 = vst [vmem:[%s17808_s11 + $0x20] sm:$0xff] %v15354_v33  ;;  %v4345_v18 = vadd.f32 %v4344_v32, %v4152_v8  ;;  %v4170_v51 = vadd.f32 %v15267_v39, %v15317_v15 }
 0x35e   :  { %v4346_v3 = vpop.f32.mrf.mxu1 }
 0x35f   :  { %12278 = vpow2.f32 %v4557_v46  ;;  %v4525_v29 = vmul.f32 0.5, %v4345_v18  ;;  %10150 = vst [vmem:[%s17808_s11 + $0x28] sm:$0xff] %v4345_v18  ;;  %v15369_v26 = vadd.f32 %v4346_v3, %v4154_v53  ;;  %v4172_v18 = vadd.f32 %v15269_v36, %v15320_v4  ;;  %v15415_v3 = vpop.f32.mrf.mxu0 }
 0x360   :  { %v4348_v16 = vpop.f32.mrf.mxu1 }
 0x361   :  { %v4559_v2 = vmul.f32 1.442695, %v4525_v29  ;;  %10151 = vst [vmem:[%s17808_s11 + $0x30] sm:$0xff] %v15369_v26  ;;  %v4349_v43 = vadd.f32 %v4348_v16, %v4156_v1 }
 0x362   :  { %v4352_v44 = vpop.f32.mrf.mxu1 }
 0x363   :  { %v4526_v23 = vmul.f32 0.5, %v4349_v43  ;;  %10152 = vst [vmem:[%s17808_s11 + $0x38] sm:$0xff] %v4349_v43  ;;  %v15384_v27 = vadd.f32 %v4352_v44, %v4160_v6  ;;  %12280 = vpow2.f32 %v4559_v2  ;;  %v4174_v2 = vadd.f32 %v15271_v24, %v15317_v15 }
 0x364   :  { %v4354_v56 = vpop.f32.mrf.mxu1 }
 0x365   :  { %v4561_v47 = vmul.f32 1.442695, %v4526_v23  ;;  %10153 = vst [vmem:[%s17808_s11 + $0x40] sm:$0xff] %v15384_v27  ;;  %v4355_v25 = vadd.f32 %v4354_v56, %v4162_v22  ;;  %v4176_v23 = vadd.f32 %v15273_v28, %v15320_v4  ;;  %v15430_v56 = vpop.f32.mrf.mxu0 }
 0x366   :  { %v4356_v57 = vpop.f32.mrf.mxu1 }
 0x367   :  { %12282 = vpow2.f32 %v4561_v47  ;;  %v4527_v30 = vmul.f32 0.5, %v4355_v25  ;;  %10154 = vst [vmem:[%s17808_s11 + $0x48] sm:$0xff] %v4355_v25  ;;  %v15402_v14 = vadd.f32 %v4356_v57, %v4164_v20 }
 0x368   :  { %v4358_v8 = vpop.f32.mrf.mxu1  ;;  %v12277_v62 = vpop.eup %12276 }
 0x369   :  { %v4563_v32 = vmul.f32 1.442695, %v4527_v30  ;;  %10155 = vst [vmem:[%s17808_s11 + $0x50] sm:$0xff] %v15402_v14  ;;  %v4359_v53 = vadd.f32 %v4358_v8, %v4166_v19  ;;  %v4619_v16 = vmul.f32 %v12277_v62, %v4491_v50  ;;  %v4180_v50 = vadd.f32 %v15275_v38, %v15317_v15  ;;  %v11956_v38 = vld [vmem:[%s17807_s8 + $0x188] ss:$28 sps:$4 sm:$0xff]  }
 0x36a   :  { %v4362_v46 = vpop.f32.mrf.mxu1 }
 0x36b   :  { %v4528_v1 = vmul.f32 0.5, %v4359_v53  ;;  %10156 = vst [vmem:[%s17808_s11 + $0x58] sm:$0xff] %v4359_v53  ;;  %v15420_v29 = vadd.f32 %v4362_v46, %v4170_v51  ;;  %12284 = vpow2.f32 %v4563_v32  ;;  %v4651_v25 = vadd.f32 %v4619_v16, %v15328_v12  ;;  %v4494_v12 = vld [vmem:[%s17809_s1 + $0x18] sm:$0xff]  ;;  %v15459_v32 = vpop.f32.mrf.mxu0 }
 0x36c   :  { %v12279_v39 = vpop.eup %12278  ;;  %v4364_v6 = vpop.f32.mrf.mxu1  ;;  %v4182_v51 = vadd.f32 %v15277_v7, %v15320_v4 }
 0x36d   :  { %v4620_v43 = vmul.f32 %v12279_v39, %v4492_v21  ;;  %v4565_v44 = vmul.f32 1.442695, %v4528_v1  ;;  %10157 = vst [vmem:[%s17808_s11 + $0x60] sm:$0xff] %v15420_v29  ;;  %v4365_v36 = vadd.f32 %v4364_v6, %v4172_v18  ;;  %v4493_v21 = vld [vmem:[%s17809_s1 + $0x10] sm:$0xff]  ;;  %v4184_v6 = vadd.f32 %v15279_v54, %v15317_v15 }
 0x36e   :  { %v4366_v22 = vpop.f32.mrf.mxu1  ;;  %v11964_v18 = vld [vmem:[%s17807_s8 + $0x154] ss:$28 sps:$4 sm:$0xff]  }
 0x36f   :  { %12286 = vpow2.f32 %v4565_v44  ;;  %v4529_v20 = vmul.f32 0.5, %v4365_v36  ;;  %10158 = vst [vmem:[%s17808_s11 + $0x68] sm:$0xff] %v4365_v36  ;;  %v15435_v24 = vadd.f32 %v4366_v22, %v4174_v2  ;;  %v4652_v57 = vadd.f32 %v4620_v43, %v15341_v59  ;;  %v11959_v59 = vld [vmem:[%s17807_s8 + $0x508] ss:$28 sps:$4 sm:$0xff]   ;;  %v11967_v1 = vld [vmem:[%s17807_s8 + $0x4d4] ss:$28 sps:$4 sm:$0xff]  }
 0x370   :  { %v4368_v47 = vpop.f32.mrf.mxu1  ;;  %v12281_v19 = vpop.eup %12280  ;;  %v11962_v22 = vld [vmem:[%s17807_s8 + $0x150] ss:$28 sps:$4 sm:$0xff]  }
 0x371   :  { %v4567_v28 = vmul.f32 1.442695, %v4529_v20  ;;  %10159 = vst [vmem:[%s17808_s11 + $0x70] sm:$0xff] %v15435_v24  ;;  %v4369_v30 = vadd.f32 %v4368_v47, %v4176_v23  ;;  %v4683_v62 = vpack.c.bf16 %v4652_v57, %v4651_v25  ;;  %v4621_v16 = vmul.f32 %v12281_v19, %v4493_v21  ;;  %v11965_v54 = vld [vmem:[%s17807_s8 + $0x4d0] ss:$28 sps:$4 sm:$0xff]   ;;  %v15488_v20 = vpop.f32.mrf.mxu0 }
 0x372   :  { %v4372_v8 = vpop.f32.mrf.mxu1  ;;  %v4186_v23 = vadd.f32 %v15281_v52, %v15320_v4  ;;  %v11970_v57 = vld [vmem:[%s17807_s8 + $0x11c] ss:$28 sps:$4 sm:$0xff]   ;;  %v4496_v21 = vld [vmem:[%s17809_s1 + $0x28] sm:$0xff] }
 0x373   :  { %12288 = vpow2.f32 %v4567_v28  ;;  %v4530_v53 = vmul.f32 0.5, %v4369_v30  ;;  %10160 = vst [vmem:[%s17808_s11 + $0x78] sm:$0xff] %v4369_v30  ;;  %v15464_v46 = vadd.f32 %v4372_v8, %v4180_v50  ;;  %4946 = vmatmul.mubr.bf16.vlgmr.msra.gmra.mxu0 %v4683_v62  ;;  %5139 = vmatmul.mubr.bf16.vlgmr.msra.gmra.mxu1 %v4683_v62  ;;  %v11973_v52 = vld [vmem:[%s17807_s8 + $0x49c] ss:$28 sps:$4 sm:$0xff]   ;;  %v4653_v50 = vadd.f32 %v4621_v16, %v15354_v33  ;;  %v4495_v30 = vld [vmem:[%s17809_s1 + $0x20] sm:$0xff] }
 0x374   :  { %v12283_v39 = vpop.eup %12282  ;;  %v4374_v7 = vpop.f32.mrf.mxu1  ;;  %4955 = vmatprep.mubr.bf16.mxu0 %v17993_v5  ;;  %5148 = vmatprep.mubr.bf16.mxu1 %v17993_v5  ;;  %v4190_v62 = vadd.f32 %v15283_v45, %v15317_v15  ;;  %v11976_v45 = vld [vmem:[%s17807_s8 + $0xe4] ss:$28 sps:$4 sm:$0xff]  }
 0x375   :  { %v4569_v2 = vmul.f32 1.442695, %v4530_v53  ;;  %10161 = vst [vmem:[%s17808_s11 + $0x80] sm:$0xff] %v15464_v46  ;;  %v4375_v43 = vadd.f32 %v4374_v7, %v4182_v51  ;;  %v4622_v44 = vmul.f32 %v12283_v39, %v4494_v12  ;;  %6937 = vmatpush1.bf16.msra.mxu0 %v11956_v38  ;;  %7130 = vmatpush1.bf16.msra.mxu1 %v11959_v59  ;;  %v11971_v38 = vld [vmem:[%s17807_s8 + $0x498] ss:$28 sps:$4 sm:$0xff]  }
 0x376   :  { %v4376_v36 = vpop.f32.mrf.mxu1  ;;  %6938 = vmatprep.subr.bf16.mxu0 %v11964_v18  ;;  %7131 = vmatprep.subr.bf16.mxu1 %v11967_v1  ;;  %v11979_v53 = vld [vmem:[%s17807_s8 + $0x464] ss:$28 sps:$4 sm:$0xff]   ;;  %v4192_v18 = vadd.f32 %v15285_v55, %v15320_v4  ;;  %v15529_v1 = vpop.f32.mrf.mxu0 }
 0x377   :  { %12290 = vpow2.f32 %v4569_v2  ;;  %v4531_v47 = vmul.f32 0.5, %v4375_v43  ;;  %10162 = vst [vmem:[%s17808_s11 + $0x88] sm:$0xff] %v4375_v43  ;;  %v15493_v25 = vadd.f32 %v4376_v36, %v4184_v6  ;;  %v4654_v28 = vadd.f32 %v4622_v44, %v15369_v26  ;;  %v11968_v26 = vld [vmem:[%s17807_s8 + $0x118] ss:$28 sps:$4 sm:$0xff]   ;;  %v11974_v55 = vld [vmem:[%s17807_s8 + $0xe0] ss:$28 sps:$4 sm:$0xff]  }
 0x378   :  { %v4378_v19 = vpop.f32.mrf.mxu1  ;;  %v12285_v8 = vpop.eup %12284  ;;  %v11977_v43 = vld [vmem:[%s17807_s8 + $0x460] ss:$28 sps:$4 sm:$0xff]   ;;  %v4194_v44 = vadd.f32 %v15287_v34, %v15317_v15  ;;  %v11982_v34 = vld [vmem:[%s17807_s8 + $0xac] ss:$28 sps:$4 sm:$0xff]  }
 0x379   :  { %v4571_v12 = vmul.f32 1.442695, %v4531_v47  ;;  %10163 = vst [vmem:[%s17808_s11 + $0x90] sm:$0xff] %v15493_v25  ;;  %v4379_v33 = vadd.f32 %v4378_v19, %v4186_v23  ;;  %v4684_v51 = vpack.c.bf16 %v4654_v28, %v4653_v50  ;;  %6939 = vmatpush1.bf16.msra.mxu0 %v11962_v22  ;;  %7132 = vmatpush1.bf16.msra.mxu1 %v11965_v54  ;;  %v4497_v23 = vld [vmem:[%s17809_s1 + $0x30] sm:$0xff]  ;;  %v11985_v47 = vld [vmem:[%s17807_s8 + $0x42c] ss:$28 sps:$4 sm:$0xff]   ;;  %v15561_v19 = vpop.f32.mrf.mxu0 }
 0x37a   :  { %v4382_v59 = vpop.f32.mrf.mxu1  ;;  %6940 = vmatprep.subr.bf16.mxu0 %v11970_v57  ;;  %7133 = vmatprep.subr.bf16.mxu1 %v11973_v52  ;;  %v4623_v2 = vmul.f32 %v12285_v8, %v4495_v30  ;;  %v4196_v52 = vadd.f32 %v15289_v40, %v15320_v4  ;;  %v4498_v40 = vld [vmem:[%s17809_s1 + $0x38] sm:$0xff] }
 0x37b   :  { %12292 = vpow2.f32 %v4571_v12  ;;  %v4532_v39 = vmul.f32 0.5, %v4379_v33  ;;  %10164 = vst [vmem:[%s17808_s11 + $0x98] sm:$0xff] %v4379_v33  ;;  %v15534_v7 = vadd.f32 %v4382_v59, %v4190_v62  ;;  %4956 = vmatmul.mubr.bf16.gmra.mxu0 %v4684_v51  ;;  %5149 = vmatmul.mubr.bf16.gmra.mxu1 %v4684_v51  ;;  %v11980_v12 = vld [vmem:[%s17807_s8 + $0xa8] ss:$28 sps:$4 sm:$0xff]   ;;  %v11991_v59 = vld [vmem:[%s17807_s8 + $0x3f4] ss:$28 sps:$4 sm:$0xff]  }
 0x37c   :  { %v12287_v16 = vpop.eup %12286  ;;  %v4384_v6 = vpop.f32.mrf.mxu1  ;;  %4965 = vmatprep.mubr.bf16.mxu0 %v17993_v5  ;;  %5158 = vmatprep.mubr.bf16.mxu1 %v17993_v5  ;;  %v4655_v8 = vadd.f32 %v4623_v2, %v15384_v27  ;;  %v11983_v33 = vld [vmem:[%s17807_s8 + $0x428] ss:$28 sps:$4 sm:$0xff]  }
 0x37d   :  { %v4573_v36 = vmul.f32 1.442695, %v4532_v39  ;;  %10165 = vst [vmem:[%s17808_s11 + $0xa0] sm:$0xff] %v15534_v7  ;;  %v4385_v22 = vadd.f32 %v4384_v6, %v4192_v18  ;;  %v4624_v54 = vmul.f32 %v12287_v16, %v4496_v21  ;;  %6941 = vmatpush1.bf16.msra.mxu0 %v11968_v26  ;;  %7134 = vmatpush1.bf16.msra.mxu1 %v11971_v38  ;;  %v15593_v18 = vpop.f32.mrf.mxu0 }
 0x37e   :  { %v4386_v57 = vpop.f32.mrf.mxu1  ;;  %6942 = vmatprep.subr.bf16.mxu0 %v11976_v45  ;;  %7135 = vmatprep.subr.bf16.mxu1 %v11979_v53  ;;  %v4200_v26 = vadd.f32 %v15291_v31, %v15317_v15  ;;  %v4202_v31 = vadd.f32 %v15293_v11, %v15320_v4  ;;  %v11986_v11 = vld [vmem:[%s17807_s8 + $0x70] ss:$28 sps:$4 sm:$0xff]  }
 0x37f   :  { %12294 = vpow2.f32 %v4573_v36  ;;  %v4533_v50 = vmul.f32 0.5, %v4385_v22  ;;  %10166 = vst [vmem:[%s17808_s11 + $0xa8] sm:$0xff] %v4385_v22  ;;  %v15566_v28 = vadd.f32 %v4386_v57, %v4194_v44  ;;  %v4656_v62 = vadd.f32 %v4624_v54, %v15402_v14  ;;  %v11988_v14 = vld [vmem:[%s17807_s8 + $0x74] ss:$28 sps:$4 sm:$0xff]   ;;  %v4499_v54 = vld [vmem:[%s17809_s1 + $0x40] sm:$0xff] }
 0x380   :  { %v12289_v30 = vpop.eup %12288  ;;  %v4388_v21 = vpop.f32.mrf.mxu1 }
 0x381   :  { %v4575_v38 = vmul.f32 1.442695, %v4533_v50  ;;  %10167 = vst [vmem:[%s17808_s11 + $0xb0] sm:$0xff] %v15566_v28  ;;  %v4389_v27 = vadd.f32 %v4388_v21, %v4196_v52  ;;  %v4685_v45 = vpack.c.bf16 %v4656_v62, %v4655_v8  ;;  %v4625_v53 = vmul.f32 %v12289_v30, %v4497_v23  ;;  %6943 = vmatpush1.bf16.msra.mxu0 %v11974_v55  ;;  %v11989_v55 = vld [vmem:[%s17807_s8 + $0x3f0] ss:$28 sps:$4 sm:$0xff]   ;;  %v15626_v52 = vpop.f32.mrf.mxu0 }
 0x382   :  { %v4392_v51 = vpop.f32.mrf.mxu1  ;;  %7136 = vmatpush1.bf16.msra.mxu1 %v11977_v43  ;;  %6944 = vmatprep.subr.bf16.mxu0 %v11982_v34  ;;  %v4204_v43 = vadd.f32 %v15295_v58, %v15317_v15  ;;  %v11994_v58 = vld [vmem:[%s17807_s8 + $0x3c] ss:$28 sps:$4 sm:$0xff]   ;;  %v4206_v34 = vadd.f32 %v15297_v60, %v15320_v4 }
 0x383   :  { %12296 = vpow2.f32 %v4575_v38  ;;  %v4534_v39 = vmul.f32 0.5, %v4389_v27  ;;  %10168 = vst [vmem:[%s17808_s11 + $0xb8] sm:$0xff] %v4389_v27  ;;  %v15598_v16 = vadd.f32 %v4392_v51, %v4200_v26  ;;  %7137 = vmatprep.subr.bf16.mxu1 %v11985_v47  ;;  %4966 = vmatmul.mubr.bf16.gmra.mxu0 %v4685_v45  ;;  %v11997_v23 = vld [vmem:[%s17807_s8 + $0x3bc] ss:$28 sps:$4 sm:$0xff]   ;;  %v4657_v57 = vadd.f32 %v4625_v53, %v15420_v29  ;;  %v4500_v29 = vld [vmem:[%s17809_s1 + $0x48] sm:$0xff]  ;;  %v15657_v51 = vpop.f32.mrf.mxu0 }
 0x384   :  { %v12291_v6 = vpop.eup %12290  ;;  %5159 = vmatmul.mubr.bf16.gmra.mxu1 %v4685_v45  ;;  %v4394_v2 = vpop.f32.mrf.mxu1  ;;  %4975 = vmatprep.mubr.bf16.mxu0 %v17993_v5  ;;  %v11992_v62 = vld [vmem:[%s17807_s8 + $0x38] ss:$28 sps:$4 sm:$0xff]   ;;  %v12000_v38 = vld [vmem:[%s17807_s8 + $0x4] ss:$28 sps:$4 sm:$0xff]  }
 0x385   :  { %v4577_v44 = vmul.f32 1.442695, %v4534_v39  ;;  %10169 = vst [vmem:[%s17808_s11 + $0xc0] sm:$0xff] %v15598_v16  ;;  %v4395_v36 = vadd.f32 %v4394_v2, %v4202_v31  ;;  %5168 = vmatprep.mubr.bf16.mxu1 %v17993_v5  ;;  %v4626_v22 = vmul.f32 %v12291_v6, %v4498_v40  ;;  %6945 = vmatpush1.bf16.msra.mxu0 %v11980_v12  ;;  %v11995_v40 = vld [vmem:[%s17807_s8 + $0x3b8] ss:$28 sps:$4 sm:$0xff]  }
 0x386   :  { %v4396_v47 = vpop.f32.mrf.mxu1  ;;  %7138 = vmatpush1.bf16.msra.mxu1 %v11983_v33  ;;  %6946 = vmatprep.subr.bf16.mxu0 %v11988_v14  ;;  %v4210_v12 = vadd.f32 %v15299_v10, %v15317_v15  ;;  %v12003_v27 = vld [vmem:[%s17807_s8 + $0x384] ss:$28 sps:$4 sm:$0xff]   ;;  %v4212_v10 = vadd.f32 %v15301_v49, %v15320_v4  ;;  %v4214_v2 = vadd.f32 %v15303_v42, %v15317_v15  ;;  %v12006_v42 = vld [vmem:[%s17807_s8 + $0x34c] ss:$28 sps:$4 sm:$0xff]  }
 0x387   :  { %12298 = vpow2.f32 %v4577_v44  ;;  %v4535_v50 = vmul.f32 0.5, %v4395_v36  ;;  %10170 = vst [vmem:[%s17808_s11 + $0xc8] sm:$0xff] %v4395_v36  ;;  %v15631_v30 = vadd.f32 %v4396_v47, %v4204_v43  ;;  %v4658_v21 = vadd.f32 %v4626_v22, %v15435_v24  ;;  %7139 = vmatprep.subr.bf16.mxu1 %v11991_v59  ;;  %v11998_v49 = vld [vmem:[%s17807_s8] ss:$28 sps:$4 sm:$0xff]   ;;  %v4501_v44 = vld [vmem:[%s17809_s1 + $0x50] sm:$0xff] }
 0x388   :  { %v12293_v60 = vpop.eup %12292  ;;  %v4398_v8 = vpop.f32.mrf.mxu1  ;;  %v12001_v6 = vld [vmem:[%s17807_s8 + $0x380] ss:$28 sps:$4 sm:$0xff]   ;;  %v12009_v36 = vld [vmem:[%s17807_s8 + $0x6cc] ss:$28 sps:$4 sm:$0xff]   ;;  %v4216_v22 = vadd.f32 %v15314_v17, %v15320_v4 }
 0x389   :  { %v4579_v24 = vmul.f32 1.442695, %v4535_v50  ;;  %10171 = vst [vmem:[%s17808_s11 + $0xd0] sm:$0xff] %v15631_v30  ;;  %v4399_v33 = vadd.f32 %v4398_v8, %v4206_v34  ;;  %v4686_v26 = vpack.c.bf16 %v4658_v21, %v4657_v57  ;;  %v4627_v59 = vmul.f32 %v12293_v60, %v4499_v54  ;;  %6947 = vmatpush1.bf16.msra.mxu0 %v11986_v11  ;;  %v12004_v21 = vld [vmem:[%s17807_s8 + $0x348] ss:$28 sps:$4 sm:$0xff]  }
 0x38a   :  { %v4402_v14 = vpop.f32.mrf.mxu1  ;;  %7140 = vmatpush1.bf16.msra.mxu1 %v11989_v55  ;;  %6948 = vmatprep.subr.bf16.mxu0 %v11994_v58  ;;  %v12007_v60 = vld [vmem:[%s17807_s8 + $0x6c8] ss:$28 sps:$4 sm:$0xff]   ;;  %v4220_v8 = vadd.f32 %v15322_v35, %v15317_v15  ;;  %v4222_v35 = vadd.f32 %v15326_v37, %v15320_v4  ;;  %v12010_v37 = vld [vmem:[%s17807_s8 + $0x310] ss:$28 sps:$4 sm:$0xff]  }
 0x38b   :  { %12300 = vpow2.f32 %v4579_v24  ;;  %v4536_v45 = vmul.f32 0.5, %v4399_v33  ;;  %10172 = vst [vmem:[%s17808_s11 + $0xd8] sm:$0xff] %v4399_v33  ;;  %v15662_v53 = vadd.f32 %v4402_v14, %v4210_v12  ;;  %7141 = vmatprep.subr.bf16.mxu1 %v11997_v23  ;;  %4976 = vmatmul.mubr.bf16.gmra.mxu0 %v4686_v26  ;;  %v4659_v58 = vadd.f32 %v4627_v59, %v15464_v46  ;;  %v15690_v23 = vpop.f32.mrf.mxu0  ;;  %v4502_v46 = vld [vmem:[%s17809_s1 + $0x58] sm:$0xff]  ;;  %v12015_v12 = vld [vmem:[%s17807_s8 + $0x694] ss:$28 sps:$4 sm:$0xff]  }
 0x38c   :  { %v12295_v31 = vpop.eup %12294  ;;  %5169 = vmatmul.mubr.bf16.gmra.mxu1 %v4686_v26  ;;  %v4404_v39 = vpop.f32.mrf.mxu1  ;;  %4985 = vmatprep.mubr.bf16.mxu0 %v17993_v5 }
 0x38d   :  { %v4581_v11 = vmul.f32 1.442695, %v4536_v45  ;;  %10173 = vst [vmem:[%s17808_s11 + $0xe0] sm:$0xff] %v15662_v53  ;;  %v4405_v55 = vadd.f32 %v4404_v39, %v4212_v10  ;;  %5178 = vmatprep.mubr.bf16.mxu1 %v17993_v5  ;;  %v4628_v43 = vmul.f32 %v12295_v31, %v4500_v29  ;;  %6949 = vmatpush1.bf16.msra.mxu0 %v11992_v62  ;;  %v15721_v26 = vpop.f32.mrf.mxu0  ;;  %v12013_v10 = vld [vmem:[%s17807_s8 + $0x690] ss:$28 sps:$4 sm:$0xff]  }
 0x38e   :  { %v4406_v54 = vpop.f32.mrf.mxu1  ;;  %7142 = vmatpush1.bf16.msra.mxu1 %v11995_v40  ;;  %6950 = vmatprep.subr.bf16.mxu0 %v12000_v38  ;;  %v12012_v40 = vld [vmem:[%s17807_s8 + $0x314] ss:$28 sps:$4 sm:$0xff]   ;;  %v4224_v45 = vadd.f32 %v15336_v48, %v15317_v15  ;;  %v12018_v48 = vld [vmem:[%s17807_s8 + $0x2dc] ss:$28 sps:$4 sm:$0xff]  }
 0x38f   :  { %12302 = vpow2.f32 %v4581_v11  ;;  %v4537_v34 = vmul.f32 0.5, %v4405_v55  ;;  %10174 = vst [vmem:[%s17808_s11 + $0xe8] sm:$0xff] %v4405_v55  ;;  %v15695_v47 = vadd.f32 %v4406_v54, %v4214_v2  ;;  %v4660_v57 = vadd.f32 %v4628_v43, %v15493_v25  ;;  %7143 = vmatprep.subr.bf16.mxu1 %v12003_v27  ;;  %v12021_v2 = vld [vmem:[%s17807_s8 + $0x65c] ss:$28 sps:$4 sm:$0xff]  }
 0x390   :  { %v12297_v17 = vpop.eup %12296  ;;  %v4408_v50 = vpop.f32.mrf.mxu1  ;;  %v4226_v11 = vadd.f32 %v15349_v41, %v15320_v4 }
 0x391   :  { %v4583_v25 = vmul.f32 1.442695, %v4537_v34  ;;  %10175 = vst [vmem:[%s17808_s11 + $0xf0] sm:$0xff] %v15695_v47  ;;  %v4409_v29 = vadd.f32 %v4408_v50, %v4216_v22  ;;  %v4687_v62 = vpack.c.bf16 %v4660_v57, %v4659_v58  ;;  %v4629_v33 = vmul.f32 %v12297_v17, %v4501_v44  ;;  %6951 = vmatpush1.bf16.msra.mxu0 %v11998_v49  ;;  %v15754_v44 = vpop.f32.mrf.mxu0  ;;  %v12016_v58 = vld [vmem:[%s17807_s8 + $0x2d8] ss:$28 sps:$4 sm:$0xff]  }
 0x392   :  { %v4412_v24 = vpop.f32.mrf.mxu1  ;;  %7144 = vmatpush1.bf16.msra.mxu1 %v12001_v6  ;;  %6952 = vmatprep.subr.bf16.mxu0 %v12006_v42  ;;  %v4503_v6 = vld [vmem:[%s17809_s1 + $0x60] sm:$0xff]  ;;  %v12019_v34 = vld [vmem:[%s17807_s8 + $0x658] ss:$28 sps:$4 sm:$0xff]   ;;  %v4230_v57 = vadd.f32 %v15364_v9, %v15317_v15  ;;  %v4232_v9 = vadd.f32 %v15379_v63, %v15320_v4 }
 0x393   :  { %12304 = vpow2.f32 %v4583_v25  ;;  %v4538_v38 = vmul.f32 0.5, %v4409_v29  ;;  %10176 = vst [vmem:[%s17808_s11 + $0xf8] sm:$0xff] %v4409_v29  ;;  %v15726_v27 = vadd.f32 %v4412_v24, %v4220_v8  ;;  %7145 = vmatprep.subr.bf16.mxu1 %v12009_v36  ;;  %4986 = vmatmul.mubr.bf16.gmra.mxu0 %v4687_v62  ;;  %v4661_v43 = vadd.f32 %v4629_v33, %v15534_v7  ;;  %v4504_v7 = vld [vmem:[%s17809_s1 + $0x68] sm:$0xff]  ;;  %v15785_v25 = vpop.f32.mrf.mxu0  ;;  %v12022_v63 = vld [vmem:[%s17807_s8 + $0x2a0] ss:$28 sps:$4 sm:$0xff]  }
 0x394   :  { %v12299_v14 = vpop.eup %12298  ;;  %5179 = vmatmul.mubr.bf16.gmra.mxu1 %v4687_v62  ;;  %v4414_v59 = vpop.f32.mrf.mxu1  ;;  %4995 = vmatprep.mubr.bf16.mxu0 %v17993_v5  ;;  %v12025_v24 = vld [vmem:[%s17807_s8 + $0x620] ss:$28 sps:$4 sm:$0xff]   ;;  %v4234_v33 = vadd.f32 %v15394_v0, %v15317_v15  ;;  %v12030_v0 = vld [vmem:[%s17807_s8 + $0x26c] ss:$28 sps:$4 sm:$0xff]  }
 0x395   :  { %v4585_v31 = vmul.f32 1.442695, %v4538_v38  ;;  %10177 = vst [vmem:[%s17808_s11 + $0x100] sm:$0xff] %v15726_v27  ;;  %v4415_v39 = vadd.f32 %v4414_v59, %v4222_v35  ;;  %5188 = vmatprep.mubr.bf16.mxu1 %v17993_v5  ;;  %v4630_v49 = vmul.f32 %v12299_v14, %v4502_v46  ;;  %6953 = vmatpush2.bf16.msra.mxu0 %v12004_v21  ;;  %v12024_v46 = vld [vmem:[%s17807_s8 + $0x2a4] ss:$28 sps:$4 sm:$0xff]   ;;  %v4505_v59 = vld [vmem:[%s17809_s1 + $0x70] sm:$0xff] }
 0x396   :  { %v4416_v55 = vpop.f32.mrf.mxu1  ;;  %7146 = vmatpush2.bf16.msra.mxu1 %v12007_v60  ;;  %6954 = vmatprep.subr.bf16.mxu0 %v12012_v40  ;;  %v12027_v21 = vld [vmem:[%s17807_s8 + $0x624] ss:$28 sps:$4 sm:$0xff]  }
 0x397   :  { %12306 = vpow2.f32 %v4585_v31  ;;  %v4539_v42 = vmul.f32 0.5, %v4415_v39  ;;  %10178 = vst [vmem:[%s17808_s11 + $0x108] sm:$0xff] %v4415_v39  ;;  %v15759_v36 = vadd.f32 %v4416_v55, %v4224_v45  ;;  %v4662_v22 = vadd.f32 %v4630_v49, %v15566_v28  ;;  %7147 = vmatprep.subr.bf16.mxu1 %v12015_v12  ;;  %v15818_v39 = vpop.f32.mrf.mxu0  ;;  %v12031_v55 = vld [vmem:[%s17807_s8 + $0x5e8] ss:$28 sps:$4 sm:$0xff]  }
 0x398   :  { %v12301_v41 = vpop.eup %12300  ;;  %v4418_v54 = vpop.f32.mrf.mxu1 }
 0x399   :  { %v4587_v28 = vmul.f32 1.442695, %v4539_v42  ;;  %10179 = vst [vmem:[%s17808_s11 + $0x110] sm:$0xff] %v15759_v36  ;;  %v4419_v17 = vadd.f32 %v4418_v54, %v4226_v11  ;;  %v4688_v50 = vpack.c.bf16 %v4662_v22, %v4661_v43  ;;  %v4631_v8 = vmul.f32 %v12301_v41, %v4503_v6  ;;  %6955 = vmatpush2.bf16.msra.mxu0 %v12010_v37  ;;  %v12033_v37 = vld [vmem:[%s17807_s8 + $0x5ec] ss:$28 sps:$4 sm:$0xff]  }
 0x39a   :  { %v4422_v60 = vpop.f32.mrf.mxu1  ;;  %7148 = vmatpush2.bf16.msra.mxu1 %v12013_v10  ;;  %6956 = vmatprep.subr.bf16.mxu0 %v12018_v48  ;;  %v4236_v10 = vadd.f32 %v15415_v3, %v15320_v4  ;;  %v12028_v11 = vld [vmem:[%s17807_s8 + $0x268] ss:$28 sps:$4 sm:$0xff]   ;;  %v4240_v43 = vadd.f32 %v15430_v56, %v15317_v15  ;;  %v12036_v41 = vld [vmem:[%s17807_s8 + $0x234] ss:$28 sps:$4 sm:$0xff]   ;;  %v4242_v56 = vadd.f32 %v15459_v32, %v15320_v4 }
 0x39b   :  { %12308 = vpow2.f32 %v4587_v28  ;;  %v4540_v29 = vmul.f32 0.5, %v4419_v17  ;;  %10180 = vst [vmem:[%s17808_s11 + $0x118] sm:$0xff] %v4419_v17  ;;  %v15790_v62 = vadd.f32 %v4422_v60, %v4230_v57  ;;  %7149 = vmatprep.subr.bf16.mxu1 %v12021_v2  ;;  %4996 = vmatmul.mubr.bf16.gmra.mxu0 %v4688_v50  ;;  %v4663_v31 = vadd.f32 %v4631_v8, %v15598_v16  ;;  %v4506_v16 = vld [vmem:[%s17809_s1 + $0x78] sm:$0xff]  ;;  %v12039_v54 = vld [vmem:[%s17807_s8 + $0x5b4] ss:$28 sps:$4 sm:$0xff]  }
 0x39c   :  { %v12303_v40 = vpop.eup %12302  ;;  %5189 = vmatmul.mubr.bf16.gmra.mxu1 %v4688_v50  ;;  %v4424_v12 = vpop.f32.mrf.mxu1  ;;  %5005 = vmatprep.mubr.bf16.mxu0 %v17993_v5  ;;  %v12034_v32 = vld [vmem:[%s17807_s8 + $0x230] ss:$28 sps:$4 sm:$0xff]  }
 0x39d   :  { %v4589_v35 = vmul.f32 1.442695, %v4540_v29  ;;  %10181 = vst [vmem:[%s17808_s11 + $0x120] sm:$0xff] %v15790_v62  ;;  %v4425_v38 = vadd.f32 %v4424_v12, %v4232_v9  ;;  %5198 = vmatprep.mubr.bf16.mxu1 %v17993_v5  ;;  %v4632_v14 = vmul.f32 %v12303_v40, %v4504_v7  ;;  %6957 = vmatpush2.bf16.msra.mxu0 %v12016_v58  ;;  %v12042_v29 = vld [vmem:[%s17807_s8 + $0x1fc] ss:$28 sps:$4 sm:$0xff]  }
 0x39e   :  { %v4426_v45 = vpop.f32.mrf.mxu1  ;;  %7150 = vmatpush2.bf16.msra.mxu1 %v12019_v34  ;;  %6958 = vmatprep.subr.bf16.mxu0 %v12024_v46  ;;  %v15849_v34 = vpop.f32.mrf.mxu0  ;;  %v12037_v46 = vld [vmem:[%s17807_s8 + $0x5b0] ss:$28 sps:$4 sm:$0xff]   ;;  %v4246_v40 = vadd.f32 %v15529_v1, %v15320_v4  ;;  %v4507_v1 = vld [vmem:[%s17809_s1 + $0x80] sm:$0xff] }
 0x39f   :  { %12310 = vpow2.f32 %v4589_v35  ;;  %v4541_v49 = vmul.f32 0.5, %v4425_v38  ;;  %10182 = vst [vmem:[%s17808_s11 + $0x128] sm:$0xff] %v4425_v38  ;;  %v15823_v6 = vadd.f32 %v4426_v45, %v4234_v33  ;;  %v4664_v48 = vadd.f32 %v4632_v14, %v15631_v30  ;;  %7151 = vmatprep.subr.bf16.mxu1 %v12027_v21  ;;  %v4508_v14 = vld [vmem:[%s17809_s1 + $0x88] sm:$0xff] }
 0x3a0   :  { %v12305_v3 = vpop.eup %12304  ;;  %v4428_v2 = vpop.f32.mrf.mxu1  ;;  %v4244_v21 = vadd.f32 %v15488_v20, %v15317_v15 }
 0x3a1   :  { %v4591_v30 = vmul.f32 1.442695, %v4541_v49  ;;  %10183 = vst [vmem:[%s17808_s11 + $0x130] sm:$0xff] %v15823_v6  ;;  %v4429_v42 = vadd.f32 %v4428_v2, %v4236_v10  ;;  %v4689_v22 = vpack.c.bf16 %v4664_v48, %v4663_v31  ;;  %v4633_v58 = vmul.f32 %v12305_v3, %v4505_v59  ;;  %6959 = vmatpush2.bf16.msra.mxu0 %v12022_v63  ;;  %v15876_v63 = vpop.f32.mrf.mxu0  ;;  %v12040_v59 = vld [vmem:[%s17807_s8 + $0x1f8] ss:$28 sps:$4 sm:$0xff]  }
 0x3a2   :  { %v4432_v7 = vpop.f32.mrf.mxu1  ;;  %7152 = vmatpush2.bf16.msra.mxu1 %v12025_v24  ;;  %6960 = vmatprep.subr.bf16.mxu0 %v12030_v0  ;;  %v4250_v0 = vadd.f32 %v15561_v19, %v15317_v15  ;;  %v4252_v49 = vadd.f32 %v15593_v18, %v15320_v4 }
 0x3a3   :  { %12312 = vpow2.f32 %v4591_v30  ;;  %v4542_v57 = vmul.f32 0.5, %v4429_v42  ;;  %10184 = vst [vmem:[%s17808_s11 + $0x138] sm:$0xff] %v4429_v42  ;;  %v15854_v28 = vadd.f32 %v4432_v7, %v4240_v43  ;;  %7153 = vmatprep.subr.bf16.mxu1 %v12033_v37  ;;  %5006 = vmatmul.mubr.bf16.gmra.mxu0 %v4689_v22  ;;  %v4665_v12 = vadd.f32 %v4633_v58, %v15662_v53  ;;  %v15901_v48 = vpop.f32.mrf.mxu0 }
 0x3a4   :  { %v12307_v17 = vpop.eup %12306  ;;  %5199 = vmatmul.mubr.bf16.gmra.mxu1 %v4689_v22  ;;  %v4434_v50 = vpop.f32.mrf.mxu1  ;;  %5015 = vmatprep.mubr.bf16.mxu0 %v17993_v5  ;;  %v4256_v30 = vadd.f32 %v15657_v51, %v15320_v4  ;;  %v4509_v51 = vld [vmem:[%s17809_s1 + $0x90] sm:$0xff] }
 0x3a5   :  { %v4593_v60 = vmul.f32 1.442695, %v4542_v57  ;;  %10185 = vst [vmem:[%s17808_s11 + $0x140] sm:$0xff] %v15854_v28  ;;  %v4435_v8 = vadd.f32 %v4434_v50, %v4242_v56  ;;  %5208 = vmatprep.mubr.bf16.mxu1 %v17993_v5  ;;  %v4634_v9 = vmul.f32 %v12307_v17, %v4506_v16  ;;  %6961 = vmatpush2.bf16.msra.mxu0 %v12028_v11 }
 0x3a6   :  { %v4436_v20 = vpop.f32.mrf.mxu1  ;;  %7154 = vmatpush2.bf16.msra.mxu1 %v12031_v55  ;;  %6962 = vmatprep.subr.bf16.mxu0 %v12036_v41  ;;  %v4254_v11 = vadd.f32 %v15626_v52, %v15317_v15  ;;  %v15919_v52 = vpop.f32.mrf.mxu0  ;;  %v4260_v57 = vadd.f32 %v15690_v23, %v15317_v15 }
 0x3a7   :  { %12314 = vpow2.f32 %v4593_v60  ;;  %v4543_v24 = vmul.f32 0.5, %v4435_v8  ;;  %10186 = vst [vmem:[%s17808_s11 + $0x148] sm:$0xff] %v4435_v8  ;;  %v15881_v33 = vadd.f32 %v4436_v20, %v4244_v21  ;;  %v4666_v35 = vadd.f32 %v4634_v9, %v15695_v47  ;;  %7155 = vmatprep.subr.bf16.mxu1 %v12039_v54 }
 0x3a8   :  { %v12309_v53 = vpop.eup %12308  ;;  %v4438_v38 = vpop.f32.mrf.mxu1  ;;  %v4262_v21 = vadd.f32 %v15721_v26, %v15320_v4 }
 0x3a9   :  { %v4595_v47 = vmul.f32 1.442695, %v4543_v24  ;;  %10187 = vst [vmem:[%s17808_s11 + $0x150] sm:$0xff] %v15881_v33  ;;  %v4439_v37 = vadd.f32 %v4438_v38, %v4246_v40  ;;  %v4690_v10 = vpack.c.bf16 %v4666_v35, %v4665_v12  ;;  %v4635_v31 = vmul.f32 %v12309_v53, %v4507_v1  ;;  %6963 = vmatpush2.bf16.msra.mxu0 %v12034_v32  ;;  %v15941_v60 = vpop.f32.mrf.mxu0 }
 0x3aa   :  { %v4442_v45 = vpop.f32.mrf.mxu1  ;;  %7156 = vmatpush2.bf16.msra.mxu1 %v12037_v46  ;;  %6964 = vmatprep.subr.bf16.mxu0 %v12042_v29  ;;  %v4264_v40 = vadd.f32 %v15754_v44, %v15317_v15  ;;  %v4266_v24 = vadd.f32 %v15785_v25, %v15320_v4  ;;  %v12043_v25 = vld [vmem:[%s17807_s8 + $0x578] ss:$28 sps:$4 sm:$0xff]  }
 0x3ab   :  { %12316 = vpow2.f32 %v4595_v47  ;;  %v4544_v3 = vmul.f32 0.5, %v4439_v37  ;;  %10188 = vst [vmem:[%s17808_s11 + $0x158] sm:$0xff] %v4439_v37  ;;  %v15906_v19 = vadd.f32 %v4442_v45, %v4250_v0  ;;  %5016 = vmatmul.mubr.bf16.gmra.mxu0 %v4690_v10  ;;  %v4667_v22 = vadd.f32 %v4635_v31, %v15726_v27  ;;  %v4510_v27 = vld [vmem:[%s17809_s1 + $0x98] sm:$0xff]  ;;  %v15959_v53 = vpop.f32.mrf.mxu0 }
 0x3ac   :  { %v12311_v2 = vpop.eup %12310  ;;  %5209 = vmatmul.mubr.bf16.gmra.mxu1 %v4690_v10  ;;  %v4444_v16 = vpop.f32.mrf.mxu1  ;;  %5025 = vmatprep.mubr.bf16.mxu0 %v17993_v5  ;;  %v4270_v37 = vadd.f32 %v15818_v39, %v15317_v15 }
 0x3ad   :  { %v4597_v55 = vmul.f32 1.442695, %v4544_v3  ;;  %10189 = vst [vmem:[%s17808_s11 + $0x160] sm:$0xff] %v15906_v19  ;;  %v4445_v18 = vadd.f32 %v4444_v16, %v4252_v49  ;;  %5218 = vmatprep.mubr.bf16.mxu1 %v17993_v5  ;;  %v4636_v43 = vmul.f32 %v12311_v2, %v4508_v14  ;;  %6965 = vmatpush2.bf16.msra.mxu0 %v12040_v59  ;;  %v4511_v59 = vld [vmem:[%s17809_s1 + $0xa0] sm:$0xff]  ;;  %v4512_v49 = vld [vmem:[%s17809_s1 + $0xa8] sm:$0xff]  ;;  %v4285_v39 = vpop.f32.mrf.mxu0 }
 0x3ae   :  { %v4446_v42 = vpop.f32.mrf.mxu1  ;;  %v4272_v2 = vadd.f32 %v15849_v34, %v15320_v4  ;;  %v4274_v34 = vadd.f32 %v15876_v63, %v15317_v15  ;;  %v12051_v63 = vld [vmem:[%s17807_s8 + $0x544] ss:$28 sps:$4 sm:$0xff]  }
 0x3af   :  { %12318 = vpow2.f32 %v4597_v55  ;;  %v4545_v41 = vmul.f32 0.5, %v4445_v18  ;;  %10190 = vst [vmem:[%s17808_s11 + $0x168] sm:$0xff] %v4445_v18  ;;  %v15924_v54 = vadd.f32 %v4446_v42, %v4254_v11  ;;  %v4668_v7 = vadd.f32 %v4636_v43, %v15759_v36  ;;  %v12048_v43 = vld [vmem:[%s17807_s8 + $0x1c4] ss:$28 sps:$4 sm:$0xff]  }
 0x3b0   :  { %v12313_v58 = vpop.eup %12312  ;;  %v4448_v56 = vpop.f32.mrf.mxu1  ;;  %6966 = vmatprep.subr.bf16.mxu0 %v12048_v43 }
 0x3b1   :  { %v4599_v17 = vmul.f32 1.442695, %v4545_v41  ;;  %10191 = vst [vmem:[%s17808_s11 + $0x170] sm:$0xff] %v15924_v54  ;;  %v4449_v36 = vadd.f32 %v4448_v56, %v4256_v30  ;;  %v4691_v50 = vpack.c.bf16 %v4668_v7, %v4667_v22  ;;  %v4637_v46 = vmul.f32 %v12313_v58, %v4509_v51  ;;  %v12046_v41 = vld [vmem:[%s17807_s8 + $0x1c0] ss:$28 sps:$4 sm:$0xff]  }
 0x3b2   :  { %v4452_v32 = vpop.f32.mrf.mxu1  ;;  %v4276_v7 = vadd.f32 %v15901_v48, %v15320_v4  ;;  %v12049_v56 = vld [vmem:[%s17807_s8 + $0x540] ss:$28 sps:$4 sm:$0xff]   ;;  %6967 = vmatpush2.bf16.msra.mxu0 %v12046_v41 }
 0x3b3   :  { %12320 = vpow2.f32 %v4599_v17  ;;  %v4546_v8 = vmul.f32 0.5, %v4449_v36  ;;  %10192 = vst [vmem:[%s17808_s11 + $0x178] sm:$0xff] %v4449_v36  ;;  %v15946_v23 = vadd.f32 %v4452_v32, %v4260_v57  ;;  %5026 = vmatmul.mubr.bf16.gmra.mxu0 %v4691_v50  ;;  %v4669_v1 = vadd.f32 %v4637_v46, %v15790_v62  ;;  %v12045_v62 = vld [vmem:[%s17807_s8 + $0x57c] ss:$28 sps:$4 sm:$0xff]  }
 0x3b4   :  { %v12315_v9 = vpop.eup %12314  ;;  %5219 = vmatmul.mubr.bf16.gmra.mxu1 %v4691_v50  ;;  %v4454_v29 = vpop.f32.mrf.mxu1  ;;  %5035 = vmatprep.mubr.bf16.mxu0 %v17993_v5  ;;  %v4280_v32 = vadd.f32 %v15919_v52, %v15317_v15 }
 0x3b5   :  { %v4601_v20 = vmul.f32 1.442695, %v4546_v8  ;;  %10193 = vst [vmem:[%s17808_s11 + $0x180] sm:$0xff] %v15946_v23  ;;  %v4455_v26 = vadd.f32 %v4454_v29, %v4262_v21  ;;  %5228 = vmatprep.mubr.bf16.mxu1 %v17993_v5  ;;  %v4638_v12 = vmul.f32 %v12315_v9, %v4510_v27  ;;  %7157 = vmatprep.subr.bf16.mxu1 %v12045_v62  ;;  %v4289_v27 = vpop.f32.mrf.mxu0  ;;  %v4514_v9 = vld [vmem:[%s17809_s1 + $0xb8] sm:$0xff] }
 0x3b6   :  { %v4456_v35 = vpop.f32.mrf.mxu1  ;;  %7158 = vmatpush2.bf16.msra.mxu1 %v12043_v25 }
 0x3b7   :  { %12322 = vpow2.f32 %v4601_v20  ;;  %v4547_v44 = vmul.f32 0.5, %v4455_v26  ;;  %10194 = vst [vmem:[%s17808_s11 + $0x188] sm:$0xff] %v4455_v26  ;;  %v15964_v38 = vadd.f32 %v4456_v35, %v4264_v40  ;;  %v4670_v14 = vadd.f32 %v4638_v12, %v15823_v6  ;;  %7159 = vmatprep.subr.bf16.mxu1 %v12051_v63  ;;  %v4291_v20 = vpop.f32.mrf.mxu0 }
 0x3b8   :  { %v12317_v0 = vpop.eup %12316  ;;  %v4458_v47 = vpop.f32.mrf.mxu1  ;;  %v4282_v40 = vadd.f32 %v15941_v60, %v15320_v4  ;;  %v4284_v35 = vadd.f32 %v15959_v53, %v15317_v15 }
 0x3b9   :  { %v4603_v10 = vmul.f32 1.442695, %v4547_v44  ;;  %10195 = vst [vmem:[%s17808_s11 + $0x190] sm:$0xff] %v15964_v38  ;;  %v4459_v6 = vadd.f32 %v4458_v47, %v4266_v24  ;;  %v4692_v45 = vpack.c.bf16 %v4670_v14, %v4669_v1  ;;  %v4639_v3 = vmul.f32 %v12317_v0, %v4511_v59  ;;  %v4293_v62 = vpop.f32.mrf.mxu0 }
 0x3ba   :  { %v4462_v31 = vpop.f32.mrf.mxu1  ;;  %7160 = vmatpush2.bf16.msra.mxu1 %v12049_v56  ;;  %v4286_v14 = vadd.f32 %v4285_v39, %v15320_v4  ;;  %v4516_v39 = vld [vmem:[%s17809_s1 + $0xc8] sm:$0xff] }
 0x3bb   :  { %12324 = vpow2.f32 %v4603_v10  ;;  %v4548_v16 = vmul.f32 0.5, %v4459_v6  ;;  %10196 = vst [vmem:[%s17808_s11 + $0x198] sm:$0xff] %v4459_v6  ;;  %v15990_v11 = vadd.f32 %v4462_v31, %v4270_v37  ;;  %5036 = vmatmul.mubr.bf16.gmra.mxu0 %v4692_v45  ;;  %v4671_v58 = vadd.f32 %v4639_v3, %v15854_v28  ;;  %v4513_v28 = vld [vmem:[%s17809_s1 + $0xb0] sm:$0xff]  ;;  %v4515_v37 = vld [vmem:[%s17809_s1 + $0xc0] sm:$0xff] }
 0x3bc   :  { %v12319_v55 = vpop.eup %12318  ;;  %5229 = vmatmul.mubr.bf16.gmra.mxu1 %v4692_v45  ;;  %v4464_v18 = vpop.f32.mrf.mxu1  ;;  %5045 = vmatprep.mubr.bf16.mxu0 %v17993_v5  ;;  %v12054_v10 = vld [vmem:[%s17807_s8 + $0x194] ss:$28 sps:$4 sm:$0xff]   ;;  %v4290_v31 = vadd.f32 %v4289_v27, %v15317_v15 }
 0x3bd   :  { %v4605_v30 = vmul.f32 1.442695, %v4548_v16  ;;  %10197 = vst [vmem:[%s17808_s11 + $0x1a0] sm:$0xff] %v15990_v11  ;;  %v4465_v42 = vadd.f32 %v4464_v18, %v4272_v2  ;;  %5238 = vmatprep.mubr.bf16.mxu1 %v17993_v5  ;;  %v4640_v22 = vmul.f32 %v12319_v55, %v4512_v49  ;;  %v12057_v45 = vld [vmem:[%s17807_s8 + $0x514] ss:$28 sps:$4 sm:$0xff]   ;;  %7322 = vmatprep.subr.bf16.mxu0 %v12054_v10  ;;  %v4295_v18 = vpop.f32.mrf.mxu0 }
 0x3be   :  { %v4466_v51 = vpop.f32.mrf.mxu1  ;;  %7515 = vmatprep.subr.bf16.mxu1 %v12057_v45  ;;  %v4292_v55 = vadd.f32 %v4291_v20, %v15320_v4  ;;  %v4519_v20 = vld [vmem:[%s17809_s1 + $0xe0] sm:$0xff]  ;;  %v18025_v45 = vld [vmem:[#allocation7_spill] sm:$0xff] }
 0x3bf   :  { %12326 = vpow2.f32 %v4605_v30  ;;  %v4549_v57 = vmul.f32 0.5, %v4465_v42  ;;  %10198 = vst [vmem:[%s17808_s11 + $0x1a8] sm:$0xff] %v4465_v42  ;;  %v16018_v17 = vadd.f32 %v4466_v51, %v4274_v34  ;;  %v4672_v36 = vadd.f32 %v4640_v22, %v15881_v33 }
 0x3c0   :  { %v12321_v48 = vpop.eup %12320  ;;  %v4468_v50 = vpop.f32.mrf.mxu1  ;;  %v4294_v22 = vadd.f32 %v4293_v62, %v15317_v15  ;;  %v4296_v51 = vadd.f32 %v4295_v18, %v15320_v4 }
 0x3c1   :  { %v4607_v46 = vmul.f32 1.442695, %v4549_v57  ;;  %10199 = vst [vmem:[%s17808_s11 + $0x1b0] sm:$0xff] %v16018_v17  ;;  %v4469_v21 = vadd.f32 %v4468_v50, %v4276_v7  ;;  %v4693_v33 = vpack.c.bf16 %v4672_v36, %v4671_v58  ;;  %v4641_v29 = vmul.f32 %v12321_v48, %v4513_v28  ;;  %v4517_v48 = vld [vmem:[%s17809_s1 + $0xd0] sm:$0xff] }
 0x3c2   :  { %v4472_v8 = vpop.f32.mrf.mxu1 }
 0x3c3   :  { %12328 = vpow2.f32 %v4607_v46  ;;  %v4550_v52 = vmul.f32 0.5, %v4469_v21  ;;  %10200 = vst [vmem:[%s17808_s11 + $0x1b8] sm:$0xff] %v4469_v21  ;;  %v16038_v26 = vadd.f32 %v4472_v8, %v4280_v32  ;;  %5046 = vmatmul.mubr.bf16.gmra.mxu0 %v4693_v33  ;;  %v4673_v25 = vadd.f32 %v4641_v29, %v15906_v19  ;;  %v4518_v32 = vld [vmem:[%s17809_s1 + $0xd8] sm:$0xff] }
 0x3c4   :  { %v12323_v12 = vpop.eup %12322  ;;  %5239 = vmatmul.mubr.bf16.gmra.mxu1 %v4693_v33  ;;  %v4474_v24 = vpop.f32.mrf.mxu1  ;;  %5055 = vmatprep.mubr.bf16.mxu0 %v17993_v5 }
 0x3c5   :  { %v4609_v1 = vmul.f32 1.442695, %v4550_v52  ;;  %10201 = vst [vmem:[%s17808_s11 + $0x1c0] sm:$0xff] %v16038_v26  ;;  %v4475_v60 = vadd.f32 %v4474_v24, %v4282_v40  ;;  %5248 = vmatprep.mubr.bf16.mxu1 %v17993_v5  ;;  %v4642_v44 = vmul.f32 %v12323_v12, %v4514_v9  ;;  %v4520_v12 = vld [vmem:[%s17809_s1 + $0xe8] sm:$0xff] }
 0x3c6   :  { %v4476_v59 = vpop.f32.mrf.mxu1 }
 0x3c7   :  { %12330 = vpow2.f32 %v4609_v1  ;;  %v4551_v53 = vmul.f32 0.5, %v4475_v60  ;;  %10202 = vst [vmem:[%s17808_s11 + $0x1c8] sm:$0xff] %v4475_v60  ;;  %v16053_v0 = vadd.f32 %v4476_v59, %v4284_v35  ;;  %v4674_v47 = vadd.f32 %v4642_v44, %v15924_v54  ;;  %v4521_v44 = vld [vmem:[%s17809_s1 + $0xf0] sm:$0xff]  ;;  %v4522_v59 = vld [vmem:[%s17809_s1 + $0xf8] sm:$0xff] }
 0x3c8   :  { %v12325_v19 = vpop.eup %12324  ;;  %v4478_v6 = vpop.f32.mrf.mxu1 }
 0x3c9   :  { %v4611_v49 = vmul.f32 1.442695, %v4551_v53  ;;  %10203 = vst [vmem:[%s17808_s11 + $0x1d0] sm:$0xff] %v16053_v0  ;;  %v4479_v54 = vadd.f32 %v4478_v6, %v4286_v14  ;;  %v4694_v3 = vpack.c.bf16 %v4674_v47, %v4673_v25  ;;  %v4643_v16 = vmul.f32 %v12325_v19, %v4515_v37  ;;  %v4731_v37 = vld [vmem:[%s17810_s7] sm:$0xf] }
 0x3ca   :  { %v4482_v2 = vpop.f32.mrf.mxu1  ;;  %v16131_v6 = vrot.slane %v4731_v37, %v18024_v13 }
 0x3cb   :  { %12332 = vpow2.f32 %v4611_v49  ;;  %v4552_v43 = vmul.f32 0.5, %v4479_v54  ;;  %10204 = vst [vmem:[%s17808_s11 + $0x1d8] sm:$0xff] %v4479_v54  ;;  %v16077_v34 = vadd.f32 %v4482_v2, %v4290_v31  ;;  %5056 = vmatmul.mubr.bf16.gmra.mxu0 %v4694_v3  ;;  %v4675_v56 = vadd.f32 %v4643_v16, %v15946_v23  ;;  %v18026_v49 = vld [vmem:[#allocation6_spill] sm:$0xff] }
 0x3cc   :  { %v12327_v30 = vpop.eup %12326  ;;  %5249 = vmatmul.mubr.bf16.gmra.mxu1 %v4694_v3  ;;  %v4484_v42 = vpop.f32.mrf.mxu1  ;;  %5065 = vmatprep.mubr.bf16.mxu0 %v17993_v5  ;;  %v16134_v31 = vrot.slane %v4731_v37, %v18025_v45  ;;  %v16140_v54 = vrot.slane %v4731_v37, %v18026_v49 }
 0x3cd   :  { %v4613_v41 = vmul.f32 1.442695, %v4552_v43  ;;  %10205 = vst [vmem:[%s17808_s11 + $0x1e0] sm:$0xff] %v16077_v34  ;;  %v4485_v63 = vadd.f32 %v4484_v42, %v4292_v55  ;;  %5258 = vmatprep.mubr.bf16.mxu1 %v17993_v5  ;;  %v4644_v7 = vmul.f32 %v12327_v30, %v4516_v39 }
 0x3ce   :  { %v4486_v58 = vpop.f32.mrf.mxu1 }
 0x3cf   :  { %12334 = vpow2.f32 %v4613_v41  ;;  %v4553_v27 = vmul.f32 0.5, %v4485_v63  ;;  %10206 = vst [vmem:[%s17808_s11 + $0x1e8] sm:$0xff] %v4485_v63  ;;  %v4487_v15 = vadd.f32 %v4486_v58, %v4294_v22  ;;  %v4676_v57 = vadd.f32 %v4644_v7, %v15964_v38 }
 0x3d0   :  { %v12329_v36 = vpop.eup %12328  ;;  %v4488_v28 = vpop.f32.mrf.mxu1 }
 0x3d1   :  { %v4615_v50 = vmul.f32 1.442695, %v4553_v27  ;;  %10207 = vst [vmem:[%s17808_s11 + $0x1f0] sm:$0xff] %v4487_v15  ;;  %v4489_v4 = vadd.f32 %v4488_v28, %v4296_v51  ;;  %v4695_v23 = vpack.c.bf16 %v4676_v57, %v4675_v56  ;;  %v4645_v38 = vmul.f32 %v12329_v36, %v4517_v48 }
 0x3d3   :  { %12336 = vpow2.f32 %v4615_v50  ;;  %v4554_v46 = vmul.f32 0.5, %v4489_v4  ;;  %10208 = vst [vmem:[%s17808_s11 + $0x1f8] sm:$0xff] %v4489_v4  ;;  %5066 = vmatmul.mubr.bf16.gmra.mxu0 %v4695_v23  ;;  %v4677_v9 = vadd.f32 %v4645_v38, %v15990_v11  ;;  %v12052_v38 = vld [vmem:[%s17807_s8 + $0x190] ss:$28 sps:$4 sm:$0xff]  }
 0x3d4   :  { %v12331_v21 = vpop.eup %12330  ;;  %5259 = vmatmul.mubr.bf16.gmra.mxu1 %v4695_v23  ;;  %5075 = vmatprep.mubr.bf16.mxu0 %v17993_v5 }
 0x3d5   :  { %v4617_v33 = vmul.f32 1.442695, %v4554_v46  ;;  %5268 = vmatprep.mubr.bf16.mxu1 %v17993_v5  ;;  %v4646_v8 = vmul.f32 %v12331_v21, %v4518_v32  ;;  %v12055_v21 = vld [vmem:[%s17807_s8 + $0x510] ss:$28 sps:$4 sm:$0xff]  }
 0x3d7   :  { %12338 = vpow2.f32 %v4617_v33  ;;  %v4678_v29 = vadd.f32 %v4646_v8, %v16018_v17 }
 0x3d8   :  { %v12333_v40 = vpop.eup %12332 }
 0x3d9   :  { %v4696_v52 = vpack.c.bf16 %v4678_v29, %v4677_v9  ;;  %v4647_v24 = vmul.f32 %v12333_v40, %v4519_v20  ;;  %v12060_v20 = vld [vmem:[%s17807_s8 + $0x15c] ss:$28 sps:$4 sm:$0xff]  }
 0x3db   :  { %5076 = vmatmul.mubr.bf16.gmra.mxu0 %v4696_v52  ;;  %v4679_v17 = vadd.f32 %v4647_v24, %v16038_v26 }
 0x3dc   :  { %v12335_v35 = vpop.eup %12334  ;;  %5269 = vmatmul.mubr.bf16.gmra.mxu1 %v4696_v52  ;;  %5085 = vmatprep.mubr.bf16.mxu0 %v17993_v5  ;;  %v12063_v52 = vld [vmem:[%s17807_s8 + $0x4dc] ss:$28 sps:$4 sm:$0xff]  }
 0x3dd   :  { %5278 = vmatprep.mubr.bf16.mxu1 %v17993_v5  ;;  %v4648_v11 = vmul.f32 %v12335_v35, %v4520_v12 }
 0x3df   :  { %v4680_v1 = vadd.f32 %v4648_v11, %v16053_v0 }
 0x3e0   :  { %v12337_v60 = vpop.eup %12336 }
 0x3e1   :  { %v4697_v14 = vpack.c.bf16 %v4680_v1, %v4679_v17  ;;  %v4649_v25 = vmul.f32 %v12337_v60, %v4521_v44 }
 0x3e3   :  { %5086 = vmatmul.mubr.bf16.gmra.mxu0 %v4697_v14  ;;  %v4681_v53 = vadd.f32 %v4649_v25, %v16077_v34 }
 0x3e4   :  { %v12339_v62 = vpop.eup %12338  ;;  %5279 = vmatmul.mubr.bf16.gmra.mxu1 %v4697_v14  ;;  %5095 = vmatprep.mubr.bf16.mxu0 %v17993_v5 }
 0x3e5   :  { %5288 = vmatprep.mubr.bf16.mxu1 %v17993_v5  ;;  %v4650_v26 = vmul.f32 %v12339_v62, %v4522_v59  ;;  %v16137_v5 = vrot.slane %v4731_v37, %v18023_v61  ;;  %v12058_v59 = vld [vmem:[%s17807_s8 + $0x158] ss:$28 sps:$4 sm:$0xff]  }
 0x3e7   :  { %v4682_v0 = vadd.f32 %v4650_v26, %v4487_v15 }
 0x3e9   :  { %v4698_v47 = vpack.c.bf16 %v4682_v0, %v4681_v53  ;;  %v12061_v0 = vld [vmem:[%s17807_s8 + $0x4d8] ss:$28 sps:$4 sm:$0xff]  }
 0x3eb   :  { %5096 = vmatmul.mubr.bf16.gmra.mxu0 %v4698_v47 }
 0x3ec   :  { %5289 = vmatmul.mubr.bf16.gmra.mxu1 %v4698_v47  ;;  %v12066_v47 = vld [vmem:[%s17807_s8 + $0x124] ss:$28 sps:$4 sm:$0xff]  }
 0x433   :  { %v4947_v10 = vpop.f32.mrf.mxu0  ;;  %v5140_v19 = vpop.f32.mrf.mxu1 }
 0x434   :  { %v4948_v30 = vadd.f32 %v4947_v10, %v16137_v5  ;;  %v5141_v42 = vadd.f32 %v5140_v19, %v16140_v54 }
 0x435   :  { %v4949_v3 = vpop.f32.mrf.mxu0  ;;  %v5142_v2 = vpop.f32.mrf.mxu1 }
 0x436   :  { %v4950_v55 = vadd.f32 %v4949_v3, %v16131_v6  ;;  %v5143_v18 = vadd.f32 %v5142_v2, %v16134_v31  ;;  %v5299_v48 = vmax.f32 %v4948_v30, 0.0  ;;  %v5301_v50 = vmax.f32 %v5141_v42, 0.0  ;;  %v12069_v30 = vld [vmem:[%s17807_s8 + $0x4a4] ss:$28 sps:$4 sm:$0xff]  }
 0x437   :  { %v4951_v39 = vpop.f32.mrf.mxu0  ;;  %v5144_v16 = vpop.f32.mrf.mxu1 }
 0x438   :  { %v4952_v43 = vadd.f32 %v4951_v39, %v16137_v5  ;;  %v5145_v34 = vadd.f32 %v5144_v16, %v16140_v54  ;;  %v5300_v15 = vmax.f32 %v4950_v55, 0.0  ;;  %v5302_v57 = vmax.f32 %v5143_v18, 0.0 }
 0x439   :  { %v4953_v22 = vpop.f32.mrf.mxu0  ;;  %v5146_v41 = vpop.f32.mrf.mxu1 }
 0x43a   :  { %v4954_v63 = vadd.f32 %v4953_v22, %v16131_v6  ;;  %v5147_v7 = vadd.f32 %v5146_v41, %v16134_v31  ;;  %v5303_v51 = vmax.f32 %v4952_v43, 0.0  ;;  %v5305_v58 = vmax.f32 %v5145_v34, 0.0  ;;  %v12064_v34 = vld [vmem:[%s17807_s8 + $0x120] ss:$28 sps:$4 sm:$0xff]  }
 0x43b   :  { %v4957_v56 = vpop.f32.mrf.mxu0  ;;  %v5150_v27 = vpop.f32.mrf.mxu1 }
 0x43c   :  { %v5304_v36 = vmax.f32 %v4954_v63, 0.0  ;;  %v5306_v28 = vmax.f32 %v5147_v7, 0.0  ;;  %v16160_v33 = vpack.c.bf16 %v5303_v51, %v5299_v48  ;;  %v16162_v8 = vpack.c.bf16 %v5305_v58, %v5301_v50  ;;  %v12067_v51 = vld [vmem:[%s17807_s8 + $0x4a0] ss:$28 sps:$4 sm:$0xff]   ;;  %v12072_v58 = vld [vmem:[%s17807_s8 + $0xec] ss:$28 sps:$4 sm:$0xff]  }
 0x43d   :  { %v4959_v4 = vpop.f32.mrf.mxu0  ;;  %v5152_v23 = vpop.f32.mrf.mxu1  ;;  %v4958_v11 = vadd.f32 %v4957_v56, %v16137_v5  ;;  %v5151_v17 = vadd.f32 %v5150_v27, %v16140_v54 }
 0x43e   :  { %v16150_v32 = vpack.c.bf16 %v5304_v36, %v5300_v15  ;;  %v16152_v46 = vpack.c.bf16 %v5306_v28, %v5302_v57  ;;  %v4960_v9 = vadd.f32 %v4959_v4, %v16131_v6  ;;  %v5153_v12 = vadd.f32 %v5152_v23, %v16134_v31  ;;  %v12075_v57 = vld [vmem:[%s17807_s8 + $0x46c] ss:$28 sps:$4 sm:$0xff]  }
 0x43f   :  { %v4961_v29 = vpop.f32.mrf.mxu0  ;;  %v5154_v40 = vpop.f32.mrf.mxu1  ;;  %v5307_v2 = vmax.f32 %v4958_v11, 0.0  ;;  %v5309_v39 = vmax.f32 %v5151_v17, 0.0 }
 0x440   :  { %v4962_v24 = vadd.f32 %v4961_v29, %v16137_v5  ;;  %v5155_v35 = vadd.f32 %v5154_v40, %v16140_v54  ;;  %6968 = vmatprep.mubr.bf16.mxu0 %v16150_v32  ;;  %7161 = vmatprep.mubr.bf16.mxu1 %v16152_v46  ;;  %v5308_v37 = vmax.f32 %v4960_v9, 0.0  ;;  %v5310_v10 = vmax.f32 %v5153_v12, 0.0 }
 0x441   :  { %v4963_v1 = vpop.f32.mrf.mxu0  ;;  %v5156_v60 = vpop.f32.mrf.mxu1  ;;  %6969 = vmatmul.mubr.bf16.vlgmr.msra.gmra.mxu0 %v16160_v33  ;;  %7162 = vmatmul.mubr.bf16.vlgmr.msra.gmra.mxu1 %v16162_v8 }
 0x442   :  { %v4964_v44 = vadd.f32 %v4963_v1, %v16131_v6  ;;  %v5157_v14 = vadd.f32 %v5156_v60, %v16134_v31  ;;  %7323 = vmatpush1.bf16.msra.mxu0 %v12052_v38  ;;  %7516 = vmatpush1.bf16.msra.mxu1 %v12055_v21  ;;  %v5311_v25 = vmax.f32 %v4962_v24, 0.0  ;;  %v5313_v62 = vmax.f32 %v5155_v35, 0.0  ;;  %v12070_v38 = vld [vmem:[%s17807_s8 + $0xe8] ss:$28 sps:$4 sm:$0xff]  }
 0x443   :  { %v4967_v26 = vpop.f32.mrf.mxu0  ;;  %7324 = vmatprep.subr.bf16.mxu0 %v12060_v20  ;;  %7517 = vmatprep.subr.bf16.mxu1 %v12063_v52  ;;  %v12073_v20 = vld [vmem:[%s17807_s8 + $0x468] ss:$28 sps:$4 sm:$0xff]   ;;  %v12078_v52 = vld [vmem:[%s17807_s8 + $0xb4] ss:$28 sps:$4 sm:$0xff]  }
 0x444   :  { %v5160_v53 = vpop.f32.mrf.mxu1  ;;  %v5312_v19 = vmax.f32 %v4964_v44, 0.0  ;;  %v5314_v3 = vmax.f32 %v5157_v14, 0.0  ;;  %v16201_v42 = vpack.c.bf16 %v5311_v25, %v5307_v2  ;;  %v16203_v22 = vpack.c.bf16 %v5313_v62, %v5309_v39  ;;  %v12076_v25 = vld [vmem:[%s17807_s8 + $0xb0] ss:$28 sps:$4 sm:$0xff]  }
 0x445   :  { %v4969_v16 = vpop.f32.mrf.mxu0  ;;  %v4968_v36 = vadd.f32 %v4967_v26, %v16137_v5  ;;  %v5161_v28 = vadd.f32 %v5160_v53, %v16140_v54  ;;  %v12081_v62 = vld [vmem:[%s17807_s8 + $0x434] ss:$28 sps:$4 sm:$0xff]  }
 0x446   :  { %v5162_v55 = vpop.f32.mrf.mxu1  ;;  %v16191_v18 = vpack.c.bf16 %v5312_v19, %v5308_v37  ;;  %v16193_v43 = vpack.c.bf16 %v5314_v3, %v5310_v10  ;;  %7325 = vmatpush1.bf16.msra.mxu0 %v12058_v59  ;;  %v4970_v41 = vadd.f32 %v4969_v16, %v16131_v6  ;;  %7518 = vmatpush1.bf16.msra.mxu1 %v12061_v0  ;;  %v12079_v10 = vld [vmem:[%s17807_s8 + $0x430] ss:$28 sps:$4 sm:$0xff]   ;;  %v12084_v19 = vld [vmem:[%s17807_s8 + $0x7c] ss:$28 sps:$4 sm:$0xff]  }
 0x447   :  { %v4971_v63 = vpop.f32.mrf.mxu0  ;;  %7326 = vmatprep.subr.bf16.mxu0 %v12066_v47  ;;  %v5163_v56 = vadd.f32 %v5162_v55, %v16134_v31  ;;  %7519 = vmatprep.subr.bf16.mxu1 %v12069_v30  ;;  %v5315_v17 = vmax.f32 %v4968_v36, 0.0  ;;  %v5317_v1 = vmax.f32 %v5161_v28, 0.0  ;;  %v12087_v16 = vld [vmem:[%s17807_s8 + $0x3fc] ss:$28 sps:$4 sm:$0xff]   ;;  %v12090_v36 = vld [vmem:[%s17807_s8 + $0x44] ss:$28 sps:$4 sm:$0xff]  }
 0x448   :  { %v5164_v7 = vpop.f32.mrf.mxu1  ;;  %v4972_v27 = vadd.f32 %v4971_v63, %v16137_v5  ;;  %6978 = vmatprep.mubr.bf16.mxu0 %v16191_v18  ;;  %7171 = vmatprep.mubr.bf16.mxu1 %v16193_v43  ;;  %v5316_v12 = vmax.f32 %v4970_v41, 0.0 }
 0x449   :  { %v5165_v15 = vadd.f32 %v5164_v7, %v16140_v54  ;;  %v4973_v48 = vpop.f32.mrf.mxu0  ;;  %6979 = vmatmul.mubr.bf16.gmra.mxu0 %v16201_v42  ;;  %7172 = vmatmul.mubr.bf16.gmra.mxu1 %v16203_v22  ;;  %v5318_v24 = vmax.f32 %v5163_v56, 0.0 }
 0x44a   :  { %v5166_v50 = vpop.f32.mrf.mxu1  ;;  %v4974_v4 = vadd.f32 %v4973_v48, %v16131_v6  ;;  %7327 = vmatpush1.bf16.msra.mxu0 %v12064_v34  ;;  %v5319_v21 = vmax.f32 %v4972_v27, 0.0  ;;  %7520 = vmatpush1.bf16.msra.mxu1 %v12067_v51  ;;  %v12082_v51 = vld [vmem:[%s17807_s8 + $0x78] ss:$28 sps:$4 sm:$0xff]  }
 0x44b   :  { %v5167_v23 = vadd.f32 %v5166_v50, %v16134_v31  ;;  %v5321_v9 = vmax.f32 %v5165_v15, 0.0  ;;  %v4977_v29 = vpop.f32.mrf.mxu0  ;;  %7328 = vmatprep.subr.bf16.mxu0 %v12072_v58  ;;  %7521 = vmatprep.subr.bf16.mxu1 %v12075_v57  ;;  %v12085_v57 = vld [vmem:[%s17807_s8 + $0x3f8] ss:$28 sps:$4 sm:$0xff]  }
 0x44c   :  { %v5170_v40 = vpop.f32.mrf.mxu1  ;;  %v5320_v35 = vmax.f32 %v4974_v4, 0.0  ;;  %v16245_v26 = vpack.c.bf16 %v5319_v21, %v5315_v17  ;;  %v4978_v55 = vadd.f32 %v4977_v29, %v16137_v5 }
 0x44d   :  { %v5322_v11 = vmax.f32 %v5167_v23, 0.0  ;;  %v4979_v60 = vpop.f32.mrf.mxu0  ;;  %v16247_v53 = vpack.c.bf16 %v5321_v9, %v5317_v1  ;;  %v5171_v34 = vadd.f32 %v5170_v40, %v16140_v54  ;;  %v12091_v1 = vld [vmem:[%s17807_s8 + $0x3c0] ss:$28 sps:$4 sm:$0xff]  }
 0x44e   :  { %v5172_v44 = vpop.f32.mrf.mxu1  ;;  %v16235_v14 = vpack.c.bf16 %v5320_v35, %v5316_v12  ;;  %7329 = vmatpush1.bf16.msra.mxu0 %v12070_v38  ;;  %v4980_v0 = vadd.f32 %v4979_v60, %v16131_v6  ;;  %7522 = vmatpush1.bf16.msra.mxu1 %v12073_v20  ;;  %v5323_v23 = vmax.f32 %v4978_v55, 0.0  ;;  %v12088_v20 = vld [vmem:[%s17807_s8 + $0x40] ss:$28 sps:$4 sm:$0xff]   ;;  %v12096_v60 = vld [vmem:[%s17807_s8 + $0xc] ss:$28 sps:$4 sm:$0xff]  }
 0x44f   :  { %v16237_v59 = vpack.c.bf16 %v5322_v11, %v5318_v24  ;;  %v4981_v47 = vpop.f32.mrf.mxu0  ;;  %7330 = vmatprep.subr.bf16.mxu0 %v12078_v52  ;;  %v5173_v3 = vadd.f32 %v5172_v44, %v16134_v31  ;;  %7523 = vmatprep.subr.bf16.mxu1 %v12081_v62  ;;  %v5325_v38 = vmax.f32 %v5171_v34, 0.0  ;;  %v12093_v52 = vld [vmem:[%s17807_s8 + $0x3c4] ss:$28 sps:$4 sm:$0xff]  }
 0x450   :  { %v5174_v37 = vpop.f32.mrf.mxu1  ;;  %v4982_v2 = vadd.f32 %v4981_v47, %v16137_v5  ;;  %6988 = vmatprep.mubr.bf16.mxu0 %v16235_v14  ;;  %v5324_v28 = vmax.f32 %v4980_v0, 0.0  ;;  %v12099_v0 = vld [vmem:[%s17807_s8 + $0x38c] ss:$28 sps:$4 sm:$0xff]  }
 0x451   :  { %v5175_v39 = vadd.f32 %v5174_v37, %v16140_v54  ;;  %7181 = vmatprep.mubr.bf16.mxu1 %v16237_v59  ;;  %v4983_v30 = vpop.f32.mrf.mxu0  ;;  %6989 = vmatmul.mubr.bf16.gmra.mxu0 %v16245_v26  ;;  %v5326_v48 = vmax.f32 %v5173_v3, 0.0 }
 0x452   :  { %v5176_v41 = vpop.f32.mrf.mxu1  ;;  %7182 = vmatmul.mubr.bf16.gmra.mxu1 %v16247_v53  ;;  %v4984_v63 = vadd.f32 %v4983_v30, %v16131_v6  ;;  %7331 = vmatpush1.bf16.msra.mxu0 %v12076_v25  ;;  %v5327_v58 = vmax.f32 %v4982_v2, 0.0 }
 0x453   :  { %v5177_v7 = vadd.f32 %v5176_v41, %v16134_v31  ;;  %v5329_v56 = vmax.f32 %v5175_v39, 0.0  ;;  %v4987_v27 = vpop.f32.mrf.mxu0  ;;  %7524 = vmatpush1.bf16.msra.mxu1 %v12079_v10  ;;  %7332 = vmatprep.subr.bf16.mxu0 %v12084_v19  ;;  %v12094_v39 = vld [vmem:[%s17807_s8 + $0x8] ss:$28 sps:$4 sm:$0xff]  }
 0x454   :  { %v5180_v15 = vpop.f32.mrf.mxu1  ;;  %v5328_v50 = vmax.f32 %v4984_v63, 0.0  ;;  %7525 = vmatprep.subr.bf16.mxu1 %v12087_v16  ;;  %v16289_v12 = vpack.c.bf16 %v5327_v58, %v5323_v23  ;;  %v4988_v47 = vadd.f32 %v4987_v27, %v16137_v5  ;;  %v12097_v41 = vld [vmem:[%s17807_s8 + $0x388] ss:$28 sps:$4 sm:$0xff]   ;;  %v12102_v63 = vld [vmem:[%s17807_s8 + $0x354] ss:$28 sps:$4 sm:$0xff]  }
 0x455   :  { %v5330_v4 = vmax.f32 %v5177_v7, 0.0  ;;  %v4989_v21 = vpop.f32.mrf.mxu0  ;;  %v16291_v24 = vpack.c.bf16 %v5329_v56, %v5325_v38  ;;  %v5181_v37 = vadd.f32 %v5180_v15, %v16140_v54 }
 0x456   :  { %v5182_v9 = vpop.f32.mrf.mxu1  ;;  %v16279_v29 = vpack.c.bf16 %v5328_v50, %v5324_v28  ;;  %7333 = vmatpush1.bf16.msra.mxu0 %v12082_v51  ;;  %v4990_v35 = vadd.f32 %v4989_v21, %v16131_v6  ;;  %v5331_v27 = vmax.f32 %v4988_v47, 0.0  ;;  %v12100_v50 = vld [vmem:[%s17807_s8 + $0x350] ss:$28 sps:$4 sm:$0xff]  }
 0x457   :  { %v16281_v40 = vpack.c.bf16 %v5330_v4, %v5326_v48  ;;  %v4991_v11 = vpop.f32.mrf.mxu0  ;;  %7526 = vmatpush1.bf16.msra.mxu1 %v12085_v57  ;;  %7334 = vmatprep.subr.bf16.mxu0 %v12090_v36  ;;  %v5183_v44 = vadd.f32 %v5182_v9, %v16134_v31  ;;  %v5333_v15 = vmax.f32 %v5181_v37, 0.0  ;;  %v12105_v4 = vld [vmem:[%s17807_s8 + $0x6d4] ss:$28 sps:$4 sm:$0xff]  }
 0x458   :  { %v5184_v17 = vpop.f32.mrf.mxu1  ;;  %v4992_v25 = vadd.f32 %v4991_v11, %v16137_v5  ;;  %6998 = vmatprep.mubr.bf16.mxu0 %v16279_v29  ;;  %7527 = vmatprep.subr.bf16.mxu1 %v12093_v52  ;;  %v5332_v7 = vmax.f32 %v4990_v35, 0.0  ;;  %v12103_v52 = vld [vmem:[%s17807_s8 + $0x6d0] ss:$28 sps:$4 sm:$0xff]   ;;  %v12108_v35 = vld [vmem:[%s17807_s8 + $0x31c] ss:$28 sps:$4 sm:$0xff]  }
 0x459   :  { %v5185_v62 = vadd.f32 %v5184_v17, %v16140_v54  ;;  %7191 = vmatprep.mubr.bf16.mxu1 %v16281_v40  ;;  %v4993_v10 = vpop.f32.mrf.mxu0  ;;  %6999 = vmatmul.mubr.bf16.gmra.mxu0 %v16289_v12  ;;  %v5334_v51 = vmax.f32 %v5183_v44, 0.0 }
 0x45a   :  { %v5186_v19 = vpop.f32.mrf.mxu1  ;;  %7192 = vmatmul.mubr.bf16.gmra.mxu1 %v16291_v24  ;;  %v4994_v3 = vadd.f32 %v4993_v10, %v16131_v6  ;;  %7335 = vmatpush1.bf16.msra.mxu0 %v12088_v20  ;;  %v5335_v16 = vmax.f32 %v4992_v25, 0.0  ;;  %v12106_v10 = vld [vmem:[%s17807_s8 + $0x318] ss:$28 sps:$4 sm:$0xff]  }
 0x45b   :  { %v5187_v2 = vadd.f32 %v5186_v19, %v16134_v31  ;;  %v5337_v55 = vmax.f32 %v5185_v62, 0.0  ;;  %v4997_v34 = vpop.f32.mrf.mxu0  ;;  %7528 = vmatpush1.bf16.msra.mxu1 %v12091_v1  ;;  %7336 = vmatprep.subr.bf16.mxu0 %v12096_v60  ;;  %v12111_v60 = vld [vmem:[%s17807_s8 + $0x69c] ss:$28 sps:$4 sm:$0xff]  }
 0x45c   :  { %v5190_v30 = vpop.f32.mrf.mxu1  ;;  %v5336_v58 = vmax.f32 %v4994_v3, 0.0  ;;  %7529 = vmatprep.subr.bf16.mxu1 %v12099_v0  ;;  %v16333_v23 = vpack.c.bf16 %v5335_v16, %v5331_v27  ;;  %v4998_v44 = vadd.f32 %v4997_v34, %v16137_v5  ;;  %v12109_v16 = vld [vmem:[%s17807_s8 + $0x698] ss:$28 sps:$4 sm:$0xff]  }
 0x45d   :  { %v5338_v56 = vmax.f32 %v5187_v2, 0.0  ;;  %v4999_v57 = vpop.f32.mrf.mxu0  ;;  %v16335_v38 = vpack.c.bf16 %v5337_v55, %v5333_v15  ;;  %v5191_v25 = vadd.f32 %v5190_v30, %v16140_v54  ;;  %v12114_v55 = vld [vmem:[%s17807_s8 + $0x2e4] ss:$28 sps:$4 sm:$0xff]  }
 0x45e   :  { %v5192_v36 = vpop.f32.mrf.mxu1  ;;  %v16323_v28 = vpack.c.bf16 %v5336_v58, %v5332_v7  ;;  %7337 = vmatpush1.bf16.msra.mxu0 %v12094_v39  ;;  %v5000_v21 = vadd.f32 %v4999_v57, %v16131_v6  ;;  %v5339_v7 = vmax.f32 %v4998_v44, 0.0  ;;  %v12112_v57 = vld [vmem:[%s17807_s8 + $0x2e0] ss:$28 sps:$4 sm:$0xff]  }
 0x45f   :  { %v16325_v48 = vpack.c.bf16 %v5338_v56, %v5334_v51  ;;  %v5001_v9 = vpop.f32.mrf.mxu0  ;;  %7530 = vmatpush1.bf16.msra.mxu1 %v12097_v41  ;;  %7338 = vmatprep.subr.bf16.mxu0 %v12102_v63  ;;  %v5193_v11 = vadd.f32 %v5192_v36, %v16134_v31  ;;  %v5341_v51 = vmax.f32 %v5191_v25, 0.0  ;;  %v12117_v36 = vld [vmem:[%s17807_s8 + $0x664] ss:$28 sps:$4 sm:$0xff]  }
 0x460   :  { %v5194_v20 = vpop.f32.mrf.mxu1  ;;  %v5002_v17 = vadd.f32 %v5001_v9, %v16137_v5  ;;  %7008 = vmatprep.mubr.bf16.mxu0 %v16323_v28  ;;  %7531 = vmatprep.subr.bf16.mxu1 %v12105_v4  ;;  %v5340_v34 = vmax.f32 %v5000_v21, 0.0 }
 0x461   :  { %v5195_v1 = vadd.f32 %v5194_v20, %v16140_v54  ;;  %7201 = vmatprep.mubr.bf16.mxu1 %v16325_v48  ;;  %v5003_v62 = vpop.f32.mrf.mxu0  ;;  %7009 = vmatmul.mubr.bf16.gmra.mxu0 %v16333_v23  ;;  %v5342_v30 = vmax.f32 %v5193_v11, 0.0 }
 0x462   :  { %v5196_v0 = vpop.f32.mrf.mxu1  ;;  %7202 = vmatmul.mubr.bf16.gmra.mxu1 %v16335_v38  ;;  %v5004_v47 = vadd.f32 %v5003_v62, %v16131_v6  ;;  %7339 = vmatpush2.bf16.msra.mxu0 %v12100_v50  ;;  %v5343_v19 = vmax.f32 %v5002_v17, 0.0 }
 0x463   :  { %v5197_v37 = vadd.f32 %v5196_v0, %v16134_v31  ;;  %v5345_v3 = vmax.f32 %v5195_v1, 0.0  ;;  %v5007_v2 = vpop.f32.mrf.mxu0  ;;  %7532 = vmatpush2.bf16.msra.mxu1 %v12103_v52  ;;  %7340 = vmatprep.subr.bf16.mxu0 %v12108_v35  ;;  %v12115_v52 = vld [vmem:[%s17807_s8 + $0x660] ss:$28 sps:$4 sm:$0xff]   ;;  %v12120_v35 = vld [vmem:[%s17807_s8 + $0x2ac] ss:$28 sps:$4 sm:$0xff]  }
 0x464   :  { %v5200_v39 = vpop.f32.mrf.mxu1  ;;  %v5344_v41 = vmax.f32 %v5004_v47, 0.0  ;;  %7533 = vmatprep.subr.bf16.mxu1 %v12111_v60  ;;  %v16377_v50 = vpack.c.bf16 %v5343_v19, %v5339_v7  ;;  %v12123_v60 = vld [vmem:[%s17807_s8 + $0x62c] ss:$28 sps:$4 sm:$0xff]   ;;  %v5008_v44 = vadd.f32 %v5007_v2, %v16137_v5 }
 0x465   :  { %v5346_v63 = vmax.f32 %v5197_v37, 0.0  ;;  %v5009_v58 = vpop.f32.mrf.mxu0  ;;  %v16379_v4 = vpack.c.bf16 %v5345_v3, %v5341_v51  ;;  %v5201_v25 = vadd.f32 %v5200_v39, %v16140_v54 }
 0x466   :  { %v5202_v56 = vpop.f32.mrf.mxu1  ;;  %v16367_v27 = vpack.c.bf16 %v5344_v41, %v5340_v34  ;;  %7341 = vmatpush2.bf16.msra.mxu0 %v12106_v10  ;;  %v5010_v21 = vadd.f32 %v5009_v58, %v16131_v6  ;;  %v12118_v10 = vld [vmem:[%s17807_s8 + $0x2a8] ss:$28 sps:$4 sm:$0xff]   ;;  %v5347_v7 = vmax.f32 %v5008_v44, 0.0 }
 0x467   :  { %v16369_v15 = vpack.c.bf16 %v5346_v63, %v5342_v30  ;;  %v5011_v9 = vpop.f32.mrf.mxu0  ;;  %7534 = vmatpush2.bf16.msra.mxu1 %v12109_v16  ;;  %7342 = vmatprep.subr.bf16.mxu0 %v12114_v55  ;;  %v5203_v11 = vadd.f32 %v5202_v56, %v16134_v31  ;;  %v12121_v16 = vld [vmem:[%s17807_s8 + $0x628] ss:$28 sps:$4 sm:$0xff]   ;;  %v12126_v55 = vld [vmem:[%s17807_s8 + $0x274] ss:$28 sps:$4 sm:$0xff]   ;;  %v5349_v51 = vmax.f32 %v5201_v25, 0.0 }
 0x468   :  { %v5204_v20 = vpop.f32.mrf.mxu1  ;;  %v5012_v17 = vadd.f32 %v5011_v9, %v16137_v5  ;;  %7018 = vmatprep.mubr.bf16.mxu0 %v16367_v27  ;;  %7535 = vmatprep.subr.bf16.mxu1 %v12117_v36  ;;  %v5348_v34 = vmax.f32 %v5010_v21, 0.0  ;;  %v12124_v9 = vld [vmem:[%s17807_s8 + $0x270] ss:$28 sps:$4 sm:$0xff]  }
 0x469   :  { %v5205_v1 = vadd.f32 %v5204_v20, %v16140_v54  ;;  %7211 = vmatprep.mubr.bf16.mxu1 %v16369_v15  ;;  %v5013_v62 = vpop.f32.mrf.mxu0  ;;  %7019 = vmatmul.mubr.bf16.gmra.mxu0 %v16377_v50  ;;  %v5350_v30 = vmax.f32 %v5203_v11, 0.0  ;;  %v12129_v21 = vld [vmem:[%s17807_s8 + $0x5f4] ss:$28 sps:$4 sm:$0xff]  }
 0x46a   :  { %v5206_v0 = vpop.f32.mrf.mxu1  ;;  %7212 = vmatmul.mubr.bf16.gmra.mxu1 %v16379_v4  ;;  %v5014_v47 = vadd.f32 %v5013_v62, %v16131_v6  ;;  %7343 = vmatpush2.bf16.msra.mxu0 %v12112_v57  ;;  %v5351_v19 = vmax.f32 %v5012_v17, 0.0 }
 0x46b   :  { %v5207_v37 = vadd.f32 %v5206_v0, %v16134_v31  ;;  %v5353_v3 = vmax.f32 %v5205_v1, 0.0  ;;  %v5017_v2 = vpop.f32.mrf.mxu0  ;;  %7536 = vmatpush2.bf16.msra.mxu1 %v12115_v52  ;;  %7344 = vmatprep.subr.bf16.mxu0 %v12120_v35  ;;  %v12127_v1 = vld [vmem:[%s17807_s8 + $0x5f0] ss:$28 sps:$4 sm:$0xff]   ;;  %v12135_v0 = vld [vmem:[%s17807_s8 + $0x5bc] ss:$28 sps:$4 sm:$0xff]  }
 0x46c   :  { %v5210_v39 = vpop.f32.mrf.mxu1  ;;  %v5352_v41 = vmax.f32 %v5014_v47, 0.0  ;;  %7537 = vmatprep.subr.bf16.mxu1 %v12123_v60  ;;  %v16421_v20 = vpack.c.bf16 %v5351_v19, %v5347_v7  ;;  %v12132_v60 = vld [vmem:[%s17807_s8 + $0x23c] ss:$28 sps:$4 sm:$0xff]   ;;  %v5018_v47 = vadd.f32 %v5017_v2, %v16137_v5 }
 0x46d   :  { %v5354_v63 = vmax.f32 %v5207_v37, 0.0  ;;  %v5019_v58 = vpop.f32.mrf.mxu0  ;;  %v16423_v52 = vpack.c.bf16 %v5353_v3, %v5349_v51  ;;  %v5211_v37 = vadd.f32 %v5210_v39, %v16140_v54 }
 0x46e   :  { %v5212_v56 = vpop.f32.mrf.mxu1  ;;  %v16411_v57 = vpack.c.bf16 %v5352_v41, %v5348_v34  ;;  %7345 = vmatpush2.bf16.msra.mxu0 %v12118_v10  ;;  %v5020_v35 = vadd.f32 %v5019_v58, %v16131_v6  ;;  %v12133_v41 = vld [vmem:[%s17807_s8 + $0x5b8] ss:$28 sps:$4 sm:$0xff]  }
 0x46f   :  { %v16413_v36 = vpack.c.bf16 %v5354_v63, %v5350_v30  ;;  %v5021_v11 = vpop.f32.mrf.mxu0  ;;  %7538 = vmatpush2.bf16.msra.mxu1 %v12121_v16  ;;  %7346 = vmatprep.subr.bf16.mxu0 %v12126_v55  ;;  %v5213_v44 = vadd.f32 %v5212_v56, %v16134_v31  ;;  %v12130_v55 = vld [vmem:[%s17807_s8 + $0x238] ss:$28 sps:$4 sm:$0xff]   ;;  %v12138_v63 = vld [vmem:[%s17807_s8 + $0x204] ss:$28 sps:$4 sm:$0xff]  }
 0x470   :  { %v5214_v17 = vpop.f32.mrf.mxu1  ;;  %v5022_v25 = vadd.f32 %v5021_v11, %v16137_v5  ;;  %7028 = vmatprep.mubr.bf16.mxu0 %v16411_v57  ;;  %7539 = vmatprep.subr.bf16.mxu1 %v12129_v21  ;;  %v5356_v7 = vmax.f32 %v5020_v35, 0.0  ;;  %v5357_v21 = vmax.f32 %v5211_v37, 0.0  ;;  %v12141_v35 = vld [vmem:[%s17807_s8 + $0x584] ss:$28 sps:$4 sm:$0xff]  }
 0x471   :  { %v5215_v62 = vadd.f32 %v5214_v17, %v16140_v54  ;;  %7221 = vmatprep.mubr.bf16.mxu1 %v16413_v36  ;;  %v5023_v10 = vpop.f32.mrf.mxu0  ;;  %7029 = vmatmul.mubr.bf16.gmra.mxu0 %v16421_v20  ;;  %v5358_v51 = vmax.f32 %v5213_v44, 0.0 }
 0x472   :  { %v5216_v19 = vpop.f32.mrf.mxu1  ;;  %7222 = vmatmul.mubr.bf16.gmra.mxu1 %v16423_v52  ;;  %v5024_v3 = vadd.f32 %v5023_v10, %v16131_v6  ;;  %7347 = vmatpush2.bf16.msra.mxu0 %v12124_v9  ;;  %v5359_v34 = vmax.f32 %v5022_v25, 0.0  ;;  %v5355_v9 = vmax.f32 %v5018_v47, 0.0  ;;  %v12139_v10 = vld [vmem:[%s17807_s8 + $0x580] ss:$28 sps:$4 sm:$0xff]  }
 0x473   :  { %v5217_v16 = vadd.f32 %v5216_v19, %v16134_v31  ;;  %v5361_v2 = vmax.f32 %v5215_v62, 0.0  ;;  %v5027_v30 = vpop.f32.mrf.mxu0  ;;  %7540 = vmatpush2.bf16.msra.mxu1 %v12127_v1  ;;  %7348 = vmatprep.subr.bf16.mxu0 %v12132_v60  ;;  %v12136_v60 = vld [vmem:[%s17807_s8 + $0x200] ss:$28 sps:$4 sm:$0xff]   ;;  %v12144_v19 = vld [vmem:[%s17807_s8 + $0x1cc] ss:$28 sps:$4 sm:$0xff]  }
 0x474   :  { %v5220_v39 = vpop.f32.mrf.mxu1  ;;  %v5360_v58 = vmax.f32 %v5024_v3, 0.0  ;;  %7541 = vmatprep.subr.bf16.mxu1 %v12135_v0  ;;  %v16465_v44 = vpack.c.bf16 %v5359_v34, %v5355_v9  ;;  %v12147_v34 = vld [vmem:[%s17807_s8 + $0x54c] ss:$28 sps:$4 sm:$0xff]  }
 0x475   :  { %v5362_v56 = vmax.f32 %v5217_v16, 0.0  ;;  %v5029_v11 = vpop.f32.mrf.mxu0  ;;  %v16467_v62 = vpack.c.bf16 %v5361_v2, %v5357_v21  ;;  %v5028_v2 = vadd.f32 %v5027_v30, %v16137_v5 }
 0x476   :  { %v5222_v17 = vpop.f32.mrf.mxu1  ;;  %v16455_v25 = vpack.c.bf16 %v5360_v58, %v5356_v7  ;;  %7349 = vmatpush2.bf16.msra.mxu0 %v12130_v55  ;;  %18029 = vst [vmem:[#allocation5_spill] sm:$0xff] %v16465_v44  ;;  %v5030_v0 = vadd.f32 %v5029_v11, %v16131_v6  ;;  %v12145_v11 = vld [vmem:[%s17807_s8 + $0x548] ss:$28 sps:$4 sm:$0xff]  }
 0x477   :  { %v16457_v1 = vpack.c.bf16 %v5362_v56, %v5358_v51  ;;  %18030 = vst [vmem:[#allocation14_spill] sm:$0xff] %v16467_v62  ;;  %v5031_v47 = vpop.f32.mrf.mxu0  ;;  %7542 = vmatpush2.bf16.msra.mxu1 %v12133_v41  ;;  %7350 = vmatprep.subr.bf16.mxu0 %v12138_v63  ;;  %v5223_v3 = vadd.f32 %v5222_v17, %v16134_v31  ;;  %v12142_v56 = vld [vmem:[%s17807_s8 + $0x1c8] ss:$28 sps:$4 sm:$0xff]   ;;  %v12150_v17 = vld [vmem:[%s17807_s8 + $0x19c] ss:$28 sps:$4 sm:$0xff]  }
 0x478   :  { %18027 = vst [vmem:[#allocation12_spill] sm:$0xff] %v16455_v25  ;;  %v5224_v37 = vpop.f32.mrf.mxu1  ;;  %v5032_v16 = vadd.f32 %v5031_v47, %v16137_v5  ;;  %7038 = vmatprep.mubr.bf16.mxu0 %v16455_v25  ;;  %v5221_v41 = vadd.f32 %v5220_v39, %v16140_v54  ;;  %7543 = vmatprep.subr.bf16.mxu1 %v12141_v35 }
 0x479   :  { %18028 = vst [vmem:[#allocation13_spill] sm:$0xff] %v16457_v1  ;;  %v5225_v55 = vadd.f32 %v5224_v37, %v16140_v54  ;;  %7231 = vmatprep.mubr.bf16.mxu1 %v16457_v1  ;;  %v5033_v63 = vpop.f32.mrf.mxu0  ;;  %7039 = vmatmul.mubr.bf16.gmra.mxu0 %v16465_v44  ;;  %v5366_v35 = vmax.f32 %v5223_v3, 0.0 }
 0x47a   :  { %v5226_v7 = vpop.f32.mrf.mxu1  ;;  %7232 = vmatmul.mubr.bf16.gmra.mxu1 %v16467_v62  ;;  %v5034_v51 = vadd.f32 %v5033_v63, %v16131_v6  ;;  %7351 = vmatpush2.bf16.msra.mxu0 %v12136_v60  ;;  %v5367_v9 = vmax.f32 %v5032_v16, 0.0  ;;  %v5364_v60 = vmax.f32 %v5030_v0, 0.0  ;;  %v5363_v63 = vmax.f32 %v5028_v2, 0.0 }
 0x47b   :  { %v5227_v58 = vadd.f32 %v5226_v7, %v16134_v31  ;;  %v5369_v30 = vmax.f32 %v5225_v55, 0.0  ;;  %v5037_v21 = vpop.f32.mrf.mxu0  ;;  %7544 = vmatpush2.bf16.msra.mxu1 %v12139_v10  ;;  %7352 = vmatprep.subr.bf16.mxu0 %v12144_v19  ;;  %v5365_v16 = vmax.f32 %v5221_v41, 0.0  ;;  %v12153_v19 = vld [vmem:[%s17807_s8 + $0x51c] ss:$28 sps:$4 sm:$0xff]  }
 0x47c   :  { %v5230_v39 = vpop.f32.mrf.mxu1  ;;  %v5368_v47 = vmax.f32 %v5034_v51, 0.0  ;;  %7545 = vmatprep.subr.bf16.mxu1 %v12147_v34  ;;  %v16506_v49 = vpack.c.bf16 %v5367_v9, %v5363_v63 }
 0x47d   :  { %v5370_v37 = vmax.f32 %v5227_v58, 0.0  ;;  %v5039_v55 = vpop.f32.mrf.mxu0  ;;  %v16508_v0 = vpack.c.bf16 %v5369_v30, %v5365_v16  ;;  %v5231_v9 = vadd.f32 %v5230_v39, %v16140_v54 }
 0x47e   :  { %v5232_v7 = vpop.f32.mrf.mxu1  ;;  %v16499_v45 = vpack.c.bf16 %v5368_v47, %v5364_v60  ;;  %7353 = vmatpush2.bf16.msra.mxu0 %v12142_v56  ;;  %18033 = vst [vmem:[#allocation16_spill] sm:$0xff] %v16506_v49  ;;  %v5040_v3 = vadd.f32 %v5039_v55, %v16131_v6  ;;  %v5038_v56 = vadd.f32 %v5037_v21, %v16137_v5 }
 0x47f   :  { %v16501_v10 = vpack.c.bf16 %v5370_v37, %v5366_v35  ;;  %18034 = vst [vmem:[#allocation17_spill] sm:$0xff] %v16508_v0  ;;  %v5041_v34 = vpop.f32.mrf.mxu0  ;;  %7546 = vmatpush2.bf16.msra.mxu1 %v12145_v11  ;;  %7708 = vmatprep.subr.bf16.mxu0 %v12150_v17  ;;  %v5233_v41 = vadd.f32 %v5232_v7, %v16134_v31 }
 0x480   :  { %18031 = vst [vmem:[#allocation9_spill] sm:$0xff] %v16499_v45  ;;  %v5234_v2 = vpop.f32.mrf.mxu1  ;;  %v5042_v51 = vadd.f32 %v5041_v34, %v16137_v5  ;;  %7048 = vmatprep.mubr.bf16.mxu0 %v16499_v45  ;;  %7901 = vmatprep.subr.bf16.mxu1 %v12153_v19  ;;  %v5372_v16 = vmax.f32 %v5040_v3, 0.0  ;;  %v5371_v39 = vmax.f32 %v5038_v56, 0.0  ;;  %v5373_v34 = vmax.f32 %v5231_v9, 0.0 }
 0x481   :  { %18032 = vst [vmem:[#allocation15_spill] sm:$0xff] %v16501_v10  ;;  %v5235_v58 = vadd.f32 %v5234_v2, %v16140_v54  ;;  %7241 = vmatprep.mubr.bf16.mxu1 %v16501_v10  ;;  %v5043_v30 = vpop.f32.mrf.mxu0  ;;  %7049 = vmatmul.mubr.bf16.gmra.mxu0 %v16506_v49  ;;  %v5374_v55 = vmax.f32 %v5233_v41, 0.0 }
 0x482   :  { %v5236_v60 = vpop.f32.mrf.mxu1  ;;  %7242 = vmatmul.mubr.bf16.gmra.mxu1 %v16508_v0  ;;  %v5044_v11 = vadd.f32 %v5043_v30, %v16131_v6  ;;  %v5375_v35 = vmax.f32 %v5042_v51, 0.0 }
 0x483   :  { %v5237_v17 = vadd.f32 %v5236_v60, %v16134_v31  ;;  %v5377_v47 = vmax.f32 %v5235_v58, 0.0  ;;  %v5047_v37 = vpop.f32.mrf.mxu0 }
 0x484   :  { %v5240_v63 = vpop.f32.mrf.mxu1  ;;  %v5376_v21 = vmax.f32 %v5044_v11, 0.0  ;;  %v16526_v30 = vpack.c.bf16 %v5375_v35, %v5371_v39  ;;  %v5048_v9 = vadd.f32 %v5047_v37, %v16137_v5 }
 0x485   :  { %v5378_v7 = vmax.f32 %v5237_v17, 0.0  ;;  %v5049_v2 = vpop.f32.mrf.mxu0  ;;  %v16528_v60 = vpack.c.bf16 %v5377_v47, %v5373_v34  ;;  %v5241_v11 = vadd.f32 %v5240_v63, %v16140_v54 }
 0x486   :  { %v5242_v13 = vpop.f32.mrf.mxu1  ;;  %v16522_v49 = vpack.c.bf16 %v5376_v21, %v5372_v16  ;;  %18037 = vst [vmem:[#allocation11_spill] sm:$0xff] %v16526_v30  ;;  %v5050_v19 = vadd.f32 %v5049_v2, %v16131_v6 }
 0x487   :  { %v16524_v0 = vpack.c.bf16 %v5378_v7, %v5374_v55  ;;  %18038 = vst [vmem:[#allocation19_spill] sm:$0xff] %v16528_v60  ;;  %v5051_v51 = vpop.f32.mrf.mxu0  ;;  %v5243_v3 = vadd.f32 %v5242_v13, %v16134_v31  ;;  %v5381_v63 = vmax.f32 %v5241_v11, 0.0 }
 0x488   :  { %18035 = vst [vmem:[#allocation8_spill] sm:$0xff] %v16522_v49  ;;  %v5244_v58 = vpop.f32.mrf.mxu1  ;;  %v5052_v41 = vadd.f32 %v5051_v51, %v16137_v5  ;;  %7058 = vmatprep.mubr.bf16.mxu0 %v16522_v49  ;;  %v5380_v39 = vmax.f32 %v5050_v19, 0.0  ;;  %v5379_v51 = vmax.f32 %v5048_v9, 0.0 }
 0x489   :  { %18036 = vst [vmem:[#allocation18_spill] sm:$0xff] %v16524_v0  ;;  %v5245_v56 = vadd.f32 %v5244_v58, %v16140_v54  ;;  %7251 = vmatprep.mubr.bf16.mxu1 %v16524_v0  ;;  %v5053_v17 = vpop.f32.mrf.mxu0  ;;  %7059 = vmatmul.mubr.bf16.gmra.mxu0 %v16526_v30  ;;  %v5382_v34 = vmax.f32 %v5243_v3, 0.0 }
 0x48a   :  { %v5246_v35 = vpop.f32.mrf.mxu1  ;;  %7252 = vmatmul.mubr.bf16.gmra.mxu1 %v16528_v60  ;;  %v5054_v13 = vadd.f32 %v5053_v17, %v16131_v6  ;;  %v5383_v16 = vmax.f32 %v5052_v41, 0.0 }
 0x48b   :  { %v5247_v47 = vadd.f32 %v5246_v35, %v16134_v31  ;;  %v5385_v55 = vmax.f32 %v5245_v56, 0.0  ;;  %v5057_v21 = vpop.f32.mrf.mxu0 }
 0x48c   :  { %v5250_v7 = vpop.f32.mrf.mxu1  ;;  %v5384_v2 = vmax.f32 %v5054_v13, 0.0  ;;  %v16546_v60 = vpack.c.bf16 %v5383_v16, %v5379_v51  ;;  %v5058_v11 = vadd.f32 %v5057_v21, %v16137_v5 }
 0x48d   :  { %v5386_v37 = vmax.f32 %v5247_v47, 0.0  ;;  %v5059_v58 = vpop.f32.mrf.mxu0  ;;  %v16548_v17 = vpack.c.bf16 %v5385_v55, %v5381_v63  ;;  %v5251_v13 = vadd.f32 %v5250_v7, %v16140_v54 }
 0x48e   :  { %v5252_v0 = vpop.f32.mrf.mxu1  ;;  %v16542_v49 = vpack.c.bf16 %v5384_v2, %v5380_v39  ;;  %18041 = vst [vmem:[#allocation10_spill] sm:$0xff] %v16546_v60  ;;  %v5060_v41 = vadd.f32 %v5059_v58, %v16131_v6 }
 0x48f   :  { %v16544_v30 = vpack.c.bf16 %v5386_v37, %v5382_v34  ;;  %18042 = vst [vmem:[#allocation22_spill] sm:$0xff] %v16548_v17  ;;  %v5061_v56 = vpop.f32.mrf.mxu0  ;;  %v5253_v19 = vadd.f32 %v5252_v0, %v16134_v31  ;;  %v5389_v7 = vmax.f32 %v5251_v13, 0.0 }
 0x490   :  { %18039 = vst [vmem:[#allocation20_spill] sm:$0xff] %v16542_v49  ;;  %v5254_v35 = vpop.f32.mrf.mxu1  ;;  %v5062_v3 = vadd.f32 %v5061_v56, %v16137_v5  ;;  %7068 = vmatprep.mubr.bf16.mxu0 %v16542_v49  ;;  %v5388_v51 = vmax.f32 %v5060_v41, 0.0  ;;  %v5387_v56 = vmax.f32 %v5058_v11, 0.0 }
 0x491   :  { %18040 = vst [vmem:[#allocation21_spill] sm:$0xff] %v16544_v30  ;;  %v5255_v9 = vadd.f32 %v5254_v35, %v16140_v54  ;;  %7261 = vmatprep.mubr.bf16.mxu1 %v16544_v30  ;;  %v5063_v47 = vpop.f32.mrf.mxu0  ;;  %7069 = vmatmul.mubr.bf16.gmra.mxu0 %v16546_v60  ;;  %v5390_v63 = vmax.f32 %v5253_v19, 0.0 }
 0x492   :  { %v5256_v16 = vpop.f32.mrf.mxu1  ;;  %7262 = vmatmul.mubr.bf16.gmra.mxu1 %v16548_v17  ;;  %v5064_v0 = vadd.f32 %v5063_v47, %v16131_v6  ;;  %v5391_v39 = vmax.f32 %v5062_v3, 0.0 }
 0x493   :  { %v5257_v55 = vadd.f32 %v5256_v16, %v16134_v31  ;;  %v5393_v34 = vmax.f32 %v5255_v9, 0.0  ;;  %v5067_v2 = vpop.f32.mrf.mxu0 }
 0x494   :  { %v5260_v37 = vpop.f32.mrf.mxu1  ;;  %v5392_v58 = vmax.f32 %v5064_v0, 0.0  ;;  %v16566_v17 = vpack.c.bf16 %v5391_v39, %v5387_v56  ;;  %v5068_v13 = vadd.f32 %v5067_v2, %v16137_v5 }
 0x495   :  { %v5394_v21 = vmax.f32 %v5257_v55, 0.0  ;;  %v5069_v35 = vpop.f32.mrf.mxu0  ;;  %v16568_v47 = vpack.c.bf16 %v5393_v34, %v5389_v7  ;;  %v5261_v0 = vadd.f32 %v5260_v37, %v16140_v54 }
 0x496   :  { %v5262_v30 = vpop.f32.mrf.mxu1  ;;  %v16562_v49 = vpack.c.bf16 %v5392_v58, %v5388_v51  ;;  %18045 = vst [vmem:[#allocation25_spill] sm:$0xff] %v16566_v17  ;;  %v5070_v3 = vadd.f32 %v5069_v35, %v16131_v6 }
 0x497   :  { %v16564_v60 = vpack.c.bf16 %v5394_v21, %v5390_v63  ;;  %18046 = vst [vmem:[#allocation26_spill] sm:$0xff] %v16568_v47  ;;  %v5071_v9 = vpop.f32.mrf.mxu0  ;;  %v5263_v41 = vadd.f32 %v5262_v30, %v16134_v31  ;;  %v5397_v37 = vmax.f32 %v5261_v0, 0.0 }
 0x498   :  { %18043 = vst [vmem:[#allocation23_spill] sm:$0xff] %v16562_v49  ;;  %v5264_v16 = vpop.f32.mrf.mxu1  ;;  %v5072_v19 = vadd.f32 %v5071_v9, %v16137_v5  ;;  %7078 = vmatprep.mubr.bf16.mxu0 %v16562_v49  ;;  %v5396_v56 = vmax.f32 %v5070_v3, 0.0  ;;  %v5395_v9 = vmax.f32 %v5068_v13, 0.0 }
 0x499   :  { %18044 = vst [vmem:[#allocation24_spill] sm:$0xff] %v16564_v60  ;;  %v5265_v11 = vadd.f32 %v5264_v16, %v16140_v54  ;;  %7271 = vmatprep.mubr.bf16.mxu1 %v16564_v60  ;;  %v5073_v55 = vpop.f32.mrf.mxu0  ;;  %7079 = vmatmul.mubr.bf16.gmra.mxu0 %v16566_v17  ;;  %v5398_v7 = vmax.f32 %v5263_v41, 0.0 }
 0x49a   :  { %v5266_v39 = vpop.f32.mrf.mxu1  ;;  %7272 = vmatmul.mubr.bf16.gmra.mxu1 %v16568_v47  ;;  %v5074_v30 = vadd.f32 %v5073_v55, %v16131_v6  ;;  %v5399_v51 = vmax.f32 %v5072_v19, 0.0 }
 0x49b   :  { %v5267_v34 = vadd.f32 %v5266_v39, %v16134_v31  ;;  %v5401_v63 = vmax.f32 %v5265_v11, 0.0  ;;  %v5077_v58 = vpop.f32.mrf.mxu0 }
 0x49c   :  { %v5270_v21 = vpop.f32.mrf.mxu1  ;;  %v5400_v35 = vmax.f32 %v5074_v30, 0.0  ;;  %v16586_v47 = vpack.c.bf16 %v5399_v51, %v5395_v9  ;;  %v5078_v0 = vadd.f32 %v5077_v58, %v16137_v5 }
 0x49d   :  { %v5402_v2 = vmax.f32 %v5267_v34, 0.0  ;;  %v5079_v16 = vpop.f32.mrf.mxu0  ;;  %v16588_v55 = vpack.c.bf16 %v5401_v63, %v5397_v37  ;;  %v5271_v30 = vadd.f32 %v5270_v21, %v16140_v54 }
 0x49e   :  { %v5272_v60 = vpop.f32.mrf.mxu1  ;;  %v16582_v49 = vpack.c.bf16 %v5400_v35, %v5396_v56  ;;  %18049 = vst [vmem:[#allocation29_spill] sm:$0xff] %v16586_v47  ;;  %v5080_v19 = vadd.f32 %v5079_v16, %v16131_v6 }
 0x49f   :  { %v16584_v17 = vpack.c.bf16 %v5402_v2, %v5398_v7  ;;  %18050 = vst [vmem:[#allocation30_spill] sm:$0xff] %v16588_v55  ;;  %v5081_v11 = vpop.f32.mrf.mxu0  ;;  %v5273_v3 = vadd.f32 %v5272_v60, %v16134_v31  ;;  %v5405_v21 = vmax.f32 %v5271_v30, 0.0 }
 0x4a0   :  { %18047 = vst [vmem:[#allocation27_spill] sm:$0xff] %v16582_v49  ;;  %v5274_v39 = vpop.f32.mrf.mxu1  ;;  %v5082_v41 = vadd.f32 %v5081_v11, %v16137_v5  ;;  %7088 = vmatprep.mubr.bf16.mxu0 %v16582_v49  ;;  %v5404_v9 = vmax.f32 %v5080_v19, 0.0  ;;  %v5403_v11 = vmax.f32 %v5078_v0, 0.0 }
 0x4a1   :  { %18048 = vst [vmem:[#allocation28_spill] sm:$0xff] %v16584_v17  ;;  %v5275_v13 = vadd.f32 %v5274_v39, %v16140_v54  ;;  %7281 = vmatprep.mubr.bf16.mxu1 %v16584_v17  ;;  %v5083_v34 = vpop.f32.mrf.mxu0  ;;  %7089 = vmatmul.mubr.bf16.gmra.mxu0 %v16586_v47  ;;  %v5406_v37 = vmax.f32 %v5273_v3, 0.0 }
 0x4a2   :  { %v5276_v51 = vpop.f32.mrf.mxu1  ;;  %7282 = vmatmul.mubr.bf16.gmra.mxu1 %v16588_v55  ;;  %v5084_v60 = vadd.f32 %v5083_v34, %v16131_v6  ;;  %v5407_v56 = vmax.f32 %v5082_v41, 0.0 }
 0x4a3   :  { %v5277_v63 = vadd.f32 %v5276_v51, %v16134_v31  ;;  %v5409_v7 = vmax.f32 %v5275_v13, 0.0  ;;  %v5087_v35 = vpop.f32.mrf.mxu0 }
 0x4a4   :  { %v5280_v2 = vpop.f32.mrf.mxu1  ;;  %v5408_v16 = vmax.f32 %v5084_v60, 0.0  ;;  %v16606_v55 = vpack.c.bf16 %v5407_v56, %v5403_v11  ;;  %v5088_v30 = vadd.f32 %v5087_v35, %v16137_v5 }
 0x4a5   :  { %v5410_v58 = vmax.f32 %v5277_v63, 0.0  ;;  %v5089_v39 = vpop.f32.mrf.mxu0  ;;  %v16608_v34 = vpack.c.bf16 %v5409_v7, %v5405_v21  ;;  %v5281_v60 = vadd.f32 %v5280_v2, %v16140_v54 }
 0x4a6   :  { %v5282_v17 = vpop.f32.mrf.mxu1  ;;  %v16602_v49 = vpack.c.bf16 %v5408_v16, %v5404_v9  ;;  %18053 = vst [vmem:[#allocation33_spill] sm:$0xff] %v16606_v55  ;;  %v5090_v41 = vadd.f32 %v5089_v39, %v16131_v6 }
 0x4a7   :  { %v16604_v47 = vpack.c.bf16 %v5410_v58, %v5406_v37  ;;  %18054 = vst [vmem:[#allocation34_spill] sm:$0xff] %v16608_v34  ;;  %v5091_v13 = vpop.f32.mrf.mxu0  ;;  %v5283_v19 = vadd.f32 %v5282_v17, %v16134_v31  ;;  %v5413_v2 = vmax.f32 %v5281_v60, 0.0 }
 0x4a8   :  { %18051 = vst [vmem:[#allocation31_spill] sm:$0xff] %v16602_v49  ;;  %v5284_v51 = vpop.f32.mrf.mxu1  ;;  %v5092_v3 = vadd.f32 %v5091_v13, %v16137_v5  ;;  %7098 = vmatprep.mubr.bf16.mxu0 %v16602_v49  ;;  %v5412_v11 = vmax.f32 %v5090_v41, 0.0  ;;  %v5411_v13 = vmax.f32 %v5088_v30, 0.0 }
 0x4a9   :  { %18052 = vst [vmem:[#allocation32_spill] sm:$0xff] %v16604_v47  ;;  %v5285_v0 = vadd.f32 %v5284_v51, %v16140_v54  ;;  %7291 = vmatprep.mubr.bf16.mxu1 %v16604_v47  ;;  %v5093_v63 = vpop.f32.mrf.mxu0  ;;  %7099 = vmatmul.mubr.bf16.gmra.mxu0 %v16606_v55  ;;  %v5414_v21 = vmax.f32 %v5283_v19, 0.0 }
 0x4aa   :  { %v5286_v56 = vpop.f32.mrf.mxu1  ;;  %7292 = vmatmul.mubr.bf16.gmra.mxu1 %v16608_v34  ;;  %v5094_v17 = vadd.f32 %v5093_v63, %v16131_v6  ;;  %v5415_v9 = vmax.f32 %v5092_v3, 0.0 }
 0x4ab   :  { %v5287_v7 = vadd.f32 %v5286_v56, %v16134_v31  ;;  %v5417_v37 = vmax.f32 %v5285_v0, 0.0  ;;  %v5097_v16 = vpop.f32.mrf.mxu0 }
 0x4ac   :  { %v5290_v58 = vpop.f32.mrf.mxu1  ;;  %v5416_v39 = vmax.f32 %v5094_v17, 0.0  ;;  %v16626_v34 = vpack.c.bf16 %v5415_v9, %v5411_v13  ;;  %v5098_v60 = vadd.f32 %v5097_v16, %v16137_v5 }
 0x4ad   :  { %v5418_v35 = vmax.f32 %v5287_v7, 0.0  ;;  %v5099_v51 = vpop.f32.mrf.mxu0  ;;  %v16628_v63 = vpack.c.bf16 %v5417_v37, %v5413_v2  ;;  %v5291_v17 = vadd.f32 %v5290_v58, %v16140_v54 }
 0x4ae   :  { %v5292_v47 = vpop.f32.mrf.mxu1  ;;  %v16622_v49 = vpack.c.bf16 %v5416_v39, %v5412_v11  ;;  %v5100_v3 = vadd.f32 %v5099_v51, %v16131_v6  ;;  %v5419_v51 = vmax.f32 %v5098_v60, 0.0  ;;  %v12165_v60 = vld [vmem:[%s17807_s8 + $0x4ac] ss:$28 sps:$4 sm:$0xff]  }
 0x4af   :  { %v16624_v55 = vpack.c.bf16 %v5418_v35, %v5414_v21  ;;  %v5101_v0 = vpop.f32.mrf.mxu0  ;;  %v5293_v41 = vadd.f32 %v5292_v47, %v16134_v31 }
 0x4b0   :  { %18055 = vst [vmem:[#allocation35_spill] sm:$0xff] %v16622_v49  ;;  %v5294_v56 = vpop.f32.mrf.mxu1  ;;  %v5102_v19 = vadd.f32 %v5101_v0, %v16137_v5  ;;  %7108 = vmatprep.mubr.bf16.mxu0 %v16622_v49  ;;  %v5420_v39 = vmax.f32 %v5100_v3, 0.0  ;;  %v5421_v5 = vmax.f32 %v5291_v17, 0.0  ;;  %v12156_v3 = vld [vmem:[%s17807_s8 + $0x164] ss:$28 sps:$4 sm:$0xff]  }
 0x4b1   :  { %18056 = vst [vmem:[#allocation36_spill] sm:$0xff] %v16624_v55  ;;  %v5295_v30 = vadd.f32 %v5294_v56, %v16140_v54  ;;  %7301 = vmatprep.mubr.bf16.mxu1 %v16624_v55  ;;  %v5103_v7 = vpop.f32.mrf.mxu0  ;;  %7109 = vmatmul.mubr.bf16.gmra.mxu0 %v16626_v34  ;;  %v5422_v35 = vmax.f32 %v5293_v41, 0.0  ;;  %v12159_v56 = vld [vmem:[%s17807_s8 + $0x4e4] ss:$28 sps:$4 sm:$0xff]  }
 0x4b2   :  { %v5296_v9 = vpop.f32.mrf.mxu1  ;;  %7302 = vmatmul.mubr.bf16.gmra.mxu1 %v16628_v63  ;;  %v5104_v47 = vadd.f32 %v5103_v7, %v16131_v6  ;;  %v5423_v11 = vmax.f32 %v5102_v19, 0.0  ;;  %v12148_v6 = vld [vmem:[%s17807_s8 + $0x198] ss:$28 sps:$4 sm:$0xff]   ;;  %v12154_v41 = vld [vmem:[%s17807_s8 + $0x160] ss:$28 sps:$4 sm:$0xff]  }
 0x4b3   :  { %v5297_v37 = vadd.f32 %v5296_v9, %v16134_v31  ;;  %v5425_v21 = vmax.f32 %v5295_v30, 0.0  ;;  %v12151_v31 = vld [vmem:[%s17807_s8 + $0x518] ss:$28 sps:$4 sm:$0xff]   ;;  %v12157_v19 = vld [vmem:[%s17807_s8 + $0x4e0] ss:$28 sps:$4 sm:$0xff]  }
 0x4b4   :  { %v5424_v13 = vmax.f32 %v5104_v47, 0.0  ;;  %v16646_v58 = vpack.c.bf16 %v5423_v11, %v5419_v51  ;;  %v12162_v30 = vld [vmem:[%s17807_s8 + $0x12c] ss:$28 sps:$4 sm:$0xff]   ;;  %v12168_v9 = vld [vmem:[%s17807_s8 + $0xf4] ss:$28 sps:$4 sm:$0xff]  }
 0x4b5   :  { %v5426_v2 = vmax.f32 %v5297_v37, 0.0  ;;  %v16648_v0 = vpack.c.bf16 %v5425_v21, %v5421_v5  ;;  %v12160_v17 = vld [vmem:[%s17807_s8 + $0x128] ss:$28 sps:$4 sm:$0xff]   ;;  %v12171_v47 = vld [vmem:[%s17807_s8 + $0x474] ss:$28 sps:$4 sm:$0xff]  }
 0x4b6   :  { %v16642_v16 = vpack.c.bf16 %v5424_v13, %v5420_v39  ;;  %v12163_v7 = vld [vmem:[%s17807_s8 + $0x4a8] ss:$28 sps:$4 sm:$0xff]   ;;  %v12166_v37 = vld [vmem:[%s17807_s8 + $0xf0] ss:$28 sps:$4 sm:$0xff]   ;;  %v12174_v21 = vld [vmem:[%s17807_s8 + $0xbc] ss:$28 sps:$4 sm:$0xff]  }
 0x4b7   :  { %v16644_v54 = vpack.c.bf16 %v5426_v2, %v5422_v35  ;;  %v12169_v11 = vld [vmem:[%s17807_s8 + $0x470] ss:$28 sps:$4 sm:$0xff]   ;;  %v12177_v39 = vld [vmem:[%s17807_s8 + $0x43c] ss:$28 sps:$4 sm:$0xff]   ;;  %v12180_v2 = vld [vmem:[%s17807_s8 + $0x84] ss:$28 sps:$4 sm:$0xff]  }
 0x4b8   :  { %7118 = vmatprep.mubr.bf16.mxu0 %v16642_v16  ;;  %v12172_v35 = vld [vmem:[%s17807_s8 + $0xb8] ss:$28 sps:$4 sm:$0xff]   ;;  %v12183_v51 = vld [vmem:[%s17807_s8 + $0x404] ss:$28 sps:$4 sm:$0xff]  }
 0x4b9   :  { %18057 = vst [vmem:[#allocation37_spill] sm:$0xff] %v16644_v54  ;;  %7311 = vmatprep.mubr.bf16.mxu1 %v16644_v54  ;;  %7119 = vmatmul.mubr.bf16.gmra.mxu0 %v16646_v58  ;;  %v12175_v13 = vld [vmem:[%s17807_s8 + $0x438] ss:$28 sps:$4 sm:$0xff]   ;;  %v12178_v5 = vld [vmem:[%s17807_s8 + $0x80] ss:$28 sps:$4 sm:$0xff]  }
 0x4ba   :  { %7312 = vmatmul.mubr.bf16.gmra.mxu1 %v16648_v0  ;;  %7354 = vmatprep.mubr.bf16.mxu0 %v16150_v32 }
 0x4bb   :  { %7547 = vmatprep.mubr.bf16.mxu1 %v16152_v46 }
 0x4c1   :  { %7355 = vmatmul.mubr.bf16.vlgmr.msra.gmra.mxu0 %v16160_v33 }
 0x4c2   :  { %7548 = vmatmul.mubr.bf16.vlgmr.msra.gmra.mxu1 %v16162_v8  ;;  %7364 = vmatprep.mubr.bf16.mxu0 %v16191_v18 }
 0x4c3   :  { %7557 = vmatprep.mubr.bf16.mxu1 %v16193_v43  ;;  %7709 = vmatpush1.bf16.msra.mxu0 %v12148_v6  ;;  %v12181_v6 = vld [vmem:[%s17807_s8 + $0x400] ss:$28 sps:$4 sm:$0xff]  }
 0x4c4   :  { %7902 = vmatpush1.bf16.msra.mxu1 %v12151_v31  ;;  %7710 = vmatprep.subr.bf16.mxu0 %v12156_v3  ;;  %v12186_v31 = vld [vmem:[%s17807_s8 + $0x4c] ss:$28 sps:$4 sm:$0xff]  }
 0x4c5   :  { %7903 = vmatprep.subr.bf16.mxu1 %v12159_v56  ;;  %v12189_v3 = vld [vmem:[%s17807_s8 + $0x3cc] ss:$28 sps:$4 sm:$0xff]  }
 0x4c6   :  { %v12184_v56 = vld [vmem:[%s17807_s8 + $0x48] ss:$28 sps:$4 sm:$0xff]  }
 0x4c7   :  { %7711 = vmatpush1.bf16.msra.mxu0 %v12154_v41  ;;  %v12187_v41 = vld [vmem:[%s17807_s8 + $0x3c8] ss:$28 sps:$4 sm:$0xff]  }
 0x4c8   :  { %7904 = vmatpush1.bf16.msra.mxu1 %v12157_v19  ;;  %7712 = vmatprep.subr.bf16.mxu0 %v12162_v30  ;;  %v12192_v19 = vld [vmem:[%s17807_s8 + $0x14] ss:$28 sps:$4 sm:$0xff]  }
 0x4c9   :  { %7905 = vmatprep.subr.bf16.mxu1 %v12165_v60  ;;  %7365 = vmatmul.mubr.bf16.gmra.mxu0 %v16201_v42  ;;  %v12195_v30 = vld [vmem:[%s17807_s8 + $0x394] ss:$28 sps:$4 sm:$0xff]  }
 0x4ca   :  { %7558 = vmatmul.mubr.bf16.gmra.mxu1 %v16203_v22  ;;  %7374 = vmatprep.mubr.bf16.mxu0 %v16235_v14  ;;  %v12190_v60 = vld [vmem:[%s17807_s8 + $0x10] ss:$28 sps:$4 sm:$0xff]  }
 0x4cb   :  { %7567 = vmatprep.mubr.bf16.mxu1 %v16237_v59  ;;  %7713 = vmatpush1.bf16.msra.mxu0 %v12160_v17  ;;  %v12193_v17 = vld [vmem:[%s17807_s8 + $0x390] ss:$28 sps:$4 sm:$0xff]  }
 0x4cc   :  { %7906 = vmatpush1.bf16.msra.mxu1 %v12163_v7  ;;  %7714 = vmatprep.subr.bf16.mxu0 %v12168_v9  ;;  %v12198_v7 = vld [vmem:[%s17807_s8 + $0x35c] ss:$28 sps:$4 sm:$0xff]  }
 0x4cd   :  { %7907 = vmatprep.subr.bf16.mxu1 %v12171_v47  ;;  %v12201_v9 = vld [vmem:[%s17807_s8 + $0x6dc] ss:$28 sps:$4 sm:$0xff]  }
 0x4ce   :  { %v12196_v47 = vld [vmem:[%s17807_s8 + $0x358] ss:$28 sps:$4 sm:$0xff]  }
 0x4cf   :  { %7715 = vmatpush1.bf16.msra.mxu0 %v12166_v37  ;;  %v12199_v37 = vld [vmem:[%s17807_s8 + $0x6d8] ss:$28 sps:$4 sm:$0xff]  }
 0x4d0   :  { %7908 = vmatpush1.bf16.msra.mxu1 %v12169_v11  ;;  %7716 = vmatprep.subr.bf16.mxu0 %v12174_v21  ;;  %v12204_v11 = vld [vmem:[%s17807_s8 + $0x324] ss:$28 sps:$4 sm:$0xff]  }
 0x4d1   :  { %7909 = vmatprep.subr.bf16.mxu1 %v12177_v39  ;;  %7375 = vmatmul.mubr.bf16.gmra.mxu0 %v16245_v26  ;;  %v12207_v21 = vld [vmem:[%s17807_s8 + $0x6a4] ss:$28 sps:$4 sm:$0xff]  }
 0x4d2   :  { %7568 = vmatmul.mubr.bf16.gmra.mxu1 %v16247_v53  ;;  %7384 = vmatprep.mubr.bf16.mxu0 %v16279_v29  ;;  %v12202_v39 = vld [vmem:[%s17807_s8 + $0x320] ss:$28 sps:$4 sm:$0xff]  }
 0x4d3   :  { %7577 = vmatprep.mubr.bf16.mxu1 %v16281_v40  ;;  %7717 = vmatpush1.bf16.msra.mxu0 %v12172_v35  ;;  %v12205_v35 = vld [vmem:[%s17807_s8 + $0x6a0] ss:$28 sps:$4 sm:$0xff]  }
 0x4d4   :  { %7910 = vmatpush1.bf16.msra.mxu1 %v12175_v13  ;;  %7718 = vmatprep.subr.bf16.mxu0 %v12180_v2  ;;  %v12210_v13 = vld [vmem:[%s17807_s8 + $0x2ec] ss:$28 sps:$4 sm:$0xff]  }
 0x4d5   :  { %7911 = vmatprep.subr.bf16.mxu1 %v12183_v51  ;;  %v12213_v2 = vld [vmem:[%s17807_s8 + $0x66c] ss:$28 sps:$4 sm:$0xff]  }
 0x4d6   :  { %v12208_v51 = vld [vmem:[%s17807_s8 + $0x2e8] ss:$28 sps:$4 sm:$0xff]  }
 0x4d7   :  { %7719 = vmatpush1.bf16.msra.mxu0 %v12178_v5  ;;  %v12211_v5 = vld [vmem:[%s17807_s8 + $0x668] ss:$28 sps:$4 sm:$0xff]  }
 0x4d8   :  { %7912 = vmatpush1.bf16.msra.mxu1 %v12181_v6  ;;  %7720 = vmatprep.subr.bf16.mxu0 %v12186_v31  ;;  %v12216_v6 = vld [vmem:[%s17807_s8 + $0x2b4] ss:$28 sps:$4 sm:$0xff]  }
 0x4d9   :  { %7913 = vmatprep.subr.bf16.mxu1 %v12189_v3  ;;  %7385 = vmatmul.mubr.bf16.gmra.mxu0 %v16289_v12  ;;  %v12219_v31 = vld [vmem:[%s17807_s8 + $0x634] ss:$28 sps:$4 sm:$0xff]  }
 0x4da   :  { %7578 = vmatmul.mubr.bf16.gmra.mxu1 %v16291_v24  ;;  %7394 = vmatprep.mubr.bf16.mxu0 %v16323_v28  ;;  %v12214_v3 = vld [vmem:[%s17807_s8 + $0x2b0] ss:$28 sps:$4 sm:$0xff]  }
 0x4db   :  { %7587 = vmatprep.mubr.bf16.mxu1 %v16325_v48  ;;  %7721 = vmatpush1.bf16.msra.mxu0 %v12184_v56  ;;  %v12217_v56 = vld [vmem:[%s17807_s8 + $0x630] ss:$28 sps:$4 sm:$0xff]  }
 0x4dc   :  { %7914 = vmatpush1.bf16.msra.mxu1 %v12187_v41  ;;  %7722 = vmatprep.subr.bf16.mxu0 %v12192_v19  ;;  %v12222_v41 = vld [vmem:[%s17807_s8 + $0x27c] ss:$28 sps:$4 sm:$0xff]  }
 0x4dd   :  { %7915 = vmatprep.subr.bf16.mxu1 %v12195_v30  ;;  %v12225_v19 = vld [vmem:[%s17807_s8 + $0x5fc] ss:$28 sps:$4 sm:$0xff]  }
 0x4de   :  { %v12220_v30 = vld [vmem:[%s17807_s8 + $0x278] ss:$28 sps:$4 sm:$0xff]  }
 0x4df   :  { %7723 = vmatpush1.bf16.msra.mxu0 %v12190_v60  ;;  %v12223_v60 = vld [vmem:[%s17807_s8 + $0x5f8] ss:$28 sps:$4 sm:$0xff]  }
 0x4e0   :  { %7916 = vmatpush1.bf16.msra.mxu1 %v12193_v17  ;;  %7724 = vmatprep.subr.bf16.mxu0 %v12198_v7  ;;  %v12228_v17 = vld [vmem:[%s17807_s8 + $0x244] ss:$28 sps:$4 sm:$0xff]  }
 0x4e1   :  { %7917 = vmatprep.subr.bf16.mxu1 %v12201_v9  ;;  %7395 = vmatmul.mubr.bf16.gmra.mxu0 %v16333_v23  ;;  %v12231_v7 = vld [vmem:[%s17807_s8 + $0x5c4] ss:$28 sps:$4 sm:$0xff]  }
 0x4e2   :  { %7588 = vmatmul.mubr.bf16.gmra.mxu1 %v16335_v38  ;;  %7404 = vmatprep.mubr.bf16.mxu0 %v16367_v27  ;;  %v12226_v9 = vld [vmem:[%s17807_s8 + $0x240] ss:$28 sps:$4 sm:$0xff]  }
 0x4e3   :  { %7597 = vmatprep.mubr.bf16.mxu1 %v16369_v15  ;;  %7725 = vmatpush2.bf16.msra.mxu0 %v12196_v47  ;;  %v12229_v47 = vld [vmem:[%s17807_s8 + $0x5c0] ss:$28 sps:$4 sm:$0xff]  }
 0x4e4   :  { %7918 = vmatpush2.bf16.msra.mxu1 %v12199_v37  ;;  %7726 = vmatprep.subr.bf16.mxu0 %v12204_v11  ;;  %v12234_v37 = vld [vmem:[%s17807_s8 + $0x20c] ss:$28 sps:$4 sm:$0xff]  }
 0x4e5   :  { %7919 = vmatprep.subr.bf16.mxu1 %v12207_v21  ;;  %v12237_v11 = vld [vmem:[%s17807_s8 + $0x58c] ss:$28 sps:$4 sm:$0xff]  }
 0x4e6   :  { %v12232_v21 = vld [vmem:[%s17807_s8 + $0x208] ss:$28 sps:$4 sm:$0xff]  }
 0x4e7   :  { %7727 = vmatpush2.bf16.msra.mxu0 %v12202_v39  ;;  %v12235_v39 = vld [vmem:[%s17807_s8 + $0x588] ss:$28 sps:$4 sm:$0xff]  }
 0x4e8   :  { %7920 = vmatpush2.bf16.msra.mxu1 %v12205_v35  ;;  %7728 = vmatprep.subr.bf16.mxu0 %v12210_v13  ;;  %v12240_v35 = vld [vmem:[%s17807_s8 + $0x1d4] ss:$28 sps:$4 sm:$0xff]  }
 0x4e9   :  { %7921 = vmatprep.subr.bf16.mxu1 %v12213_v2  ;;  %7405 = vmatmul.mubr.bf16.gmra.mxu0 %v16377_v50  ;;  %v12243_v13 = vld [vmem:[%s17807_s8 + $0x554] ss:$28 sps:$4 sm:$0xff]   ;;  %v5747_v2 = vld [vmem:[%s17811_s9] sm:$0x7f] }
 0x4ea   :  { %7598 = vmatmul.mubr.bf16.gmra.mxu1 %v16379_v4  ;;  %7414 = vmatprep.mubr.bf16.mxu0 %v16411_v57 }
 0x4eb   :  { %7607 = vmatprep.mubr.bf16.mxu1 %v16413_v36  ;;  %7729 = vmatpush2.bf16.msra.mxu0 %v12208_v51  ;;  %v12238_v51 = vld [vmem:[%s17807_s8 + $0x1d0] ss:$28 sps:$4 sm:$0xff]  }
 0x4ec   :  { %7922 = vmatpush2.bf16.msra.mxu1 %v12211_v5  ;;  %7730 = vmatprep.subr.bf16.mxu0 %v12216_v6  ;;  %v12241_v5 = vld [vmem:[%s17807_s8 + $0x550] ss:$28 sps:$4 sm:$0xff]   ;;  %v12244_v6 = vld [vmem:[%s17807_s8 + $0x360] ss:$28 sps:$4 sm:$0xff]  }
 0x4ed   :  { %7923 = vmatprep.subr.bf16.mxu1 %v12219_v31  ;;  %v12246_v31 = vld [vmem:[%s17807_s8 + $0x6e0] ss:$28 sps:$4 sm:$0xff]  }
 0x4ef   :  { %7731 = vmatpush2.bf16.msra.mxu0 %v12214_v3  ;;  %v16884_v3 = vrot.slane %v5747_v2, %v18023_v61 }
 0x4f0   :  { %7924 = vmatpush2.bf16.msra.mxu1 %v12217_v56  ;;  %7732 = vmatprep.subr.bf16.mxu0 %v12222_v41  ;;  %v18058_v56 = vld [vmem:[#allocation4_spill] sm:$0xff] }
 0x4f1   :  { %7925 = vmatprep.subr.bf16.mxu1 %v12225_v19  ;;  %7415 = vmatmul.mubr.bf16.gmra.mxu0 %v16421_v20  ;;  %v16887_v41 = vrot.slane %v5747_v2, %v18058_v56 }
 0x4f2   :  { %7608 = vmatmul.mubr.bf16.gmra.mxu1 %v16423_v52  ;;  %7424 = vmatprep.mubr.bf16.mxu0 %v16455_v25 }
 0x4f3   :  { %7617 = vmatprep.mubr.bf16.mxu1 %v16457_v1  ;;  %7733 = vmatpush2.bf16.msra.mxu0 %v12220_v30 }
 0x4f4   :  { %7926 = vmatpush2.bf16.msra.mxu1 %v12223_v60  ;;  %7734 = vmatprep.subr.bf16.mxu0 %v12228_v17  ;;  %v18059_v60 = vld [vmem:[#allocation16_spill] sm:$0xff]  ;;  %v18060_v17 = vld [vmem:[#allocation17_spill] sm:$0xff] }
 0x4f5   :  { %7927 = vmatprep.subr.bf16.mxu1 %v12231_v7 }
 0x4f7   :  { %7735 = vmatpush2.bf16.msra.mxu0 %v12226_v9  ;;  %v18061_v9 = vld [vmem:[#allocation8_spill] sm:$0xff] }
 0x4f8   :  { %7928 = vmatpush2.bf16.msra.mxu1 %v12229_v47  ;;  %7736 = vmatprep.subr.bf16.mxu0 %v12234_v37  ;;  %v18062_v47 = vld [vmem:[#allocation18_spill] sm:$0xff] }
 0x4f9   :  { %7929 = vmatprep.subr.bf16.mxu1 %v12237_v11  ;;  %7425 = vmatmul.mubr.bf16.gmra.mxu0 %v16465_v44 }
 0x4fa   :  { %7618 = vmatmul.mubr.bf16.gmra.mxu1 %v16467_v62  ;;  %7434 = vmatprep.mubr.bf16.mxu0 %v16499_v45  ;;  %v18071_v62 = vld [vmem:[#allocation25_spill] sm:$0xff] }
 0x4fb   :  { %7627 = vmatprep.mubr.bf16.mxu1 %v16501_v10  ;;  %7737 = vmatpush2.bf16.msra.mxu0 %v12232_v21 }
 0x4fc   :  { %7930 = vmatpush2.bf16.msra.mxu1 %v12235_v39  ;;  %7738 = vmatprep.subr.bf16.mxu0 %v12240_v35 }
 0x4fd   :  { %7931 = vmatprep.subr.bf16.mxu1 %v12243_v13 }
 0x4ff   :  { %7739 = vmatpush2.bf16.msra.mxu0 %v12238_v51 }
 0x500   :  { %7932 = vmatpush2.bf16.msra.mxu1 %v12241_v5  ;;  %11133 = vmatprep.subr.bf16.mxu0 %v12244_v6 }
 0x501   :  { %11245 = vmatprep.subr.bf16.mxu1 %v12246_v31  ;;  %v6970_v19 = vpop.f32.mrf.mxu0  ;;  %v7163_v30 = vpop.f32.mrf.mxu1  ;;  %7435 = vmatmul.mubr.bf16.gmra.mxu0 %v18059_v60 }
 0x502   :  { %7628 = vmatmul.mubr.bf16.gmra.mxu1 %v18060_v17  ;;  %v6971_v7 = vadd.f32 %v6970_v19, %v16884_v3  ;;  %7444 = vmatprep.mubr.bf16.mxu0 %v18061_v9  ;;  %v18063_v17 = vld [vmem:[#allocation11_spill] sm:$0xff] }
 0x503   :  { %7637 = vmatprep.mubr.bf16.mxu1 %v18062_v47  ;;  %v6972_v61 = vpop.f32.mrf.mxu0  ;;  %v7165_v37 = vpop.f32.mrf.mxu1 }
 0x504   :  { %v7164_v11 = vadd.f32 %v7163_v30, %v6971_v7  ;;  %v6973_v21 = vadd.f32 %v6972_v61, %v16887_v41  ;;  %v18064_v30 = vld [vmem:[#allocation19_spill] sm:$0xff] }
 0x505   :  { %v6974_v39 = vpop.f32.mrf.mxu0  ;;  %v7167_v35 = vpop.f32.mrf.mxu1 }
 0x506   :  { %v8416_v13 = vmul.f32 0.5, %v7164_v11  ;;  %v7166_v2 = vadd.f32 %v7165_v37, %v6973_v21  ;;  %v6975_v51 = vadd.f32 %v6974_v39, %v16884_v3  ;;  %v18065_v11 = vld [vmem:[#allocation20_spill] sm:$0xff]  ;;  %v18066_v21 = vld [vmem:[#allocation21_spill] sm:$0xff] }
 0x507   :  { %v6976_v5 = vpop.f32.mrf.mxu0  ;;  %v7169_v6 = vpop.f32.mrf.mxu1 }
 0x508   :  { %12340 = vtanh.f32 %v8416_v13  ;;  %v8417_v31 = vmul.f32 0.5, %v7166_v2  ;;  %v7168_v56 = vadd.f32 %v7167_v35, %v6975_v51  ;;  %v6977_v19 = vadd.f32 %v6976_v5, %v16887_v41 }
 0x509   :  { %v6980_v9 = vpop.f32.mrf.mxu0  ;;  %v7173_v47 = vpop.f32.mrf.mxu1  ;;  %7445 = vmatmul.mubr.bf16.gmra.mxu0 %v18063_v17 }
 0x50a   :  { %7638 = vmatmul.mubr.bf16.gmra.mxu1 %v18064_v30  ;;  %12342 = vtanh.f32 %v8417_v31  ;;  %v8423_v7 = vmul.f32 0.5, %v7168_v56  ;;  %v7170_v61 = vadd.f32 %v7169_v6, %v6977_v19  ;;  %v6981_v37 = vadd.f32 %v6980_v9, %v16884_v3  ;;  %7454 = vmatprep.mubr.bf16.mxu0 %v18065_v11 }
 0x50b   :  { %7647 = vmatprep.mubr.bf16.mxu1 %v18066_v21  ;;  %v6982_v39 = vpop.f32.mrf.mxu0  ;;  %v7175_v13 = vpop.f32.mrf.mxu1 }
 0x50c   :  { %12344 = vtanh.f32 %v8423_v7  ;;  %v8424_v35 = vmul.f32 0.5, %v7170_v61  ;;  %v7174_v2 = vadd.f32 %v7173_v47, %v6981_v37  ;;  %v6983_v51 = vadd.f32 %v6982_v39, %v16887_v41  ;;  %v18067_v61 = vld [vmem:[#allocation10_spill] sm:$0xff] }
 0x50d   :  { %v6984_v5 = vpop.f32.mrf.mxu0  ;;  %v7177_v17 = vpop.f32.mrf.mxu1  ;;  %v18068_v47 = vld [vmem:[#allocation22_spill] sm:$0xff] }
 0x50e   :  { %12346 = vtanh.f32 %v8424_v35  ;;  %v8430_v30 = vmul.f32 0.5, %v7174_v2  ;;  %v7176_v31 = vadd.f32 %v7175_v13, %v6983_v51  ;;  %v6985_v6 = vadd.f32 %v6984_v5, %v16884_v3  ;;  %v18069_v35 = vld [vmem:[#allocation23_spill] sm:$0xff]  ;;  %v18070_v2 = vld [vmem:[#allocation24_spill] sm:$0xff] }
 0x50f   :  { %v6986_v56 = vpop.f32.mrf.mxu0  ;;  %v7179_v9 = vpop.f32.mrf.mxu1 }
 0x510   :  { %12348 = vtanh.f32 %v8430_v30  ;;  %v8431_v19 = vmul.f32 0.5, %v7176_v31  ;;  %v7178_v11 = vadd.f32 %v7177_v17, %v6985_v6  ;;  %v6987_v21 = vadd.f32 %v6986_v56, %v16887_v41 }
 0x511   :  { %v6990_v60 = vpop.f32.mrf.mxu0  ;;  %7455 = vmatmul.mubr.bf16.gmra.mxu0 %v18067_v61 }
 0x512   :  { %v7183_v7 = vpop.f32.mrf.mxu1  ;;  %7648 = vmatmul.mubr.bf16.gmra.mxu1 %v18068_v47  ;;  %12350 = vtanh.f32 %v8431_v19  ;;  %v8437_v37 = vmul.f32 0.5, %v7178_v11  ;;  %v7180_v39 = vadd.f32 %v7179_v9, %v6987_v21  ;;  %v6991_v13 = vadd.f32 %v6990_v60, %v16884_v3  ;;  %7464 = vmatprep.mubr.bf16.mxu0 %v18069_v35 }
 0x513   :  { %7657 = vmatprep.mubr.bf16.mxu1 %v18070_v2  ;;  %v6992_v30 = vpop.f32.mrf.mxu0 }
 0x514   :  { %v7185_v51 = vpop.f32.mrf.mxu1  ;;  %12352 = vtanh.f32 %v8437_v37  ;;  %v8438_v17 = vmul.f32 0.5, %v7180_v39  ;;  %v7184_v5 = vadd.f32 %v7183_v7, %v6991_v13  ;;  %v6993_v31 = vadd.f32 %v6992_v30, %v16887_v41 }
 0x515   :  { %v12341_v6 = vpop.eup %12340  ;;  %v6994_v56 = vpop.f32.mrf.mxu0 }
 0x516   :  { %v7187_v61 = vpop.f32.mrf.mxu1  ;;  %v8864_v47 = vmul.f32 0.5, %v12341_v6  ;;  %12354 = vtanh.f32 %v8438_v17  ;;  %v8444_v11 = vmul.f32 0.5, %v7184_v5  ;;  %v7186_v21 = vadd.f32 %v7185_v51, %v6993_v31  ;;  %v18072_v17 = vld [vmem:[#allocation26_spill] sm:$0xff]  ;;  %v18073_v6 = vld [vmem:[#allocation27_spill] sm:$0xff] }
 0x517   :  { %v12343_v9 = vpop.eup %12342  ;;  %v6995_v60 = vadd.f32 %v6994_v56, %v16884_v3  ;;  %v6996_v19 = vpop.f32.mrf.mxu0  ;;  %v18074_v56 = vld [vmem:[#allocation28_spill] sm:$0xff] }
 0x518   :  { %v7189_v35 = vpop.f32.mrf.mxu1  ;;  %v8865_v2 = vmul.f32 0.5, %v12343_v9  ;;  %12356 = vtanh.f32 %v8444_v11  ;;  %v8445_v10 = vmul.f32 0.5, %v7186_v21  ;;  %v9088_v39 = vadd.f32 0.5, %v8864_v47 }
 0x519   :  { %v12345_v37 = vpop.eup %12344  ;;  %v7188_v7 = vadd.f32 %v7187_v61, %v6995_v60  ;;  %v6997_v13 = vadd.f32 %v6996_v19, %v16887_v41  ;;  %v7000_v30 = vpop.f32.mrf.mxu0  ;;  %7465 = vmatmul.mubr.bf16.gmra.mxu0 %v18071_v62 }
 0x51a   :  { %v7193_v45 = vpop.f32.mrf.mxu1  ;;  %7658 = vmatmul.mubr.bf16.gmra.mxu1 %v18072_v17  ;;  %v9089_v51 = vadd.f32 0.5, %v8865_v2  ;;  %v8871_v5 = vmul.f32 0.5, %v12345_v37  ;;  %12358 = vtanh.f32 %v8445_v10  ;;  %v7001_v31 = vadd.f32 %v7000_v30, %v16884_v3  ;;  %7474 = vmatprep.mubr.bf16.mxu0 %v18073_v6 }
 0x51b   :  { %7667 = vmatprep.mubr.bf16.mxu1 %v18074_v56  ;;  %v12347_v11 = vpop.eup %12346  ;;  %v8451_v47 = vmul.f32 0.5, %v7188_v7  ;;  %v7190_v61 = vadd.f32 %v7189_v35, %v6997_v13  ;;  %v7002_v21 = vpop.f32.mrf.mxu0 }
 0x51c   :  { %v7195_v9 = vpop.f32.mrf.mxu1  ;;  %v11005_v60 = vpack.c.bf16 %v9089_v51, %v9088_v39  ;;  %v8872_v19 = vmul.f32 0.5, %v12347_v11  ;;  %v7194_v44 = vadd.f32 %v7193_v45, %v7001_v31  ;;  %v9095_v1 = vadd.f32 0.5, %v8871_v5 }
 0x51d   :  { %v12349_v62 = vpop.eup %12348  ;;  %12360 = vtanh.f32 %v8451_v47  ;;  %v8452_v2 = vmul.f32 0.5, %v7190_v61  ;;  %v7003_v10 = vadd.f32 %v7002_v21, %v16887_v41  ;;  %v7004_v37 = vpop.f32.mrf.mxu0 }
 0x51e   :  { %v7197_v30 = vpop.f32.mrf.mxu1  ;;  %10016 = vst [vmem:[%s17812_s10] sm:$0xff] %v11005_v60  ;;  %v9096_v56 = vadd.f32 0.5, %v8872_v19  ;;  %v8878_v7 = vmul.f32 0.5, %v12349_v62  ;;  %v8458_v35 = vmul.f32 0.5, %v7194_v44  ;;  %v7005_v13 = vadd.f32 %v7004_v37, %v16884_v3  ;;  %v18075_v19 = vld [vmem:[#allocation29_spill] sm:$0xff]  ;;  %v18076_v44 = vld [vmem:[#allocation30_spill] sm:$0xff] }
 0x51f   :  { %v12351_v39 = vpop.eup %12350  ;;  %12362 = vtanh.f32 %v8452_v2  ;;  %v7196_v45 = vadd.f32 %v7195_v9, %v7003_v10  ;;  %v7006_v51 = vpop.f32.mrf.mxu0  ;;  %v18077_v2 = vld [vmem:[#allocation31_spill] sm:$0xff]  ;;  %v18078_v10 = vld [vmem:[#allocation32_spill] sm:$0xff] }
 0x520   :  { %v7199_v5 = vpop.f32.mrf.mxu1  ;;  %v11009_v31 = vpack.c.bf16 %v9096_v56, %v9095_v1  ;;  %v8879_v11 = vmul.f32 0.5, %v12351_v39  ;;  %12364 = vtanh.f32 %v8458_v35  ;;  %v7198_v21 = vadd.f32 %v7197_v30, %v7005_v13 }
 0x521   :  { %v12353_v47 = vpop.eup %12352  ;;  %v8459_v61 = vmul.f32 0.5, %v7196_v45  ;;  %v7007_v6 = vadd.f32 %v7006_v51, %v16887_v41  ;;  %v7010_v17 = vpop.f32.mrf.mxu0  ;;  %7475 = vmatmul.mubr.bf16.gmra.mxu0 %v18075_v19  ;;  %v9102_v62 = vadd.f32 0.5, %v8878_v7 }
 0x522   :  { %v7203_v60 = vpop.f32.mrf.mxu1  ;;  %7668 = vmatmul.mubr.bf16.gmra.mxu1 %v18076_v44  ;;  %10021 = vst [vmem:[%s17812_s10 + $0x1c] sm:$0xff] %v11009_v31  ;;  %v9103_v9 = vadd.f32 0.5, %v8879_v11  ;;  %v8885_v1 = vmul.f32 0.5, %v12353_v47  ;;  %v7011_v56 = vadd.f32 %v7010_v17, %v16884_v3  ;;  %7484 = vmatprep.mubr.bf16.mxu0 %v18077_v2  ;;  %v8465_v30 = vmul.f32 0.5, %v7198_v21 }
 0x523   :  { %7677 = vmatprep.mubr.bf16.mxu1 %v18078_v10  ;;  %v12355_v37 = vpop.eup %12354  ;;  %12366 = vtanh.f32 %v8459_v61  ;;  %v7200_v35 = vadd.f32 %v7199_v5, %v7007_v6  ;;  %v7012_v13 = vpop.f32.mrf.mxu0 }
 0x524   :  { %v7205_v39 = vpop.f32.mrf.mxu1  ;;  %v11013_v45 = vpack.c.bf16 %v9103_v9, %v9102_v62  ;;  %v8886_v51 = vmul.f32 0.5, %v12355_v37  ;;  %v7204_v44 = vadd.f32 %v7203_v60, %v7011_v56  ;;  %v9109_v31 = vadd.f32 0.5, %v8885_v1 }
 0x525   :  { %v12357_v19 = vpop.eup %12356  ;;  %12368 = vtanh.f32 %v8465_v30  ;;  %v8466_v7 = vmul.f32 0.5, %v7200_v35  ;;  %v7013_v11 = vadd.f32 %v7012_v13, %v16887_v41  ;;  %v7014_v17 = vpop.f32.mrf.mxu0 }
 0x526   :  { %v7207_v47 = vpop.f32.mrf.mxu1  ;;  %10025 = vst [vmem:[%s17812_s10 + $0x38] sm:$0xff] %v11013_v45  ;;  %v9110_v61 = vadd.f32 0.5, %v8886_v51  ;;  %v8892_v21 = vmul.f32 0.5, %v12357_v19  ;;  %v8472_v6 = vmul.f32 0.5, %v7204_v44  ;;  %v7015_v5 = vadd.f32 %v7014_v17, %v16884_v3  ;;  %v18079_v45 = vld [vmem:[#allocation33_spill] sm:$0xff]  ;;  %v18080_v19 = vld [vmem:[#allocation34_spill] sm:$0xff] }
 0x527   :  { %v12359_v62 = vpop.eup %12358  ;;  %12370 = vtanh.f32 %v8466_v7  ;;  %v7206_v60 = vadd.f32 %v7205_v39, %v7013_v11  ;;  %v7016_v9 = vpop.f32.mrf.mxu0 }
 0x528   :  { %v7209_v1 = vpop.f32.mrf.mxu1  ;;  %v11017_v56 = vpack.c.bf16 %v9110_v61, %v9109_v31  ;;  %v8893_v37 = vmul.f32 0.5, %v12359_v62  ;;  %12372 = vtanh.f32 %v8472_v6  ;;  %v7208_v35 = vadd.f32 %v7207_v47, %v7015_v5 }
 0x529   :  { %v8473_v30 = vmul.f32 0.5, %v7206_v60  ;;  %v7017_v13 = vadd.f32 %v7016_v9, %v16887_v41  ;;  %v7020_v10 = vpop.f32.mrf.mxu0  ;;  %7485 = vmatmul.mubr.bf16.gmra.mxu0 %v18079_v45  ;;  %v9116_v39 = vadd.f32 0.5, %v8892_v21 }
 0x52a   :  { %v7213_v2 = vpop.f32.mrf.mxu1  ;;  %7678 = vmatmul.mubr.bf16.gmra.mxu1 %v18080_v19  ;;  %v12361_v44 = vpop.eup %12360  ;;  %10029 = vst [vmem:[%s17812_s10 + $0x54] sm:$0xff] %v11017_v56  ;;  %v9117_v51 = vadd.f32 0.5, %v8893_v37  ;;  %v7021_v31 = vadd.f32 %v7020_v10, %v16884_v3  ;;  %7494 = vmatprep.mubr.bf16.mxu0 %v16622_v49  ;;  %v8479_v11 = vmul.f32 0.5, %v7208_v35 }
 0x52b   :  { %7687 = vmatprep.mubr.bf16.mxu1 %v16624_v55  ;;  %v8899_v7 = vmul.f32 0.5, %v12361_v44  ;;  %12374 = vtanh.f32 %v8473_v30  ;;  %v7210_v17 = vadd.f32 %v7209_v1, %v7017_v13  ;;  %v7022_v47 = vpop.f32.mrf.mxu0 }
 0x52c   :  { %v7215_v61 = vpop.f32.mrf.mxu1  ;;  %v12363_v6 = vpop.eup %12362  ;;  %v11021_v5 = vpack.c.bf16 %v9117_v51, %v9116_v39  ;;  %v7214_v62 = vadd.f32 %v7213_v2, %v7021_v31  ;;  %v7023_v60 = vadd.f32 %v7022_v47, %v16887_v41  ;;  %12376 = vtanh.f32 %v8479_v11 }
 0x52d   :  { %v12365_v9 = vpop.eup %12364  ;;  %v8900_v21 = vmul.f32 0.5, %v12363_v6  ;;  %v8480_v56 = vmul.f32 0.5, %v7210_v17  ;;  %v7024_v10 = vpop.f32.mrf.mxu0  ;;  %v9123_v13 = vadd.f32 0.5, %v8899_v7 }
 0x52e   :  { %v7217_v37 = vpop.f32.mrf.mxu1  ;;  %10033 = vst [vmem:[%s17812_s10 + $0x70] sm:$0xff] %v11021_v5  ;;  %v8486_v30 = vmul.f32 0.5, %v7214_v62  ;;  %v7216_v35 = vadd.f32 %v7215_v61, %v7023_v60  ;;  %v7025_v1 = vadd.f32 %v7024_v10, %v16884_v3  ;;  %v8906_v39 = vmul.f32 0.5, %v12365_v9 }
 0x52f   :  { %v9124_v44 = vadd.f32 0.5, %v8900_v21  ;;  %12378 = vtanh.f32 %v8480_v56  ;;  %v7026_v2 = vpop.f32.mrf.mxu0 }
 0x530   :  { %v7219_v51 = vpop.f32.mrf.mxu1  ;;  %v12367_v31 = vpop.eup %12366  ;;  %12380 = vtanh.f32 %v8486_v30  ;;  %v8487_v11 = vmul.f32 0.5, %v7216_v35  ;;  %v7218_v17 = vadd.f32 %v7217_v37, %v7025_v1  ;;  %v7027_v55 = vadd.f32 %v7026_v2, %v16887_v41 }
 0x531   :  { %v11025_v47 = vpack.c.bf16 %v9124_v44, %v9123_v13  ;;  %v8907_v6 = vmul.f32 0.5, %v12367_v31  ;;  %v7030_v49 = vpop.f32.mrf.mxu0  ;;  %7495 = vmatmul.mubr.bf16.gmra.mxu0 %v16626_v34  ;;  %v9130_v60 = vadd.f32 0.5, %v8906_v39 }
 0x532   :  { %v7223_v5 = vpop.f32.mrf.mxu1  ;;  %7688 = vmatmul.mubr.bf16.gmra.mxu1 %v16628_v63  ;;  %v12369_v7 = vpop.eup %12368  ;;  %12382 = vtanh.f32 %v8487_v11  ;;  %v8493_v61 = vmul.f32 0.5, %v7218_v17  ;;  %v7031_v62 = vadd.f32 %v7030_v49, %v16884_v3  ;;  %7504 = vmatprep.mubr.bf16.mxu0 %v16642_v16  ;;  %v7220_v56 = vadd.f32 %v7219_v51, %v7027_v55 }
 0x533   :  { %7697 = vmatprep.mubr.bf16.mxu1 %v16644_v54  ;;  %10037 = vst [vmem:[%s17812_s10 + $0x8c] sm:$0xff] %v11025_v47  ;;  %v9131_v9 = vadd.f32 0.5, %v8907_v6  ;;  %v8913_v21 = vmul.f32 0.5, %v12369_v7  ;;  %v7032_v10 = vpop.f32.mrf.mxu0 }
 0x534   :  { %v7225_v37 = vpop.f32.mrf.mxu1  ;;  %v12371_v30 = vpop.eup %12370  ;;  %12384 = vtanh.f32 %v8493_v61  ;;  %v7224_v35 = vadd.f32 %v7223_v5, %v7031_v62  ;;  %v7033_v1 = vadd.f32 %v7032_v10, %v16887_v41  ;;  %v8494_v2 = vmul.f32 0.5, %v7220_v56 }
 0x535   :  { %v12373_v49 = vpop.eup %12372  ;;  %v11029_v13 = vpack.c.bf16 %v9131_v9, %v9130_v60  ;;  %v8914_v44 = vmul.f32 0.5, %v12371_v30  ;;  %v7034_v31 = vpop.f32.mrf.mxu0  ;;  %v9137_v55 = vadd.f32 0.5, %v8913_v21 }
 0x536   :  { %v7227_v11 = vpop.f32.mrf.mxu1  ;;  %v8500_v17 = vmul.f32 0.5, %v7224_v35  ;;  %v7226_v54 = vadd.f32 %v7225_v37, %v7033_v1  ;;  %v7035_v39 = vadd.f32 %v7034_v31, %v16884_v3  ;;  %v8920_v47 = vmul.f32 0.5, %v12373_v49 }
 0x537   :  { %10041 = vst [vmem:[%s17812_s10 + $0xa8] sm:$0xff] %v11029_v13  ;;  %v9138_v51 = vadd.f32 0.5, %v8914_v44  ;;  %12386 = vtanh.f32 %v8494_v2  ;;  %v7036_v6 = vpop.f32.mrf.mxu0 }
 0x538   :  { %v7229_v5 = vpop.f32.mrf.mxu1  ;;  %v12375_v7 = vpop.eup %12374  ;;  %12388 = vtanh.f32 %v8500_v17  ;;  %v8501_v61 = vmul.f32 0.5, %v7226_v54  ;;  %v7228_v62 = vadd.f32 %v7227_v11, %v7035_v39  ;;  %v7037_v56 = vadd.f32 %v7036_v6, %v16887_v41 }
 0x539   :  { %v11033_v60 = vpack.c.bf16 %v9138_v51, %v9137_v55  ;;  %v8921_v9 = vmul.f32 0.5, %v12375_v7  ;;  %v7040_v10 = vpop.f32.mrf.mxu0  ;;  %7505 = vmatmul.mubr.bf16.gmra.mxu0 %v16646_v58  ;;  %v12377_v21 = vpop.eup %12376  ;;  %v9144_v54 = vadd.f32 0.5, %v8920_v47 }
 0x53a   :  { %v7233_v37 = vpop.f32.mrf.mxu1  ;;  %7698 = vmatmul.mubr.bf16.gmra.mxu1 %v16648_v0  ;;  %12390 = vtanh.f32 %v8501_v61  ;;  %v8507_v30 = vmul.f32 0.5, %v7228_v62  ;;  %v7041_v35 = vadd.f32 %v7040_v10, %v16884_v3  ;;  %7740 = vmatprep.mubr.bf16.mxu0 %v16150_v32  ;;  %v8927_v49 = vmul.f32 0.5, %v12377_v21 }
 0x53b   :  { %7933 = vmatprep.mubr.bf16.mxu1 %v16152_v46  ;;  %10045 = vst [vmem:[%s17812_s10 + $0xc4] sm:$0xff] %v11033_v60  ;;  %v9145_v1 = vadd.f32 0.5, %v8921_v9  ;;  %v7230_v13 = vadd.f32 %v7229_v5, %v7037_v56  ;;  %v7042_v44 = vpop.f32.mrf.mxu0 }
 0x53c   :  { %v7235_v2 = vpop.f32.mrf.mxu1  ;;  %v12379_v31 = vpop.eup %12378  ;;  %12392 = vtanh.f32 %v8507_v30  ;;  %v7234_v11 = vadd.f32 %v7233_v37, %v7041_v35  ;;  %v7043_v17 = vadd.f32 %v7042_v44, %v16887_v41  ;;  %v9151_v5 = vadd.f32 0.5, %v8927_v49  ;;  %v12245_v30 = vld [vmem:[%s17807_s8 + $0x1a0] ss:$28 sps:$4 sm:$0xff]   ;;  %v12250_v49 = vld [vmem:[%s17807_s8 + $0x6a8] ss:$28 sps:$4 sm:$0xff]  }
 0x53d   :  { %v12381_v39 = vpop.eup %12380  ;;  %v11037_v55 = vpack.c.bf16 %v9145_v1, %v9144_v54  ;;  %v8928_v51 = vmul.f32 0.5, %v12379_v31  ;;  %v8508_v6 = vmul.f32 0.5, %v7230_v13  ;;  %v7044_v7 = vpop.f32.mrf.mxu0  ;;  %v12247_v35 = vld [vmem:[%s17807_s8 + $0x520] ss:$28 sps:$4 sm:$0xff]   ;;  %v12248_v13 = vld [vmem:[%s17807_s8 + $0x328] ss:$28 sps:$4 sm:$0xff]  }
 0x53e   :  { %v7237_v61 = vpop.f32.mrf.mxu1  ;;  %v8934_v62 = vmul.f32 0.5, %v12381_v39  ;;  %v8514_v10 = vmul.f32 0.5, %v7234_v11  ;;  %v7236_v60 = vadd.f32 %v7235_v2, %v7043_v17  ;;  %v7045_v47 = vadd.f32 %v7044_v7, %v16884_v3 }
 0x53f   :  { %v12383_v9 = vpop.eup %12382  ;;  %10049 = vst [vmem:[%s17812_s10 + $0xe0] sm:$0xff] %v11037_v55  ;;  %v9152_v56 = vadd.f32 0.5, %v8928_v51  ;;  %12394 = vtanh.f32 %v8508_v6  ;;  %v7046_v37 = vpop.f32.mrf.mxu0 }
 0x540   :  { %v7239_v21 = vpop.f32.mrf.mxu1  ;;  %v8935_v54 = vmul.f32 0.5, %v12383_v9  ;;  %12396 = vtanh.f32 %v8514_v10  ;;  %v8515_v1 = vmul.f32 0.5, %v7236_v60  ;;  %v7238_v31 = vadd.f32 %v7237_v61, %v7045_v47  ;;  %v12251_v9 = vld [vmem:[%s17807_s8 + $0x4e8] ss:$28 sps:$4 sm:$0xff]  }
 0x541   :  { %v12385_v44 = vpop.eup %12384  ;;  %v11041_v2 = vpack.c.bf16 %v9152_v56, %v9151_v5  ;;  %v7047_v11 = vadd.f32 %v7046_v37, %v16887_v41  ;;  %v7050_v17 = vpop.f32.mrf.mxu0  ;;  %7741 = vmatmul.mubr.bf16.vlgmr.msra.gmra.mxu0 %v16160_v33  ;;  %v9158_v55 = vadd.f32 0.5, %v8934_v62  ;;  %v12249_v62 = vld [vmem:[%s17807_s8 + $0x168] ss:$28 sps:$4 sm:$0xff]  }
 0x542   :  { %v7243_v39 = vpop.f32.mrf.mxu1  ;;  %7934 = vmatmul.mubr.bf16.vlgmr.msra.gmra.mxu1 %v16162_v8  ;;  %v9159_v51 = vadd.f32 0.5, %v8935_v54  ;;  %12398 = vtanh.f32 %v8515_v1  ;;  %v7051_v6 = vadd.f32 %v7050_v17, %v16884_v3  ;;  %7750 = vmatprep.mubr.bf16.mxu0 %v16191_v18  ;;  %v8941_v7 = vmul.f32 0.5, %v12385_v44 }
 0x543   :  { %7943 = vmatprep.mubr.bf16.mxu1 %v16193_v43  ;;  %10053 = vst [vmem:[%s17812_s10 + $0xfc] sm:$0xff] %v11041_v2  ;;  %v8521_v61 = vmul.f32 0.5, %v7238_v31  ;;  %v7240_v10 = vadd.f32 %v7239_v21, %v7047_v11  ;;  %11134 = vmatpush3.bf16.msra.mxu0 %v12245_v30  ;;  %v7052_v60 = vpop.f32.mrf.mxu0  ;;  %v12252_v21 = vld [vmem:[%s17807_s8 + $0x2f0] ss:$28 sps:$4 sm:$0xff]  }
 0x544   :  { %v7245_v47 = vpop.f32.mrf.mxu1  ;;  %11246 = vmatpush3.bf16.msra.mxu1 %v12247_v35  ;;  %v12387_v5 = vpop.eup %12386  ;;  %v11045_v56 = vpack.c.bf16 %v9159_v51, %v9158_v55  ;;  %v7244_v37 = vadd.f32 %v7243_v39, %v7051_v6  ;;  %v7053_v54 = vadd.f32 %v7052_v60, %v16887_v41  ;;  %11135 = vmatprep.subr.bf16.mxu0 %v12248_v13  ;;  %v12254_v30 = vld [vmem:[%s17807_s8 + $0x670] ss:$28 sps:$4 sm:$0xff]   ;;  %v9165_v55 = vadd.f32 0.5, %v8941_v7  ;;  %v12256_v7 = vld [vmem:[%s17807_s8 + $0x2b8] ss:$28 sps:$4 sm:$0xff]  }
 0x545   :  { %11247 = vmatprep.subr.bf16.mxu1 %v12250_v49  ;;  %v12389_v35 = vpop.eup %12388  ;;  %v8942_v1 = vmul.f32 0.5, %v12387_v5  ;;  %12400 = vtanh.f32 %v8521_v61  ;;  %v8522_v44 = vmul.f32 0.5, %v7240_v10  ;;  %v7054_v2 = vpop.f32.mrf.mxu0  ;;  %v12253_v61 = vld [vmem:[%s17807_s8 + $0x130] ss:$28 sps:$4 sm:$0xff]  }
 0x546   :  { %v7247_v31 = vpop.f32.mrf.mxu1  ;;  %10057 = vst [vmem:[%s17812_s10 + $0x118] sm:$0xff] %v11045_v56  ;;  %v8948_v13 = vmul.f32 0.5, %v12389_v35  ;;  %v8528_v49 = vmul.f32 0.5, %v7244_v37  ;;  %v7246_v11 = vadd.f32 %v7245_v47, %v7053_v54  ;;  %v7055_v17 = vadd.f32 %v7054_v2, %v16884_v3  ;;  %v12255_v10 = vld [vmem:[%s17807_s8 + $0x4b0] ss:$28 sps:$4 sm:$0xff]  }
 0x547   :  { %v12391_v39 = vpop.eup %12390  ;;  %v9166_v51 = vadd.f32 0.5, %v8942_v1  ;;  %12402 = vtanh.f32 %v8522_v44  ;;  %v7056_v6 = vpop.f32.mrf.mxu0  ;;  %11136 = vmatpush3.bf16.msra.mxu0 %v12249_v62  ;;  %v12258_v62 = vld [vmem:[%s17807_s8 + $0x638] ss:$28 sps:$4 sm:$0xff]  }
 0x548   :  { %v7249_v60 = vpop.f32.mrf.mxu1  ;;  %11248 = vmatpush3.bf16.msra.mxu1 %v12251_v9  ;;  %v8949_v5 = vmul.f32 0.5, %v12391_v39  ;;  %12404 = vtanh.f32 %v8528_v49  ;;  %v8529_v47 = vmul.f32 0.5, %v7246_v11  ;;  %11137 = vmatprep.subr.bf16.mxu0 %v12252_v21  ;;  %v7248_v37 = vadd.f32 %v7247_v31, %v7055_v17  ;;  %v12259_v39 = vld [vmem:[%s17807_s8 + $0x478] ss:$28 sps:$4 sm:$0xff]  }
 0x549   :  { %11249 = vmatprep.subr.bf16.mxu1 %v12254_v30  ;;  %v12393_v9 = vpop.eup %12392  ;;  %v11049_v56 = vpack.c.bf16 %v9166_v51, %v9165_v55  ;;  %v7057_v54 = vadd.f32 %v7056_v6, %v16887_v41  ;;  %v7060_v35 = vpop.f32.mrf.mxu0  ;;  %7751 = vmatmul.mubr.bf16.gmra.mxu0 %v16201_v42  ;;  %v9172_v21 = vadd.f32 0.5, %v8948_v13  ;;  %v12257_v13 = vld [vmem:[%s17807_s8 + $0xf8] ss:$28 sps:$4 sm:$0xff]  }
 0x54a   :  { %v7253_v1 = vpop.f32.mrf.mxu1  ;;  %7944 = vmatmul.mubr.bf16.gmra.mxu1 %v16203_v22  ;;  %v9173_v30 = vadd.f32 0.5, %v8949_v5  ;;  %12406 = vtanh.f32 %v8529_v47  ;;  %v7061_v44 = vadd.f32 %v7060_v35, %v16884_v3  ;;  %7760 = vmatprep.mubr.bf16.mxu0 %v16235_v14  ;;  %v8955_v2 = vmul.f32 0.5, %v12393_v9 }
 0x54b   :  { %7953 = vmatprep.mubr.bf16.mxu1 %v16237_v59  ;;  %10061 = vst [vmem:[%s17812_s10 + $0x134] sm:$0xff] %v11049_v56  ;;  %v8535_v31 = vmul.f32 0.5, %v7248_v37  ;;  %v7250_v49 = vadd.f32 %v7249_v60, %v7057_v54  ;;  %v7062_v11 = vpop.f32.mrf.mxu0  ;;  %11138 = vmatpush3.bf16.msra.mxu0 %v12253_v61  ;;  %v12260_v60 = vld [vmem:[%s17807_s8 + $0x280] ss:$28 sps:$4 sm:$0xff]  }
 0x54c   :  { %v7255_v17 = vpop.f32.mrf.mxu1  ;;  %11250 = vmatpush3.bf16.msra.mxu1 %v12255_v10  ;;  %v12395_v55 = vpop.eup %12394  ;;  %v11053_v51 = vpack.c.bf16 %v9173_v30, %v9172_v21  ;;  %v7254_v6 = vadd.f32 %v7253_v1, %v7061_v44  ;;  %v7063_v5 = vadd.f32 %v7062_v11, %v16887_v41  ;;  %11139 = vmatprep.subr.bf16.mxu0 %v12256_v7  ;;  %v12262_v61 = vld [vmem:[%s17807_s8 + $0x600] ss:$28 sps:$4 sm:$0xff]   ;;  %v9179_v21 = vadd.f32 0.5, %v8955_v2  ;;  %v12264_v2 = vld [vmem:[%s17807_s8 + $0x248] ss:$28 sps:$4 sm:$0xff]  }
 0x54d   :  { %11251 = vmatprep.subr.bf16.mxu1 %v12258_v62  ;;  %v12397_v10 = vpop.eup %12396  ;;  %v8956_v47 = vmul.f32 0.5, %v12395_v55  ;;  %12408 = vtanh.f32 %v8535_v31  ;;  %v8536_v9 = vmul.f32 0.5, %v7250_v49  ;;  %v7064_v56 = vpop.f32.mrf.mxu0  ;;  %v12261_v31 = vld [vmem:[%s17807_s8 + $0xc0] ss:$28 sps:$4 sm:$0xff]  }
 0x54e   :  { %v7257_v37 = vpop.f32.mrf.mxu1  ;;  %10065 = vst [vmem:[%s17812_s10 + $0x150] sm:$0xff] %v11053_v51  ;;  %v8962_v7 = vmul.f32 0.5, %v12397_v10  ;;  %v8542_v62 = vmul.f32 0.5, %v7254_v6  ;;  %v7256_v54 = vadd.f32 %v7255_v17, %v7063_v5  ;;  %v7065_v35 = vadd.f32 %v7064_v56, %v16884_v3  ;;  %v12263_v49 = vld [vmem:[%s17807_s8 + $0x440] ss:$28 sps:$4 sm:$0xff]  }
 0x54f   :  { %v12399_v1 = vpop.eup %12398  ;;  %v9180_v30 = vadd.f32 0.5, %v8956_v47  ;;  %12410 = vtanh.f32 %v8536_v9  ;;  %v7066_v44 = vpop.f32.mrf.mxu0  ;;  %11140 = vmatpush3.bf16.msra.mxu0 %v12257_v13  ;;  %v12266_v13 = vld [vmem:[%s17807_s8 + $0x5c8] ss:$28 sps:$4 sm:$0xff]  }
 0x550   :  { %v7259_v11 = vpop.f32.mrf.mxu1  ;;  %11252 = vmatpush3.bf16.msra.mxu1 %v12259_v39  ;;  %v8963_v55 = vmul.f32 0.5, %v12399_v1  ;;  %12412 = vtanh.f32 %v8542_v62  ;;  %v8543_v17 = vmul.f32 0.5, %v7256_v54  ;;  %11141 = vmatprep.subr.bf16.mxu0 %v12260_v60  ;;  %v7258_v51 = vadd.f32 %v7257_v37, %v7065_v35  ;;  %v12267_v1 = vld [vmem:[%s17807_s8 + $0x408] ss:$28 sps:$4 sm:$0xff]  }
 0x551   :  { %11253 = vmatprep.subr.bf16.mxu1 %v12262_v61  ;;  %v11057_v39 = vpack.c.bf16 %v9180_v30, %v9179_v21  ;;  %v7067_v6 = vadd.f32 %v7066_v44, %v16887_v41  ;;  %v7070_v5 = vpop.f32.mrf.mxu0  ;;  %7761 = vmatmul.mubr.bf16.gmra.mxu0 %v16245_v26  ;;  %v9186_v61 = vadd.f32 0.5, %v8962_v7  ;;  %v12265_v7 = vld [vmem:[%s17807_s8 + $0x88] ss:$28 sps:$4 sm:$0xff]  }
 0x552   :  { %v7263_v10 = vpop.f32.mrf.mxu1  ;;  %7954 = vmatmul.mubr.bf16.gmra.mxu1 %v16247_v53  ;;  %v12401_v60 = vpop.eup %12400  ;;  %v9187_v47 = vadd.f32 0.5, %v8963_v55  ;;  %12414 = vtanh.f32 %v8543_v17  ;;  %v7071_v9 = vadd.f32 %v7070_v5, %v16884_v3  ;;  %7770 = vmatprep.mubr.bf16.mxu0 %v16279_v29  ;;  %v8549_v37 = vmul.f32 0.5, %v7258_v51 }
 0x553   :  { %7963 = vmatprep.mubr.bf16.mxu1 %v16281_v40  ;;  %10069 = vst [vmem:[%s17812_s10 + $0x16c] sm:$0xff] %v11057_v39  ;;  %v8969_v56 = vmul.f32 0.5, %v12401_v60  ;;  %v7260_v62 = vadd.f32 %v7259_v11, %v7067_v6  ;;  %v7072_v54 = vpop.f32.mrf.mxu0  ;;  %11142 = vmatpush3.bf16.msra.mxu0 %v12261_v31  ;;  %v12268_v11 = vld [vmem:[%s17807_s8 + $0x210] ss:$28 sps:$4 sm:$0xff]  }
 0x554   :  { %v7265_v35 = vpop.f32.mrf.mxu1  ;;  %11254 = vmatpush3.bf16.msra.mxu1 %v12263_v49  ;;  %v12403_v21 = vpop.eup %12402  ;;  %v11061_v30 = vpack.c.bf16 %v9187_v47, %v9186_v61  ;;  %v7264_v44 = vadd.f32 %v7263_v10, %v7071_v9  ;;  %v7073_v55 = vadd.f32 %v7072_v54, %v16887_v41  ;;  %11143 = vmatprep.subr.bf16.mxu0 %v12264_v2  ;;  %v12270_v31 = vld [vmem:[%s17807_s8 + $0x590] ss:$28 sps:$4 sm:$0xff]   ;;  %12416 = vtanh.f32 %v8549_v37 }
 0x555   :  { %11255 = vmatprep.subr.bf16.mxu1 %v12266_v13  ;;  %v12405_v49 = vpop.eup %12404  ;;  %v8970_v17 = vmul.f32 0.5, %v12403_v21  ;;  %v8550_v39 = vmul.f32 0.5, %v7260_v62  ;;  %v7074_v51 = vpop.f32.mrf.mxu0  ;;  %v9193_v61 = vadd.f32 0.5, %v8969_v56  ;;  %v12269_v37 = vld [vmem:[%s17807_s8 + $0x50] ss:$28 sps:$4 sm:$0xff]  }
 0x556   :  { %v7267_v6 = vpop.f32.mrf.mxu1  ;;  %10073 = vst [vmem:[%s17812_s10 + $0x188] sm:$0xff] %v11061_v30  ;;  %v8976_v2 = vmul.f32 0.5, %v12405_v49  ;;  %v8556_v13 = vmul.f32 0.5, %v7264_v44  ;;  %v7266_v5 = vadd.f32 %v7265_v35, %v7073_v55  ;;  %v7075_v10 = vadd.f32 %v7074_v51, %v16884_v3  ;;  %v12271_v62 = vld [vmem:[%s17807_s8 + $0x3d0] ss:$28 sps:$4 sm:$0xff]  }
 0x557   :  { %v12407_v60 = vpop.eup %12406  ;;  %v9194_v47 = vadd.f32 0.5, %v8970_v17  ;;  %12418 = vtanh.f32 %v8550_v39  ;;  %v7076_v9 = vpop.f32.mrf.mxu0  ;;  %11144 = vmatpush3.bf16.msra.mxu0 %v12265_v7  ;;  %v12272_v56 = vld [vmem:[%s17807_s8 + $0x1d8] ss:$28 sps:$4 sm:$0xff]  }
 0x558   :  { %v7269_v54 = vpop.f32.mrf.mxu1  ;;  %11256 = vmatpush3.bf16.msra.mxu1 %v12267_v1  ;;  %v8977_v21 = vmul.f32 0.5, %v12407_v60  ;;  %12420 = vtanh.f32 %v8556_v13  ;;  %v8557_v35 = vmul.f32 0.5, %v7266_v5  ;;  %11145 = vmatprep.subr.bf16.mxu0 %v12268_v11  ;;  %v12274_v7 = vld [vmem:[%s17807_s8 + $0x558] ss:$28 sps:$4 sm:$0xff]   ;;  %v7268_v30 = vadd.f32 %v7267_v6, %v7075_v10 }
 0x559   :  { %11257 = vmatprep.subr.bf16.mxu1 %v12270_v31  ;;  %v11065_v1 = vpack.c.bf16 %v9194_v47, %v9193_v61  ;;  %v7077_v44 = vadd.f32 %v7076_v9, %v16887_v41  ;;  %v7080_v55 = vpop.f32.mrf.mxu0  ;;  %7771 = vmatmul.mubr.bf16.gmra.mxu0 %v16289_v12  ;;  %v9200_v31 = vadd.f32 0.5, %v8976_v2  ;;  %v12273_v2 = vld [vmem:[%s17807_s8 + $0x18] ss:$28 sps:$4 sm:$0xff]  }
 0x55a   :  { %v7273_v49 = vpop.f32.mrf.mxu1  ;;  %7964 = vmatmul.mubr.bf16.gmra.mxu1 %v16291_v24  ;;  %v12409_v11 = vpop.eup %12408  ;;  %v9201_v17 = vadd.f32 0.5, %v8977_v21  ;;  %12422 = vtanh.f32 %v8557_v35  ;;  %v7081_v39 = vadd.f32 %v7080_v55, %v16884_v3  ;;  %7780 = vmatprep.mubr.bf16.mxu0 %v16323_v28  ;;  %v8563_v6 = vmul.f32 0.5, %v7268_v30  ;;  %v12275_v60 = vld [vmem:[%s17807_s8 + $0x398] ss:$28 sps:$4 sm:$0xff]  }
 0x55b   :  { %7973 = vmatprep.mubr.bf16.mxu1 %v16325_v48  ;;  %10077 = vst [vmem:[%s17812_s10 + $0x1a4] sm:$0xff] %v11065_v1  ;;  %v8983_v51 = vmul.f32 0.5, %v12409_v11  ;;  %v7270_v13 = vadd.f32 %v7269_v54, %v7077_v44  ;;  %v7082_v5 = vpop.f32.mrf.mxu0  ;;  %11146 = vmatpush3.bf16.msra.mxu0 %v12269_v37 }
 0x55c   :  { %v7275_v10 = vpop.f32.mrf.mxu1  ;;  %11258 = vmatpush3.bf16.msra.mxu1 %v12271_v62  ;;  %v12411_v61 = vpop.eup %12410  ;;  %v11069_v47 = vpack.c.bf16 %v9201_v17, %v9200_v31  ;;  %v7274_v9 = vadd.f32 %v7273_v49, %v7081_v39  ;;  %v7083_v21 = vadd.f32 %v7082_v5, %v16887_v41  ;;  %11147 = vmatprep.subr.bf16.mxu0 %v12272_v56  ;;  %12424 = vtanh.f32 %v8563_v6 }
 0x55d   :  { %11259 = vmatprep.subr.bf16.mxu1 %v12274_v7  ;;  %v12413_v54 = vpop.eup %12412  ;;  %v8984_v35 = vmul.f32 0.5, %v12411_v61  ;;  %v8564_v37 = vmul.f32 0.5, %v7270_v13  ;;  %v7084_v62 = vpop.f32.mrf.mxu0  ;;  %v9207_v31 = vadd.f32 0.5, %v8983_v51 }
 0x55e   :  { %v7277_v1 = vpop.f32.mrf.mxu1  ;;  %10081 = vst [vmem:[%s17812_s10 + $0x1c0] sm:$0xff] %v11069_v47  ;;  %v8990_v30 = vmul.f32 0.5, %v12413_v54  ;;  %v8570_v44 = vmul.f32 0.5, %v7274_v9  ;;  %v7276_v55 = vadd.f32 %v7275_v10, %v7083_v21  ;;  %v7085_v11 = vadd.f32 %v7084_v62, %v16884_v3 }
 0x55f   :  { %v12415_v49 = vpop.eup %12414  ;;  %v9208_v17 = vadd.f32 0.5, %v8984_v35  ;;  %12426 = vtanh.f32 %v8564_v37  ;;  %v7086_v56 = vpop.f32.mrf.mxu0  ;;  %11148 = vmatpush3.bf16.msra.mxu0 %v12273_v2 }
 0x560   :  { %v7279_v7 = vpop.f32.mrf.mxu1  ;;  %11260 = vmatpush3.bf16.msra.mxu1 %v12275_v60  ;;  %v8991_v39 = vmul.f32 0.5, %v12415_v49  ;;  %12428 = vtanh.f32 %v8570_v44  ;;  %v8571_v6 = vmul.f32 0.5, %v7276_v55  ;;  %v7278_v5 = vadd.f32 %v7277_v1, %v7085_v11 }
 0x561   :  { %v11073_v13 = vpack.c.bf16 %v9208_v17, %v9207_v31  ;;  %v7087_v61 = vadd.f32 %v7086_v56, %v16887_v41  ;;  %v7090_v47 = vpop.f32.mrf.mxu0  ;;  %7781 = vmatmul.mubr.bf16.gmra.mxu0 %v16333_v23  ;;  %v12417_v51 = vpop.eup %12416  ;;  %v9214_v10 = vadd.f32 0.5, %v8990_v30 }
 0x562   :  { %v7283_v9 = vpop.f32.mrf.mxu1  ;;  %7974 = vmatmul.mubr.bf16.gmra.mxu1 %v16335_v38  ;;  %v9215_v21 = vadd.f32 0.5, %v8991_v39  ;;  %12430 = vtanh.f32 %v8571_v6  ;;  %v7091_v2 = vadd.f32 %v7090_v47, %v16884_v3  ;;  %7790 = vmatprep.mubr.bf16.mxu0 %v16367_v27  ;;  %v8997_v60 = vmul.f32 0.5, %v12417_v51 }
 0x563   :  { %7983 = vmatprep.mubr.bf16.mxu1 %v16369_v15  ;;  %10085 = vst [vmem:[%s17812_s10 + $0x1dc] sm:$0xff] %v11073_v13  ;;  %v8577_v54 = vmul.f32 0.5, %v7278_v5  ;;  %v7280_v35 = vadd.f32 %v7279_v7, %v7087_v61  ;;  %v7092_v37 = vpop.f32.mrf.mxu0 }
 0x564   :  { %v7285_v62 = vpop.f32.mrf.mxu1  ;;  %v12419_v1 = vpop.eup %12418  ;;  %v11077_v44 = vpack.c.bf16 %v9215_v21, %v9214_v10  ;;  %v7284_v30 = vadd.f32 %v7283_v9, %v7091_v2  ;;  %v7093_v55 = vadd.f32 %v7092_v37, %v16887_v41  ;;  %v9221_v61 = vadd.f32 0.5, %v8997_v60 }
 0x565   :  { %v12421_v11 = vpop.eup %12420  ;;  %v8998_v49 = vmul.f32 0.5, %v12419_v1  ;;  %12432 = vtanh.f32 %v8577_v54  ;;  %v8578_v31 = vmul.f32 0.5, %v7280_v35  ;;  %v7094_v17 = vpop.f32.mrf.mxu0 }
 0x566   :  { %v7287_v56 = vpop.f32.mrf.mxu1  ;;  %10089 = vst [vmem:[%s17812_s10 + $0x1f8] sm:$0xff] %v11077_v44  ;;  %v9004_v39 = vmul.f32 0.5, %v12421_v11  ;;  %v8584_v6 = vmul.f32 0.5, %v7284_v30  ;;  %v7286_v7 = vadd.f32 %v7285_v62, %v7093_v55  ;;  %v7095_v13 = vadd.f32 %v7094_v17, %v16884_v3 }
 0x567   :  { %v12423_v5 = vpop.eup %12422  ;;  %v9222_v47 = vadd.f32 0.5, %v8998_v49  ;;  %12434 = vtanh.f32 %v8578_v31  ;;  %v7096_v9 = vpop.f32.mrf.mxu0 }
 0x568   :  { %v7289_v51 = vpop.f32.mrf.mxu1  ;;  %v9005_v10 = vmul.f32 0.5, %v12423_v5  ;;  %12436 = vtanh.f32 %v8584_v6  ;;  %v8585_v21 = vmul.f32 0.5, %v7286_v7  ;;  %v7288_v54 = vadd.f32 %v7287_v56, %v7095_v13 }
 0x569   :  { %v11081_v2 = vpack.c.bf16 %v9222_v47, %v9221_v61  ;;  %v7097_v35 = vadd.f32 %v7096_v9, %v16887_v41  ;;  %v7100_v37 = vpop.f32.mrf.mxu0  ;;  %7791 = vmatmul.mubr.bf16.gmra.mxu0 %v16377_v50  ;;  %v12425_v62 = vpop.eup %12424  ;;  %v9228_v44 = vadd.f32 0.5, %v9004_v39 }
 0x56a   :  { %v7293_v1 = vpop.f32.mrf.mxu1  ;;  %7984 = vmatmul.mubr.bf16.gmra.mxu1 %v16379_v4  ;;  %v9229_v60 = vadd.f32 0.5, %v9005_v10  ;;  %12438 = vtanh.f32 %v8585_v21  ;;  %v7101_v30 = vadd.f32 %v7100_v37, %v16884_v3  ;;  %7800 = vmatprep.mubr.bf16.mxu0 %v16411_v57  ;;  %v9011_v55 = vmul.f32 0.5, %v12425_v62 }
 0x56b   :  { %7993 = vmatprep.mubr.bf16.mxu1 %v16413_v36  ;;  %10093 = vst [vmem:[%s17812_s10 + $0x214] sm:$0xff] %v11081_v2  ;;  %v8591_v11 = vmul.f32 0.5, %v7288_v54  ;;  %v7290_v49 = vadd.f32 %v7289_v51, %v7097_v35  ;;  %v7102_v31 = vpop.f32.mrf.mxu0 }
 0x56c   :  { %v7295_v17 = vpop.f32.mrf.mxu1  ;;  %v12427_v56 = vpop.eup %12426  ;;  %v11085_v6 = vpack.c.bf16 %v9229_v60, %v9228_v44  ;;  %v7294_v39 = vadd.f32 %v7293_v1, %v7101_v30  ;;  %v7103_v7 = vadd.f32 %v7102_v31, %v16887_v41  ;;  %v9235_v35 = vadd.f32 0.5, %v9011_v55 }
 0x56d   :  { %v12429_v13 = vpop.eup %12428  ;;  %v9012_v5 = vmul.f32 0.5, %v12427_v56  ;;  %12440 = vtanh.f32 %v8591_v11  ;;  %v8592_v61 = vmul.f32 0.5, %v7290_v49  ;;  %v7104_v47 = vpop.f32.mrf.mxu0 }
 0x56e   :  { %v7297_v9 = vpop.f32.mrf.mxu1  ;;  %10097 = vst [vmem:[%s17812_s10 + $0x230] sm:$0xff] %v11085_v6  ;;  %v9018_v10 = vmul.f32 0.5, %v12429_v13  ;;  %v8598_v21 = vmul.f32 0.5, %v7294_v39  ;;  %v7296_v51 = vadd.f32 %v7295_v17, %v7103_v7  ;;  %v7105_v2 = vadd.f32 %v7104_v47, %v16884_v3  ;;  %v18081_v7 = vld [vmem:[#allocation13_spill] sm:$0xff] }
 0x56f   :  { %v12431_v54 = vpop.eup %12430  ;;  %v9236_v37 = vadd.f32 0.5, %v9012_v5  ;;  %12442 = vtanh.f32 %v8592_v61  ;;  %v7106_v1 = vpop.f32.mrf.mxu0 }
 0x570   :  { %v7299_v62 = vpop.f32.mrf.mxu1  ;;  %v9019_v44 = vmul.f32 0.5, %v12431_v54  ;;  %12444 = vtanh.f32 %v8598_v21  ;;  %v8599_v60 = vmul.f32 0.5, %v7296_v51  ;;  %v7298_v11 = vadd.f32 %v7297_v9, %v7105_v2 }
 0x571   :  { %v11089_v30 = vpack.c.bf16 %v9236_v37, %v9235_v35  ;;  %v7107_v49 = vadd.f32 %v7106_v1, %v16887_v41  ;;  %v7110_v31 = vpop.f32.mrf.mxu0  ;;  %7801 = vmatmul.mubr.bf16.gmra.mxu0 %v16421_v20  ;;  %v9242_v6 = vadd.f32 0.5, %v9018_v10 }
 0x572   :  { %v7303_v56 = vpop.f32.mrf.mxu1  ;;  %7994 = vmatmul.mubr.bf16.gmra.mxu1 %v16423_v52  ;;  %v12433_v17 = vpop.eup %12432  ;;  %v9243_v55 = vadd.f32 0.5, %v9019_v44  ;;  %12446 = vtanh.f32 %v8599_v60  ;;  %v7111_v39 = vadd.f32 %v7110_v31, %v16884_v3  ;;  %7810 = vmatprep.mubr.bf16.mxu0 %v16455_v25  ;;  %v8605_v5 = vmul.f32 0.5, %v7298_v11 }
 0x573   :  { %8003 = vmatprep.mubr.bf16.mxu1 %v18081_v7  ;;  %10101 = vst [vmem:[%s17812_s10 + $0x24c] sm:$0xff] %v11089_v30  ;;  %v9025_v13 = vmul.f32 0.5, %v12433_v17  ;;  %v7300_v61 = vadd.f32 %v7299_v62, %v7107_v49  ;;  %v7112_v47 = vpop.f32.mrf.mxu0 }
 0x574   :  { %v7305_v9 = vpop.f32.mrf.mxu1  ;;  %v12435_v21 = vpop.eup %12434  ;;  %v11093_v51 = vpack.c.bf16 %v9243_v55, %v9242_v6  ;;  %v7304_v10 = vadd.f32 %v7303_v56, %v7111_v39  ;;  %v7113_v2 = vadd.f32 %v7112_v47, %v16887_v41  ;;  %12448 = vtanh.f32 %v8605_v5 }
 0x575   :  { %v12437_v54 = vpop.eup %12436  ;;  %v9026_v35 = vmul.f32 0.5, %v12435_v21  ;;  %v8606_v37 = vmul.f32 0.5, %v7300_v61  ;;  %v7114_v1 = vpop.f32.mrf.mxu0  ;;  %v9249_v31 = vadd.f32 0.5, %v9025_v13 }
 0x576   :  { %v7307_v44 = vpop.f32.mrf.mxu1  ;;  %10105 = vst [vmem:[%s17812_s10 + $0x268] sm:$0xff] %v11093_v51  ;;  %v9032_v60 = vmul.f32 0.5, %v12437_v54  ;;  %v8612_v30 = vmul.f32 0.5, %v7304_v10  ;;  %v7306_v62 = vadd.f32 %v7305_v9, %v7113_v2  ;;  %v7115_v11 = vadd.f32 %v7114_v1, %v16884_v3  ;;  %v18082_v54 = vld [vmem:[#allocation5_spill] sm:$0xff]  ;;  %v18083_v9 = vld [vmem:[#allocation14_spill] sm:$0xff]  ;;  %v18085_v1 = vld [vmem:[#allocation15_spill] sm:$0xff] }
 0x577   :  { %v12439_v49 = vpop.eup %12438  ;;  %v9250_v56 = vadd.f32 0.5, %v9026_v35  ;;  %12450 = vtanh.f32 %v8606_v37  ;;  %v7116_v17 = vpop.f32.mrf.mxu0  ;;  %v18084_v37 = vld [vmem:[#allocation9_spill] sm:$0xff] }
 0x578   :  { %v7309_v6 = vpop.f32.mrf.mxu1  ;;  %v9033_v55 = vmul.f32 0.5, %v12439_v49  ;;  %12452 = vtanh.f32 %v8612_v30  ;;  %v8613_v39 = vmul.f32 0.5, %v7306_v62  ;;  %v7308_v61 = vadd.f32 %v7307_v44, %v7115_v11 }
 0x579   :  { %v11097_v5 = vpack.c.bf16 %v9250_v56, %v9249_v31  ;;  %v7117_v47 = vadd.f32 %v7116_v17, %v16887_v41  ;;  %v7120_v21 = vpop.f32.mrf.mxu0  ;;  %7811 = vmatmul.mubr.bf16.gmra.mxu0 %v18082_v54  ;;  %v9256_v2 = vadd.f32 0.5, %v9032_v60 }
 0x57a   :  { %v7313_v51 = vpop.f32.mrf.mxu1  ;;  %8004 = vmatmul.mubr.bf16.gmra.mxu1 %v18083_v9  ;;  %v12441_v10 = vpop.eup %12440  ;;  %v9257_v13 = vadd.f32 0.5, %v9033_v55  ;;  %12454 = vtanh.f32 %v8613_v39  ;;  %v7121_v35 = vadd.f32 %v7120_v21, %v16884_v3  ;;  %7820 = vmatprep.mubr.bf16.mxu0 %v18084_v37  ;;  %v8619_v30 = vmul.f32 0.5, %v7308_v61 }
 0x57b   :  { %8013 = vmatprep.mubr.bf16.mxu1 %v18085_v1  ;;  %10109 = vst [vmem:[%s17812_s10 + $0x284] sm:$0xff] %v11097_v5  ;;  %v9039_v44 = vmul.f32 0.5, %v12441_v10  ;;  %v7310_v62 = vadd.f32 %v7309_v6, %v7117_v47  ;;  %v7122_v11 = vpop.f32.mrf.mxu0  ;;  %v12901_v5 = vld [vmem:[%s17811_s9] sm:$0x7f] }
 0x57c   :  { %v7315_v49 = vpop.f32.mrf.mxu1  ;;  %v12443_v31 = vpop.eup %12442  ;;  %v11101_v56 = vpack.c.bf16 %v9257_v13, %v9256_v2  ;;  %v7314_v60 = vadd.f32 %v7313_v51, %v7121_v35  ;;  %v7123_v17 = vadd.f32 %v7122_v11, %v16887_v41  ;;  %12456 = vtanh.f32 %v8619_v30  ;;  %v18086_v10 = vld [vmem:[#allocation6_spill] sm:$0xff] }
 0x57d   :  { %v12445_v55 = vpop.eup %12444  ;;  %v9040_v39 = vmul.f32 0.5, %v12443_v31  ;;  %v8620_v21 = vmul.f32 0.5, %v7310_v62  ;;  %v7124_v37 = vpop.f32.mrf.mxu0  ;;  %v17181_v61 = vrot.slane %v12901_v5, %v18086_v10  ;;  %v9263_v35 = vadd.f32 0.5, %v9039_v44  ;;  %v18087_v10 = vld [vmem:[#allocation7_spill] sm:$0xff] }
 0x57e   :  { %v7317_v1 = vpop.f32.mrf.mxu1  ;;  %10113 = vst [vmem:[%s17812_s10 + $0x2a0] sm:$0xff] %v11101_v56  ;;  %v9046_v6 = vmul.f32 0.5, %v12445_v55  ;;  %v8626_v47 = vmul.f32 0.5, %v7314_v60  ;;  %v7316_v51 = vadd.f32 %v7315_v49, %v7123_v17  ;;  %v7125_v2 = vadd.f32 %v7124_v37, %v16884_v3  ;;  %v18088_v17 = vld [vmem:[#allocation16_spill] sm:$0xff]  ;;  %v18089_v3 = vld [vmem:[#allocation17_spill] sm:$0xff] }
 0x57f   :  { %v12447_v13 = vpop.eup %12446  ;;  %v9264_v30 = vadd.f32 0.5, %v9040_v39  ;;  %12458 = vtanh.f32 %v8620_v21  ;;  %v7126_v62 = vpop.f32.mrf.mxu0  ;;  %v17188_v54 = vrot.slane %v12901_v5, %v18087_v10  ;;  %v18090_v21 = vld [vmem:[#allocation8_spill] sm:$0xff]  ;;  %v18091_v5 = vld [vmem:[#allocation18_spill] sm:$0xff] }
 0x580   :  { %v7319_v11 = vpop.f32.mrf.mxu1  ;;  %v9047_v31 = vmul.f32 0.5, %v12447_v13  ;;  %12460 = vtanh.f32 %v8626_v47  ;;  %v8627_v9 = vmul.f32 0.5, %v7316_v51  ;;  %v7318_v25 = vadd.f32 %v7317_v1, %v7125_v2 }
 0x581   :  { %v11105_v7 = vpack.c.bf16 %v9264_v30, %v9263_v35  ;;  %v7127_v56 = vadd.f32 %v7126_v62, %v16887_v41  ;;  %v7356_v60 = vpop.f32.mrf.mxu0  ;;  %7821 = vmatmul.mubr.bf16.gmra.mxu0 %v18088_v17  ;;  %v12449_v37 = vpop.eup %12448  ;;  %v9270_v44 = vadd.f32 0.5, %v9046_v6 }
 0x582   :  { %v7549_v49 = vpop.f32.mrf.mxu1  ;;  %8014 = vmatmul.mubr.bf16.gmra.mxu1 %v18089_v3  ;;  %v9271_v55 = vadd.f32 0.5, %v9047_v31  ;;  %12462 = vtanh.f32 %v8627_v9  ;;  %v7357_v39 = vadd.f32 %v7356_v60, %v17181_v61  ;;  %7830 = vmatprep.mubr.bf16.mxu0 %v18090_v21  ;;  %v9053_v41 = vmul.f32 0.5, %v12449_v37 }
 0x583   :  { %8023 = vmatprep.mubr.bf16.mxu1 %v18091_v5  ;;  %10117 = vst [vmem:[%s17812_s10 + $0x2bc] sm:$0xff] %v11105_v7  ;;  %v8633_v1 = vmul.f32 0.5, %v7318_v25  ;;  %v7320_v47 = vadd.f32 %v7319_v11, %v7127_v56  ;;  %v7358_v51 = vpop.f32.mrf.mxu0 }
 0x584   :  { %v7551_v2 = vpop.f32.mrf.mxu1  ;;  %v12451_v13 = vpop.eup %12450  ;;  %v11109_v35 = vpack.c.bf16 %v9271_v55, %v9270_v44  ;;  %v7550_v6 = vadd.f32 %v7549_v49, %v7357_v39  ;;  %v7359_v9 = vadd.f32 %v7358_v51, %v17188_v54  ;;  %v9277_v44 = vadd.f32 0.5, %v9053_v41 }
 0x585   :  { %v12453_v30 = vpop.eup %12452  ;;  %v9054_v62 = vmul.f32 0.5, %v12451_v13  ;;  %12464 = vtanh.f32 %v8633_v1  ;;  %v8634_v31 = vmul.f32 0.5, %v7320_v47  ;;  %v7360_v10 = vpop.f32.mrf.mxu0 }
 0x586   :  { %v7553_v60 = vpop.f32.mrf.mxu1  ;;  %10121 = vst [vmem:[%s17812_s10 + $0x2d8] sm:$0xff] %v11109_v35  ;;  %v9060_v7 = vmul.f32 0.5, %v12453_v30  ;;  %v8418_v25 = vmul.f32 0.5, %v7550_v6  ;;  %v7552_v11 = vadd.f32 %v7551_v2, %v7359_v9  ;;  %v7361_v56 = vadd.f32 %v7360_v10, %v17181_v61  ;;  %v18092_v30 = vld [vmem:[#allocation11_spill] sm:$0xff]  ;;  %v18095_v10 = vld [vmem:[#allocation21_spill] sm:$0xff] }
 0x587   :  { %v12455_v37 = vpop.eup %12454  ;;  %v9278_v49 = vadd.f32 0.5, %v9054_v62  ;;  %12466 = vtanh.f32 %v8634_v31  ;;  %v7362_v55 = vpop.f32.mrf.mxu0  ;;  %v18093_v2 = vld [vmem:[#allocation19_spill] sm:$0xff]  ;;  %v18094_v31 = vld [vmem:[#allocation20_spill] sm:$0xff] }
 0x588   :  { %v7555_v39 = vpop.f32.mrf.mxu1  ;;  %v9061_v51 = vmul.f32 0.5, %v12455_v37  ;;  %12468 = vtanh.f32 %v8418_v25  ;;  %v8419_v1 = vmul.f32 0.5, %v7552_v11  ;;  %v7554_v13 = vadd.f32 %v7553_v60, %v7361_v56 }
 0x589   :  { %v11113_v47 = vpack.c.bf16 %v9278_v49, %v9277_v44  ;;  %v7363_v5 = vadd.f32 %v7362_v55, %v17188_v54  ;;  %v7366_v21 = vpop.f32.mrf.mxu0  ;;  %7831 = vmatmul.mubr.bf16.gmra.mxu0 %v18092_v30  ;;  %v12457_v6 = vpop.eup %12456  ;;  %v9284_v9 = vadd.f32 0.5, %v9060_v7 }
 0x58a   :  { %v7559_v35 = vpop.f32.mrf.mxu1  ;;  %8024 = vmatmul.mubr.bf16.gmra.mxu1 %v18093_v2  ;;  %v9285_v41 = vadd.f32 0.5, %v9061_v51  ;;  %12470 = vtanh.f32 %v8419_v1  ;;  %v7367_v62 = vadd.f32 %v7366_v21, %v17181_v61  ;;  %7840 = vmatprep.mubr.bf16.mxu0 %v18094_v31  ;;  %v9067_v60 = vmul.f32 0.5, %v12457_v6 }
 0x58b   :  { %8033 = vmatprep.mubr.bf16.mxu1 %v18095_v10  ;;  %10125 = vst [vmem:[%s17812_s10 + $0x2f4] sm:$0xff] %v11113_v47  ;;  %v8425_v25 = vmul.f32 0.5, %v7554_v13  ;;  %v7556_v11 = vadd.f32 %v7555_v39, %v7363_v5  ;;  %v7368_v56 = vpop.f32.mrf.mxu0 }
 0x58c   :  { %v7561_v37 = vpop.f32.mrf.mxu1  ;;  %v12459_v44 = vpop.eup %12458  ;;  %v11117_v49 = vpack.c.bf16 %v9285_v41, %v9284_v9  ;;  %v7560_v7 = vadd.f32 %v7559_v35, %v7367_v62  ;;  %v7369_v55 = vadd.f32 %v7368_v56, %v17188_v54  ;;  %v9291_v9 = vadd.f32 0.5, %v9067_v60 }
 0x58d   :  { %v12461_v51 = vpop.eup %12460  ;;  %v9068_v21 = vmul.f32 0.5, %v12459_v44  ;;  %12472 = vtanh.f32 %v8425_v25  ;;  %v8426_v1 = vmul.f32 0.5, %v7556_v11  ;;  %v7370_v31 = vpop.f32.mrf.mxu0 }
 0x58e   :  { %v7563_v10 = vpop.f32.mrf.mxu1  ;;  %10129 = vst [vmem:[%s17812_s10 + $0x310] sm:$0xff] %v11117_v49  ;;  %v9074_v47 = vmul.f32 0.5, %v12461_v51  ;;  %v8432_v13 = vmul.f32 0.5, %v7560_v7  ;;  %v7562_v5 = vadd.f32 %v7561_v37, %v7369_v55  ;;  %v7371_v39 = vadd.f32 %v7370_v31, %v17181_v61  ;;  %v18096_v51 = vld [vmem:[#allocation10_spill] sm:$0xff] }
 0x58f   :  { %v12463_v6 = vpop.eup %12462  ;;  %v9292_v35 = vadd.f32 0.5, %v9068_v21  ;;  %12474 = vtanh.f32 %v8426_v1  ;;  %v7372_v41 = vpop.f32.mrf.mxu0  ;;  %v18097_v37 = vld [vmem:[#allocation22_spill] sm:$0xff]  ;;  %v18098_v21 = vld [vmem:[#allocation23_spill] sm:$0xff]  ;;  %v18099_v1 = vld [vmem:[#allocation24_spill] sm:$0xff] }
 0x590   :  { %v7565_v62 = vpop.f32.mrf.mxu1  ;;  %v9075_v56 = vmul.f32 0.5, %v12463_v6  ;;  %12476 = vtanh.f32 %v8432_v13  ;;  %v8433_v25 = vmul.f32 0.5, %v7562_v5  ;;  %v7564_v44 = vadd.f32 %v7563_v10, %v7371_v39 }
 0x591   :  { %v11121_v11 = vpack.c.bf16 %v9292_v35, %v9291_v9  ;;  %v7373_v2 = vadd.f32 %v7372_v41, %v17188_v54  ;;  %v7376_v30 = vpop.f32.mrf.mxu0  ;;  %7841 = vmatmul.mubr.bf16.gmra.mxu0 %v18096_v51  ;;  %v9298_v7 = vadd.f32 0.5, %v9074_v47 }
 0x592   :  { %v7569_v49 = vpop.f32.mrf.mxu1  ;;  %8034 = vmatmul.mubr.bf16.gmra.mxu1 %v18097_v37  ;;  %v12465_v31 = vpop.eup %12464  ;;  %v9299_v60 = vadd.f32 0.5, %v9075_v56  ;;  %12478 = vtanh.f32 %v8433_v25  ;;  %v7377_v55 = vadd.f32 %v7376_v30, %v17181_v61  ;;  %7850 = vmatprep.mubr.bf16.mxu0 %v18098_v21  ;;  %v8439_v13 = vmul.f32 0.5, %v7564_v44 }
 0x593   :  { %8043 = vmatprep.mubr.bf16.mxu1 %v18099_v1  ;;  %10133 = vst [vmem:[%s17812_s10 + $0x32c] sm:$0xff] %v11121_v11  ;;  %v9081_v10 = vmul.f32 0.5, %v12465_v31  ;;  %v7566_v5 = vadd.f32 %v7565_v62, %v7373_v2  ;;  %v7378_v39 = vpop.f32.mrf.mxu0 }
 0x594   :  { %v7571_v6 = vpop.f32.mrf.mxu1  ;;  %v12467_v9 = vpop.eup %12466  ;;  %v11125_v35 = vpack.c.bf16 %v9299_v60, %v9298_v7  ;;  %v7570_v47 = vadd.f32 %v7569_v49, %v7377_v55  ;;  %v7379_v41 = vadd.f32 %v7378_v39, %v17188_v54  ;;  %12480 = vtanh.f32 %v8439_v13 }
 0x595   :  { %v12469_v56 = vpop.eup %12468  ;;  %v9082_v30 = vmul.f32 0.5, %v12467_v9  ;;  %v8440_v25 = vmul.f32 0.5, %v7566_v5  ;;  %v7380_v21 = vpop.f32.mrf.mxu0  ;;  %v9305_v7 = vadd.f32 0.5, %v9081_v10 }
 0x596   :  { %v7573_v1 = vpop.f32.mrf.mxu1  ;;  %10137 = vst [vmem:[%s17812_s10 + $0x348] sm:$0xff] %v11125_v35  ;;  %v8866_v11 = vmul.f32 0.5, %v12469_v56  ;;  %v8446_v44 = vmul.f32 0.5, %v7570_v47  ;;  %v7572_v2 = vadd.f32 %v7571_v6, %v7379_v41  ;;  %v7381_v62 = vadd.f32 %v7380_v21, %v17181_v61  ;;  %v18100_v56 = vld [vmem:[#allocation25_spill] sm:$0xff]  ;;  %v18101_v6 = vld [vmem:[#allocation26_spill] sm:$0xff] }
 0x597   :  { %v12471_v31 = vpop.eup %12470  ;;  %v9306_v49 = vadd.f32 0.5, %v9082_v30  ;;  %12482 = vtanh.f32 %v8440_v25  ;;  %v7382_v60 = vpop.f32.mrf.mxu0  ;;  %v18102_v30 = vld [vmem:[#allocation27_spill] sm:$0xff]  ;;  %v18103_v25 = vld [vmem:[#allocation28_spill] sm:$0xff] }
 0x598   :  { %v7575_v55 = vpop.f32.mrf.mxu1  ;;  %v8867_v39 = vmul.f32 0.5, %v12471_v31  ;;  %12484 = vtanh.f32 %v8446_v44  ;;  %v8447_v13 = vmul.f32 0.5, %v7572_v2  ;;  %v7574_v9 = vadd.f32 %v7573_v1, %v7381_v62 }
 0x599   :  { %v11129_v5 = vpack.c.bf16 %v9306_v49, %v9305_v7  ;;  %v7383_v37 = vadd.f32 %v7382_v60, %v17188_v54  ;;  %v7386_v51 = vpop.f32.mrf.mxu0  ;;  %7851 = vmatmul.mubr.bf16.gmra.mxu0 %v18100_v56  ;;  %v9090_v47 = vadd.f32 0.5, %v8866_v11 }
 0x59a   :  { %v7579_v35 = vpop.f32.mrf.mxu1  ;;  %8044 = vmatmul.mubr.bf16.gmra.mxu1 %v18101_v6  ;;  %v12473_v21 = vpop.eup %12472  ;;  %v9091_v10 = vadd.f32 0.5, %v8867_v39  ;;  %12486 = vtanh.f32 %v8447_v13  ;;  %v7387_v41 = vadd.f32 %v7386_v51, %v17181_v61  ;;  %7860 = vmatprep.mubr.bf16.mxu0 %v18102_v30  ;;  %v8453_v44 = vmul.f32 0.5, %v7574_v9 }
 0x59b   :  { %8053 = vmatprep.mubr.bf16.mxu1 %v18103_v25  ;;  %10141 = vst [vmem:[%s17812_s10 + $0x364] sm:$0xff] %v11129_v5  ;;  %v8873_v1 = vmul.f32 0.5, %v12473_v21  ;;  %v7576_v2 = vadd.f32 %v7575_v55, %v7383_v37  ;;  %v7388_v62 = vpop.f32.mrf.mxu0 }
 0x59c   :  { %v7581_v31 = vpop.f32.mrf.mxu1  ;;  %v12475_v7 = vpop.eup %12474  ;;  %v11006_v49 = vpack.c.bf16 %v9091_v10, %v9090_v47  ;;  %v7580_v11 = vadd.f32 %v7579_v35, %v7387_v41  ;;  %v7389_v60 = vadd.f32 %v7388_v62, %v17188_v54  ;;  %12488 = vtanh.f32 %v8453_v44 }
 0x59d   :  { %v12477_v39 = vpop.eup %12476  ;;  %v8874_v51 = vmul.f32 0.5, %v12475_v7  ;;  %v8454_v13 = vmul.f32 0.5, %v7576_v2  ;;  %v7390_v30 = vpop.f32.mrf.mxu0  ;;  %v9097_v47 = vadd.f32 0.5, %v8873_v1 }
 0x59e   :  { %v7583_v25 = vpop.f32.mrf.mxu1  ;;  %10017 = vst [vmem:[%s17812_s10 + $0x8] sm:$0xff] %v11006_v49  ;;  %v8880_v5 = vmul.f32 0.5, %v12477_v39  ;;  %v8460_v9 = vmul.f32 0.5, %v7580_v11  ;;  %v7582_v37 = vadd.f32 %v7581_v31, %v7389_v60  ;;  %v7391_v55 = vadd.f32 %v7390_v30, %v17181_v61  ;;  %v18104_v39 = vld [vmem:[#allocation29_spill] sm:$0xff]  ;;  %v18105_v31 = vld [vmem:[#allocation30_spill] sm:$0xff] }
 0x59f   :  { %v12479_v21 = vpop.eup %12478  ;;  %v9098_v35 = vadd.f32 0.5, %v8874_v51  ;;  %12490 = vtanh.f32 %v8454_v13  ;;  %v7392_v10 = vpop.f32.mrf.mxu0  ;;  %v18106_v51 = vld [vmem:[#allocation31_spill] sm:$0xff]  ;;  %v18107_v13 = vld [vmem:[#allocation32_spill] sm:$0xff] }
 0x5a0   :  { %v7585_v41 = vpop.f32.mrf.mxu1  ;;  %v8881_v62 = vmul.f32 0.5, %v12479_v21  ;;  %12492 = vtanh.f32 %v8460_v9  ;;  %v8461_v44 = vmul.f32 0.5, %v7582_v37  ;;  %v7584_v7 = vadd.f32 %v7583_v25, %v7391_v55 }
 0x5a1   :  { %v11010_v2 = vpack.c.bf16 %v9098_v35, %v9097_v47  ;;  %v7393_v6 = vadd.f32 %v7392_v10, %v17188_v54  ;;  %v7396_v56 = vpop.f32.mrf.mxu0  ;;  %7861 = vmatmul.mubr.bf16.gmra.mxu0 %v18104_v39  ;;  %v12481_v30 = vpop.eup %12480  ;;  %v9104_v11 = vadd.f32 0.5, %v8880_v5 }
 0x5a2   :  { %v7589_v49 = vpop.f32.mrf.mxu1  ;;  %8054 = vmatmul.mubr.bf16.gmra.mxu1 %v18105_v31  ;;  %v9105_v1 = vadd.f32 0.5, %v8881_v62  ;;  %12494 = vtanh.f32 %v8461_v44  ;;  %v7397_v60 = vadd.f32 %v7396_v56, %v17181_v61  ;;  %7870 = vmatprep.mubr.bf16.mxu0 %v18106_v51  ;;  %v8887_v25 = vmul.f32 0.5, %v12481_v30 }
 0x5a3   :  { %8063 = vmatprep.mubr.bf16.mxu1 %v18107_v13  ;;  %10022 = vst [vmem:[%s17812_s10 + $0x24] sm:$0xff] %v11010_v2  ;;  %v8467_v9 = vmul.f32 0.5, %v7584_v7  ;;  %v7586_v37 = vadd.f32 %v7585_v41, %v7393_v6  ;;  %v7398_v55 = vpop.f32.mrf.mxu0 }
 0x5a4   :  { %v7591_v21 = vpop.f32.mrf.mxu1  ;;  %v12483_v47 = vpop.eup %12482  ;;  %v11014_v35 = vpack.c.bf16 %v9105_v1, %v9104_v11  ;;  %v7590_v5 = vadd.f32 %v7589_v49, %v7397_v60  ;;  %v7399_v10 = vadd.f32 %v7398_v55, %v17188_v54  ;;  %v9111_v11 = vadd.f32 0.5, %v8887_v25 }
 0x5a5   :  { %v12485_v62 = vpop.eup %12484  ;;  %v8888_v56 = vmul.f32 0.5, %v12483_v47  ;;  %12496 = vtanh.f32 %v8467_v9  ;;  %v8468_v44 = vmul.f32 0.5, %v7586_v37  ;;  %v7400_v51 = vpop.f32.mrf.mxu0 }
 0x5a6   :  { %v7593_v13 = vpop.f32.mrf.mxu1  ;;  %10026 = vst [vmem:[%s17812_s10 + $0x40] sm:$0xff] %v11014_v35  ;;  %v8894_v2 = vmul.f32 0.5, %v12485_v62  ;;  %v8474_v7 = vmul.f32 0.5, %v7590_v5  ;;  %v7592_v6 = vadd.f32 %v7591_v21, %v7399_v10  ;;  %v7401_v41 = vadd.f32 %v7400_v51, %v17181_v61  ;;  %v18108_v10 = vld [vmem:[#allocation35_spill] sm:$0xff]  ;;  %v18109_v62 = vld [vmem:[#allocation36_spill] sm:$0xff] }
 0x5a7   :  { %v12487_v30 = vpop.eup %12486  ;;  %v9112_v49 = vadd.f32 0.5, %v8888_v56  ;;  %12498 = vtanh.f32 %v8468_v44  ;;  %v7402_v1 = vpop.f32.mrf.mxu0 }
 0x5a8   :  { %v7595_v60 = vpop.f32.mrf.mxu1  ;;  %v8895_v55 = vmul.f32 0.5, %v12487_v30  ;;  %12500 = vtanh.f32 %v8474_v7  ;;  %v8475_v9 = vmul.f32 0.5, %v7592_v6  ;;  %v7594_v47 = vadd.f32 %v7593_v13, %v7401_v41 }
 0x5a9   :  { %v11018_v37 = vpack.c.bf16 %v9112_v49, %v9111_v11  ;;  %v7403_v31 = vadd.f32 %v7402_v1, %v17188_v54  ;;  %v7406_v39 = vpop.f32.mrf.mxu0  ;;  %7871 = vmatmul.mubr.bf16.gmra.mxu0 %v18079_v45  ;;  %v12489_v51 = vpop.eup %12488  ;;  %v9118_v21 = vadd.f32 0.5, %v8894_v2 }
 0x5aa   :  { %v7599_v35 = vpop.f32.mrf.mxu1  ;;  %8064 = vmatmul.mubr.bf16.gmra.mxu1 %v18080_v19  ;;  %v9119_v25 = vadd.f32 0.5, %v8895_v55  ;;  %12502 = vtanh.f32 %v8475_v9  ;;  %v7407_v5 = vadd.f32 %v7406_v39, %v17181_v61  ;;  %7880 = vmatprep.mubr.bf16.mxu0 %v18108_v10  ;;  %v8901_v13 = vmul.f32 0.5, %v12489_v51 }
 0x5ab   :  { %8073 = vmatprep.mubr.bf16.mxu1 %v18109_v62  ;;  %10030 = vst [vmem:[%s17812_s10 + $0x5c] sm:$0xff] %v11018_v37  ;;  %v8481_v56 = vmul.f32 0.5, %v7594_v47  ;;  %v7596_v44 = vadd.f32 %v7595_v60, %v7403_v31  ;;  %v7408_v7 = vpop.f32.mrf.mxu0 }
 0x5ac   :  { %v7601_v6 = vpop.f32.mrf.mxu1  ;;  %v12491_v41 = vpop.eup %12490  ;;  %v11022_v30 = vpack.c.bf16 %v9119_v25, %v9118_v21  ;;  %v7600_v2 = vadd.f32 %v7599_v35, %v7407_v5  ;;  %v7409_v11 = vadd.f32 %v7408_v7, %v17188_v54  ;;  %v9125_v21 = vadd.f32 0.5, %v8901_v13 }
 0x5ad   :  { %v12493_v49 = vpop.eup %12492  ;;  %v8902_v39 = vmul.f32 0.5, %v12491_v41  ;;  %12504 = vtanh.f32 %v8481_v56  ;;  %v8482_v1 = vmul.f32 0.5, %v7596_v44  ;;  %v7410_v55 = vpop.f32.mrf.mxu0 }
 0x5ae   :  { %v7603_v9 = vpop.f32.mrf.mxu1  ;;  %10034 = vst [vmem:[%s17812_s10 + $0x78] sm:$0xff] %v11022_v30  ;;  %v8908_v37 = vmul.f32 0.5, %v12493_v49  ;;  %v8488_v47 = vmul.f32 0.5, %v7600_v2  ;;  %v7602_v31 = vadd.f32 %v7601_v6, %v7409_v11  ;;  %v7411_v60 = vadd.f32 %v7410_v55, %v17181_v61  ;;  %v18110_v49 = vld [vmem:[#allocation37_spill] sm:$0xff] }
 0x5af   :  { %v12495_v51 = vpop.eup %12494  ;;  %v9126_v35 = vadd.f32 0.5, %v8902_v39  ;;  %12506 = vtanh.f32 %v8482_v1  ;;  %v7412_v25 = vpop.f32.mrf.mxu0 }
 0x5b0   :  { %v7605_v5 = vpop.f32.mrf.mxu1  ;;  %v8909_v7 = vmul.f32 0.5, %v12495_v51  ;;  %12508 = vtanh.f32 %v8488_v47  ;;  %v8489_v56 = vmul.f32 0.5, %v7602_v31  ;;  %v7604_v41 = vadd.f32 %v7603_v9, %v7411_v60 }
 0x5b1   :  { %v11026_v44 = vpack.c.bf16 %v9126_v35, %v9125_v21  ;;  %v7413_v62 = vadd.f32 %v7412_v25, %v17188_v54  ;;  %v7416_v10 = vpop.f32.mrf.mxu0  ;;  %7881 = vmatmul.mubr.bf16.gmra.mxu0 %v16626_v34  ;;  %v9132_v2 = vadd.f32 0.5, %v8908_v37 }
 0x5b2   :  { %v7609_v30 = vpop.f32.mrf.mxu1  ;;  %8074 = vmatmul.mubr.bf16.gmra.mxu1 %v16628_v63  ;;  %v12497_v6 = vpop.eup %12496  ;;  %v9133_v13 = vadd.f32 0.5, %v8909_v7  ;;  %12510 = vtanh.f32 %v8489_v56  ;;  %v7417_v11 = vadd.f32 %v7416_v10, %v17181_v61  ;;  %7890 = vmatprep.mubr.bf16.mxu0 %v16642_v16  ;;  %v8495_v1 = vmul.f32 0.5, %v7604_v41 }
 0x5b3   :  { %8083 = vmatprep.mubr.bf16.mxu1 %v18110_v49  ;;  %10038 = vst [vmem:[%s17812_s10 + $0x94] sm:$0xff] %v11026_v44  ;;  %v8915_v39 = vmul.f32 0.5, %v12497_v6  ;;  %v7606_v55 = vadd.f32 %v7605_v5, %v7413_v62  ;;  %v7418_v9 = vpop.f32.mrf.mxu0 }
 0x5b4   :  { %v7611_v47 = vpop.f32.mrf.mxu1  ;;  %v12499_v31 = vpop.eup %12498  ;;  %v11030_v60 = vpack.c.bf16 %v9133_v13, %v9132_v2  ;;  %v7610_v37 = vadd.f32 %v7609_v30, %v7417_v11  ;;  %v7419_v51 = vadd.f32 %v7418_v9, %v17188_v54  ;;  %12512 = vtanh.f32 %v8495_v1 }
 0x5b5   :  { %v12501_v21 = vpop.eup %12500  ;;  %v8916_v10 = vmul.f32 0.5, %v12499_v31  ;;  %v8496_v35 = vmul.f32 0.5, %v7606_v55  ;;  %v7420_v25 = vpop.f32.mrf.mxu0  ;;  %v9139_v6 = vadd.f32 0.5, %v8915_v39 }
 0x5b6   :  { %v7613_v7 = vpop.f32.mrf.mxu1  ;;  %10042 = vst [vmem:[%s17812_s10 + $0xb0] sm:$0xff] %v11030_v60  ;;  %v8922_v56 = vmul.f32 0.5, %v12501_v21  ;;  %v8502_v44 = vmul.f32 0.5, %v7610_v37  ;;  %v7612_v62 = vadd.f32 %v7611_v47, %v7419_v51  ;;  %v7421_v5 = vadd.f32 %v7420_v25, %v17181_v61 }
 0x5b7   :  { %v12503_v41 = vpop.eup %12502  ;;  %v9140_v30 = vadd.f32 0.5, %v8916_v10  ;;  %12514 = vtanh.f32 %v8496_v35  ;;  %v7422_v2 = vpop.f32.mrf.mxu0 }
 0x5b8   :  { %v7615_v13 = vpop.f32.mrf.mxu1  ;;  %v8923_v11 = vmul.f32 0.5, %v12503_v41  ;;  %12516 = vtanh.f32 %v8502_v44  ;;  %v8503_v1 = vmul.f32 0.5, %v7612_v62  ;;  %v7614_v9 = vadd.f32 %v7613_v7, %v7421_v5 }
 0x5b9   :  { %v11034_v55 = vpack.c.bf16 %v9140_v30, %v9139_v6  ;;  %v7423_v31 = vadd.f32 %v7422_v2, %v17188_v54  ;;  %v7426_v49 = vpop.f32.mrf.mxu0  ;;  %7891 = vmatmul.mubr.bf16.gmra.mxu0 %v16646_v58  ;;  %v9146_v37 = vadd.f32 0.5, %v8922_v56 }
 0x5ba   :  { %v7619_v60 = vpop.f32.mrf.mxu1  ;;  %8084 = vmatmul.mubr.bf16.gmra.mxu1 %v16648_v0  ;;  %v12505_v47 = vpop.eup %12504  ;;  %v9147_v39 = vadd.f32 0.5, %v8923_v11  ;;  %12518 = vtanh.f32 %v8503_v1  ;;  %v7427_v51 = vadd.f32 %v7426_v49, %v17181_v61  ;;  %8126 = vmatprep.mubr.bf16.mxu0 %v16150_v32  ;;  %v8509_v10 = vmul.f32 0.5, %v7614_v9 }
 0x5bb   :  { %8287 = vmatprep.mubr.bf16.mxu1 %v16152_v46  ;;  %10046 = vst [vmem:[%s17812_s10 + $0xcc] sm:$0xff] %v11034_v55  ;;  %v8929_v21 = vmul.f32 0.5, %v12505_v47  ;;  %v7616_v35 = vadd.f32 %v7615_v13, %v7423_v31  ;;  %v7428_v25 = vpop.f32.mrf.mxu0 }
 0x5bc   :  { %v7621_v7 = vpop.f32.mrf.mxu1  ;;  %v12507_v44 = vpop.eup %12506  ;;  %v11038_v62 = vpack.c.bf16 %v9147_v39, %v9146_v37  ;;  %v7620_v56 = vadd.f32 %v7619_v60, %v7427_v51  ;;  %v7429_v5 = vadd.f32 %v7428_v25, %v17188_v54  ;;  %12520 = vtanh.f32 %v8509_v10 }
 0x5bd   :  { %v12509_v41 = vpop.eup %12508  ;;  %v8930_v49 = vmul.f32 0.5, %v12507_v44  ;;  %v8510_v32 = vmul.f32 0.5, %v7616_v35  ;;  %v7430_v6 = vpop.f32.mrf.mxu0  ;;  %v9153_v55 = vadd.f32 0.5, %v8929_v21 }
 0x5be   :  { %v7623_v46 = vpop.f32.mrf.mxu1  ;;  %10050 = vst [vmem:[%s17812_s10 + $0xe8] sm:$0xff] %v11038_v62  ;;  %v8936_v30 = vmul.f32 0.5, %v12509_v41  ;;  %v8516_v2 = vmul.f32 0.5, %v7620_v56  ;;  %v7622_v13 = vadd.f32 %v7621_v7, %v7429_v5  ;;  %v7431_v11 = vadd.f32 %v7430_v6, %v17181_v61 }
 0x5bf   :  { %v12511_v1 = vpop.eup %12510  ;;  %v9154_v9 = vadd.f32 0.5, %v8930_v49  ;;  %12522 = vtanh.f32 %v8510_v32  ;;  %v7432_v31 = vpop.f32.mrf.mxu0 }
 0x5c0   :  { %v7625_v60 = vpop.f32.mrf.mxu1  ;;  %v8937_v47 = vmul.f32 0.5, %v12511_v1  ;;  %12524 = vtanh.f32 %v8516_v2  ;;  %v8517_v37 = vmul.f32 0.5, %v7622_v13  ;;  %v7624_v51 = vadd.f32 %v7623_v46, %v7431_v11 }
 0x5c1   :  { %v11042_v39 = vpack.c.bf16 %v9154_v9, %v9153_v55  ;;  %v7433_v10 = vadd.f32 %v7432_v31, %v17188_v54  ;;  %v7436_v35 = vpop.f32.mrf.mxu0  ;;  %8127 = vmatmul.mubr.bf16.vlgmr.msra.gmra.mxu0 %v16160_v33  ;;  %v12513_v7 = vpop.eup %12512  ;;  %v9160_v44 = vadd.f32 0.5, %v8936_v30 }
 0x5c2   :  { %v7629_v25 = vpop.f32.mrf.mxu1  ;;  %8288 = vmatmul.mubr.bf16.vlgmr.msra.gmra.mxu1 %v16162_v8  ;;  %v9161_v21 = vadd.f32 0.5, %v8937_v47  ;;  %12526 = vtanh.f32 %v8517_v37  ;;  %v7437_v62 = vadd.f32 %v7436_v35, %v17181_v61  ;;  %8134 = vmatprep.mubr.bf16.mxu0 %v16191_v18  ;;  %v8943_v56 = vmul.f32 0.5, %v12513_v7 }
 0x5c3   :  { %8295 = vmatprep.mubr.bf16.mxu1 %v16193_v43  ;;  %10054 = vst [vmem:[%s17812_s10 + $0x104] sm:$0xff] %v11042_v39  ;;  %v8523_v5 = vmul.f32 0.5, %v7624_v51  ;;  %v7626_v41 = vadd.f32 %v7625_v60, %v7433_v10  ;;  %v7438_v33 = vpop.f32.mrf.mxu0 }
 0x5c4   :  { %v7631_v49 = vpop.f32.mrf.mxu1  ;;  %v12515_v8 = vpop.eup %12514  ;;  %v11046_v32 = vpack.c.bf16 %v9161_v21, %v9160_v44  ;;  %v7630_v6 = vadd.f32 %v7629_v25, %v7437_v62  ;;  %v7439_v46 = vadd.f32 %v7438_v33, %v17188_v54  ;;  %v9167_v60 = vadd.f32 0.5, %v8943_v56 }
 0x5c5   :  { %v12517_v30 = vpop.eup %12516  ;;  %v8944_v2 = vmul.f32 0.5, %v12515_v8  ;;  %12528 = vtanh.f32 %v8523_v5  ;;  %v8524_v18 = vmul.f32 0.5, %v7626_v41  ;;  %v7440_v13 = vpop.f32.mrf.mxu0 }
 0x5c6   :  { %v7633_v43 = vpop.f32.mrf.mxu1  ;;  %10058 = vst [vmem:[%s17812_s10 + $0x120] sm:$0xff] %v11046_v32  ;;  %v8950_v11 = vmul.f32 0.5, %v12517_v30  ;;  %v8530_v1 = vmul.f32 0.5, %v7630_v6  ;;  %v7632_v55 = vadd.f32 %v7631_v49, %v7439_v46  ;;  %v7441_v9 = vadd.f32 %v7440_v13, %v17181_v61 }
 0x5c7   :  { %v12519_v31 = vpop.eup %12518  ;;  %v9168_v47 = vadd.f32 0.5, %v8944_v2  ;;  %12530 = vtanh.f32 %v8524_v18  ;;  %v7442_v37 = vpop.f32.mrf.mxu0 }
 0x5c8   :  { %v7635_v39 = vpop.f32.mrf.mxu1  ;;  %v8951_v51 = vmul.f32 0.5, %v12519_v31  ;;  %12532 = vtanh.f32 %v8530_v1  ;;  %v8531_v10 = vmul.f32 0.5, %v7632_v55  ;;  %v7634_v25 = vadd.f32 %v7633_v43, %v7441_v9 }
 0x5c9   :  { %v11050_v35 = vpack.c.bf16 %v9168_v47, %v9167_v60  ;;  %v7443_v7 = vadd.f32 %v7442_v37, %v17188_v54  ;;  %v7446_v44 = vpop.f32.mrf.mxu0  ;;  %8135 = vmatmul.mubr.bf16.gmra.mxu0 %v16201_v42  ;;  %v12521_v62 = vpop.eup %12520  ;;  %v9174_v5 = vadd.f32 0.5, %v8950_v11 }
 0x5ca   :  { %v7639_v21 = vpop.f32.mrf.mxu1  ;;  %8296 = vmatmul.mubr.bf16.gmra.mxu1 %v16203_v22  ;;  %v9175_v56 = vadd.f32 0.5, %v8951_v51  ;;  %12534 = vtanh.f32 %v8531_v10  ;;  %v7447_v41 = vadd.f32 %v7446_v44, %v17181_v61  ;;  %8142 = vmatprep.mubr.bf16.mxu0 %v16235_v14  ;;  %v8957_v33 = vmul.f32 0.5, %v12521_v62 }
 0x5cb   :  { %8303 = vmatprep.mubr.bf16.mxu1 %v16237_v59  ;;  %10062 = vst [vmem:[%s17812_s10 + $0x13c] sm:$0xff] %v11050_v35  ;;  %v8537_v49 = vmul.f32 0.5, %v7634_v25  ;;  %v7636_v8 = vadd.f32 %v7635_v39, %v7443_v7  ;;  %v7448_v42 = vpop.f32.mrf.mxu0 }
 0x5cc   :  { %v7641_v32 = vpop.f32.mrf.mxu1  ;;  %v12523_v22 = vpop.eup %12522  ;;  %v11054_v6 = vpack.c.bf16 %v9175_v56, %v9174_v5  ;;  %v7640_v46 = vadd.f32 %v7639_v21, %v7447_v41  ;;  %v7449_v30 = vadd.f32 %v7448_v42, %v17188_v54  ;;  %v9181_v31 = vadd.f32 0.5, %v8957_v33 }
 0x5cd   :  { %v12525_v2 = vpop.eup %12524  ;;  %v8958_v18 = vmul.f32 0.5, %v12523_v22  ;;  %12536 = vtanh.f32 %v8537_v49  ;;  %v8538_v14 = vmul.f32 0.5, %v7636_v8  ;;  %v7450_v13 = vpop.f32.mrf.mxu0 }
 0x5ce   :  { %v7643_v59 = vpop.f32.mrf.mxu1  ;;  %10066 = vst [vmem:[%s17812_s10 + $0x158] sm:$0xff] %v11054_v6  ;;  %v8964_v43 = vmul.f32 0.5, %v12525_v2  ;;  %v8544_v11 = vmul.f32 0.5, %v7640_v46  ;;  %v7642_v1 = vadd.f32 %v7641_v32, %v7449_v30  ;;  %v7451_v55 = vadd.f32 %v7450_v13, %v17181_v61 }
 0x5cf   :  { %v12527_v9 = vpop.eup %12526  ;;  %v9182_v60 = vadd.f32 0.5, %v8958_v18  ;;  %12538 = vtanh.f32 %v8538_v14  ;;  %v7452_v47 = vpop.f32.mrf.mxu0 }
 0x5d0   :  { %v7645_v37 = vpop.f32.mrf.mxu1  ;;  %v8965_v39 = vmul.f32 0.5, %v12527_v9  ;;  %12540 = vtanh.f32 %v8544_v11  ;;  %v8545_v51 = vmul.f32 0.5, %v7642_v1  ;;  %v7644_v35 = vadd.f32 %v7643_v59, %v7451_v55 }
 0x5d1   :  { %v11058_v10 = vpack.c.bf16 %v9182_v60, %v9181_v31  ;;  %v7453_v25 = vadd.f32 %v7452_v47, %v17188_v54  ;;  %v7456_v7 = vpop.f32.mrf.mxu0  ;;  %8143 = vmatmul.mubr.bf16.gmra.mxu0 %v16245_v26  ;;  %v9188_v62 = vadd.f32 0.5, %v8964_v43 }
 0x5d2   :  { %v7649_v44 = vpop.f32.mrf.mxu1  ;;  %8304 = vmatmul.mubr.bf16.gmra.mxu1 %v16247_v53  ;;  %v12529_v21 = vpop.eup %12528  ;;  %v9189_v5 = vadd.f32 0.5, %v8965_v39  ;;  %12542 = vtanh.f32 %v8545_v51  ;;  %v7457_v56 = vadd.f32 %v7456_v7, %v17181_v61  ;;  %8150 = vmatprep.mubr.bf16.mxu0 %v16279_v29  ;;  %v8551_v33 = vmul.f32 0.5, %v7644_v35 }
 0x5d3   :  { %8311 = vmatprep.mubr.bf16.mxu1 %v16281_v40  ;;  %10070 = vst [vmem:[%s17812_s10 + $0x174] sm:$0xff] %v11058_v10  ;;  %v8971_v41 = vmul.f32 0.5, %v12529_v21  ;;  %v7646_v49 = vadd.f32 %v7645_v37, %v7453_v25  ;;  %v7458_v26 = vpop.f32.mrf.mxu0 }
 0x5d4   :  { %v7651_v8 = vpop.f32.mrf.mxu1  ;;  %v12531_v53 = vpop.eup %12530  ;;  %v11062_v42 = vpack.c.bf16 %v9189_v5, %v9188_v62  ;;  %v7650_v32 = vadd.f32 %v7649_v44, %v7457_v56  ;;  %v7459_v22 = vadd.f32 %v7458_v26, %v17188_v54  ;;  %12544 = vtanh.f32 %v8551_v33 }
 0x5d5   :  { %v12533_v6 = vpop.eup %12532  ;;  %v8972_v46 = vmul.f32 0.5, %v12531_v53  ;;  %v8552_v29 = vmul.f32 0.5, %v7646_v49  ;;  %v7460_v30 = vpop.f32.mrf.mxu0  ;;  %v9195_v43 = vadd.f32 0.5, %v8971_v41 }
 0x5d6   :  { %v7653_v40 = vpop.f32.mrf.mxu1  ;;  %10074 = vst [vmem:[%s17812_s10 + $0x190] sm:$0xff] %v11062_v42  ;;  %v8978_v2 = vmul.f32 0.5, %v12533_v6  ;;  %v8558_v18 = vmul.f32 0.5, %v7650_v32  ;;  %v7652_v14 = vadd.f32 %v7651_v8, %v7459_v22  ;;  %v7461_v13 = vadd.f32 %v7460_v30, %v17181_v61 }
 0x5d7   :  { %v12535_v59 = vpop.eup %12534  ;;  %v9196_v11 = vadd.f32 0.5, %v8972_v46  ;;  %12546 = vtanh.f32 %v8552_v29  ;;  %v7462_v1 = vpop.f32.mrf.mxu0 }
 0x5d8   :  { %v7655_v55 = vpop.f32.mrf.mxu1  ;;  %v8979_v9 = vmul.f32 0.5, %v12535_v59  ;;  %12548 = vtanh.f32 %v8558_v18  ;;  %v8559_v31 = vmul.f32 0.5, %v7652_v14  ;;  %v7654_v47 = vadd.f32 %v7653_v40, %v7461_v13 }
 0x5d9   :  { %v11066_v60 = vpack.c.bf16 %v9196_v11, %v9195_v43  ;;  %v7463_v37 = vadd.f32 %v7462_v1, %v17188_v54  ;;  %v7466_v39 = vpop.f32.mrf.mxu0  ;;  %8151 = vmatmul.mubr.bf16.gmra.mxu0 %v16289_v12  ;;  %v9202_v35 = vadd.f32 0.5, %v8978_v2 }
 0x5da   :  { %v7659_v51 = vpop.f32.mrf.mxu1  ;;  %8312 = vmatmul.mubr.bf16.gmra.mxu1 %v16291_v24  ;;  %v12537_v10 = vpop.eup %12536  ;;  %v9203_v25 = vadd.f32 0.5, %v8979_v9  ;;  %12550 = vtanh.f32 %v8559_v31  ;;  %v7467_v7 = vadd.f32 %v7466_v39, %v17181_v61  ;;  %8158 = vmatprep.mubr.bf16.mxu0 %v16323_v28  ;;  %v8565_v21 = vmul.f32 0.5, %v7654_v47 }
 0x5db   :  { %8319 = vmatprep.mubr.bf16.mxu1 %v16325_v48  ;;  %10078 = vst [vmem:[%s17812_s10 + $0x1ac] sm:$0xff] %v11066_v60  ;;  %v8985_v44 = vmul.f32 0.5, %v12537_v10  ;;  %v7656_v62 = vadd.f32 %v7655_v55, %v7463_v37  ;;  %v7468_v12 = vpop.f32.mrf.mxu0 }
 0x5dc   :  { %v7661_v5 = vpop.f32.mrf.mxu1  ;;  %v12539_v24 = vpop.eup %12538  ;;  %v11070_v56 = vpack.c.bf16 %v9203_v25, %v9202_v35  ;;  %v7660_v41 = vadd.f32 %v7659_v51, %v7467_v7  ;;  %v7469_v33 = vadd.f32 %v7468_v12, %v17188_v54  ;;  %12552 = vtanh.f32 %v8565_v21 }
 0x5dd   :  { %v12541_v49 = vpop.eup %12540  ;;  %v8986_v26 = vmul.f32 0.5, %v12539_v24  ;;  %v8566_v28 = vmul.f32 0.5, %v7656_v62  ;;  %v7470_v8 = vpop.f32.mrf.mxu0  ;;  %v9209_v46 = vadd.f32 0.5, %v8985_v44 }
 0x5de   :  { %v7663_v48 = vpop.f32.mrf.mxu1  ;;  %10082 = vst [vmem:[%s17812_s10 + $0x1c8] sm:$0xff] %v11070_v56  ;;  %v8992_v53 = vmul.f32 0.5, %v12541_v49  ;;  %v8572_v42 = vmul.f32 0.5, %v7660_v41  ;;  %v7662_v32 = vadd.f32 %v7661_v5, %v7469_v33  ;;  %v7471_v22 = vadd.f32 %v7470_v8, %v17181_v61 }
 0x5df   :  { %v12543_v6 = vpop.eup %12542  ;;  %v9210_v29 = vadd.f32 0.5, %v8986_v26  ;;  %12554 = vtanh.f32 %v8566_v28  ;;  %v7472_v30 = vpop.f32.mrf.mxu0 }
 0x5e0   :  { %v7665_v40 = vpop.f32.mrf.mxu1  ;;  %v8993_v2 = vmul.f32 0.5, %v12543_v6  ;;  %12556 = vtanh.f32 %v8572_v42  ;;  %v8573_v18 = vmul.f32 0.5, %v7662_v32  ;;  %v7664_v13 = vadd.f32 %v7663_v48, %v7471_v22 }
 0x5e1   :  { %v11074_v14 = vpack.c.bf16 %v9210_v29, %v9209_v46  ;;  %v7473_v59 = vadd.f32 %v7472_v30, %v17188_v54  ;;  %v7476_v43 = vpop.f32.mrf.mxu0  ;;  %8159 = vmatmul.mubr.bf16.gmra.mxu0 %v16333_v23  ;;  %v12545_v1 = vpop.eup %12544  ;;  %v9216_v55 = vadd.f32 0.5, %v8992_v53 }
 0x5e2   :  { %v7669_v11 = vpop.f32.mrf.mxu1  ;;  %8320 = vmatmul.mubr.bf16.gmra.mxu1 %v16335_v38  ;;  %v9217_v9 = vadd.f32 0.5, %v8993_v2  ;;  %12558 = vtanh.f32 %v8573_v18  ;;  %v7477_v31 = vadd.f32 %v7476_v43, %v17181_v61  ;;  %8166 = vmatprep.mubr.bf16.mxu0 %v16367_v27  ;;  %v8999_v60 = vmul.f32 0.5, %v12545_v1 }
 0x5e3   :  { %8327 = vmatprep.mubr.bf16.mxu1 %v16369_v15  ;;  %10086 = vst [vmem:[%s17812_s10 + $0x1e4] sm:$0xff] %v11074_v14  ;;  %v8579_v47 = vmul.f32 0.5, %v7664_v13  ;;  %v7666_v37 = vadd.f32 %v7665_v40, %v7473_v59  ;;  %v7478_v23 = vpop.f32.mrf.mxu0 }
 0x5e4   :  { %v7671_v39 = vpop.f32.mrf.mxu1  ;;  %v12547_v38 = vpop.eup %12546  ;;  %v11078_v51 = vpack.c.bf16 %v9217_v9, %v9216_v55  ;;  %v7670_v10 = vadd.f32 %v7669_v11, %v7477_v31  ;;  %v7479_v35 = vadd.f32 %v7478_v23, %v17188_v54  ;;  %v9223_v56 = vadd.f32 0.5, %v8999_v60 }
 0x5e5   :  { %v12549_v25 = vpop.eup %12548  ;;  %v9000_v7 = vmul.f32 0.5, %v12547_v38  ;;  %12560 = vtanh.f32 %v8579_v47  ;;  %v8580_v27 = vmul.f32 0.5, %v7666_v37  ;;  %v7480_v44 = vpop.f32.mrf.mxu0 }
 0x5e6   :  { %v7673_v15 = vpop.f32.mrf.mxu1  ;;  %10090 = vst [vmem:[%s17812_s10 + $0x200] sm:$0xff] %v11078_v51  ;;  %v9006_v21 = vmul.f32 0.5, %v12549_v25  ;;  %v8586_v62 = vmul.f32 0.5, %v7670_v10  ;;  %v7672_v12 = vadd.f32 %v7671_v39, %v7479_v35  ;;  %v7481_v5 = vadd.f32 %v7480_v44, %v17181_v61 }
 0x5e7   :  { %v12551_v24 = vpop.eup %12550  ;;  %v9224_v41 = vadd.f32 0.5, %v9000_v7  ;;  %12562 = vtanh.f32 %v8580_v27  ;;  %v7482_v33 = vpop.f32.mrf.mxu0 }
 0x5e8   :  { %v7675_v49 = vpop.f32.mrf.mxu1  ;;  %v9007_v26 = vmul.f32 0.5, %v12551_v24  ;;  %12564 = vtanh.f32 %v8586_v62  ;;  %v8587_v28 = vmul.f32 0.5, %v7672_v12  ;;  %v7674_v48 = vadd.f32 %v7673_v15, %v7481_v5  ;;  %v18111_v5 = vld [vmem:[#allocation12_spill] sm:$0xff]  ;;  %v18112_v24 = vld [vmem:[#allocation13_spill] sm:$0xff] }
 0x5e9   :  { %v11082_v8 = vpack.c.bf16 %v9224_v41, %v9223_v56  ;;  %v7483_v53 = vadd.f32 %v7482_v33, %v17188_v54  ;;  %v7486_v42 = vpop.f32.mrf.mxu0  ;;  %8167 = vmatmul.mubr.bf16.gmra.mxu0 %v16377_v50  ;;  %v12553_v22 = vpop.eup %12552  ;;  %v9230_v6 = vadd.f32 0.5, %v9006_v21 }
 0x5ea   :  { %v7679_v32 = vpop.f32.mrf.mxu1  ;;  %8328 = vmatmul.mubr.bf16.gmra.mxu1 %v16379_v4  ;;  %v9231_v46 = vadd.f32 0.5, %v9007_v26  ;;  %12566 = vtanh.f32 %v8587_v28  ;;  %v7487_v29 = vadd.f32 %v7486_v42, %v17181_v61  ;;  %8174 = vmatprep.mubr.bf16.mxu0 %v16411_v57  ;;  %v9013_v30 = vmul.f32 0.5, %v12553_v22 }
 0x5eb   :  { %8335 = vmatprep.mubr.bf16.mxu1 %v16413_v36  ;;  %10094 = vst [vmem:[%s17812_s10 + $0x21c] sm:$0xff] %v11082_v8  ;;  %v8593_v40 = vmul.f32 0.5, %v7674_v48  ;;  %v7676_v2 = vadd.f32 %v7675_v49, %v7483_v53  ;;  %v7488_v50 = vpop.f32.mrf.mxu0 }
 0x5ec   :  { %v7681_v18 = vpop.f32.mrf.mxu1  ;;  %v12555_v4 = vpop.eup %12554  ;;  %v11086_v14 = vpack.c.bf16 %v9231_v46, %v9230_v6  ;;  %v7680_v13 = vadd.f32 %v7679_v32, %v7487_v29  ;;  %v7489_v59 = vadd.f32 %v7488_v50, %v17188_v54  ;;  %v9237_v37 = vadd.f32 0.5, %v9013_v30 }
 0x5ed   :  { %v12557_v43 = vpop.eup %12556  ;;  %v9014_v11 = vmul.f32 0.5, %v12555_v4  ;;  %12568 = vtanh.f32 %v8593_v40  ;;  %v8594_v57 = vmul.f32 0.5, %v7676_v2  ;;  %v7490_v1 = vpop.f32.mrf.mxu0 }
 0x5ee   :  { %v7683_v36 = vpop.f32.mrf.mxu1  ;;  %10098 = vst [vmem:[%s17812_s10 + $0x238] sm:$0xff] %v11086_v14  ;;  %v9020_v55 = vmul.f32 0.5, %v12557_v43  ;;  %v8600_v9 = vmul.f32 0.5, %v7680_v13  ;;  %v7682_v31 = vadd.f32 %v7681_v18, %v7489_v59  ;;  %v7491_v60 = vadd.f32 %v7490_v1, %v17181_v61 }
 0x5ef   :  { %v12559_v47 = vpop.eup %12558  ;;  %v9238_v23 = vadd.f32 0.5, %v9014_v11  ;;  %12570 = vtanh.f32 %v8594_v57  ;;  %v7492_v39 = vpop.f32.mrf.mxu0 }
 0x5f0   :  { %v7685_v38 = vpop.f32.mrf.mxu1  ;;  %v9021_v51 = vmul.f32 0.5, %v12559_v47  ;;  %12572 = vtanh.f32 %v8600_v9  ;;  %v8601_v10 = vmul.f32 0.5, %v7682_v31  ;;  %v7684_v25 = vadd.f32 %v7683_v36, %v7491_v60  ;;  %v18113_v36 = vld [vmem:[#allocation5_spill] sm:$0xff]  ;;  %v18115_v9 = vld [vmem:[#allocation2_spill] sm:$0xff] }
 0x5f1   :  { %v11090_v35 = vpack.c.bf16 %v9238_v23, %v9237_v37  ;;  %v7493_v7 = vadd.f32 %v7492_v39, %v17188_v54  ;;  %v7496_v27 = vpop.f32.mrf.mxu0  ;;  %8175 = vmatmul.mubr.bf16.gmra.mxu0 %v16421_v20  ;;  %v9244_v21 = vadd.f32 0.5, %v9020_v55  ;;  %v18114_v55 = vld [vmem:[#allocation14_spill] sm:$0xff]  ;;  %v5767_v31 = vsub.s32 4, %v18115_v9  ;;  %v18116_v39 = vld [vmem:[#allocation9_spill] sm:$0xff] }
 0x5f2   :  { %v7689_v44 = vpop.f32.mrf.mxu1  ;;  %8336 = vmatmul.mubr.bf16.gmra.mxu1 %v16423_v52  ;;  %v12561_v15 = vpop.eup %12560  ;;  %v9245_v62 = vadd.f32 0.5, %v9021_v51  ;;  %12574 = vtanh.f32 %v8601_v10  ;;  %v7497_v12 = vadd.f32 %v7496_v27, %v17181_v61  ;;  %8182 = vmatprep.mubr.bf16.mxu0 %v18111_v5  ;;  %v8607_v41 = vmul.f32 0.5, %v7684_v25 }
 0x5f3   :  { %8343 = vmatprep.mubr.bf16.mxu1 %v18112_v24  ;;  %10102 = vst [vmem:[%s17812_s10 + $0x254] sm:$0xff] %v11090_v35  ;;  %v9027_v56 = vmul.f32 0.5, %v12561_v15  ;;  %v7686_v33 = vadd.f32 %v7685_v38, %v7493_v7  ;;  %v7498_v20 = vpop.f32.mrf.mxu0  ;;  %v18117_v38 = vld [vmem:[#allocation15_spill] sm:$0xff] }
 0x5f4   :  { %v7691_v49 = vpop.f32.mrf.mxu1  ;;  %v12563_v52 = vpop.eup %12562  ;;  %v11094_v26 = vpack.c.bf16 %v9245_v62, %v9244_v21  ;;  %v7690_v28 = vadd.f32 %v7689_v44, %v7497_v12  ;;  %v7499_v8 = vadd.f32 %v7498_v20, %v17188_v54  ;;  %12576 = vtanh.f32 %v8607_v41 }
 0x5f5   :  { %v12565_v48 = vpop.eup %12564  ;;  %v9028_v53 = vmul.f32 0.5, %v12563_v52  ;;  %v8608_v42 = vmul.f32 0.5, %v7686_v33  ;;  %v7500_v32 = vpop.f32.mrf.mxu0  ;;  %v9251_v2 = vadd.f32 0.5, %v9027_v56  ;;  %v5771_v62 = vsub.s32 5, %v18115_v9  ;;  %v12902_v33 = vld [vmem:[%s17811_s9] sm:$0x7f] }
 0x5f6   :  { %v7693_v22 = vpop.f32.mrf.mxu1  ;;  %10106 = vst [vmem:[%s17812_s10 + $0x270] sm:$0xff] %v11094_v26  ;;  %v9034_v6 = vmul.f32 0.5, %v12565_v48  ;;  %v8614_v46 = vmul.f32 0.5, %v7690_v28  ;;  %v7692_v29 = vadd.f32 %v7691_v49, %v7499_v8  ;;  %v7501_v30 = vadd.f32 %v7500_v32, %v17181_v61 }
 0x5f7   :  { %v12567_v40 = vpop.eup %12566  ;;  %v9252_v50 = vadd.f32 0.5, %v9028_v53  ;;  %12578 = vtanh.f32 %v8608_v42  ;;  %v7502_v18 = vpop.f32.mrf.mxu0  ;;  %v17415_v20 = vrot.slane %v12902_v33, %v5767_v31 }
 0x5f8   :  { %v7695_v4 = vpop.f32.mrf.mxu1  ;;  %v9035_v14 = vmul.f32 0.5, %v12567_v40  ;;  %12580 = vtanh.f32 %v8614_v46  ;;  %v8615_v13 = vmul.f32 0.5, %v7692_v29  ;;  %v7694_v43 = vadd.f32 %v7693_v22, %v7501_v30 }
 0x5f9   :  { %v11098_v59 = vpack.c.bf16 %v9252_v50, %v9251_v2  ;;  %v7503_v11 = vadd.f32 %v7502_v18, %v17188_v54  ;;  %v7506_v57 = vpop.f32.mrf.mxu0  ;;  %8183 = vmatmul.mubr.bf16.gmra.mxu0 %v18113_v36  ;;  %v9258_v47 = vadd.f32 0.5, %v9034_v6  ;;  %v17421_v46 = vrot.slane %v12902_v33, %v5771_v62  ;;  %v18121_v33 = vld [vmem:[#allocation19_spill] sm:$0xff] }
 0x5fa   :  { %v7699_v1 = vpop.f32.mrf.mxu1  ;;  %8344 = vmatmul.mubr.bf16.gmra.mxu1 %v18114_v55  ;;  %v12569_v60 = vpop.eup %12568  ;;  %v9259_v37 = vadd.f32 0.5, %v9035_v14  ;;  %12582 = vtanh.f32 %v8615_v13  ;;  %v7507_v23 = vadd.f32 %v7506_v57, %v17181_v61  ;;  %8190 = vmatprep.mubr.bf16.mxu0 %v18116_v39  ;;  %v8621_v10 = vmul.f32 0.5, %v7694_v43  ;;  %v18118_v13 = vld [vmem:[#allocation8_spill] sm:$0xff] }
 0x5fb   :  { %8351 = vmatprep.mubr.bf16.mxu1 %v18117_v38  ;;  %10110 = vst [vmem:[%s17812_s10 + $0x28c] sm:$0xff] %v11098_v59  ;;  %v9041_v51 = vmul.f32 0.5, %v12569_v60  ;;  %v7696_v35 = vadd.f32 %v7695_v4, %v7503_v11  ;;  %v7508_v25 = vpop.f32.mrf.mxu0  ;;  %v18119_v59 = vld [vmem:[#allocation18_spill] sm:$0xff] }
 0x5fc   :  { %v7701_v7 = vpop.f32.mrf.mxu1  ;;  %v12571_v27 = vpop.eup %12570  ;;  %v11102_v44 = vpack.c.bf16 %v9259_v37, %v9258_v47  ;;  %v7700_v15 = vadd.f32 %v7699_v1, %v7507_v23  ;;  %v7509_v21 = vadd.f32 %v7508_v25, %v17188_v54  ;;  %12584 = vtanh.f32 %v8621_v10 }
 0x5fd   :  { %v12573_v12 = vpop.eup %12572  ;;  %v9042_v5 = vmul.f32 0.5, %v12571_v27  ;;  %v8622_v24 = vmul.f32 0.5, %v7696_v35  ;;  %v7510_v56 = vpop.f32.mrf.mxu0  ;;  %v9265_v48 = vadd.f32 0.5, %v9041_v51 }
 0x5fe   :  { %v7703_v41 = vpop.f32.mrf.mxu1  ;;  %10114 = vst [vmem:[%s17812_s10 + $0x2a8] sm:$0xff] %v11102_v44  ;;  %v9048_v49 = vmul.f32 0.5, %v12573_v12  ;;  %v8628_v52 = vmul.f32 0.5, %v7700_v15  ;;  %v7702_v26 = vadd.f32 %v7701_v7, %v7509_v21  ;;  %v7511_v28 = vadd.f32 %v7510_v56, %v17181_v61 }
 0x5ff   :  { %v12575_v8 = vpop.eup %12574  ;;  %v9266_v53 = vadd.f32 0.5, %v9042_v5  ;;  %12586 = vtanh.f32 %v8622_v24  ;;  %v7512_v42 = vpop.f32.mrf.mxu0 }
 0x600   :  { %v7705_v32 = vpop.f32.mrf.mxu1  ;;  %v9049_v22 = vmul.f32 0.5, %v12575_v8  ;;  %12588 = vtanh.f32 %v8628_v52  ;;  %v8629_v6 = vmul.f32 0.5, %v7702_v26  ;;  %v7704_v30 = vadd.f32 %v7703_v41, %v7511_v28  ;;  %v18120_v41 = vld [vmem:[#allocation11_spill] sm:$0xff]  ;;  %v18122_v8 = vld [vmem:[#allocation20_spill] sm:$0xff] }
 0x601   :  { %v11106_v29 = vpack.c.bf16 %v9266_v53, %v9265_v48  ;;  %v7513_v40 = vadd.f32 %v7512_v42, %v17188_v54  ;;  %v7742_v2 = vpop.f32.mrf.mxu0  ;;  %8191 = vmatmul.mubr.bf16.gmra.mxu0 %v18088_v17  ;;  %v12577_v61 = vpop.eup %12576  ;;  %v9272_v18 = vadd.f32 0.5, %v9048_v49  ;;  %v18123_v48 = vld [vmem:[#allocation21_spill] sm:$0xff] }
 0x602   :  { %v7935_v50 = vpop.f32.mrf.mxu1  ;;  %8352 = vmatmul.mubr.bf16.gmra.mxu1 %v18089_v3  ;;  %v9273_v4 = vadd.f32 0.5, %v9049_v22  ;;  %12590 = vtanh.f32 %v8629_v6  ;;  %v7743_v14 = vadd.f32 %v7742_v2, %v17415_v20  ;;  %8198 = vmatprep.mubr.bf16.mxu0 %v18118_v13  ;;  %v9055_v54 = vmul.f32 0.5, %v12577_v61 }
 0x603   :  { %8359 = vmatprep.mubr.bf16.mxu1 %v18119_v59  ;;  %10118 = vst [vmem:[%s17812_s10 + $0x2c4] sm:$0xff] %v11106_v29  ;;  %v8635_v43 = vmul.f32 0.5, %v7704_v30  ;;  %v7706_v11 = vadd.f32 %v7705_v32, %v7513_v40  ;;  %v7744_v17 = vpop.f32.mrf.mxu0 }
 0x604   :  { %v7937_v57 = vpop.f32.mrf.mxu1  ;;  %v12579_v3 = vpop.eup %12578  ;;  %v11110_v1 = vpack.c.bf16 %v9273_v4, %v9272_v18  ;;  %v7936_v36 = vadd.f32 %v7935_v50, %v7743_v14  ;;  %v7745_v55 = vadd.f32 %v7744_v17, %v17421_v46  ;;  %v9279_v25 = vadd.f32 0.5, %v9055_v54 }
 0x605   :  { %v12581_v31 = vpop.eup %12580  ;;  %v9056_v60 = vmul.f32 0.5, %v12579_v3  ;;  %12592 = vtanh.f32 %v8635_v43  ;;  %v8636_v47 = vmul.f32 0.5, %v7706_v11  ;;  %v7746_v37 = vpop.f32.mrf.mxu0 }
 0x606   :  { %v7939_v23 = vpop.f32.mrf.mxu1  ;;  %10122 = vst [vmem:[%s17812_s10 + $0x2e0] sm:$0xff] %v11110_v1  ;;  %v9062_v39 = vmul.f32 0.5, %v12581_v31  ;;  %v8420_v38 = vmul.f32 0.5, %v7936_v36  ;;  %v7938_v51 = vadd.f32 %v7937_v57, %v7745_v55  ;;  %v7747_v10 = vadd.f32 %v7746_v37, %v17415_v20 }
 0x607   :  { %v12583_v35 = vpop.eup %12582  ;;  %v9280_v7 = vadd.f32 0.5, %v9056_v60  ;;  %12594 = vtanh.f32 %v8636_v47  ;;  %v7748_v27 = vpop.f32.mrf.mxu0 }
 0x608   :  { %v7941_v44 = vpop.f32.mrf.mxu1  ;;  %v9063_v15 = vmul.f32 0.5, %v12583_v35  ;;  %12596 = vtanh.f32 %v8420_v38  ;;  %v8421_v21 = vmul.f32 0.5, %v7938_v51  ;;  %v7940_v12 = vadd.f32 %v7939_v23, %v7747_v10  ;;  %v18125_v38 = vld [vmem:[#allocation22_spill] sm:$0xff] }
 0x609   :  { %v11114_v62 = vpack.c.bf16 %v9280_v7, %v9279_v25  ;;  %v7749_v5 = vadd.f32 %v7748_v27, %v17421_v46  ;;  %v7752_v24 = vpop.f32.mrf.mxu0  ;;  %8199 = vmatmul.mubr.bf16.gmra.mxu0 %v18120_v41  ;;  %v12585_v49 = vpop.eup %12584  ;;  %v9286_v52 = vadd.f32 0.5, %v9062_v39  ;;  %v18124_v39 = vld [vmem:[#allocation10_spill] sm:$0xff]  ;;  %v18126_v7 = vld [vmem:[#allocation23_spill] sm:$0xff]  ;;  %v18127_v27 = vld [vmem:[#allocation24_spill] sm:$0xff] }
 0x60a   :  { %v7945_v56 = vpop.f32.mrf.mxu1  ;;  %8360 = vmatmul.mubr.bf16.gmra.mxu1 %v18121_v33  ;;  %v9287_v26 = vadd.f32 0.5, %v9063_v15  ;;  %12598 = vtanh.f32 %v8421_v21  ;;  %v7753_v28 = vadd.f32 %v7752_v24, %v17415_v20  ;;  %8206 = vmatprep.mubr.bf16.mxu0 %v18122_v8  ;;  %v9069_v53 = vmul.f32 0.5, %v12585_v49 }
 0x60b   :  { %8367 = vmatprep.mubr.bf16.mxu1 %v18123_v48  ;;  %10126 = vst [vmem:[%s17812_s10 + $0x2fc] sm:$0xff] %v11114_v62  ;;  %v8427_v42 = vmul.f32 0.5, %v7940_v12  ;;  %v7942_v32 = vadd.f32 %v7941_v44, %v7749_v5  ;;  %v7754_v22 = vpop.f32.mrf.mxu0 }
 0x60c   :  { %v7947_v6 = vpop.f32.mrf.mxu1  ;;  %v12587_v29 = vpop.eup %12586  ;;  %v11118_v30 = vpack.c.bf16 %v9287_v26, %v9286_v52  ;;  %v7946_v40 = vadd.f32 %v7945_v56, %v7753_v28  ;;  %v7755_v2 = vadd.f32 %v7754_v22, %v17421_v46  ;;  %v9293_v17 = vadd.f32 0.5, %v9069_v53 }
 0x60d   :  { %v12589_v50 = vpop.eup %12588  ;;  %v9070_v61 = vmul.f32 0.5, %v12587_v29  ;;  %12600 = vtanh.f32 %v8427_v42  ;;  %v8428_v18 = vmul.f32 0.5, %v7942_v32  ;;  %v7756_v4 = vpop.f32.mrf.mxu0 }
 0x60e   :  { %v7949_v14 = vpop.f32.mrf.mxu1  ;;  %10130 = vst [vmem:[%s17812_s10 + $0x318] sm:$0xff] %v11118_v30  ;;  %v9076_v13 = vmul.f32 0.5, %v12589_v50  ;;  %v8434_v59 = vmul.f32 0.5, %v7946_v40  ;;  %v7948_v54 = vadd.f32 %v7947_v6, %v7755_v2  ;;  %v7757_v43 = vadd.f32 %v7756_v4, %v17415_v20 }
 0x60f   :  { %v12591_v11 = vpop.eup %12590  ;;  %v9294_v57 = vadd.f32 0.5, %v9070_v61  ;;  %12602 = vtanh.f32 %v8428_v18  ;;  %v7758_v3 = vpop.f32.mrf.mxu0 }
 0x610   :  { %v7951_v1 = vpop.f32.mrf.mxu1  ;;  %v9077_v36 = vmul.f32 0.5, %v12591_v11  ;;  %12604 = vtanh.f32 %v8434_v59  ;;  %v8435_v55 = vmul.f32 0.5, %v7948_v54  ;;  %v7950_v60 = vadd.f32 %v7949_v14, %v7757_v43  ;;  %v18129_v59 = vld [vmem:[#allocation26_spill] sm:$0xff] }
 0x611   :  { %v11122_v31 = vpack.c.bf16 %v9294_v57, %v9293_v17  ;;  %v7759_v47 = vadd.f32 %v7758_v3, %v17421_v46  ;;  %v7762_v37 = vpop.f32.mrf.mxu0  ;;  %8207 = vmatmul.mubr.bf16.gmra.mxu0 %v18124_v39  ;;  %v9300_v10 = vadd.f32 0.5, %v9076_v13  ;;  %v18128_v13 = vld [vmem:[#allocation25_spill] sm:$0xff]  ;;  %v18130_v57 = vld [vmem:[#allocation27_spill] sm:$0xff]  ;;  %v18131_v3 = vld [vmem:[#allocation28_spill] sm:$0xff] }
 0x612   :  { %v7955_v23 = vpop.f32.mrf.mxu1  ;;  %8368 = vmatmul.mubr.bf16.gmra.mxu1 %v18125_v38  ;;  %v12593_v51 = vpop.eup %12592  ;;  %v9301_v35 = vadd.f32 0.5, %v9077_v36  ;;  %12606 = vtanh.f32 %v8435_v55  ;;  %v7763_v25 = vadd.f32 %v7762_v37, %v17415_v20  ;;  %8214 = vmatprep.mubr.bf16.mxu0 %v18126_v7  ;;  %v8441_v15 = vmul.f32 0.5, %v7950_v60 }
 0x613   :  { %8375 = vmatprep.mubr.bf16.mxu1 %v18127_v27  ;;  %10134 = vst [vmem:[%s17812_s10 + $0x334] sm:$0xff] %v11122_v31  ;;  %v9083_v44 = vmul.f32 0.5, %v12593_v51  ;;  %v7952_v21 = vadd.f32 %v7951_v1, %v7759_v47  ;;  %v7764_v62 = vpop.f32.mrf.mxu0 }
 0x614   :  { %v7957_v12 = vpop.f32.mrf.mxu1  ;;  %v12595_v5 = vpop.eup %12594  ;;  %v11126_v24 = vpack.c.bf16 %v9301_v35, %v9300_v10  ;;  %v7956_v56 = vadd.f32 %v7955_v23, %v7763_v25  ;;  %v7765_v41 = vadd.f32 %v7764_v62, %v17421_v46  ;;  %12608 = vtanh.f32 %v8441_v15 }
 0x615   :  { %v12597_v33 = vpop.eup %12596  ;;  %v9084_v49 = vmul.f32 0.5, %v12595_v5  ;;  %v8442_v52 = vmul.f32 0.5, %v7952_v21  ;;  %v7766_v26 = vpop.f32.mrf.mxu0  ;;  %v9307_v22 = vadd.f32 0.5, %v9083_v44 }
 0x616   :  { %v7959_v28 = vpop.f32.mrf.mxu1  ;;  %10138 = vst [vmem:[%s17812_s10 + $0x350] sm:$0xff] %v11126_v24  ;;  %v8868_v8 = vmul.f32 0.5, %v12597_v33  ;;  %v8448_v48 = vmul.f32 0.5, %v7956_v56  ;;  %v7958_v53 = vadd.f32 %v7957_v12, %v7765_v41  ;;  %v7767_v42 = vadd.f32 %v7766_v26, %v17415_v20 }
 0x617   :  { %v12599_v32 = vpop.eup %12598  ;;  %v9308_v6 = vadd.f32 0.5, %v9084_v49  ;;  %12610 = vtanh.f32 %v8442_v52  ;;  %v7768_v29 = vpop.f32.mrf.mxu0 }
 0x618   :  { %v7961_v30 = vpop.f32.mrf.mxu1  ;;  %v8869_v40 = vmul.f32 0.5, %v12599_v32  ;;  %12612 = vtanh.f32 %v8448_v48  ;;  %v8449_v2 = vmul.f32 0.5, %v7958_v53  ;;  %v7960_v61 = vadd.f32 %v7959_v28, %v7767_v42  ;;  %v18133_v48 = vld [vmem:[#allocation30_spill] sm:$0xff] }
 0x619   :  { %v11130_v50 = vpack.c.bf16 %v9308_v6, %v9307_v22  ;;  %v7769_v18 = vadd.f32 %v7768_v29, %v17421_v46  ;;  %v7772_v4 = vpop.f32.mrf.mxu0  ;;  %8215 = vmatmul.mubr.bf16.gmra.mxu0 %v18128_v13  ;;  %v9092_v43 = vadd.f32 0.5, %v8868_v8  ;;  %v18132_v8 = vld [vmem:[#allocation29_spill] sm:$0xff]  ;;  %v18134_v6 = vld [vmem:[#allocation31_spill] sm:$0xff]  ;;  %v18135_v29 = vld [vmem:[#allocation32_spill] sm:$0xff] }
 0x61a   :  { %v7965_v14 = vpop.f32.mrf.mxu1  ;;  %8376 = vmatmul.mubr.bf16.gmra.mxu1 %v18129_v59  ;;  %v12601_v54 = vpop.eup %12600  ;;  %v9093_v11 = vadd.f32 0.5, %v8869_v40  ;;  %12614 = vtanh.f32 %v8449_v2  ;;  %v7773_v17 = vadd.f32 %v7772_v4, %v17415_v20  ;;  %8222 = vmatprep.mubr.bf16.mxu0 %v18130_v57  ;;  %v8455_v36 = vmul.f32 0.5, %v7960_v61 }
 0x61b   :  { %8383 = vmatprep.mubr.bf16.mxu1 %v18131_v3  ;;  %10142 = vst [vmem:[%s17812_s10 + $0x36c] sm:$0xff] %v11130_v50  ;;  %v8875_v1 = vmul.f32 0.5, %v12601_v54  ;;  %v7962_v55 = vadd.f32 %v7961_v30, %v7769_v18  ;;  %v7774_v31 = vpop.f32.mrf.mxu0 }
 0x61c   :  { %v7967_v60 = vpop.f32.mrf.mxu1  ;;  %v12603_v47 = vpop.eup %12602  ;;  %v11007_v37 = vpack.c.bf16 %v9093_v11, %v9092_v43  ;;  %v7966_v23 = vadd.f32 %v7965_v14, %v7773_v17  ;;  %v7775_v39 = vadd.f32 %v7774_v31, %v17421_v46  ;;  %12616 = vtanh.f32 %v8455_v36 }
 0x61d   :  { %v12605_v38 = vpop.eup %12604  ;;  %v8876_v51 = vmul.f32 0.5, %v12603_v47  ;;  %v8456_v10 = vmul.f32 0.5, %v7962_v55  ;;  %v7776_v35 = vpop.f32.mrf.mxu0  ;;  %v9099_v62 = vadd.f32 0.5, %v8875_v1 }
 0x61e   :  { %v7969_v25 = vpop.f32.mrf.mxu1  ;;  %10018 = vst [vmem:[%s17812_s10 + $0x10] sm:$0xff] %v11007_v37  ;;  %v8882_v7 = vmul.f32 0.5, %v12605_v38  ;;  %v8462_v27 = vmul.f32 0.5, %v7966_v23  ;;  %v7968_v44 = vadd.f32 %v7967_v60, %v7775_v39  ;;  %v7777_v15 = vadd.f32 %v7776_v35, %v17415_v20 }
 0x61f   :  { %v12607_v21 = vpop.eup %12606  ;;  %v9100_v12 = vadd.f32 0.5, %v8876_v51  ;;  %12618 = vtanh.f32 %v8456_v10  ;;  %v7778_v5 = vpop.f32.mrf.mxu0 }
 0x620   :  { %v7971_v24 = vpop.f32.mrf.mxu1  ;;  %v8883_v56 = vmul.f32 0.5, %v12607_v21  ;;  %12620 = vtanh.f32 %v8462_v27  ;;  %v8463_v41 = vmul.f32 0.5, %v7968_v44  ;;  %v7970_v49 = vadd.f32 %v7969_v25, %v7777_v15  ;;  %v18136_v21 = vld [vmem:[#allocation35_spill] sm:$0xff] }
 0x621   :  { %v11011_v33 = vpack.c.bf16 %v9100_v12, %v9099_v62  ;;  %v7779_v52 = vadd.f32 %v7778_v5, %v17421_v46  ;;  %v7782_v26 = vpop.f32.mrf.mxu0  ;;  %8223 = vmatmul.mubr.bf16.gmra.mxu0 %v18132_v8  ;;  %v12609_v53 = vpop.eup %12608  ;;  %v9106_v42 = vadd.f32 0.5, %v8882_v7  ;;  %v18137_v62 = vld [vmem:[#allocation36_spill] sm:$0xff] }
 0x622   :  { %v7975_v28 = vpop.f32.mrf.mxu1  ;;  %8384 = vmatmul.mubr.bf16.gmra.mxu1 %v18133_v48  ;;  %v9107_v32 = vadd.f32 0.5, %v8883_v56  ;;  %12622 = vtanh.f32 %v8463_v41  ;;  %v7783_v22 = vadd.f32 %v7782_v26, %v17415_v20  ;;  %8230 = vmatprep.mubr.bf16.mxu0 %v18134_v6  ;;  %v8889_v30 = vmul.f32 0.5, %v12609_v53 }
 0x623   :  { %8391 = vmatprep.mubr.bf16.mxu1 %v18135_v29  ;;  %10023 = vst [vmem:[%s17812_s10 + $0x2c] sm:$0xff] %v11011_v33  ;;  %v8469_v40 = vmul.f32 0.5, %v7970_v49  ;;  %v7972_v2 = vadd.f32 %v7971_v24, %v7779_v52  ;;  %v7784_v50 = vpop.f32.mrf.mxu0 }
 0x624   :  { %v7977_v61 = vpop.f32.mrf.mxu1  ;;  %v12611_v18 = vpop.eup %12610  ;;  %v11015_v4 = vpack.c.bf16 %v9107_v32, %v9106_v42  ;;  %v7976_v14 = vadd.f32 %v7975_v28, %v7783_v22  ;;  %v7785_v13 = vadd.f32 %v7784_v50, %v17421_v46  ;;  %v9113_v31 = vadd.f32 0.5, %v8889_v30 }
 0x625   :  { %v12613_v59 = vpop.eup %12612  ;;  %v8890_v54 = vmul.f32 0.5, %v12611_v18  ;;  %12624 = vtanh.f32 %v8469_v40  ;;  %v8470_v43 = vmul.f32 0.5, %v7972_v2  ;;  %v7786_v11 = vpop.f32.mrf.mxu0 }
 0x626   :  { %v7979_v17 = vpop.f32.mrf.mxu1  ;;  %10027 = vst [vmem:[%s17812_s10 + $0x48] sm:$0xff] %v11015_v4  ;;  %v8896_v57 = vmul.f32 0.5, %v12613_v59  ;;  %v8476_v3 = vmul.f32 0.5, %v7976_v14  ;;  %v7978_v1 = vadd.f32 %v7977_v61, %v7785_v13  ;;  %v7787_v36 = vadd.f32 %v7786_v11, %v17415_v20 }
 0x627   :  { %v12615_v55 = vpop.eup %12614  ;;  %v9114_v60 = vadd.f32 0.5, %v8890_v54  ;;  %12626 = vtanh.f32 %v8470_v43  ;;  %v7788_v47 = vpop.f32.mrf.mxu0 }
 0x628   :  { %v7981_v37 = vpop.f32.mrf.mxu1  ;;  %v8897_v23 = vmul.f32 0.5, %v12615_v55  ;;  %12628 = vtanh.f32 %v8476_v3  ;;  %v8477_v39 = vmul.f32 0.5, %v7978_v1  ;;  %v7980_v51 = vadd.f32 %v7979_v17, %v7787_v36 }
 0x629   :  { %v11019_v38 = vpack.c.bf16 %v9114_v60, %v9113_v31  ;;  %v7789_v10 = vadd.f32 %v7788_v47, %v17421_v46  ;;  %v7792_v35 = vpop.f32.mrf.mxu0  ;;  %8231 = vmatmul.mubr.bf16.gmra.mxu0 %v18079_v45  ;;  %v12617_v7 = vpop.eup %12616  ;;  %v9120_v27 = vadd.f32 0.5, %v8896_v57  ;;  %v18138_v57 = vld [vmem:[#allocation37_spill] sm:$0xff] }
 0x62a   :  { %v7985_v25 = vpop.f32.mrf.mxu1  ;;  %8392 = vmatmul.mubr.bf16.gmra.mxu1 %v18080_v19  ;;  %v9121_v44 = vadd.f32 0.5, %v8897_v23  ;;  %12630 = vtanh.f32 %v8477_v39  ;;  %v7793_v15 = vadd.f32 %v7792_v35, %v17415_v20  ;;  %8238 = vmatprep.mubr.bf16.mxu0 %v18136_v21  ;;  %v8903_v12 = vmul.f32 0.5, %v12617_v7 }
 0x62b   :  { %8399 = vmatprep.mubr.bf16.mxu1 %v18137_v62  ;;  %10031 = vst [vmem:[%s17812_s10 + $0x64] sm:$0xff] %v11019_v38  ;;  %v8483_v5 = vmul.f32 0.5, %v7980_v51  ;;  %v7982_v24 = vadd.f32 %v7981_v37, %v7789_v10  ;;  %v7794_v45 = vpop.f32.mrf.mxu0 }
 0x62c   :  { %v7987_v56 = vpop.f32.mrf.mxu1  ;;  %v12619_v19 = vpop.eup %12618  ;;  %v11023_v41 = vpack.c.bf16 %v9121_v44, %v9120_v27  ;;  %v7986_v33 = vadd.f32 %v7985_v25, %v7793_v15  ;;  %v7795_v49 = vadd.f32 %v7794_v45, %v17421_v46  ;;  %v9127_v29 = vadd.f32 0.5, %v8903_v12 }
 0x62d   :  { %v12621_v52 = vpop.eup %12620  ;;  %v8904_v26 = vmul.f32 0.5, %v12619_v19  ;;  %12632 = vtanh.f32 %v8483_v5  ;;  %v8484_v28 = vmul.f32 0.5, %v7982_v24  ;;  %v7796_v8 = vpop.f32.mrf.mxu0 }
 0x62e   :  { %v7989_v48 = vpop.f32.mrf.mxu1  ;;  %10035 = vst [vmem:[%s17812_s10 + $0x80] sm:$0xff] %v11023_v41  ;;  %v8910_v53 = vmul.f32 0.5, %v12621_v52  ;;  %v8490_v42 = vmul.f32 0.5, %v7986_v33  ;;  %v7988_v32 = vadd.f32 %v7987_v56, %v7795_v49  ;;  %v7797_v22 = vadd.f32 %v7796_v8, %v17415_v20 }
 0x62f   :  { %v12623_v6 = vpop.eup %12622  ;;  %v9128_v30 = vadd.f32 0.5, %v8904_v26  ;;  %12634 = vtanh.f32 %v8484_v28  ;;  %v7798_v40 = vpop.f32.mrf.mxu0 }
 0x630   :  { %v7991_v2 = vpop.f32.mrf.mxu1  ;;  %v8911_v50 = vmul.f32 0.5, %v12623_v6  ;;  %12636 = vtanh.f32 %v8490_v42  ;;  %v8491_v61 = vmul.f32 0.5, %v7988_v32  ;;  %v7990_v4 = vadd.f32 %v7989_v48, %v7797_v22 }
 0x631   :  { %v11027_v18 = vpack.c.bf16 %v9128_v30, %v9127_v29  ;;  %v7799_v14 = vadd.f32 %v7798_v40, %v17421_v46  ;;  %v7802_v13 = vpop.f32.mrf.mxu0  ;;  %8239 = vmatmul.mubr.bf16.gmra.mxu0 %v16626_v34  ;;  %v9134_v43 = vadd.f32 0.5, %v8910_v53 }
 0x632   :  { %v7995_v59 = vpop.f32.mrf.mxu1  ;;  %8400 = vmatmul.mubr.bf16.gmra.mxu1 %v16628_v63  ;;  %v12625_v54 = vpop.eup %12624  ;;  %v9135_v11 = vadd.f32 0.5, %v8911_v50  ;;  %12638 = vtanh.f32 %v8491_v61  ;;  %v7803_v17 = vadd.f32 %v7802_v13, %v17415_v20  ;;  %8246 = vmatprep.mubr.bf16.mxu0 %v16642_v16  ;;  %v8497_v1 = vmul.f32 0.5, %v7990_v4 }
 0x633   :  { %8407 = vmatprep.mubr.bf16.mxu1 %v18138_v57  ;;  %10039 = vst [vmem:[%s17812_s10 + $0x9c] sm:$0xff] %v11027_v18  ;;  %v8917_v3 = vmul.f32 0.5, %v12625_v54  ;;  %v7992_v36 = vadd.f32 %v7991_v2, %v7799_v14  ;;  %v7804_v34 = vpop.f32.mrf.mxu0 }
 0x634   :  { %v7997_v55 = vpop.f32.mrf.mxu1  ;;  %v12627_v63 = vpop.eup %12626  ;;  %v11031_v31 = vpack.c.bf16 %v9135_v11, %v9134_v43  ;;  %v7996_v60 = vadd.f32 %v7995_v59, %v7803_v17  ;;  %v7805_v47 = vadd.f32 %v7804_v34, %v17421_v46  ;;  %12640 = vtanh.f32 %v8497_v1 }
 0x635   :  { %v12629_v37 = vpop.eup %12628  ;;  %v8918_v23 = vmul.f32 0.5, %v12627_v63  ;;  %v8498_v16 = vmul.f32 0.5, %v7992_v36  ;;  %v7806_v39 = vpop.f32.mrf.mxu0  ;;  %v9141_v27 = vadd.f32 0.5, %v8917_v3 }
 0x636   :  { %v7999_v38 = vpop.f32.mrf.mxu1  ;;  %10043 = vst [vmem:[%s17812_s10 + $0xb8] sm:$0xff] %v11031_v31  ;;  %v8924_v51 = vmul.f32 0.5, %v12629_v37  ;;  %v8504_v10 = vmul.f32 0.5, %v7996_v60  ;;  %v7998_v35 = vadd.f32 %v7997_v55, %v7805_v47  ;;  %v7807_v25 = vadd.f32 %v7806_v39, %v17415_v20 }
 0x637   :  { %v12631_v7 = vpop.eup %12630  ;;  %v9142_v44 = vadd.f32 0.5, %v8918_v23  ;;  %12642 = vtanh.f32 %v8498_v16  ;;  %v7808_v15 = vpop.f32.mrf.mxu0 }
 0x638   :  { %v8001_v21 = vpop.f32.mrf.mxu1  ;;  %v8925_v62 = vmul.f32 0.5, %v12631_v7  ;;  %12644 = vtanh.f32 %v8504_v10  ;;  %v8505_v12 = vmul.f32 0.5, %v7998_v35  ;;  %v8000_v24 = vadd.f32 %v7999_v38, %v7807_v25 }
 0x639   :  { %v11035_v5 = vpack.c.bf16 %v9142_v44, %v9141_v27  ;;  %v7809_v45 = vadd.f32 %v7808_v15, %v17421_v46  ;;  %v7812_v56 = vpop.f32.mrf.mxu0  ;;  %8247 = vmatmul.mubr.bf16.gmra.mxu0 %v16646_v58  ;;  %v9148_v33 = vadd.f32 0.5, %v8924_v51 }
 0x63a   :  { %v8005_v19 = vpop.f32.mrf.mxu1  ;;  %8408 = vmatmul.mubr.bf16.gmra.mxu1 %v16648_v0  ;;  %v12633_v41 = vpop.eup %12632  ;;  %v9149_v49 = vadd.f32 0.5, %v8925_v62  ;;  %12646 = vtanh.f32 %v8505_v12  ;;  %v7813_v52 = vadd.f32 %v7812_v56, %v17415_v20  ;;  %v8511_v28 = vmul.f32 0.5, %v8000_v24 }
 0x63b   :  { %10047 = vst [vmem:[%s17812_s10 + $0xd4] sm:$0xff] %v11035_v5  ;;  %v8931_v26 = vmul.f32 0.5, %v12633_v41  ;;  %v8002_v8 = vadd.f32 %v8001_v21, %v7809_v45  ;;  %v7814_v48 = vpop.f32.mrf.mxu0 }
 0x63c   :  { %v8007_v53 = vpop.f32.mrf.mxu1  ;;  %v12635_v42 = vpop.eup %12634  ;;  %v11039_v32 = vpack.c.bf16 %v9149_v49, %v9148_v33  ;;  %v8006_v58 = vadd.f32 %v8005_v19, %v7813_v52  ;;  %v7815_v0 = vadd.f32 %v7814_v48, %v17421_v46  ;;  %12648 = vtanh.f32 %v8511_v28 }
 0x63d   :  { %v12637_v22 = vpop.eup %12636  ;;  %v8932_v6 = vmul.f32 0.5, %v12635_v42  ;;  %v8512_v29 = vmul.f32 0.5, %v8002_v8  ;;  %v7816_v30 = vpop.f32.mrf.mxu0  ;;  %v9155_v14 = vadd.f32 0.5, %v8931_v26 }
 0x63e   :  { %v8009_v40 = vpop.f32.mrf.mxu1  ;;  %10051 = vst [vmem:[%s17812_s10 + $0xf0] sm:$0xff] %v11039_v32  ;;  %v8938_v2 = vmul.f32 0.5, %v12637_v22  ;;  %v8518_v50 = vmul.f32 0.5, %v8006_v58  ;;  %v8008_v61 = vadd.f32 %v8007_v53, %v7815_v0  ;;  %v7817_v18 = vadd.f32 %v7816_v30, %v17415_v20 }
 0x63f   :  { %v12639_v4 = vpop.eup %12638  ;;  %v9156_v13 = vadd.f32 0.5, %v8932_v6  ;;  %12650 = vtanh.f32 %v8512_v29  ;;  %v7818_v59 = vpop.f32.mrf.mxu0 }
 0x640   :  { %v8011_v54 = vpop.f32.mrf.mxu1  ;;  %v8939_v43 = vmul.f32 0.5, %v12639_v4  ;;  %12652 = vtanh.f32 %v8518_v50  ;;  %v8519_v11 = vmul.f32 0.5, %v8008_v61  ;;  %v8010_v57 = vadd.f32 %v8009_v40, %v7817_v18 }
 0x641   :  { %v11043_v17 = vpack.c.bf16 %v9156_v13, %v9155_v14  ;;  %v7819_v3 = vadd.f32 %v7818_v59, %v17421_v46  ;;  %v7822_v1 = vpop.f32.mrf.mxu0  ;;  %v12641_v34 = vpop.eup %12640  ;;  %v9162_v55 = vadd.f32 0.5, %v8938_v2 }
 0x642   :  { %v8015_v36 = vpop.f32.mrf.mxu1  ;;  %v9163_v63 = vadd.f32 0.5, %v8939_v43  ;;  %12654 = vtanh.f32 %v8519_v11  ;;  %v7823_v31 = vadd.f32 %v7822_v1, %v17415_v20  ;;  %v8945_v60 = vmul.f32 0.5, %v12641_v34 }
 0x643   :  { %10055 = vst [vmem:[%s17812_s10 + $0x10c] sm:$0xff] %v11043_v17  ;;  %v8525_v47 = vmul.f32 0.5, %v8010_v57  ;;  %v8012_v37 = vadd.f32 %v8011_v54, %v7819_v3  ;;  %v7824_v23 = vpop.f32.mrf.mxu0 }
 0x644   :  { %v8017_v16 = vpop.f32.mrf.mxu1  ;;  %v12643_v39 = vpop.eup %12642  ;;  %v11047_v38 = vpack.c.bf16 %v9163_v63, %v9162_v55  ;;  %v8016_v51 = vadd.f32 %v8015_v36, %v7823_v31  ;;  %v7825_v10 = vadd.f32 %v7824_v23, %v17421_v46  ;;  %v9169_v24 = vadd.f32 0.5, %v8945_v60 }
 0x645   :  { %v12645_v35 = vpop.eup %12644  ;;  %v8946_v25 = vmul.f32 0.5, %v12643_v39  ;;  %12656 = vtanh.f32 %v8525_v47  ;;  %v8526_v7 = vmul.f32 0.5, %v8012_v37  ;;  %v7826_v27 = vpop.f32.mrf.mxu0 }
 0x646   :  { %v8019_v44 = vpop.f32.mrf.mxu1  ;;  %10059 = vst [vmem:[%s17812_s10 + $0x128] sm:$0xff] %v11047_v38  ;;  %v8952_v15 = vmul.f32 0.5, %v12645_v35  ;;  %v8532_v21 = vmul.f32 0.5, %v8016_v51  ;;  %v8018_v62 = vadd.f32 %v8017_v16, %v7825_v10  ;;  %v7827_v12 = vadd.f32 %v7826_v27, %v17415_v20 }
 0x647   :  { %v12647_v5 = vpop.eup %12646  ;;  %v9170_v45 = vadd.f32 0.5, %v8946_v25  ;;  %12658 = vtanh.f32 %v8526_v7  ;;  %v7828_v56 = vpop.f32.mrf.mxu0 }
 0x648   :  { %v8021_v19 = vpop.f32.mrf.mxu1  ;;  %v8953_v41 = vmul.f32 0.5, %v12647_v5  ;;  %12660 = vtanh.f32 %v8532_v21  ;;  %v8533_v33 = vmul.f32 0.5, %v8018_v62  ;;  %v8020_v52 = vadd.f32 %v8019_v44, %v7827_v12 }
 0x649   :  { %v11051_v49 = vpack.c.bf16 %v9170_v45, %v9169_v24  ;;  %v7829_v26 = vadd.f32 %v7828_v56, %v17421_v46  ;;  %v7832_v28 = vpop.f32.mrf.mxu0  ;;  %v12649_v48 = vpop.eup %12648  ;;  %v9176_v53 = vadd.f32 0.5, %v8952_v15 }
 0x64a   :  { %v8025_v8 = vpop.f32.mrf.mxu1  ;;  %v9177_v42 = vadd.f32 0.5, %v8953_v41  ;;  %12662 = vtanh.f32 %v8533_v33  ;;  %v7833_v32 = vadd.f32 %v7832_v28, %v17415_v20  ;;  %v8959_v58 = vmul.f32 0.5, %v12649_v48 }
 0x64b   :  { %10063 = vst [vmem:[%s17812_s10 + $0x144] sm:$0xff] %v11051_v49  ;;  %v8539_v0 = vmul.f32 0.5, %v8020_v52  ;;  %v8022_v22 = vadd.f32 %v8021_v19, %v7829_v26  ;;  %v7834_v6 = vpop.f32.mrf.mxu0 }
 0x64c   :  { %v8027_v29 = vpop.f32.mrf.mxu1  ;;  %v12651_v30 = vpop.eup %12650  ;;  %v11055_v40 = vpack.c.bf16 %v9177_v42, %v9176_v53  ;;  %v8026_v2 = vadd.f32 %v8025_v8, %v7833_v32  ;;  %v7835_v50 = vadd.f32 %v7834_v6, %v17421_v46  ;;  %v9183_v57 = vadd.f32 0.5, %v8959_v58 }
 0x64d   :  { %v12653_v61 = vpop.eup %12652  ;;  %v8960_v18 = vmul.f32 0.5, %v12651_v30  ;;  %12664 = vtanh.f32 %v8539_v0  ;;  %v8540_v4 = vmul.f32 0.5, %v8022_v22  ;;  %v7836_v14 = vpop.f32.mrf.mxu0 }
 0x64e   :  { %v8029_v13 = vpop.f32.mrf.mxu1  ;;  %10067 = vst [vmem:[%s17812_s10 + $0x160] sm:$0xff] %v11055_v40  ;;  %v8966_v59 = vmul.f32 0.5, %v12653_v61  ;;  %v8546_v54 = vmul.f32 0.5, %v8026_v2  ;;  %v8028_v43 = vadd.f32 %v8027_v29, %v7835_v50  ;;  %v7837_v11 = vadd.f32 %v7836_v14, %v17415_v20 }
 0x64f   :  { %v12655_v17 = vpop.eup %12654  ;;  %v9184_v3 = vadd.f32 0.5, %v8960_v18  ;;  %12666 = vtanh.f32 %v8540_v4  ;;  %v7838_v1 = vpop.f32.mrf.mxu0 }
 0x650   :  { %v8031_v36 = vpop.f32.mrf.mxu1  ;;  %v8967_v34 = vmul.f32 0.5, %v12655_v17  ;;  %12668 = vtanh.f32 %v8546_v54  ;;  %v8547_v55 = vmul.f32 0.5, %v8028_v43  ;;  %v8030_v31 = vadd.f32 %v8029_v13, %v7837_v11 }
 0x651   :  { %v11059_v63 = vpack.c.bf16 %v9184_v3, %v9183_v57  ;;  %v7839_v60 = vadd.f32 %v7838_v1, %v17421_v46  ;;  %v7842_v47 = vpop.f32.mrf.mxu0  ;;  %v9190_v16 = vadd.f32 0.5, %v8966_v59 }
 0x652   :  { %v8035_v37 = vpop.f32.mrf.mxu1  ;;  %v12657_v23 = vpop.eup %12656  ;;  %v9191_v39 = vadd.f32 0.5, %v8967_v34  ;;  %12670 = vtanh.f32 %v8547_v55  ;;  %v7843_v38 = vadd.f32 %v7842_v47, %v17415_v20  ;;  %v8553_v10 = vmul.f32 0.5, %v8030_v31 }
 0x653   :  { %10071 = vst [vmem:[%s17812_s10 + $0x17c] sm:$0xff] %v11059_v63  ;;  %v8973_v51 = vmul.f32 0.5, %v12657_v23  ;;  %v8032_v35 = vadd.f32 %v8031_v36, %v7839_v60  ;;  %v7844_v25 = vpop.f32.mrf.mxu0 }
 0x654   :  { %v8037_v7 = vpop.f32.mrf.mxu1  ;;  %v12659_v27 = vpop.eup %12658  ;;  %v11063_v44 = vpack.c.bf16 %v9191_v39, %v9190_v16  ;;  %v8036_v15 = vadd.f32 %v8035_v37, %v7843_v38  ;;  %v7845_v21 = vadd.f32 %v7844_v25, %v17421_v46  ;;  %12672 = vtanh.f32 %v8553_v10 }
 0x655   :  { %v12661_v62 = vpop.eup %12660  ;;  %v8974_v12 = vmul.f32 0.5, %v12659_v27  ;;  %v8554_v5 = vmul.f32 0.5, %v8032_v35  ;;  %v7846_v24 = vpop.f32.mrf.mxu0  ;;  %v9197_v52 = vadd.f32 0.5, %v8973_v51 }
 0x656   :  { %v8039_v45 = vpop.f32.mrf.mxu1  ;;  %10075 = vst [vmem:[%s17812_s10 + $0x198] sm:$0xff] %v11063_v44  ;;  %v8980_v56 = vmul.f32 0.5, %v12661_v62  ;;  %v8560_v19 = vmul.f32 0.5, %v8036_v15  ;;  %v8038_v41 = vadd.f32 %v8037_v7, %v7845_v21  ;;  %v7847_v33 = vadd.f32 %v7846_v24, %v17415_v20 }
 0x657   :  { %v12663_v49 = vpop.eup %12662  ;;  %v9198_v26 = vadd.f32 0.5, %v8974_v12  ;;  %12674 = vtanh.f32 %v8554_v5  ;;  %v7848_v28 = vpop.f32.mrf.mxu0 }
 0x658   :  { %v8041_v8 = vpop.f32.mrf.mxu1  ;;  %v8981_v48 = vmul.f32 0.5, %v12663_v49  ;;  %12676 = vtanh.f32 %v8560_v19  ;;  %v8561_v53 = vmul.f32 0.5, %v8038_v41  ;;  %v8040_v32 = vadd.f32 %v8039_v45, %v7847_v33 }
 0x659   :  { %v11067_v42 = vpack.c.bf16 %v9198_v26, %v9197_v52  ;;  %v7849_v58 = vadd.f32 %v7848_v28, %v17421_v46  ;;  %v7852_v0 = vpop.f32.mrf.mxu0  ;;  %v9204_v29 = vadd.f32 0.5, %v8980_v56 }
 0x65a   :  { %v8045_v22 = vpop.f32.mrf.mxu1  ;;  %v12665_v6 = vpop.eup %12664  ;;  %v9205_v30 = vadd.f32 0.5, %v8981_v48  ;;  %12678 = vtanh.f32 %v8561_v53  ;;  %v7853_v40 = vadd.f32 %v7852_v0, %v17415_v20  ;;  %v8567_v50 = vmul.f32 0.5, %v8040_v32 }
 0x65b   :  { %10079 = vst [vmem:[%s17812_s10 + $0x1b4] sm:$0xff] %v11067_v42  ;;  %v8987_v2 = vmul.f32 0.5, %v12665_v6  ;;  %v8042_v61 = vadd.f32 %v8041_v8, %v7849_v58  ;;  %v7854_v18 = vpop.f32.mrf.mxu0 }
 0x65c   :  { %v8047_v4 = vpop.f32.mrf.mxu1  ;;  %v12667_v14 = vpop.eup %12666  ;;  %v11071_v13 = vpack.c.bf16 %v9205_v30, %v9204_v29  ;;  %v8046_v59 = vadd.f32 %v8045_v22, %v7853_v40  ;;  %v7855_v54 = vadd.f32 %v7854_v18, %v17421_v46  ;;  %12680 = vtanh.f32 %v8567_v50 }
 0x65d   :  { %v12669_v43 = vpop.eup %12668  ;;  %v8988_v11 = vmul.f32 0.5, %v12667_v14  ;;  %v8568_v17 = vmul.f32 0.5, %v8042_v61  ;;  %v7856_v57 = vpop.f32.mrf.mxu0  ;;  %v9211_v31 = vadd.f32 0.5, %v8987_v2 }
 0x65e   :  { %v8049_v3 = vpop.f32.mrf.mxu1  ;;  %10083 = vst [vmem:[%s17812_s10 + $0x1d0] sm:$0xff] %v11071_v13  ;;  %v8994_v1 = vmul.f32 0.5, %v12669_v43  ;;  %v8574_v36 = vmul.f32 0.5, %v8046_v59  ;;  %v8048_v34 = vadd.f32 %v8047_v4, %v7855_v54  ;;  %v7857_v55 = vadd.f32 %v7856_v57, %v17415_v20 }
 0x65f   :  { %v12671_v63 = vpop.eup %12670  ;;  %v9212_v60 = vadd.f32 0.5, %v8988_v11  ;;  %12682 = vtanh.f32 %v8568_v17  ;;  %v7858_v47 = vpop.f32.mrf.mxu0 }
 0x660   :  { %v8051_v37 = vpop.f32.mrf.mxu1  ;;  %v8995_v23 = vmul.f32 0.5, %v12671_v63  ;;  %12684 = vtanh.f32 %v8574_v36  ;;  %v8575_v16 = vmul.f32 0.5, %v8048_v34  ;;  %v8050_v38 = vadd.f32 %v8049_v3, %v7857_v55 }
 0x661   :  { %v11075_v39 = vpack.c.bf16 %v9212_v60, %v9211_v31  ;;  %v7859_v51 = vadd.f32 %v7858_v47, %v17421_v46  ;;  %v7862_v10 = vpop.f32.mrf.mxu0  ;;  %v12673_v25 = vpop.eup %12672  ;;  %v9218_v7 = vadd.f32 0.5, %v8994_v1 }
 0x662   :  { %v8055_v35 = vpop.f32.mrf.mxu1  ;;  %v9219_v27 = vadd.f32 0.5, %v8995_v23  ;;  %12686 = vtanh.f32 %v8575_v16  ;;  %v7863_v44 = vadd.f32 %v7862_v10, %v17415_v20  ;;  %v9001_v15 = vmul.f32 0.5, %v12673_v25 }
 0x663   :  { %10087 = vst [vmem:[%s17812_s10 + $0x1ec] sm:$0xff] %v11075_v39  ;;  %v8581_v21 = vmul.f32 0.5, %v8050_v38  ;;  %v8052_v62 = vadd.f32 %v8051_v37, %v7859_v51  ;;  %v7864_v12 = vpop.f32.mrf.mxu0 }
 0x664   :  { %v8057_v5 = vpop.f32.mrf.mxu1  ;;  %v12675_v24 = vpop.eup %12674  ;;  %v11079_v45 = vpack.c.bf16 %v9219_v27, %v9218_v7  ;;  %v8056_v56 = vadd.f32 %v8055_v35, %v7863_v44  ;;  %v7865_v19 = vadd.f32 %v7864_v12, %v17421_v46  ;;  %v9225_v32 = vadd.f32 0.5, %v9001_v15 }
 0x665   :  { %v12677_v41 = vpop.eup %12676  ;;  %v9002_v33 = vmul.f32 0.5, %v12675_v24  ;;  %12688 = vtanh.f32 %v8581_v21  ;;  %v8582_v49 = vmul.f32 0.5, %v8052_v62  ;;  %v7866_v52 = vpop.f32.mrf.mxu0 }
 0x666   :  { %v8059_v26 = vpop.f32.mrf.mxu1  ;;  %10091 = vst [vmem:[%s17812_s10 + $0x208] sm:$0xff] %v11079_v45  ;;  %v9008_v28 = vmul.f32 0.5, %v12677_v41  ;;  %v8588_v8 = vmul.f32 0.5, %v8056_v56  ;;  %v8058_v48 = vadd.f32 %v8057_v5, %v7865_v19  ;;  %v7867_v53 = vadd.f32 %v7866_v52, %v17415_v20 }
 0x667   :  { %v12679_v42 = vpop.eup %12678  ;;  %v9226_v58 = vadd.f32 0.5, %v9002_v33  ;;  %12690 = vtanh.f32 %v8582_v49  ;;  %v7868_v0 = vpop.f32.mrf.mxu0 }
 0x668   :  { %v8061_v22 = vpop.f32.mrf.mxu1  ;;  %v9009_v6 = vmul.f32 0.5, %v12679_v42  ;;  %12692 = vtanh.f32 %v8588_v8  ;;  %v8589_v29 = vmul.f32 0.5, %v8058_v48  ;;  %v8060_v40 = vadd.f32 %v8059_v26, %v7867_v53 }
 0x669   :  { %v11083_v30 = vpack.c.bf16 %v9226_v58, %v9225_v32  ;;  %v7869_v2 = vadd.f32 %v7868_v0, %v17421_v46  ;;  %v7872_v50 = vpop.f32.mrf.mxu0  ;;  %v12681_v18 = vpop.eup %12680  ;;  %v9232_v4 = vadd.f32 0.5, %v9008_v28 }
 0x66a   :  { %v8065_v61 = vpop.f32.mrf.mxu1  ;;  %v9233_v14 = vadd.f32 0.5, %v9009_v6  ;;  %12694 = vtanh.f32 %v8589_v29  ;;  %v7873_v13 = vadd.f32 %v7872_v50, %v17415_v20  ;;  %v9015_v59 = vmul.f32 0.5, %v12681_v18 }
 0x66b   :  { %10095 = vst [vmem:[%s17812_s10 + $0x224] sm:$0xff] %v11083_v30  ;;  %v8595_v54 = vmul.f32 0.5, %v8060_v40  ;;  %v8062_v43 = vadd.f32 %v8061_v22, %v7869_v2  ;;  %v7874_v11 = vpop.f32.mrf.mxu0 }
 0x66c   :  { %v8067_v17 = vpop.f32.mrf.mxu1  ;;  %v12683_v57 = vpop.eup %12682  ;;  %v11087_v3 = vpack.c.bf16 %v9233_v14, %v9232_v4  ;;  %v8066_v1 = vadd.f32 %v8065_v61, %v7873_v13  ;;  %v7875_v36 = vadd.f32 %v7874_v11, %v17421_v46  ;;  %v9239_v38 = vadd.f32 0.5, %v9015_v59 }
 0x66d   :  { %v12685_v34 = vpop.eup %12684  ;;  %v9016_v55 = vmul.f32 0.5, %v12683_v57  ;;  %12696 = vtanh.f32 %v8595_v54  ;;  %v8596_v63 = vmul.f32 0.5, %v8062_v43  ;;  %v7876_v31 = vpop.f32.mrf.mxu0 }
 0x66e   :  { %v8069_v60 = vpop.f32.mrf.mxu1  ;;  %10099 = vst [vmem:[%s17812_s10 + $0x240] sm:$0xff] %v11087_v3  ;;  %v9022_v47 = vmul.f32 0.5, %v12685_v34  ;;  %v8602_v37 = vmul.f32 0.5, %v8066_v1  ;;  %v8068_v23 = vadd.f32 %v8067_v17, %v7875_v36  ;;  %v7877_v16 = vadd.f32 %v7876_v31, %v17415_v20 }
 0x66f   :  { %v12687_v39 = vpop.eup %12686  ;;  %v9240_v51 = vadd.f32 0.5, %v9016_v55  ;;  %12698 = vtanh.f32 %v8596_v63  ;;  %v7878_v10 = vpop.f32.mrf.mxu0 }
 0x670   :  { %v8071_v35 = vpop.f32.mrf.mxu1  ;;  %v9023_v25 = vmul.f32 0.5, %v12687_v39  ;;  %12700 = vtanh.f32 %v8602_v37  ;;  %v8603_v7 = vmul.f32 0.5, %v8068_v23  ;;  %v8070_v44 = vadd.f32 %v8069_v60, %v7877_v16 }
 0x671   :  { %v11091_v27 = vpack.c.bf16 %v9240_v51, %v9239_v38  ;;  %v7879_v15 = vadd.f32 %v7878_v10, %v17421_v46  ;;  %v7882_v21 = vpop.f32.mrf.mxu0  ;;  %v9246_v5 = vadd.f32 0.5, %v9022_v47  ;;  %v5775_v10 = vsub.s32 6, %v18115_v9 }
 0x672   :  { %v8075_v62 = vpop.f32.mrf.mxu1  ;;  %v12689_v12 = vpop.eup %12688  ;;  %v9247_v24 = vadd.f32 0.5, %v9023_v25  ;;  %12702 = vtanh.f32 %v8603_v7  ;;  %v7883_v45 = vadd.f32 %v7882_v21, %v17415_v20  ;;  %v8609_v19 = vmul.f32 0.5, %v8070_v44 }
 0x673   :  { %10103 = vst [vmem:[%s17812_s10 + $0x25c] sm:$0xff] %v11091_v27  ;;  %v9029_v56 = vmul.f32 0.5, %v12689_v12  ;;  %v8072_v41 = vadd.f32 %v8071_v35, %v7879_v15  ;;  %v7884_v33 = vpop.f32.mrf.mxu0 }
 0x674   :  { %v8077_v49 = vpop.f32.mrf.mxu1  ;;  %v12691_v52 = vpop.eup %12690  ;;  %v11095_v26 = vpack.c.bf16 %v9247_v24, %v9246_v5  ;;  %v8076_v28 = vadd.f32 %v8075_v62, %v7883_v45  ;;  %v7885_v8 = vadd.f32 %v7884_v33, %v17421_v46  ;;  %12704 = vtanh.f32 %v8609_v19 }
 0x675   :  { %v12693_v48 = vpop.eup %12692  ;;  %v9030_v53 = vmul.f32 0.5, %v12691_v52  ;;  %v8610_v42 = vmul.f32 0.5, %v8072_v41  ;;  %v7886_v32 = vpop.f32.mrf.mxu0  ;;  %v9253_v40 = vadd.f32 0.5, %v9029_v56 }
 0x676   :  { %v8079_v58 = vpop.f32.mrf.mxu1  ;;  %10107 = vst [vmem:[%s17812_s10 + $0x278] sm:$0xff] %v11095_v26  ;;  %v9036_v0 = vmul.f32 0.5, %v12693_v48  ;;  %v8616_v22 = vmul.f32 0.5, %v8076_v28  ;;  %v8078_v6 = vadd.f32 %v8077_v49, %v7885_v8  ;;  %v7887_v29 = vadd.f32 %v7886_v32, %v17415_v20 }
 0x677   :  { %v12695_v30 = vpop.eup %12694  ;;  %v9254_v2 = vadd.f32 0.5, %v9030_v53  ;;  %12706 = vtanh.f32 %v8610_v42  ;;  %v7888_v50 = vpop.f32.mrf.mxu0 }
 0x678   :  { %v8081_v61 = vpop.f32.mrf.mxu1  ;;  %v9037_v18 = vmul.f32 0.5, %v12695_v30  ;;  %12708 = vtanh.f32 %v8616_v22  ;;  %v8617_v4 = vmul.f32 0.5, %v8078_v6  ;;  %v8080_v13 = vadd.f32 %v8079_v58, %v7887_v29 }
 0x679   :  { %v11099_v14 = vpack.c.bf16 %v9254_v2, %v9253_v40  ;;  %v7889_v59 = vadd.f32 %v7888_v50, %v17421_v46  ;;  %v7892_v54 = vpop.f32.mrf.mxu0  ;;  %v9260_v17 = vadd.f32 0.5, %v9036_v0 }
 0x67a   :  { %v8085_v43 = vpop.f32.mrf.mxu1  ;;  %v12697_v11 = vpop.eup %12696  ;;  %v9261_v57 = vadd.f32 0.5, %v9037_v18  ;;  %12710 = vtanh.f32 %v8617_v4  ;;  %v7893_v3 = vadd.f32 %v7892_v54, %v17415_v20  ;;  %v8623_v36 = vmul.f32 0.5, %v8080_v13 }
 0x67b   :  { %10111 = vst [vmem:[%s17812_s10 + $0x294] sm:$0xff] %v11099_v14  ;;  %v9043_v1 = vmul.f32 0.5, %v12697_v11  ;;  %v8082_v34 = vadd.f32 %v8081_v61, %v7889_v59  ;;  %v7894_v55 = vpop.f32.mrf.mxu0 }
 0x67c   :  { %v8087_v63 = vpop.f32.mrf.mxu1  ;;  %v12699_v31 = vpop.eup %12698  ;;  %v11103_v60 = vpack.c.bf16 %v9261_v57, %v9260_v17  ;;  %v8086_v47 = vadd.f32 %v8085_v43, %v7893_v3  ;;  %v7895_v37 = vadd.f32 %v7894_v55, %v17421_v46  ;;  %12712 = vtanh.f32 %v8623_v36 }
 0x67d   :  { %v12701_v23 = vpop.eup %12700  ;;  %v9044_v16 = vmul.f32 0.5, %v12699_v31  ;;  %v8624_v39 = vmul.f32 0.5, %v8082_v34  ;;  %v7896_v38 = vpop.f32.mrf.mxu0  ;;  %v9267_v15 = vadd.f32 0.5, %v9043_v1 }
 0x67e   :  { %v8089_v51 = vpop.f32.mrf.mxu1  ;;  %10115 = vst [vmem:[%s17812_s10 + $0x2b0] sm:$0xff] %v11103_v60  ;;  %v9050_v35 = vmul.f32 0.5, %v12701_v23  ;;  %v8630_v25 = vmul.f32 0.5, %v8086_v47  ;;  %v8088_v7 = vadd.f32 %v8087_v63, %v7895_v37  ;;  %v7897_v27 = vadd.f32 %v7896_v38, %v17415_v20  ;;  %v12903_v20 = vld [vmem:[%s17811_s9] sm:$0x7f] }
 0x67f   :  { %v12703_v44 = vpop.eup %12702  ;;  %v9268_v21 = vadd.f32 0.5, %v9044_v16  ;;  %12714 = vtanh.f32 %v8624_v39  ;;  %v7898_v62 = vpop.f32.mrf.mxu0  ;;  %v17618_v26 = vrot.slane %v12903_v20, %v5775_v10 }
 0x680   :  { %v8091_v12 = vpop.f32.mrf.mxu1  ;;  %v9051_v5 = vmul.f32 0.5, %v12703_v44  ;;  %12716 = vtanh.f32 %v8630_v25  ;;  %v8631_v24 = vmul.f32 0.5, %v8088_v7  ;;  %v8090_v9 = vadd.f32 %v8089_v51, %v7897_v27 }
 0x681   :  { %v11107_v45 = vpack.c.bf16 %v9268_v21, %v9267_v15  ;;  %v7899_v56 = vadd.f32 %v7898_v62, %v17421_v46  ;;  %v11149_v19 = vpop.f32.mrf.mxu0  ;;  %v12705_v33 = vpop.eup %12704  ;;  %v9274_v49 = vadd.f32 0.5, %v9050_v35 }
 0x682   :  { %v11261_v41 = vpop.f32.mrf.mxu1  ;;  %v9275_v52 = vadd.f32 0.5, %v9051_v5  ;;  %12718 = vtanh.f32 %v8631_v24  ;;  %v9057_v28 = vmul.f32 0.5, %v12705_v33  ;;  %v8637_v8 = vmul.f32 0.5, %v8090_v9 }
 0x683   :  { %10119 = vst [vmem:[%s17812_s10 + $0x2cc] sm:$0xff] %v11107_v45  ;;  %v8092_v48 = vadd.f32 %v8091_v12, %v7899_v56  ;;  %v11150_v46 = vpop.f32.mrf.mxu0 }
 0x684   :  { %v11262_v53 = vpop.f32.mrf.mxu1  ;;  %v12707_v42 = vpop.eup %12706  ;;  %v11111_v32 = vpack.c.bf16 %v9275_v52, %v9274_v49  ;;  %v11151_v58 = vadd.f32 %v11150_v46, %v11149_v19  ;;  %12720 = vtanh.f32 %v8637_v8  ;;  %v9281_v18 = vadd.f32 0.5, %v9057_v28 }
 0x685   :  { %v12709_v0 = vpop.eup %12708  ;;  %v9058_v22 = vmul.f32 0.5, %v12707_v42  ;;  %v8638_v6 = vmul.f32 0.5, %v8092_v48  ;;  %v11152_v29 = vpop.f32.mrf.mxu0  ;;  %v11263_v50 = vadd.f32 %v11262_v53, %v11261_v41 }
 0x686   :  { %v11264_v30 = vpop.f32.mrf.mxu1  ;;  %10123 = vst [vmem:[%s17812_s10 + $0x2e8] sm:$0xff] %v11111_v32  ;;  %v9064_v40 = vmul.f32 0.5, %v12709_v0  ;;  %v8129_v2 = vadd.f32 %v11151_v58, %v17618_v26 }
 0x687   :  { %v12711_v61 = vpop.eup %12710  ;;  %v9282_v4 = vadd.f32 0.5, %v9058_v22  ;;  %12722 = vtanh.f32 %v8638_v6  ;;  %v11153_v14 = vpop.f32.mrf.mxu0 }
 0x688   :  { %v11265_v13 = vpop.f32.mrf.mxu1  ;;  %v9065_v59 = vmul.f32 0.5, %v12711_v61  ;;  %v8290_v54 = vadd.f32 %v11263_v50, %v8129_v2  ;;  %v11154_v43 = vadd.f32 %v11153_v14, %v11152_v29  ;;  %v9288_v17 = vadd.f32 0.5, %v9064_v40 }
 0x689   :  { %v11115_v11 = vpack.c.bf16 %v9282_v4, %v9281_v18  ;;  %v11155_v57 = vpop.f32.mrf.mxu0  ;;  %v12713_v1 = vpop.eup %12712  ;;  %v11266_v63 = vadd.f32 %v11265_v13, %v11264_v30 }
 0x68a   :  { %v11267_v3 = vpop.f32.mrf.mxu1  ;;  %v9289_v36 = vadd.f32 0.5, %v9065_v59  ;;  %v8422_v34 = vmul.f32 0.5, %v8290_v54  ;;  %v8132_v55 = vadd.f32 %v11154_v43, %v17618_v26  ;;  %v9071_v31 = vmul.f32 0.5, %v12713_v1 }
 0x68b   :  { %10127 = vst [vmem:[%s17812_s10 + $0x304] sm:$0xff] %v11115_v11  ;;  %v11156_v60 = vpop.f32.mrf.mxu0 }
 0x68c   :  { %v11268_v47 = vpop.f32.mrf.mxu1  ;;  %v12715_v37 = vpop.eup %12714  ;;  %v11119_v23 = vpack.c.bf16 %v9289_v36, %v9288_v17  ;;  %12724 = vtanh.f32 %v8422_v34  ;;  %v8293_v16 = vadd.f32 %v11266_v63, %v8132_v55  ;;  %v11157_v39 = vadd.f32 %v11156_v60, %v11155_v57 }
 0x68d   :  { %v12717_v38 = vpop.eup %12716  ;;  %v9072_v51 = vmul.f32 0.5, %v12715_v37  ;;  %v11158_v10 = vpop.f32.mrf.mxu0  ;;  %v11269_v44 = vadd.f32 %v11268_v47, %v11267_v3  ;;  %v9295_v21 = vadd.f32 0.5, %v9071_v31 }
 0x68e   :  { %v11270_v35 = vpop.f32.mrf.mxu1  ;;  %10131 = vst [vmem:[%s17812_s10 + $0x320] sm:$0xff] %v11119_v23  ;;  %v9078_v25 = vmul.f32 0.5, %v12717_v38  ;;  %v8429_v7 = vmul.f32 0.5, %v8293_v16  ;;  %v8137_v27 = vadd.f32 %v11157_v39, %v17618_v26 }
 0x68f   :  { %v12719_v15 = vpop.eup %12718  ;;  %v9296_v62 = vadd.f32 0.5, %v9072_v51  ;;  %v11159_v12 = vpop.f32.mrf.mxu0 }
 0x690   :  { %v11271_v5 = vpop.f32.mrf.mxu1  ;;  %v9079_v24 = vmul.f32 0.5, %v12719_v15  ;;  %12726 = vtanh.f32 %v8429_v7  ;;  %v8298_v45 = vadd.f32 %v11269_v44, %v8137_v27  ;;  %v11160_v56 = vadd.f32 %v11159_v12, %v11158_v10 }
 0x691   :  { %v11123_v9 = vpack.c.bf16 %v9296_v62, %v9295_v21  ;;  %v11161_v19 = vpop.f32.mrf.mxu0  ;;  %v12721_v33 = vpop.eup %12720  ;;  %v9302_v49 = vadd.f32 0.5, %v9078_v25  ;;  %v11272_v48 = vadd.f32 %v11271_v5, %v11270_v35 }
 0x692   :  { %v11273_v41 = vpop.f32.mrf.mxu1  ;;  %v9303_v52 = vadd.f32 0.5, %v9079_v24  ;;  %v8436_v20 = vmul.f32 0.5, %v8298_v45  ;;  %v9085_v28 = vmul.f32 0.5, %v12721_v33  ;;  %v8140_v8 = vadd.f32 %v11160_v56, %v17618_v26 }
 0x693   :  { %10135 = vst [vmem:[%s17812_s10 + $0x33c] sm:$0xff] %v11123_v9  ;;  %v11162_v46 = vpop.f32.mrf.mxu0 }
 0x694   :  { %v11274_v53 = vpop.f32.mrf.mxu1  ;;  %v12723_v42 = vpop.eup %12722  ;;  %v11127_v32 = vpack.c.bf16 %v9303_v52, %v9302_v49  ;;  %12728 = vtanh.f32 %v8436_v20  ;;  %v11163_v58 = vadd.f32 %v11162_v46, %v11161_v19  ;;  %v8301_v22 = vadd.f32 %v11272_v48, %v8140_v8 }
 0x695   :  { %v9086_v0 = vmul.f32 0.5, %v12723_v42  ;;  %v11164_v6 = vpop.f32.mrf.mxu0  ;;  %v11275_v40 = vadd.f32 %v11274_v53, %v11273_v41  ;;  %v9309_v2 = vadd.f32 0.5, %v9085_v28 }
 0x696   :  { %v11276_v29 = vpop.f32.mrf.mxu1  ;;  %10139 = vst [vmem:[%s17812_s10 + $0x358] sm:$0xff] %v11127_v32  ;;  %v8145_v30 = vadd.f32 %v11163_v58, %v17618_v26  ;;  %v8443_v61 = vmul.f32 0.5, %v8301_v22 }
 0x697   :  { %v9310_v50 = vadd.f32 0.5, %v9086_v0  ;;  %v11165_v18 = vpop.f32.mrf.mxu0 }
 0x698   :  { %v11277_v4 = vpop.f32.mrf.mxu1  ;;  %v8306_v14 = vadd.f32 %v11275_v40, %v8145_v30  ;;  %v11166_v13 = vadd.f32 %v11165_v18, %v11164_v6  ;;  %12730 = vtanh.f32 %v8443_v61 }
 0x699   :  { %v12725_v59 = vpop.eup %12724  ;;  %v11131_v54 = vpack.c.bf16 %v9310_v50, %v9309_v2  ;;  %v11167_v43 = vpop.f32.mrf.mxu0  ;;  %v11278_v1 = vadd.f32 %v11277_v4, %v11276_v29 }
 0x69a   :  { %v11279_v11 = vpop.f32.mrf.mxu1  ;;  %v8870_v17 = vmul.f32 0.5, %v12725_v59  ;;  %v8450_v57 = vmul.f32 0.5, %v8306_v14  ;;  %v8148_v3 = vadd.f32 %v11166_v13, %v17618_v26 }
 0x69b   :  { %10143 = vst [vmem:[%s17812_s10 + $0x374] sm:$0xff] %v11131_v54  ;;  %v11168_v36 = vpop.f32.mrf.mxu0 }
 0x69c   :  { %v11280_v34 = vpop.f32.mrf.mxu1  ;;  %v9094_v55 = vadd.f32 0.5, %v8870_v17  ;;  %12732 = vtanh.f32 %v8450_v57  ;;  %v8309_v63 = vadd.f32 %v11278_v1, %v8148_v3  ;;  %v11169_v31 = vadd.f32 %v11168_v36, %v11167_v43 }
 0x69d   :  { %v12727_v60 = vpop.eup %12726  ;;  %v11281_v47 = vadd.f32 %v11280_v34, %v11279_v11  ;;  %v11170_v37 = vpop.f32.mrf.mxu0 }
 0x69e   :  { %v11282_v23 = vpop.f32.mrf.mxu1  ;;  %v11008_v16 = vpack.c.bf16 %v9094_v55, %v9094_v55  ;;  %v8877_v39 = vmul.f32 0.5, %v12727_v60  ;;  %v8457_v38 = vmul.f32 0.5, %v8309_v63  ;;  %v8153_v51 = vadd.f32 %v11169_v31, %v17618_v26 }
 0x69f   :  { %v11171_v10 = vpop.f32.mrf.mxu0 }
 0x6a0   :  { %v11283_v35 = vpop.f32.mrf.mxu1  ;;  %10020 = vst.msk [vmem:[%s17812_s10 + $0x18] sm:$0xf] %vm10019_vm1, %v11008_v16  ;;  %v9101_v25 = vadd.f32 0.5, %v8877_v39  ;;  %12734 = vtanh.f32 %v8457_v38  ;;  %v8314_v7 = vadd.f32 %v11281_v47, %v8153_v51  ;;  %v11172_v27 = vadd.f32 %v11171_v10, %v11170_v37 }
 0x6a1   :  { %v12729_v44 = vpop.eup %12728  ;;  %v11284_v15 = vadd.f32 %v11283_v35, %v11282_v23  ;;  %v11173_v21 = vpop.f32.mrf.mxu0 }
 0x6a2   :  { %v11285_v62 = vpop.f32.mrf.mxu1  ;;  %v11012_v12 = vpack.c.bf16 %v9101_v25, %v9101_v25  ;;  %v8884_v5 = vmul.f32 0.5, %v12729_v44  ;;  %v8464_v24 = vmul.f32 0.5, %v8314_v7  ;;  %v8156_v45 = vadd.f32 %v11172_v27, %v17618_v26 }
 0x6a3   :  { %v11174_v9 = vpop.f32.mrf.mxu0 }
 0x6a4   :  { %v11286_v56 = vpop.f32.mrf.mxu1  ;;  %10024 = vst.msk [vmem:[%s17812_s10 + $0x34] sm:$0xf] %vm10019_vm1, %v11012_v12  ;;  %v9108_v19 = vadd.f32 0.5, %v8884_v5  ;;  %12736 = vtanh.f32 %v8464_v24  ;;  %v8317_v41 = vadd.f32 %v11284_v15, %v8156_v45  ;;  %v11175_v33 = vadd.f32 %v11174_v9, %v11173_v21 }
 0x6a5   :  { %v11176_v49 = vpop.f32.mrf.mxu0  ;;  %v12731_v20 = vpop.eup %12730  ;;  %v11287_v46 = vadd.f32 %v11286_v56, %v11285_v62 }
 0x6a6   :  { %v11288_v52 = vpop.f32.mrf.mxu1  ;;  %v11016_v28 = vpack.c.bf16 %v9108_v19, %v9108_v19  ;;  %v8471_v8 = vmul.f32 0.5, %v8317_v41  ;;  %v8161_v48 = vadd.f32 %v11175_v33, %v17618_v26  ;;  %v8891_v53 = vmul.f32 0.5, %v12731_v20 }
 0x6a7   :  { %v11177_v42 = vpop.f32.mrf.mxu0 }
 0x6a8   :  { %v11289_v32 = vpop.f32.mrf.mxu1  ;;  %10028 = vst.msk [vmem:[%s17812_s10 + $0x50] sm:$0xf] %vm10019_vm1, %v11016_v28  ;;  %12738 = vtanh.f32 %v8471_v8  ;;  %v8322_v58 = vadd.f32 %v11287_v46, %v8161_v48  ;;  %v11178_v0 = vadd.f32 %v11177_v42, %v11176_v49  ;;  %v9115_v6 = vadd.f32 0.5, %v8891_v53 }
 0x6a9   :  { %v12733_v22 = vpop.eup %12732  ;;  %v11179_v29 = vpop.f32.mrf.mxu0  ;;  %v11290_v61 = vadd.f32 %v11289_v32, %v11288_v52 }
 0x6aa   :  { %v11291_v30 = vpop.f32.mrf.mxu1  ;;  %v8898_v40 = vmul.f32 0.5, %v12733_v22  ;;  %v8478_v2 = vmul.f32 0.5, %v8322_v58  ;;  %v8164_v50 = vadd.f32 %v11178_v0, %v17618_v26  ;;  %v11020_v18 = vpack.c.bf16 %v9115_v6, %v9115_v6 }
 0x6ab   :  { %v11180_v4 = vpop.f32.mrf.mxu0 }
 0x6ac   :  { %v11292_v14 = vpop.f32.mrf.mxu1  ;;  %v9122_v13 = vadd.f32 0.5, %v8898_v40  ;;  %12740 = vtanh.f32 %v8478_v2  ;;  %v8325_v59 = vadd.f32 %v11290_v61, %v8164_v50  ;;  %v11181_v54 = vadd.f32 %v11180_v4, %v11179_v29  ;;  %10032 = vst.msk [vmem:[%s17812_s10 + $0x6c] sm:$0xf] %vm10019_vm1, %v11020_v18 }
 0x6ad   :  { %v12735_v43 = vpop.eup %12734  ;;  %v11293_v11 = vadd.f32 %v11292_v14, %v11291_v30  ;;  %v11182_v17 = vpop.f32.mrf.mxu0 }
 0x6ae   :  { %v11294_v57 = vpop.f32.mrf.mxu1  ;;  %v11024_v3 = vpack.c.bf16 %v9122_v13, %v9122_v13  ;;  %v8905_v1 = vmul.f32 0.5, %v12735_v43  ;;  %v8485_v36 = vmul.f32 0.5, %v8325_v59  ;;  %v8169_v34 = vadd.f32 %v11181_v54, %v17618_v26 }
 0x6af   :  { %v11183_v55 = vpop.f32.mrf.mxu0 }
 0x6b0   :  { %v11295_v63 = vpop.f32.mrf.mxu1  ;;  %10036 = vst.msk [vmem:[%s17812_s10 + $0x88] sm:$0xf] %vm10019_vm1, %v11024_v3  ;;  %v9129_v31 = vadd.f32 0.5, %v8905_v1  ;;  %12742 = vtanh.f32 %v8485_v36  ;;  %v8330_v60 = vadd.f32 %v11293_v11, %v8169_v34  ;;  %v11184_v47 = vadd.f32 %v11183_v55, %v11182_v17 }
 0x6b1   :  { %v12737_v37 = vpop.eup %12736  ;;  %v11296_v23 = vadd.f32 %v11295_v63, %v11294_v57  ;;  %v11185_v16 = vpop.f32.mrf.mxu0 }
 0x6b2   :  { %v11297_v39 = vpop.f32.mrf.mxu1  ;;  %v11028_v38 = vpack.c.bf16 %v9129_v31, %v9129_v31  ;;  %v8912_v51 = vmul.f32 0.5, %v12737_v37  ;;  %v8492_v10 = vmul.f32 0.5, %v8330_v60  ;;  %v8172_v35 = vadd.f32 %v11184_v47, %v17618_v26 }
 0x6b3   :  { %v11186_v25 = vpop.f32.mrf.mxu0 }
 0x6b4   :  { %v11298_v7 = vpop.f32.mrf.mxu1  ;;  %10040 = vst.msk [vmem:[%s17812_s10 + $0xa4] sm:$0xf] %vm10019_vm1, %v11028_v38  ;;  %v9136_v27 = vadd.f32 0.5, %v8912_v51  ;;  %12744 = vtanh.f32 %v8492_v10  ;;  %v8333_v44 = vadd.f32 %v11296_v23, %v8172_v35  ;;  %v11187_v15 = vadd.f32 %v11186_v25, %v11185_v16 }
 0x6b5   :  { %v12739_v21 = vpop.eup %12738  ;;  %v11299_v62 = vadd.f32 %v11298_v7, %v11297_v39  ;;  %v11188_v12 = vpop.f32.mrf.mxu0 }
 0x6b6   :  { %v11300_v5 = vpop.f32.mrf.mxu1  ;;  %v11032_v24 = vpack.c.bf16 %v9136_v27, %v9136_v27  ;;  %v8919_v45 = vmul.f32 0.5, %v12739_v21  ;;  %v8499_v9 = vmul.f32 0.5, %v8333_v44  ;;  %v8177_v56 = vadd.f32 %v11187_v15, %v17618_v26 }
 0x6b7   :  { %v11189_v19 = vpop.f32.mrf.mxu0 }
 0x6b8   :  { %v11301_v41 = vpop.f32.mrf.mxu1  ;;  %10044 = vst.msk [vmem:[%s17812_s10 + $0xc0] sm:$0xf] %vm10019_vm1, %v11032_v24  ;;  %v9143_v33 = vadd.f32 0.5, %v8919_v45  ;;  %12746 = vtanh.f32 %v8499_v9  ;;  %v8338_v49 = vadd.f32 %v11299_v62, %v8177_v56  ;;  %v11190_v52 = vadd.f32 %v11189_v19, %v11188_v12 }
 0x6b9   :  { %v12741_v20 = vpop.eup %12740  ;;  %v11302_v28 = vadd.f32 %v11301_v41, %v11300_v5  ;;  %v11191_v8 = vpop.f32.mrf.mxu0 }
 0x6ba   :  { %v11303_v48 = vpop.f32.mrf.mxu1  ;;  %v11036_v46 = vpack.c.bf16 %v9143_v33, %v9143_v33  ;;  %v8926_v53 = vmul.f32 0.5, %v12741_v20  ;;  %v8506_v42 = vmul.f32 0.5, %v8338_v49  ;;  %v8180_v32 = vadd.f32 %v11190_v52, %v17618_v26 }
 0x6bb   :  { %v11192_v58 = vpop.f32.mrf.mxu0 }
 0x6bc   :  { %v11304_v0 = vpop.f32.mrf.mxu1  ;;  %10048 = vst.msk [vmem:[%s17812_s10 + $0xdc] sm:$0xf] %vm10019_vm1, %v11036_v46  ;;  %v9150_v22 = vadd.f32 0.5, %v8926_v53  ;;  %12748 = vtanh.f32 %v8506_v42  ;;  %v8341_v6 = vadd.f32 %v11302_v28, %v8180_v32  ;;  %v11193_v29 = vadd.f32 %v11192_v58, %v11191_v8 }
 0x6bd   :  { %v12743_v30 = vpop.eup %12742  ;;  %v11305_v40 = vadd.f32 %v11304_v0, %v11303_v48  ;;  %v11194_v2 = vpop.f32.mrf.mxu0 }
 0x6be   :  { %v11306_v50 = vpop.f32.mrf.mxu1  ;;  %v11040_v61 = vpack.c.bf16 %v9150_v22, %v9150_v22  ;;  %v8933_v18 = vmul.f32 0.5, %v12743_v30  ;;  %v8513_v4 = vmul.f32 0.5, %v8341_v6  ;;  %v8185_v14 = vadd.f32 %v11193_v29, %v17618_v26 }
 0x6bf   :  { %v11195_v13 = vpop.f32.mrf.mxu0 }
 0x6c0   :  { %v11307_v59 = vpop.f32.mrf.mxu1  ;;  %10052 = vst.msk [vmem:[%s17812_s10 + $0xf8] sm:$0xf] %vm10019_vm1, %v11040_v61  ;;  %v9157_v54 = vadd.f32 0.5, %v8933_v18  ;;  %12750 = vtanh.f32 %v8513_v4  ;;  %v8346_v43 = vadd.f32 %v11305_v40, %v8185_v14  ;;  %v11196_v11 = vadd.f32 %v11195_v13, %v11194_v2 }
 0x6c1   :  { %v12745_v17 = vpop.eup %12744  ;;  %v11308_v57 = vadd.f32 %v11307_v59, %v11306_v50  ;;  %v11197_v3 = vpop.f32.mrf.mxu0 }
 0x6c2   :  { %v11309_v1 = vpop.f32.mrf.mxu1  ;;  %v11044_v36 = vpack.c.bf16 %v9157_v54, %v9157_v54  ;;  %v8940_v34 = vmul.f32 0.5, %v12745_v17  ;;  %v8520_v55 = vmul.f32 0.5, %v8346_v43  ;;  %v8188_v63 = vadd.f32 %v11196_v11, %v17618_v26 }
 0x6c3   :  { %v11198_v31 = vpop.f32.mrf.mxu0 }
 0x6c4   :  { %v11310_v60 = vpop.f32.mrf.mxu1  ;;  %10056 = vst.msk [vmem:[%s17812_s10 + $0x114] sm:$0xf] %vm10019_vm1, %v11044_v36  ;;  %v9164_v47 = vadd.f32 0.5, %v8940_v34  ;;  %12752 = vtanh.f32 %v8520_v55  ;;  %v8349_v37 = vadd.f32 %v11308_v57, %v8188_v63  ;;  %v11199_v23 = vadd.f32 %v11198_v31, %v11197_v3 }
 0x6c5   :  { %v12747_v16 = vpop.eup %12746  ;;  %v11311_v39 = vadd.f32 %v11310_v60, %v11309_v1  ;;  %v11200_v38 = vpop.f32.mrf.mxu0 }
 0x6c6   :  { %v11312_v51 = vpop.f32.mrf.mxu1  ;;  %v11048_v10 = vpack.c.bf16 %v9164_v47, %v9164_v47  ;;  %v8947_v35 = vmul.f32 0.5, %v12747_v16  ;;  %v8527_v25 = vmul.f32 0.5, %v8349_v37  ;;  %v8193_v7 = vadd.f32 %v11199_v23, %v17618_v26 }
 0x6c7   :  { %v11201_v27 = vpop.f32.mrf.mxu0 }
 0x6c8   :  { %v11313_v44 = vpop.f32.mrf.mxu1  ;;  %10060 = vst.msk [vmem:[%s17812_s10 + $0x130] sm:$0xf] %vm10019_vm1, %v11048_v10  ;;  %v9171_v15 = vadd.f32 0.5, %v8947_v35  ;;  %12754 = vtanh.f32 %v8527_v25  ;;  %v8354_v21 = vadd.f32 %v11311_v39, %v8193_v7  ;;  %v11202_v62 = vadd.f32 %v11201_v27, %v11200_v38 }
 0x6c9   :  { %v12749_v12 = vpop.eup %12748  ;;  %v11314_v5 = vadd.f32 %v11313_v44, %v11312_v51  ;;  %v11203_v24 = vpop.f32.mrf.mxu0 }
 0x6ca   :  { %v11315_v45 = vpop.f32.mrf.mxu1  ;;  %v11052_v9 = vpack.c.bf16 %v9171_v15, %v9171_v15  ;;  %v8954_v56 = vmul.f32 0.5, %v12749_v12  ;;  %v8534_v19 = vmul.f32 0.5, %v8354_v21  ;;  %v8196_v41 = vadd.f32 %v11202_v62, %v17618_v26 }
 0x6cb   :  { %v11204_v33 = vpop.f32.mrf.mxu0 }
 0x6cc   :  { %v11316_v49 = vpop.f32.mrf.mxu1  ;;  %10064 = vst.msk [vmem:[%s17812_s10 + $0x14c] sm:$0xf] %vm10019_vm1, %v11052_v9  ;;  %v9178_v52 = vadd.f32 0.5, %v8954_v56  ;;  %12756 = vtanh.f32 %v8534_v19  ;;  %v8357_v20 = vadd.f32 %v11314_v5, %v8196_v41  ;;  %v11205_v28 = vadd.f32 %v11204_v33, %v11203_v24 }
 0x6cd   :  { %v12751_v8 = vpop.eup %12750  ;;  %v11317_v48 = vadd.f32 %v11316_v49, %v11315_v45  ;;  %v11206_v46 = vpop.f32.mrf.mxu0 }
 0x6ce   :  { %v11318_v53 = vpop.f32.mrf.mxu1  ;;  %v11056_v42 = vpack.c.bf16 %v9178_v52, %v9178_v52  ;;  %v8961_v32 = vmul.f32 0.5, %v12751_v8  ;;  %v8541_v58 = vmul.f32 0.5, %v8357_v20  ;;  %v8201_v0 = vadd.f32 %v11205_v28, %v17618_v26 }
 0x6cf   :  { %v11207_v22 = vpop.f32.mrf.mxu0 }
 0x6d0   :  { %v11319_v6 = vpop.f32.mrf.mxu1  ;;  %10068 = vst.msk [vmem:[%s17812_s10 + $0x168] sm:$0xf] %vm10019_vm1, %v11056_v42  ;;  %v9185_v29 = vadd.f32 0.5, %v8961_v32  ;;  %12758 = vtanh.f32 %v8541_v58  ;;  %v8362_v30 = vadd.f32 %v11317_v48, %v8201_v0  ;;  %v11208_v40 = vadd.f32 %v11207_v22, %v11206_v46 }
 0x6d1   :  { %v12753_v2 = vpop.eup %12752  ;;  %v11320_v50 = vadd.f32 %v11319_v6, %v11318_v53  ;;  %v11209_v61 = vpop.f32.mrf.mxu0 }
 0x6d2   :  { %v11321_v18 = vpop.f32.mrf.mxu1  ;;  %v11060_v4 = vpack.c.bf16 %v9185_v29, %v9185_v29  ;;  %v8968_v14 = vmul.f32 0.5, %v12753_v2  ;;  %v8548_v13 = vmul.f32 0.5, %v8362_v30  ;;  %v8204_v59 = vadd.f32 %v11208_v40, %v17618_v26 }
 0x6d3   :  { %v11210_v54 = vpop.f32.mrf.mxu0 }
 0x6d4   :  { %v11322_v43 = vpop.f32.mrf.mxu1  ;;  %10072 = vst.msk [vmem:[%s17812_s10 + $0x184] sm:$0xf] %vm10019_vm1, %v11060_v4  ;;  %v9192_v11 = vadd.f32 0.5, %v8968_v14  ;;  %12760 = vtanh.f32 %v8548_v13  ;;  %v8365_v17 = vadd.f32 %v11320_v50, %v8204_v59  ;;  %v11211_v57 = vadd.f32 %v11210_v54, %v11209_v61 }
 0x6d5   :  { %v12755_v3 = vpop.eup %12754  ;;  %v11323_v1 = vadd.f32 %v11322_v43, %v11321_v18  ;;  %v11212_v36 = vpop.f32.mrf.mxu0 }
 0x6d6   :  { %v11324_v34 = vpop.f32.mrf.mxu1  ;;  %v11064_v55 = vpack.c.bf16 %v9192_v11, %v9192_v11  ;;  %v8975_v63 = vmul.f32 0.5, %v12755_v3  ;;  %v8555_v31 = vmul.f32 0.5, %v8365_v17  ;;  %v8209_v60 = vadd.f32 %v11211_v57, %v17618_v26 }
 0x6d7   :  { %v11213_v47 = vpop.f32.mrf.mxu0 }
 0x6d8   :  { %v11325_v37 = vpop.f32.mrf.mxu1  ;;  %10076 = vst.msk [vmem:[%s17812_s10 + $0x1a0] sm:$0xf] %vm10019_vm1, %v11064_v55  ;;  %v9199_v23 = vadd.f32 0.5, %v8975_v63  ;;  %12762 = vtanh.f32 %v8555_v31  ;;  %v8370_v16 = vadd.f32 %v11323_v1, %v8209_v60  ;;  %v11214_v39 = vadd.f32 %v11213_v47, %v11212_v36 }
 0x6d9   :  { %v12757_v38 = vpop.eup %12756  ;;  %v11326_v51 = vadd.f32 %v11325_v37, %v11324_v34  ;;  %v11215_v10 = vpop.f32.mrf.mxu0 }
 0x6da   :  { %v11327_v35 = vpop.f32.mrf.mxu1  ;;  %v11068_v25 = vpack.c.bf16 %v9199_v23, %v9199_v23  ;;  %v8982_v7 = vmul.f32 0.5, %v12757_v38  ;;  %v8562_v27 = vmul.f32 0.5, %v8370_v16  ;;  %v8212_v44 = vadd.f32 %v11214_v39, %v17618_v26 }
 0x6db   :  { %v11216_v15 = vpop.f32.mrf.mxu0 }
 0x6dc   :  { %v11328_v21 = vpop.f32.mrf.mxu1  ;;  %10080 = vst.msk [vmem:[%s17812_s10 + $0x1bc] sm:$0xf] %vm10019_vm1, %v11068_v25  ;;  %v9206_v62 = vadd.f32 0.5, %v8982_v7  ;;  %12764 = vtanh.f32 %v8562_v27  ;;  %v8373_v12 = vadd.f32 %v11326_v51, %v8212_v44  ;;  %v11217_v5 = vadd.f32 %v11216_v15, %v11215_v10 }
 0x6dd   :  { %v12759_v24 = vpop.eup %12758  ;;  %v11329_v45 = vadd.f32 %v11328_v21, %v11327_v35  ;;  %v11218_v9 = vpop.f32.mrf.mxu0 }
 0x6de   :  { %v11330_v56 = vpop.f32.mrf.mxu1  ;;  %v11072_v19 = vpack.c.bf16 %v9206_v62, %v9206_v62  ;;  %v8989_v41 = vmul.f32 0.5, %v12759_v24  ;;  %v8569_v33 = vmul.f32 0.5, %v8373_v12  ;;  %v8217_v49 = vadd.f32 %v11217_v5, %v17618_v26 }
 0x6df   :  { %v11219_v52 = vpop.f32.mrf.mxu0 }
 0x6e0   :  { %v11331_v20 = vpop.f32.mrf.mxu1  ;;  %10084 = vst.msk [vmem:[%s17812_s10 + $0x1d8] sm:$0xf] %vm10019_vm1, %v11072_v19  ;;  %v9213_v28 = vadd.f32 0.5, %v8989_v41  ;;  %12766 = vtanh.f32 %v8569_v33  ;;  %v8378_v8 = vadd.f32 %v11329_v45, %v8217_v49  ;;  %v11220_v48 = vadd.f32 %v11219_v52, %v11218_v9 }
 0x6e1   :  { %v12761_v46 = vpop.eup %12760  ;;  %v11332_v53 = vadd.f32 %v11331_v20, %v11330_v56  ;;  %v11221_v42 = vpop.f32.mrf.mxu0 }
 0x6e2   :  { %v11333_v32 = vpop.f32.mrf.mxu1  ;;  %v11076_v58 = vpack.c.bf16 %v9213_v28, %v9213_v28  ;;  %v8996_v0 = vmul.f32 0.5, %v12761_v46  ;;  %v8576_v22 = vmul.f32 0.5, %v8378_v8  ;;  %v8220_v6 = vadd.f32 %v11220_v48, %v17618_v26 }
 0x6e3   :  { %v11222_v29 = vpop.f32.mrf.mxu0 }
 0x6e4   :  { %v11334_v30 = vpop.f32.mrf.mxu1  ;;  %10088 = vst.msk [vmem:[%s17812_s10 + $0x1f4] sm:$0xf] %vm10019_vm1, %v11076_v58  ;;  %v9220_v40 = vadd.f32 0.5, %v8996_v0  ;;  %12768 = vtanh.f32 %v8576_v22  ;;  %v8381_v2 = vadd.f32 %v11332_v53, %v8220_v6  ;;  %v11223_v50 = vadd.f32 %v11222_v29, %v11221_v42 }
 0x6e5   :  { %v12763_v61 = vpop.eup %12762  ;;  %v11335_v18 = vadd.f32 %v11334_v30, %v11333_v32  ;;  %v11224_v4 = vpop.f32.mrf.mxu0 }
 0x6e6   :  { %v11336_v14 = vpop.f32.mrf.mxu1  ;;  %v11080_v13 = vpack.c.bf16 %v9220_v40, %v9220_v40  ;;  %v9003_v59 = vmul.f32 0.5, %v12763_v61  ;;  %v8583_v54 = vmul.f32 0.5, %v8381_v2  ;;  %v8225_v43 = vadd.f32 %v11223_v50, %v17618_v26 }
 0x6e7   :  { %v11225_v11 = vpop.f32.mrf.mxu0 }
 0x6e8   :  { %v11337_v17 = vpop.f32.mrf.mxu1  ;;  %10092 = vst.msk [vmem:[%s17812_s10 + $0x210] sm:$0xf] %vm10019_vm1, %v11080_v13  ;;  %v9227_v57 = vadd.f32 0.5, %v9003_v59  ;;  %12770 = vtanh.f32 %v8583_v54  ;;  %v8386_v3 = vadd.f32 %v11335_v18, %v8225_v43  ;;  %v11226_v1 = vadd.f32 %v11225_v11, %v11224_v4 }
 0x6e9   :  { %v12765_v36 = vpop.eup %12764  ;;  %v11338_v34 = vadd.f32 %v11337_v17, %v11336_v14  ;;  %v11227_v55 = vpop.f32.mrf.mxu0 }
 0x6ea   :  { %v11339_v63 = vpop.f32.mrf.mxu1  ;;  %v11084_v31 = vpack.c.bf16 %v9227_v57, %v9227_v57  ;;  %v9010_v60 = vmul.f32 0.5, %v12765_v36  ;;  %v8590_v47 = vmul.f32 0.5, %v8386_v3  ;;  %v8228_v37 = vadd.f32 %v11226_v1, %v17618_v26 }
 0x6eb   :  { %v11228_v23 = vpop.f32.mrf.mxu0 }
 0x6ec   :  { %v11340_v16 = vpop.f32.mrf.mxu1  ;;  %10096 = vst.msk [vmem:[%s17812_s10 + $0x22c] sm:$0xf] %vm10019_vm1, %v11084_v31  ;;  %v9234_v39 = vadd.f32 0.5, %v9010_v60  ;;  %12772 = vtanh.f32 %v8590_v47  ;;  %v8389_v38 = vadd.f32 %v11338_v34, %v8228_v37  ;;  %v11229_v51 = vadd.f32 %v11228_v23, %v11227_v55 }
 0x6ed   :  { %v12767_v10 = vpop.eup %12766  ;;  %v11341_v35 = vadd.f32 %v11340_v16, %v11339_v63  ;;  %v11230_v25 = vpop.f32.mrf.mxu0 }
 0x6ee   :  { %v11342_v7 = vpop.f32.mrf.mxu1  ;;  %v11088_v27 = vpack.c.bf16 %v9234_v39, %v9234_v39  ;;  %v9017_v44 = vmul.f32 0.5, %v12767_v10  ;;  %v8597_v15 = vmul.f32 0.5, %v8389_v38  ;;  %v8233_v21 = vadd.f32 %v11229_v51, %v17618_v26 }
 0x6ef   :  { %v11231_v62 = vpop.f32.mrf.mxu0 }
 0x6f0   :  { %v11343_v12 = vpop.f32.mrf.mxu1  ;;  %10100 = vst.msk [vmem:[%s17812_s10 + $0x248] sm:$0xf] %vm10019_vm1, %v11088_v27  ;;  %v9241_v5 = vadd.f32 0.5, %v9017_v44  ;;  %12774 = vtanh.f32 %v8597_v15  ;;  %v8394_v24 = vadd.f32 %v11341_v35, %v8233_v21  ;;  %v11232_v45 = vadd.f32 %v11231_v62, %v11230_v25 }
 0x6f1   :  { %v12769_v9 = vpop.eup %12768  ;;  %v11344_v56 = vadd.f32 %v11343_v12, %v11342_v7  ;;  %v11233_v19 = vpop.f32.mrf.mxu0 }
 0x6f2   :  { %v11345_v41 = vpop.f32.mrf.mxu1  ;;  %v11092_v33 = vpack.c.bf16 %v9241_v5, %v9241_v5  ;;  %v9024_v49 = vmul.f32 0.5, %v12769_v9  ;;  %v8604_v52 = vmul.f32 0.5, %v8394_v24  ;;  %v8236_v20 = vadd.f32 %v11232_v45, %v17618_v26 }
 0x6f3   :  { %v11234_v28 = vpop.f32.mrf.mxu0 }
 0x6f4   :  { %v11346_v8 = vpop.f32.mrf.mxu1  ;;  %10104 = vst.msk [vmem:[%s17812_s10 + $0x264] sm:$0xf] %vm10019_vm1, %v11092_v33  ;;  %v9248_v48 = vadd.f32 0.5, %v9024_v49  ;;  %12776 = vtanh.f32 %v8604_v52  ;;  %v8397_v46 = vadd.f32 %v11344_v56, %v8236_v20  ;;  %v11235_v53 = vadd.f32 %v11234_v28, %v11233_v19 }
 0x6f5   :  { %v12771_v42 = vpop.eup %12770  ;;  %v11347_v32 = vadd.f32 %v11346_v8, %v11345_v41  ;;  %v11236_v58 = vpop.f32.mrf.mxu0 }
 0x6f6   :  { %v11348_v0 = vpop.f32.mrf.mxu1  ;;  %v11096_v22 = vpack.c.bf16 %v9248_v48, %v9248_v48  ;;  %v9031_v6 = vmul.f32 0.5, %v12771_v42  ;;  %v8611_v29 = vmul.f32 0.5, %v8397_v46  ;;  %v8241_v30 = vadd.f32 %v11235_v53, %v17618_v26 }
 0x6f7   :  { %v11237_v40 = vpop.f32.mrf.mxu0 }
 0x6f8   :  { %v11349_v2 = vpop.f32.mrf.mxu1  ;;  %10108 = vst.msk [vmem:[%s17812_s10 + $0x280] sm:$0xf] %vm10019_vm1, %v11096_v22  ;;  %v9255_v50 = vadd.f32 0.5, %v9031_v6  ;;  %12778 = vtanh.f32 %v8611_v29  ;;  %v8402_v61 = vadd.f32 %v11347_v32, %v8241_v30  ;;  %v11238_v18 = vadd.f32 %v11237_v40, %v11236_v58 }
 0x6f9   :  { %v12773_v4 = vpop.eup %12772  ;;  %v11350_v14 = vadd.f32 %v11349_v2, %v11348_v0  ;;  %v11239_v13 = vpop.f32.mrf.mxu0 }
 0x6fa   :  { %v11351_v59 = vpop.f32.mrf.mxu1  ;;  %v11100_v54 = vpack.c.bf16 %v9255_v50, %v9255_v50  ;;  %v9038_v43 = vmul.f32 0.5, %v12773_v4  ;;  %v8618_v11 = vmul.f32 0.5, %v8402_v61  ;;  %v8244_v17 = vadd.f32 %v11238_v18, %v17618_v26 }
 0x6fb   :  { %v11240_v57 = vpop.f32.mrf.mxu0 }
 0x6fc   :  { %v11352_v3 = vpop.f32.mrf.mxu1  ;;  %10112 = vst.msk [vmem:[%s17812_s10 + $0x29c] sm:$0xf] %vm10019_vm1, %v11100_v54  ;;  %v9262_v1 = vadd.f32 0.5, %v9038_v43  ;;  %12780 = vtanh.f32 %v8618_v11  ;;  %v8405_v36 = vadd.f32 %v11350_v14, %v8244_v17  ;;  %v11241_v34 = vadd.f32 %v11240_v57, %v11239_v13 }
 0x6fd   :  { %v12775_v55 = vpop.eup %12774  ;;  %v11353_v63 = vadd.f32 %v11352_v3, %v11351_v59  ;;  %v11242_v31 = vpop.f32.mrf.mxu0 }
 0x6fe   :  { %v11354_v60 = vpop.f32.mrf.mxu1  ;;  %v11104_v47 = vpack.c.bf16 %v9262_v1, %v9262_v1  ;;  %v9045_v37 = vmul.f32 0.5, %v12775_v55  ;;  %v8625_v23 = vmul.f32 0.5, %v8405_v36  ;;  %v8249_v16 = vadd.f32 %v11241_v34, %v17618_v26 }
 0x6ff   :  { %v11243_v39 = vpop.f32.mrf.mxu0 }
 0x700   :  { %v11355_v38 = vpop.f32.mrf.mxu1  ;;  %10116 = vst.msk [vmem:[%s17812_s10 + $0x2b8] sm:$0xf] %vm10019_vm1, %v11104_v47  ;;  %v9269_v51 = vadd.f32 0.5, %v9045_v37  ;;  %12782 = vtanh.f32 %v8625_v23  ;;  %v8410_v10 = vadd.f32 %v11353_v63, %v8249_v16  ;;  %v11244_v35 = vadd.f32 %v11243_v39, %v11242_v31 }
 0x701   :  { %v12777_v25 = vpop.eup %12776  ;;  %v11356_v7 = vadd.f32 %v11355_v38, %v11354_v60 }
 0x702   :  { %v11108_v27 = vpack.c.bf16 %v9269_v51, %v9269_v51  ;;  %v9052_v44 = vmul.f32 0.5, %v12777_v25  ;;  %v8632_v15 = vmul.f32 0.5, %v8410_v10  ;;  %v8252_v21 = vadd.f32 %v11244_v35, %v17618_v26 }
 0x704   :  { %10120 = vst.msk [vmem:[%s17812_s10 + $0x2d4] sm:$0xf] %vm10019_vm1, %v11108_v27  ;;  %v9276_v62 = vadd.f32 0.5, %v9052_v44  ;;  %12784 = vtanh.f32 %v8632_v15  ;;  %v8413_v12 = vadd.f32 %v11356_v7, %v8252_v21 }
 0x705   :  { %v12779_v5 = vpop.eup %12778 }
 0x706   :  { %v11112_v24 = vpack.c.bf16 %v9276_v62, %v9276_v62  ;;  %v9059_v45 = vmul.f32 0.5, %v12779_v5  ;;  %v8639_v9 = vmul.f32 0.5, %v8413_v12 }
 0x708   :  { %10124 = vst.msk [vmem:[%s17812_s10 + $0x2f0] sm:$0xf] %vm10019_vm1, %v11112_v24  ;;  %v9283_v56 = vadd.f32 0.5, %v9059_v45  ;;  %12786 = vtanh.f32 %v8639_v9 }
 0x709   :  { %v12781_v26 = vpop.eup %12780 }
 0x70a   :  { %v11116_v19 = vpack.c.bf16 %v9283_v56, %v9283_v56  ;;  %v9066_v41 = vmul.f32 0.5, %v12781_v26 }
 0x70c   :  { %10128 = vst.msk [vmem:[%s17812_s10 + $0x30c] sm:$0xf] %vm10019_vm1, %v11116_v19  ;;  %v9290_v33 = vadd.f32 0.5, %v9066_v41 }
 0x70d   :  { %v12783_v49 = vpop.eup %12782 }
 0x70e   :  { %v11120_v52 = vpack.c.bf16 %v9290_v33, %v9290_v33  ;;  %v9073_v20 = vmul.f32 0.5, %v12783_v49 }
 0x710   :  { %10132 = vst.msk [vmem:[%s17812_s10 + $0x328] sm:$0xf] %vm10019_vm1, %v11120_v52  ;;  %v9297_v28 = vadd.f32 0.5, %v9073_v20 }
 0x711   :  { %v12785_v8 = vpop.eup %12784 }
 0x712   :  { %v11124_v48 = vpack.c.bf16 %v9297_v28, %v9297_v28  ;;  %v9080_v46 = vmul.f32 0.5, %v12785_v8 }
 0x714   :  { %10136 = vst.msk [vmem:[%s17812_s10 + $0x344] sm:$0xf] %vm10019_vm1, %v11124_v48  ;;  %v9304_v53 = vadd.f32 0.5, %v9080_v46 }
 0x715   :  { %v12787_v42 = vpop.eup %12786 }
 0x716   :  { %v11128_v32 = vpack.c.bf16 %v9304_v53, %v9304_v53  ;;  %v9087_v58 = vmul.f32 0.5, %v12787_v42 }
 0x718   :  { %10140 = vst.msk [vmem:[%s17812_s10 + $0x360] sm:$0xf] %vm10019_vm1, %v11128_v32  ;;  %v9311_v0 = vadd.f32 0.5, %v9087_v58 }
 0x71a   :  { %v11132_v22 = vpack.c.bf16 %v9311_v0, %v9311_v0 }
 0x71c   :  { %10144 = vst.msk [vmem:[%s17812_s10 + $0x37c] sm:$0xf] %vm10019_vm1, %v11132_v22 }

</bundles_post_ra>
